<compile_context>
chip_gen: v7x
topology: tpu7x:2x2x1
jax: 0.10.0
libtpu: 0.0.40
codegen_flags: <defaults>
</compile_context>

<pallas_src>
import jax
import jax.numpy as jnp
from jax.experimental import pallas as pl
from jax.experimental.pallas import tpu as pltpu

BN_EPS = 1e-5   # PyTorch BatchNorm2d default
LANE = 128


# ------------------------- Pallas kernel ------------------------------------
def _resblock_kernel(x_ref, w1_ref, t1_ref, w2_ref, t2_ref, o_ref, y1p_ref):
    # x_ref  : (1, H+2, Wpad, Cp) bf16  zero-halo'd, channel/width-padded image
    # w1/w2  : (9, Cp, Cp)        bf16  folded (conv * BN-scale) weights per tap
    # t1/t2  : (1, Cp)            f32   folded bias/BN offsets
    # o_ref  : (1, H, W, Cp)      f32
    # y1p_ref: (H+2, Wpad, Cp)    bf16  VMEM intermediate with zero halo ring
    _, H, W, Cp = o_ref.shape
    HW = H * W

    # ---- conv1 (3x3, pad=1) + folded BN1 + ReLU -----------------------------
    # 9-shift decomposition: out = sum_{dy,dx} shift(x, dy, dx) @ W1[dy*3+dx].
    # Partial sums stay in a traced value (vregs / MXU result path) and are
    # only written once.
    acc = None
    for k in range(9):
        dy, dx = divmod(k, 3)
        patch = x_ref[0, dy:dy + H, dx:dx + W, :].reshape(HW, Cp)     # bf16
        d = jnp.dot(patch, w1_ref[k], preferred_element_type=jnp.float32)
        acc = d if acc is None else acc + d
    y1 = jnp.maximum(acc + t1_ref[...], 0.0).astype(jnp.bfloat16)      # (HW, Cp)

    # Stage y1 in VMEM with a zero halo.  Only the halo *ring* is zeroed each
    # step (cheap); the interior is fully overwritten.  Columns beyond W+1 of
    # the interior rows are never read by the conv2 windows.
    _, Wpad, _ = y1p_ref.shape
    zrow = jnp.zeros((1, Wpad, Cp), jnp.bfloat16)
    zcol = jnp.zeros((H, 1, Cp), jnp.bfloat16)
    y1p_ref[0:1, :, :] = zrow                       # top halo row
    y1p_ref[H + 1:H + 2, :, :] = zrow               # bottom halo row
    y1p_ref[1:1 + H, 0:1, :] = zcol                 # left halo column
    y1p_ref[1:1 + H, W + 1:W + 2, :] = zcol         # right halo column
    y1p_ref[1:1 + H, 1:1 + W, :] = y1.reshape(H, W, Cp)

    # ---- conv2 (3x3, pad=1) + folded BN2 + residual + ReLU ------------------
    acc = None
    for k in range(9):
        dy, dx = divmod(k, 3)
        patch = y1p_ref[dy:dy + H, dx:dx + W, :].reshape(HW, Cp)      # bf16
        d = jnp.dot(patch, w2_ref[k], preferred_element_type=jnp.float32)
        acc = d if acc is None else acc + d
    resid = x_ref[0, 1:1 + H, 1:1 + W, :].reshape(HW, Cp).astype(jnp.float32)
    out = jnp.maximum(resid + acc + t2_ref[...], 0.0)
    o_ref[0] = out.reshape(H, W, Cp).astype(o_ref.dtype)


# ------------------------- host-side folding ---------------------------------
def _fold_conv_bn(w_oihw, bias, gamma, beta, mean, var, cp):
    """Fold BN (eval) + conv bias into (9, Cp, Cp) bf16 weights and (1, Cp) f32 offset."""
    c = w_oihw.shape[0]
    scale = (gamma.astype(jnp.float32) *
             jax.lax.rsqrt(var.astype(jnp.float32) + BN_EPS))
    # (Cout, Cin, 3, 3) -> (ky, kx, Cin, Cout) -> (9, Cin, Cout), scaled per Cout
    w = jnp.transpose(w_oihw.astype(jnp.float32), (2, 3, 1, 0)).reshape(9, c, c)
    w = w * scale[None, None, :]
    w_pad = jnp.zeros((9, cp, cp), jnp.float32).at[:, :c, :c].set(w)
    t = (bias.astype(jnp.float32) - mean.astype(jnp.float32)) * scale + beta.astype(jnp.float32)
    t_pad = jnp.zeros((1, cp), jnp.float32).at[0, :c].set(t)
    return w_pad.astype(jnp.bfloat16), t_pad


# ------------------------- wrapper --------------------------------------------
@jax.jit
def residual_block(x_nchw, params):
    N, C, H, W = x_nchw.shape
    Cp = ((C + LANE - 1) // LANE) * LANE
    # Padded width (left halo = 1, right halo >= 1) rounded up to a multiple of
    # 8 sublanes so tiles / stores are sublane-aligned.
    Wpad = ((W + 2 + 7) // 8) * 8

    # NCHW -> NHWC, bf16, zero spatial halo, zero channel pad to a 128-lane slab.
    x_nhwc = jnp.transpose(x_nchw, (0, 2, 3, 1)).astype(jnp.bfloat16)
    x_pad = jnp.pad(x_nhwc, ((0, 0), (1, 1), (1, Wpad - W - 1), (0, Cp - C)))

    w1, t1 = _fold_conv_bn(params["w1"], params["b1"], params["g1"],
                           params["beta1"], params["m1"], params["v1"], Cp)
    w2, t2 = _fold_conv_bn(params["w2"], params["b2"], params["g2"],
                           params["beta2"], params["m2"], params["v2"], Cp)

    # Per-step VMEM footprint (double-buffered pipelined operands + scratch).
    bytes_x = (H + 2) * Wpad * Cp * 2
    bytes_out = H * W * Cp * 4
    bytes_w = 2 * 9 * Cp * Cp * 2
    bytes_t = 2 * Cp * 4
    bytes_y1p = (H + 2) * Wpad * Cp * 2
    vmem_needed = 2 * (bytes_x + bytes_out + bytes_w + bytes_t) + bytes_y1p
    # Generous headroom for Mosaic temporaries; 48 MiB cap is safe on v5e/v6e
    # (128 MiB physical) and v7x (64 MiB physical).
    vmem_limit = int(min(max(4 * vmem_needed, 16 * 1024 * 1024), 48 * 1024 * 1024))

    out_padded = pl.pallas_call(
        _resblock_kernel,
        out_shape=jax.ShapeDtypeStruct((N, H, W, Cp), jnp.float32),
        grid=(N,),
        in_specs=[
            pl.BlockSpec((1, H + 2, Wpad, Cp), lambda n: (n, 0, 0, 0)),  # x (halo)
            # Constant block index across the grid -> Mosaic skips re-fetching
            # these weight/bias slabs after the first step.
            pl.BlockSpec((9, Cp, Cp), lambda n: (0, 0, 0)),              # folded w1
            pl.BlockSpec((1, Cp), lambda n: (0, 0)),                     # folded t1
            pl.BlockSpec((9, Cp, Cp), lambda n: (0, 0, 0)),              # folded w2
            pl.BlockSpec((1, Cp), lambda n: (0, 0)),                     # folded t2
        ],
        out_specs=pl.BlockSpec((1, H, W, Cp), lambda n: (n, 0, 0, 0)),
        scratch_shapes=[
            pltpu.VMEM((H + 2, Wpad, Cp), jnp.bfloat16),   # y1 with zero halo
        ],
        compiler_params=pltpu.CompilerParams(
            dimension_semantics=("parallel",),             # batch sharded across TCs
            vmem_limit_bytes=vmem_limit),
    )(x_pad, w1, t1, w2, t2)

    out = out_padded[..., :C]                    # drop channel padding
    return jnp.transpose(out, (0, 3, 1, 2))      # back to NCHW


# ------------------------- pure-JAX reference (for validation) ---------------
def residual_block_ref(x, params):
    def conv(z, w, b):
        y = jax.lax.conv_general_dilated(
            z, w, (1, 1), ((1, 1), (1, 1)),
            dimension_numbers=("NCHW", "OIHW", "NCHW"))
        return y + b.reshape(1, -1, 1, 1)

    def bn(z, g, beta, m, v):
        s = lambda a: a.reshape(1, -1, 1, 1)
        return (z - s(m)) * (s(g) * jax.lax.rsqrt(s(v) + BN_EPS)) + s(beta)

    h = jax.nn.relu(bn(conv(x, params["w1"], params["b1"]),
                       params["g1"], params["beta1"], params["m1"], params["v1"]))
    h = bn(conv(h, params["w2"], params["b2"]),
           params["g2"], params["beta2"], params["m2"], params["v2"])
    return jax.nn.relu(x + h)


# ------------------------- main ----------------------------------------------
if __name__ == "__main__":
    key = jax.random.PRNGKey(0)
    N, C, H, W = 2, 4, 16, 16
    ks = jax.random.split(key, 13)

    x = jax.random.normal(ks[0], (N, C, H, W), jnp.float32)
    params = dict(
        w1=0.2 * jax.random.normal(ks[1], (C, C, 3, 3), jnp.float32),
        b1=0.1 * jax.random.normal(ks[2], (C,), jnp.float32),
        g1=1.0 + 0.1 * jax.random.normal(ks[3], (C,), jnp.float32),
        beta1=0.1 * jax.random.normal(ks[4], (C,), jnp.float32),
        m1=0.1 * jax.random.normal(ks[5], (C,), jnp.float32),
        v1=0.5 + jnp.abs(jax.random.normal(ks[6], (C,), jnp.float32)),
        w2=0.2 * jax.random.normal(ks[7], (C, C, 3, 3), jnp.float32),
        b2=0.1 * jax.random.normal(ks[8], (C,), jnp.float32),
        g2=1.0 + 0.1 * jax.random.normal(ks[9], (C,), jnp.float32),
        beta2=0.1 * jax.random.normal(ks[10], (C,), jnp.float32),
        m2=0.1 * jax.random.normal(ks[11], (C,), jnp.float32),
        v2=0.5 + jnp.abs(jax.random.normal(ks[12], (C,), jnp.float32)),
    )

    out = jax.block_until_ready(residual_block(x, params))
    ref = residual_block_ref(x, params)

    assert out.shape == x.shape and out.dtype == jnp.float32
    # bf16 MXU operands / bf16-staged activations (f32 accumulation & epilogue)
    # -> bf16-level tolerance.
    assert jnp.allclose(out, ref, rtol=2e-2, atol=5e-2), "mismatch vs JAX reference"
    print("KERNEL_OK")
</pallas_src>

<mosaic_0001>
module attributes {stable_mosaic.version = 11 : i64} {
  func.func @_resblock_kernel(%arg0: i32, %arg1: memref<1x18x24x128xbf16, #tpu.memory_space<vmem>>, %arg2: memref<9x128x128xbf16, #tpu.memory_space<vmem>>, %arg3: memref<1x128xf32, #tpu.memory_space<vmem>>, %arg4: memref<9x128x128xbf16, #tpu.memory_space<vmem>>, %arg5: memref<1x128xf32, #tpu.memory_space<vmem>>, %arg6: memref<1x16x16x128xf32, #tpu.memory_space<vmem>>, %arg7: memref<18x24x128xbf16, #tpu.memory_space<vmem>>) attributes {dimension_semantics = [#tpu.dimension_semantics<parallel>], iteration_bounds = array<i64: 2>, scalar_prefetch = 0 : i64, scratch_operands = 1 : i64, tpu.core_type = #tpu.core_type<tc>, window_params = [{transform_indices = @transform_0, window_bounds = array<i64: 1, 18, 24, 128>}, {pipeline_mode = #tpu.pipeline_mode<synchronous>, transform_indices = @transform_1, window_bounds = array<i64: 9, 128, 128>}, {pipeline_mode = #tpu.pipeline_mode<synchronous>, transform_indices = @transform_2, window_bounds = array<i64: 1, 128>}, {pipeline_mode = #tpu.pipeline_mode<synchronous>, transform_indices = @transform_3, window_bounds = array<i64: 9, 128, 128>}, {pipeline_mode = #tpu.pipeline_mode<synchronous>, transform_indices = @transform_4, window_bounds = array<i64: 1, 128>}, {transform_indices = @transform_5, window_bounds = array<i64: 1, 16, 16, 128>}]} {
    %c0 = arith.constant 0 : index
    %c0_0 = arith.constant 0 : index
    %c0_1 = arith.constant 0 : index
    %c0_2 = arith.constant 0 : index
    %0 = vector.load %arg1[%c0, %c0_0, %c0_1, %c0_2] : memref<1x18x24x128xbf16, #tpu.memory_space<vmem>>, vector<1x16x16x128xbf16>
    %1 = vector.shape_cast %0 : vector<1x16x16x128xbf16> to vector<16x16x128xbf16>
    %2 = vector.shape_cast %1 : vector<16x16x128xbf16> to vector<256x128xbf16>
    %c0_3 = arith.constant 0 : index
    %c0_4 = arith.constant 0 : index
    %c0_5 = arith.constant 0 : index
    %3 = vector.load %arg2[%c0_3, %c0_4, %c0_5] : memref<9x128x128xbf16, #tpu.memory_space<vmem>>, vector<1x128x128xbf16>
    %4 = vector.shape_cast %3 : vector<1x128x128xbf16> to vector<128x128xbf16>
    %cst = arith.constant dense<0.000000e+00> : vector<256x128xf32>
    %5 = tpu.matmul %2, %4, %cst {dimension_numbers = #tpu.dot_dimension_numbers<[1], [0], [0], [1], [0, 0, 1, 1], [], []>} : vector<256x128xbf16>, vector<128x128xbf16>, vector<256x128xf32> -> vector<256x128xf32>
    %c0_6 = arith.constant 0 : index
    %c0_7 = arith.constant 0 : index
    %c1 = arith.constant 1 : index
    %c0_8 = arith.constant 0 : index
    %6 = vector.load %arg1[%c0_6, %c0_7, %c1, %c0_8] : memref<1x18x24x128xbf16, #tpu.memory_space<vmem>>, vector<1x16x16x128xbf16>
    %7 = vector.shape_cast %6 : vector<1x16x16x128xbf16> to vector<16x16x128xbf16>
    %8 = vector.shape_cast %7 : vector<16x16x128xbf16> to vector<256x128xbf16>
    %c1_9 = arith.constant 1 : index
    %c0_10 = arith.constant 0 : index
    %c0_11 = arith.constant 0 : index
    %9 = vector.load %arg2[%c1_9, %c0_10, %c0_11] : memref<9x128x128xbf16, #tpu.memory_space<vmem>>, vector<1x128x128xbf16>
    %10 = vector.shape_cast %9 : vector<1x128x128xbf16> to vector<128x128xbf16>
    %cst_12 = arith.constant dense<0.000000e+00> : vector<256x128xf32>
    %11 = tpu.matmul %8, %10, %cst_12 {dimension_numbers = #tpu.dot_dimension_numbers<[1], [0], [0], [1], [0, 0, 1, 1], [], []>} : vector<256x128xbf16>, vector<128x128xbf16>, vector<256x128xf32> -> vector<256x128xf32>
    %12 = arith.addf %5, %11 : vector<256x128xf32>
    %c0_13 = arith.constant 0 : index
    %c0_14 = arith.constant 0 : index
    %c2 = arith.constant 2 : index
    %c0_15 = arith.constant 0 : index
    %13 = vector.load %arg1[%c0_13, %c0_14, %c2, %c0_15] : memref<1x18x24x128xbf16, #tpu.memory_space<vmem>>, vector<1x16x16x128xbf16>
    %14 = vector.shape_cast %13 : vector<1x16x16x128xbf16> to vector<16x16x128xbf16>
    %15 = vector.shape_cast %14 : vector<16x16x128xbf16> to vector<256x128xbf16>
    %c2_16 = arith.constant 2 : index
    %c0_17 = arith.constant 0 : index
    %c0_18 = arith.constant 0 : index
    %16 = vector.load %arg2[%c2_16, %c0_17, %c0_18] : memref<9x128x128xbf16, #tpu.memory_space<vmem>>, vector<1x128x128xbf16>
    %17 = vector.shape_cast %16 : vector<1x128x128xbf16> to vector<128x128xbf16>
    %cst_19 = arith.constant dense<0.000000e+00> : vector<256x128xf32>
    %18 = tpu.matmul %15, %17, %cst_19 {dimension_numbers = #tpu.dot_dimension_numbers<[1], [0], [0], [1], [0, 0, 1, 1], [], []>} : vector<256x128xbf16>, vector<128x128xbf16>, vector<256x128xf32> -> vector<256x128xf32>
    %19 = arith.addf %12, %18 : vector<256x128xf32>
    %c0_20 = arith.constant 0 : index
    %c1_21 = arith.constant 1 : index
    %c0_22 = arith.constant 0 : index
    %c0_23 = arith.constant 0 : index
    %20 = vector.load %arg1[%c0_20, %c1_21, %c0_22, %c0_23] : memref<1x18x24x128xbf16, #tpu.memory_space<vmem>>, vector<1x16x16x128xbf16>
    %21 = vector.shape_cast %20 : vector<1x16x16x128xbf16> to vector<16x16x128xbf16>
    %22 = vector.shape_cast %21 : vector<16x16x128xbf16> to vector<256x128xbf16>
    %c3 = arith.constant 3 : index
    %c0_24 = arith.constant 0 : index
    %c0_25 = arith.constant 0 : index
    %23 = vector.load %arg2[%c3, %c0_24, %c0_25] : memref<9x128x128xbf16, #tpu.memory_space<vmem>>, vector<1x128x128xbf16>
    %24 = vector.shape_cast %23 : vector<1x128x128xbf16> to vector<128x128xbf16>
    %cst_26 = arith.constant dense<0.000000e+00> : vector<256x128xf32>
    %25 = tpu.matmul %22, %24, %cst_26 {dimension_numbers = #tpu.dot_dimension_numbers<[1], [0], [0], [1], [0, 0, 1, 1], [], []>} : vector<256x128xbf16>, vector<128x128xbf16>, vector<256x128xf32> -> vector<256x128xf32>
    %26 = arith.addf %19, %25 : vector<256x128xf32>
    %c0_27 = arith.constant 0 : index
    %c1_28 = arith.constant 1 : index
    %c1_29 = arith.constant 1 : index
    %c0_30 = arith.constant 0 : index
    %27 = vector.load %arg1[%c0_27, %c1_28, %c1_29, %c0_30] : memref<1x18x24x128xbf16, #tpu.memory_space<vmem>>, vector<1x16x16x128xbf16>
    %28 = vector.shape_cast %27 : vector<1x16x16x128xbf16> to vector<16x16x128xbf16>
    %29 = vector.shape_cast %28 : vector<16x16x128xbf16> to vector<256x128xbf16>
    %c4 = arith.constant 4 : index
    %c0_31 = arith.constant 0 : index
    %c0_32 = arith.constant 0 : index
    %30 = vector.load %arg2[%c4, %c0_31, %c0_32] : memref<9x128x128xbf16, #tpu.memory_space<vmem>>, vector<1x128x128xbf16>
    %31 = vector.shape_cast %30 : vector<1x128x128xbf16> to vector<128x128xbf16>
    %cst_33 = arith.constant dense<0.000000e+00> : vector<256x128xf32>
    %32 = tpu.matmul %29, %31, %cst_33 {dimension_numbers = #tpu.dot_dimension_numbers<[1], [0], [0], [1], [0, 0, 1, 1], [], []>} : vector<256x128xbf16>, vector<128x128xbf16>, vector<256x128xf32> -> vector<256x128xf32>
    %33 = arith.addf %26, %32 : vector<256x128xf32>
    %c0_34 = arith.constant 0 : index
    %c1_35 = arith.constant 1 : index
    %c2_36 = arith.constant 2 : index
    %c0_37 = arith.constant 0 : index
    %34 = vector.load %arg1[%c0_34, %c1_35, %c2_36, %c0_37] : memref<1x18x24x128xbf16, #tpu.memory_space<vmem>>, vector<1x16x16x128xbf16>
    %35 = vector.shape_cast %34 : vector<1x16x16x128xbf16> to vector<16x16x128xbf16>
    %36 = vector.shape_cast %35 : vector<16x16x128xbf16> to vector<256x128xbf16>
    %c5 = arith.constant 5 : index
    %c0_38 = arith.constant 0 : index
    %c0_39 = arith.constant 0 : index
    %37 = vector.load %arg2[%c5, %c0_38, %c0_39] : memref<9x128x128xbf16, #tpu.memory_space<vmem>>, vector<1x128x128xbf16>
    %38 = vector.shape_cast %37 : vector<1x128x128xbf16> to vector<128x128xbf16>
    %cst_40 = arith.constant dense<0.000000e+00> : vector<256x128xf32>
    %39 = tpu.matmul %36, %38, %cst_40 {dimension_numbers = #tpu.dot_dimension_numbers<[1], [0], [0], [1], [0, 0, 1, 1], [], []>} : vector<256x128xbf16>, vector<128x128xbf16>, vector<256x128xf32> -> vector<256x128xf32>
    %40 = arith.addf %33, %39 : vector<256x128xf32>
    %c0_41 = arith.constant 0 : index
    %c2_42 = arith.constant 2 : index
    %c0_43 = arith.constant 0 : index
    %c0_44 = arith.constant 0 : index
    %41 = vector.load %arg1[%c0_41, %c2_42, %c0_43, %c0_44] : memref<1x18x24x128xbf16, #tpu.memory_space<vmem>>, vector<1x16x16x128xbf16>
    %42 = vector.shape_cast %41 : vector<1x16x16x128xbf16> to vector<16x16x128xbf16>
    %43 = vector.shape_cast %42 : vector<16x16x128xbf16> to vector<256x128xbf16>
    %c6 = arith.constant 6 : index
    %c0_45 = arith.constant 0 : index
    %c0_46 = arith.constant 0 : index
    %44 = vector.load %arg2[%c6, %c0_45, %c0_46] : memref<9x128x128xbf16, #tpu.memory_space<vmem>>, vector<1x128x128xbf16>
    %45 = vector.shape_cast %44 : vector<1x128x128xbf16> to vector<128x128xbf16>
    %cst_47 = arith.constant dense<0.000000e+00> : vector<256x128xf32>
    %46 = tpu.matmul %43, %45, %cst_47 {dimension_numbers = #tpu.dot_dimension_numbers<[1], [0], [0], [1], [0, 0, 1, 1], [], []>} : vector<256x128xbf16>, vector<128x128xbf16>, vector<256x128xf32> -> vector<256x128xf32>
    %47 = arith.addf %40, %46 : vector<256x128xf32>
    %c0_48 = arith.constant 0 : index
    %c2_49 = arith.constant 2 : index
    %c1_50 = arith.constant 1 : index
    %c0_51 = arith.constant 0 : index
    %48 = vector.load %arg1[%c0_48, %c2_49, %c1_50, %c0_51] : memref<1x18x24x128xbf16, #tpu.memory_space<vmem>>, vector<1x16x16x128xbf16>
    %49 = vector.shape_cast %48 : vector<1x16x16x128xbf16> to vector<16x16x128xbf16>
    %50 = vector.shape_cast %49 : vector<16x16x128xbf16> to vector<256x128xbf16>
    %c7 = arith.constant 7 : index
    %c0_52 = arith.constant 0 : index
    %c0_53 = arith.constant 0 : index
    %51 = vector.load %arg2[%c7, %c0_52, %c0_53] : memref<9x128x128xbf16, #tpu.memory_space<vmem>>, vector<1x128x128xbf16>
    %52 = vector.shape_cast %51 : vector<1x128x128xbf16> to vector<128x128xbf16>
    %cst_54 = arith.constant dense<0.000000e+00> : vector<256x128xf32>
    %53 = tpu.matmul %50, %52, %cst_54 {dimension_numbers = #tpu.dot_dimension_numbers<[1], [0], [0], [1], [0, 0, 1, 1], [], []>} : vector<256x128xbf16>, vector<128x128xbf16>, vector<256x128xf32> -> vector<256x128xf32>
    %54 = arith.addf %47, %53 : vector<256x128xf32>
    %c0_55 = arith.constant 0 : index
    %c2_56 = arith.constant 2 : index
    %c2_57 = arith.constant 2 : index
    %c0_58 = arith.constant 0 : index
    %55 = vector.load %arg1[%c0_55, %c2_56, %c2_57, %c0_58] : memref<1x18x24x128xbf16, #tpu.memory_space<vmem>>, vector<1x16x16x128xbf16>
    %56 = vector.shape_cast %55 : vector<1x16x16x128xbf16> to vector<16x16x128xbf16>
    %57 = vector.shape_cast %56 : vector<16x16x128xbf16> to vector<256x128xbf16>
    %c8 = arith.constant 8 : index
    %c0_59 = arith.constant 0 : index
    %c0_60 = arith.constant 0 : index
    %58 = vector.load %arg2[%c8, %c0_59, %c0_60] : memref<9x128x128xbf16, #tpu.memory_space<vmem>>, vector<1x128x128xbf16>
    %59 = vector.shape_cast %58 : vector<1x128x128xbf16> to vector<128x128xbf16>
    %cst_61 = arith.constant dense<0.000000e+00> : vector<256x128xf32>
    %60 = tpu.matmul %57, %59, %cst_61 {dimension_numbers = #tpu.dot_dimension_numbers<[1], [0], [0], [1], [0, 0, 1, 1], [], []>} : vector<256x128xbf16>, vector<128x128xbf16>, vector<256x128xf32> -> vector<256x128xf32>
    %61 = arith.addf %54, %60 : vector<256x128xf32>
    %c0_62 = arith.constant 0 : index
    %c0_63 = arith.constant 0 : index
    %62 = vector.load %arg3[%c0_62, %c0_63] : memref<1x128xf32, #tpu.memory_space<vmem>>, vector<1x128xf32>
    %63 = vector.broadcast %62 : vector<1x128xf32> to vector<256x128xf32>
    %64 = arith.addf %61, %63 : vector<256x128xf32>
    %cst_64 = arith.constant 0.000000e+00 : f32
    %65 = vector.broadcast %cst_64 : f32 to vector<256x128xf32>
    %66 = arith.maximumf %64, %65 : vector<256x128xf32>
    %67 = arith.truncf %66 : vector<256x128xf32> to vector<256x128xbf16>
    %cst_65 = arith.constant 0.000000e+00 : bf16
    %68 = vector.broadcast %cst_65 : bf16 to vector<1x24x128xbf16>
    %cst_66 = arith.constant 0.000000e+00 : bf16
    %69 = vector.broadcast %cst_66 : bf16 to vector<16x1x128xbf16>
    %c0_67 = arith.constant 0 : index
    %c0_68 = arith.constant 0 : index
    %c0_69 = arith.constant 0 : index
    %70 = vector.load %arg7[%c0_67, %c0_68, %c0_69] : memref<18x24x128xbf16, #tpu.memory_space<vmem>>, vector<1x24x128xbf16>
    tpu.vector_store %arg7[%c0_67, %c0_68, %c0_69], %68 {strides = array<i32>} : memref<18x24x128xbf16, #tpu.memory_space<vmem>>, vector<1x24x128xbf16>,
    %c17 = arith.constant 17 : index
    %c0_70 = arith.constant 0 : index
    %c0_71 = arith.constant 0 : index
    %71 = vector.load %arg7[%c17, %c0_70, %c0_71] : memref<18x24x128xbf16, #tpu.memory_space<vmem>>, vector<1x24x128xbf16>
    tpu.vector_store %arg7[%c17, %c0_70, %c0_71], %68 {strides = array<i32>} : memref<18x24x128xbf16, #tpu.memory_space<vmem>>, vector<1x24x128xbf16>,
    %c1_72 = arith.constant 1 : index
    %c0_73 = arith.constant 0 : index
    %c0_74 = arith.constant 0 : index
    %72 = vector.load %arg7[%c1_72, %c0_73, %c0_74] : memref<18x24x128xbf16, #tpu.memory_space<vmem>>, vector<16x1x128xbf16>
    tpu.vector_store %arg7[%c1_72, %c0_73, %c0_74], %69 {strides = array<i32>} : memref<18x24x128xbf16, #tpu.memory_space<vmem>>, vector<16x1x128xbf16>,
    %c1_75 = arith.constant 1 : index
    %c17_76 = arith.constant 17 : index
    %c0_77 = arith.constant 0 : index
    %73 = vector.load %arg7[%c1_75, %c17_76, %c0_77] : memref<18x24x128xbf16, #tpu.memory_space<vmem>>, vector<16x1x128xbf16>
    tpu.vector_store %arg7[%c1_75, %c17_76, %c0_77], %69 {strides = array<i32>} : memref<18x24x128xbf16, #tpu.memory_space<vmem>>, vector<16x1x128xbf16>,
    %74 = vector.shape_cast %67 : vector<256x128xbf16> to vector<16x16x128xbf16>
    %c1_78 = arith.constant 1 : index
    %c1_79 = arith.constant 1 : index
    %c0_80 = arith.constant 0 : index
    %75 = vector.load %arg7[%c1_78, %c1_79, %c0_80] : memref<18x24x128xbf16, #tpu.memory_space<vmem>>, vector<16x16x128xbf16>
    tpu.vector_store %arg7[%c1_78, %c1_79, %c0_80], %74 {strides = array<i32>} : memref<18x24x128xbf16, #tpu.memory_space<vmem>>, vector<16x16x128xbf16>,
    %c0_81 = arith.constant 0 : index
    %c0_82 = arith.constant 0 : index
    %c0_83 = arith.constant 0 : index
    %76 = vector.load %arg7[%c0_81, %c0_82, %c0_83] : memref<18x24x128xbf16, #tpu.memory_space<vmem>>, vector<16x16x128xbf16>
    %77 = vector.shape_cast %76 : vector<16x16x128xbf16> to vector<256x128xbf16>
    %c0_84 = arith.constant 0 : index
    %c0_85 = arith.constant 0 : index
    %c0_86 = arith.constant 0 : index
    %78 = vector.load %arg4[%c0_84, %c0_85, %c0_86] : memref<9x128x128xbf16, #tpu.memory_space<vmem>>, vector<1x128x128xbf16>
    %79 = vector.shape_cast %78 : vector<1x128x128xbf16> to vector<128x128xbf16>
    %cst_87 = arith.constant dense<0.000000e+00> : vector<256x128xf32>
    %80 = tpu.matmul %77, %79, %cst_87 {dimension_numbers = #tpu.dot_dimension_numbers<[1], [0], [0], [1], [0, 0, 1, 1], [], []>} : vector<256x128xbf16>, vector<128x128xbf16>, vector<256x128xf32> -> vector<256x128xf32>
    %c0_88 = arith.constant 0 : index
    %c1_89 = arith.constant 1 : index
    %c0_90 = arith.constant 0 : index
    %81 = vector.load %arg7[%c0_88, %c1_89, %c0_90] : memref<18x24x128xbf16, #tpu.memory_space<vmem>>, vector<16x16x128xbf16>
    %82 = vector.shape_cast %81 : vector<16x16x128xbf16> to vector<256x128xbf16>
    %c1_91 = arith.constant 1 : index
    %c0_92 = arith.constant 0 : index
    %c0_93 = arith.constant 0 : index
    %83 = vector.load %arg4[%c1_91, %c0_92, %c0_93] : memref<9x128x128xbf16, #tpu.memory_space<vmem>>, vector<1x128x128xbf16>
    %84 = vector.shape_cast %83 : vector<1x128x128xbf16> to vector<128x128xbf16>
    %cst_94 = arith.constant dense<0.000000e+00> : vector<256x128xf32>
    %85 = tpu.matmul %82, %84, %cst_94 {dimension_numbers = #tpu.dot_dimension_numbers<[1], [0], [0], [1], [0, 0, 1, 1], [], []>} : vector<256x128xbf16>, vector<128x128xbf16>, vector<256x128xf32> -> vector<256x128xf32>
    %86 = arith.addf %80, %85 : vector<256x128xf32>
    %c0_95 = arith.constant 0 : index
    %c2_96 = arith.constant 2 : index
    %c0_97 = arith.constant 0 : index
    %87 = vector.load %arg7[%c0_95, %c2_96, %c0_97] : memref<18x24x128xbf16, #tpu.memory_space<vmem>>, vector<16x16x128xbf16>
    %88 = vector.shape_cast %87 : vector<16x16x128xbf16> to vector<256x128xbf16>
    %c2_98 = arith.constant 2 : index
    %c0_99 = arith.constant 0 : index
    %c0_100 = arith.constant 0 : index
    %89 = vector.load %arg4[%c2_98, %c0_99, %c0_100] : memref<9x128x128xbf16, #tpu.memory_space<vmem>>, vector<1x128x128xbf16>
    %90 = vector.shape_cast %89 : vector<1x128x128xbf16> to vector<128x128xbf16>
    %cst_101 = arith.constant dense<0.000000e+00> : vector<256x128xf32>
    %91 = tpu.matmul %88, %90, %cst_101 {dimension_numbers = #tpu.dot_dimension_numbers<[1], [0], [0], [1], [0, 0, 1, 1], [], []>} : vector<256x128xbf16>, vector<128x128xbf16>, vector<256x128xf32> -> vector<256x128xf32>
    %92 = arith.addf %86, %91 : vector<256x128xf32>
    %c1_102 = arith.constant 1 : index
    %c0_103 = arith.constant 0 : index
    %c0_104 = arith.constant 0 : index
    %93 = vector.load %arg7[%c1_102, %c0_103, %c0_104] : memref<18x24x128xbf16, #tpu.memory_space<vmem>>, vector<16x16x128xbf16>
    %94 = vector.shape_cast %93 : vector<16x16x128xbf16> to vector<256x128xbf16>
    %c3_105 = arith.constant 3 : index
    %c0_106 = arith.constant 0 : index
    %c0_107 = arith.constant 0 : index
    %95 = vector.load %arg4[%c3_105, %c0_106, %c0_107] : memref<9x128x128xbf16, #tpu.memory_space<vmem>>, vector<1x128x128xbf16>
    %96 = vector.shape_cast %95 : vector<1x128x128xbf16> to vector<128x128xbf16>
    %cst_108 = arith.constant dense<0.000000e+00> : vector<256x128xf32>
    %97 = tpu.matmul %94, %96, %cst_108 {dimension_numbers = #tpu.dot_dimension_numbers<[1], [0], [0], [1], [0, 0, 1, 1], [], []>} : vector<256x128xbf16>, vector<128x128xbf16>, vector<256x128xf32> -> vector<256x128xf32>
    %98 = arith.addf %92, %97 : vector<256x128xf32>
    %c1_109 = arith.constant 1 : index
    %c1_110 = arith.constant 1 : index
    %c0_111 = arith.constant 0 : index
    %99 = vector.load %arg7[%c1_109, %c1_110, %c0_111] : memref<18x24x128xbf16, #tpu.memory_space<vmem>>, vector<16x16x128xbf16>
    %100 = vector.shape_cast %99 : vector<16x16x128xbf16> to vector<256x128xbf16>
    %c4_112 = arith.constant 4 : index
    %c0_113 = arith.constant 0 : index
    %c0_114 = arith.constant 0 : index
    %101 = vector.load %arg4[%c4_112, %c0_113, %c0_114] : memref<9x128x128xbf16, #tpu.memory_space<vmem>>, vector<1x128x128xbf16>
    %102 = vector.shape_cast %101 : vector<1x128x128xbf16> to vector<128x128xbf16>
    %cst_115 = arith.constant dense<0.000000e+00> : vector<256x128xf32>
    %103 = tpu.matmul %100, %102, %cst_115 {dimension_numbers = #tpu.dot_dimension_numbers<[1], [0], [0], [1], [0, 0, 1, 1], [], []>} : vector<256x128xbf16>, vector<128x128xbf16>, vector<256x128xf32> -> vector<256x128xf32>
    %104 = arith.addf %98, %103 : vector<256x128xf32>
    %c1_116 = arith.constant 1 : index
    %c2_117 = arith.constant 2 : index
    %c0_118 = arith.constant 0 : index
    %105 = vector.load %arg7[%c1_116, %c2_117, %c0_118] : memref<18x24x128xbf16, #tpu.memory_space<vmem>>, vector<16x16x128xbf16>
    %106 = vector.shape_cast %105 : vector<16x16x128xbf16> to vector<256x128xbf16>
    %c5_119 = arith.constant 5 : index
    %c0_120 = arith.constant 0 : index
    %c0_121 = arith.constant 0 : index
    %107 = vector.load %arg4[%c5_119, %c0_120, %c0_121] : memref<9x128x128xbf16, #tpu.memory_space<vmem>>, vector<1x128x128xbf16>
    %108 = vector.shape_cast %107 : vector<1x128x128xbf16> to vector<128x128xbf16>
    %cst_122 = arith.constant dense<0.000000e+00> : vector<256x128xf32>
    %109 = tpu.matmul %106, %108, %cst_122 {dimension_numbers = #tpu.dot_dimension_numbers<[1], [0], [0], [1], [0, 0, 1, 1], [], []>} : vector<256x128xbf16>, vector<128x128xbf16>, vector<256x128xf32> -> vector<256x128xf32>
    %110 = arith.addf %104, %109 : vector<256x128xf32>
    %c2_123 = arith.constant 2 : index
    %c0_124 = arith.constant 0 : index
    %c0_125 = arith.constant 0 : index
    %111 = vector.load %arg7[%c2_123, %c0_124, %c0_125] : memref<18x24x128xbf16, #tpu.memory_space<vmem>>, vector<16x16x128xbf16>
    %112 = vector.shape_cast %111 : vector<16x16x128xbf16> to vector<256x128xbf16>
    %c6_126 = arith.constant 6 : index
    %c0_127 = arith.constant 0 : index
    %c0_128 = arith.constant 0 : index
    %113 = vector.load %arg4[%c6_126, %c0_127, %c0_128] : memref<9x128x128xbf16, #tpu.memory_space<vmem>>, vector<1x128x128xbf16>
    %114 = vector.shape_cast %113 : vector<1x128x128xbf16> to vector<128x128xbf16>
    %cst_129 = arith.constant dense<0.000000e+00> : vector<256x128xf32>
    %115 = tpu.matmul %112, %114, %cst_129 {dimension_numbers = #tpu.dot_dimension_numbers<[1], [0], [0], [1], [0, 0, 1, 1], [], []>} : vector<256x128xbf16>, vector<128x128xbf16>, vector<256x128xf32> -> vector<256x128xf32>
    %116 = arith.addf %110, %115 : vector<256x128xf32>
    %c2_130 = arith.constant 2 : index
    %c1_131 = arith.constant 1 : index
    %c0_132 = arith.constant 0 : index
    %117 = vector.load %arg7[%c2_130, %c1_131, %c0_132] : memref<18x24x128xbf16, #tpu.memory_space<vmem>>, vector<16x16x128xbf16>
    %118 = vector.shape_cast %117 : vector<16x16x128xbf16> to vector<256x128xbf16>
    %c7_133 = arith.constant 7 : index
    %c0_134 = arith.constant 0 : index
    %c0_135 = arith.constant 0 : index
    %119 = vector.load %arg4[%c7_133, %c0_134, %c0_135] : memref<9x128x128xbf16, #tpu.memory_space<vmem>>, vector<1x128x128xbf16>
    %120 = vector.shape_cast %119 : vector<1x128x128xbf16> to vector<128x128xbf16>
    %cst_136 = arith.constant dense<0.000000e+00> : vector<256x128xf32>
    %121 = tpu.matmul %118, %120, %cst_136 {dimension_numbers = #tpu.dot_dimension_numbers<[1], [0], [0], [1], [0, 0, 1, 1], [], []>} : vector<256x128xbf16>, vector<128x128xbf16>, vector<256x128xf32> -> vector<256x128xf32>
    %122 = arith.addf %116, %121 : vector<256x128xf32>
    %c2_137 = arith.constant 2 : index
    %c2_138 = arith.constant 2 : index
    %c0_139 = arith.constant 0 : index
    %123 = vector.load %arg7[%c2_137, %c2_138, %c0_139] : memref<18x24x128xbf16, #tpu.memory_space<vmem>>, vector<16x16x128xbf16>
    %124 = vector.shape_cast %123 : vector<16x16x128xbf16> to vector<256x128xbf16>
    %c8_140 = arith.constant 8 : index
    %c0_141 = arith.constant 0 : index
    %c0_142 = arith.constant 0 : index
    %125 = vector.load %arg4[%c8_140, %c0_141, %c0_142] : memref<9x128x128xbf16, #tpu.memory_space<vmem>>, vector<1x128x128xbf16>
    %126 = vector.shape_cast %125 : vector<1x128x128xbf16> to vector<128x128xbf16>
    %cst_143 = arith.constant dense<0.000000e+00> : vector<256x128xf32>
    %127 = tpu.matmul %124, %126, %cst_143 {dimension_numbers = #tpu.dot_dimension_numbers<[1], [0], [0], [1], [0, 0, 1, 1], [], []>} : vector<256x128xbf16>, vector<128x128xbf16>, vector<256x128xf32> -> vector<256x128xf32>
    %128 = arith.addf %122, %127 : vector<256x128xf32>
    %c0_144 = arith.constant 0 : index
    %c1_145 = arith.constant 1 : index
    %c1_146 = arith.constant 1 : index
    %c0_147 = arith.constant 0 : index
    %129 = vector.load %arg1[%c0_144, %c1_145, %c1_146, %c0_147] : memref<1x18x24x128xbf16, #tpu.memory_space<vmem>>, vector<1x16x16x128xbf16>
    %130 = vector.shape_cast %129 : vector<1x16x16x128xbf16> to vector<16x16x128xbf16>
    %131 = vector.shape_cast %130 : vector<16x16x128xbf16> to vector<256x128xbf16>
    %132 = arith.extf %131 : vector<256x128xbf16> to vector<256x128xf32>
    %133 = arith.addf %132, %128 : vector<256x128xf32>
    %c0_148 = arith.constant 0 : index
    %c0_149 = arith.constant 0 : index
    %134 = vector.load %arg5[%c0_148, %c0_149] : memref<1x128xf32, #tpu.memory_space<vmem>>, vector<1x128xf32>
    %135 = vector.broadcast %134 : vector<1x128xf32> to vector<256x128xf32>
    %136 = arith.addf %133, %135 : vector<256x128xf32>
    %cst_150 = arith.constant 0.000000e+00 : f32
    %137 = vector.broadcast %cst_150 : f32 to vector<256x128xf32>
    %138 = arith.maximumf %136, %137 : vector<256x128xf32>
    %139 = vector.shape_cast %138 : vector<256x128xf32> to vector<16x16x128xf32>
    %c0_151 = arith.constant 0 : index
    %c0_152 = arith.constant 0 : index
    %c0_153 = arith.constant 0 : index
    %c0_154 = arith.constant 0 : index
    %140 = vector.load %arg6[%c0_151, %c0_152, %c0_153, %c0_154] : memref<1x16x16x128xf32, #tpu.memory_space<vmem>>, vector<1x16x16x128xf32>
    %141 = vector.shape_cast %140 : vector<1x16x16x128xf32> to vector<16x16x128xf32>
    %142 = vector.shape_cast %139 : vector<16x16x128xf32> to vector<1x16x16x128xf32>
    tpu.vector_store %arg6[%c0_151, %c0_152, %c0_153, %c0_154], %142 {strides = array<i32>} : memref<1x16x16x128xf32, #tpu.memory_space<vmem>>, vector<1x16x16x128xf32>,
    return
  }
  func.func @transform_0(%arg0: i32) -> (i32, i32, i32, i32) {
    %c0_i32 = arith.constant 0 : i32
    %c0_i32_0 = arith.constant 0 : i32
    %c0_i32_1 = arith.constant 0 : i32
    %c0_i32_2 = arith.constant 0 : i32
    return %arg0, %c0_i32, %c0_i32_0, %c0_i32_1 : i32, i32, i32, i32
  }
  func.func @transform_1(%arg0: i32) -> (i32, i32, i32) {
    %c0_i32 = arith.constant 0 : i32
    %c0_i32_0 = arith.constant 0 : i32
    %c0_i32_1 = arith.constant 0 : i32
    %c0_i32_2 = arith.constant 0 : i32
    return %c0_i32, %c0_i32_0, %c0_i32_1 : i32, i32, i32
  }
  func.func @transform_2(%arg0: i32) -> (i32, i32) {
    %c0_i32 = arith.constant 0 : i32
    %c0_i32_0 = arith.constant 0 : i32
    %c0_i32_1 = arith.constant 0 : i32
    return %c0_i32, %c0_i32_0 : i32, i32
  }
  func.func @transform_3(%arg0: i32) -> (i32, i32, i32) {
    %c0_i32 = arith.constant 0 : i32
    %c0_i32_0 = arith.constant 0 : i32
    %c0_i32_1 = arith.constant 0 : i32
    %c0_i32_2 = arith.constant 0 : i32
    return %c0_i32, %c0_i32_0, %c0_i32_1 : i32, i32, i32
  }
  func.func @transform_4(%arg0: i32) -> (i32, i32) {
    %c0_i32 = arith.constant 0 : i32
    %c0_i32_0 = arith.constant 0 : i32
    %c0_i32_1 = arith.constant 0 : i32
    return %c0_i32, %c0_i32_0 : i32, i32
  }
  func.func @transform_5(%arg0: i32) -> (i32, i32, i32, i32) {
    %c0_i32 = arith.constant 0 : i32
    %c0_i32_0 = arith.constant 0 : i32
    %c0_i32_1 = arith.constant 0 : i32
    %c0_i32_2 = arith.constant 0 : i32
    return %arg0, %c0_i32, %c0_i32_0, %c0_i32_1 : i32, i32, i32, i32
  }
}

</mosaic_0001>

<bundles_post_ra>
// kernel: residual_block.1
= control target key start
LH: loop header
LB: loop body
LE: loop exit
PB: predicated region body
PF: predicated region fallthrough
CT: control target
= control target key end

     0   :  { %s14490_s18 = smov 0   ;;  %s18510_s0 = inlined_call_operand.vmem [shape: bf16[2,18,24,128], index: 0, kind: input, shape index: {}]   ;;  %s18511_s1 = inlined_call_operand.vmem [shape: bf16[9,128,128], index: 1, kind: input, shape index: {}]   ;;  %s18512_s2 = inlined_call_operand.vmem [shape: f32[1,128], index: 2, kind: input, shape index: {}]   ;;  %s18513_s3 = inlined_call_operand.vmem [shape: bf16[9,128,128], index: 3, kind: input, shape index: {}]   ;;  %s18514_s4 = inlined_call_operand.vmem [shape: f32[1,128], index: 4, kind: input, shape index: {}]   ;;  %s18515_s5 = inlined_call_operand.vmem [shape: f32[2,16,16,128], index: 5, kind: output, shape index: {}]  }
   0x1 LB: > { %s11235_s19 = sadd.s32 4294967295, %s14457_s18   ;;  %p11239_p0 = scmp.ge.s32.totalorder %s14457_s18, 1  ;;  %s14457_s18 = sphi %s14490_s18, %s15_s18  }
   0x2   : > { %p187_p1 = scmp.lt.s32.totalorder %s14457_s18, 3 }
   0x4   : > { %p188_p2 = pnand %p11239_p0, %p187_p1 }
   0x6   : > { %191 = sbr.rel (%p188_p2) target bundleno = 1655 (0x677), region = 40 }
   0xd   : > { %v14154_v0 = vld [vmem:[%s18511_s1 + $0x40] sm:$0xff]   ;;  %p215_p3 = scmp.lt.s32.totalorder %s11235_s19, 1  ;;  %v14155_v1 = vld [vmem:[%s18511_s1 + $0x48] sm:$0xff]   ;;  %v14156_v2 = vld [vmem:[%s18511_s1 + $0x50] sm:$0xff]   ;;  %vm290_vm0 = vsmask.f32 3328 }
   0xe   : > { %12768 = vmatprep.subr.bf16.mxu0 %v14154_v0  ;;  %v14157_v3 = vld [vmem:[%s18511_s1 + $0x58] sm:$0xff]   ;;  %vm291_vm1 = vsmask.f32 7440  ;;  %v14158_v17 = vld [vmem:[%s18511_s1 + $0x60] sm:$0xff]   ;;  %v18620_v25 = vmov 0  ;;  %v14159_v36 = vld [vmem:[%s18511_s1 + $0x68] sm:$0xff]  }
   0xf   : > { %s18913_s19 = smov (!%p215_p3, %s11235_s19), 1  ;;  %12769 = vmatpush3.bf16.msra.mxu0 %v14154_v0  ;;  %vm14545_vm2 = vmor %vm290_vm0, %vm291_vm1  ;;  %v14160_v56 = vld [vmem:[%s18511_s1 + $0x70] sm:$0xff]   ;;  %vm1320_vm3 = vcmask 1042432   ;;  %vm1321_vm4 = vcmask 1046532   ;;  %vm5130_vm6 = vcmask 1040384   ;;  %vm5633_vm11 = vcmask 1043456  }
  0x10   : > { %12770 = vmatprep.subr.bf16.mxu0 %v14155_v1  ;;  %s14144_s26 = smul.u32 216, %s18913_s19  ;;  %v18621_v25 = vsel %vm14545_vm2, 4294967295, %v18620_v25  ;;  %vm14878_vm5 = vmor %vm1320_vm3, %vm1321_vm4  ;;  %vm5131_vm7 = vsmask.f32 256  ;;  %vm5181_vm9 = vsmask.f32 7938 }
  0x11   : > { %18622 = vst [vmem:[#allocation3_spill] sm:$0xff] %v18621_v25  ;;  %vm16392_vm8 = vmand %vm5130_vm6, %vm5131_vm7  ;;  %vm5311_vm12 = vsmask.f32 4368  ;;  %s12303_s7 = sshll.u32 %s18913_s19, 8 }
  0x12   : > { %s14513_s29 = scalar_lea.vmem %s18510_s0, %s14144_s26  ;;  %vm16399_vm10 = vmand %vm5130_vm6, %vm5181_vm9  ;;  %s18315_s9 = scalar_lea.vmem %s18515_s5, %s12303_s7 }
  0x13   : > { %12771 = vmatpush3.bf16.msra.mxu0 %v14155_v1  ;;  %v14519_v4 = vld [vmem:[%s14513_s29] sm:$0xf]  ;;  %v14522_v5 = vld [vmem:[%s14513_s29 + $0x4] sm:$0xf]  ;;  %v274_v6 = vld [vmem:[%s14513_s29 + $0x8] sm:$0x1] }
  0x14   : > { %12772 = vmatprep.subr.bf16.mxu0 %v14156_v2  ;;  %v294_v7 = vshrl.u32 %v14519_v4, 16  ;;  %v297_v8 = vshll.u32 %v14519_v4, 16  ;;  %v303_v9 = vshll.u32 %v14522_v5, 16  ;;  %v307_v10 = vshrl.u32 %v14522_v5, 16  ;;  %v14530_v12 = vld [vmem:[%s14513_s29 + $0xc] sm:$0xf]  ;;  %vm16507_vm13 = vmand %vm5633_vm11, %vm5181_vm9 }
  0x15   : > { %v313_v11 = vshll.u32 %v274_v6, 16  ;;  %v14533_v15 = vld [vmem:[%s14513_s29 + $0x10] sm:$0xf]  ;;  %v275_v16 = vld [vmem:[%s14513_s29 + $0x14] sm:$0x1]  ;;  %v318_v20 = vshrl.u32 %v14530_v12, 16  ;;  %vm16514_vm14 = vmor %vm5131_vm7, %vm5311_vm12 }
  0x16   : > { %v296_v13 = vrot.slane %v294_v7, 4  ;;  %v299_v14 = vrot.slane %v297_v8, 5  ;;  %v305_v18 = vrot.slane %v303_v9, 5  ;;  %v309_v19 = vrot.slane %v307_v10, 4  ;;  %v14550_v30 = vld [vmem:[%s14513_s29 + $0x18] sm:$0xf] }
  0x17   : > { %12773 = vmatpush3.bf16.msra.mxu0 %v14156_v2  ;;  %v321_v22 = vshll.u32 %v14530_v12, 16  ;;  %v327_v23 = vshll.u32 %v14533_v15, 16  ;;  %v331_v24 = vshrl.u32 %v14533_v15, 16  ;;  %v315_v27 = vrot.slane %v313_v11, 5  ;;  %v14553_v35 = vld [vmem:[%s14513_s29 + $0x1c] sm:$0xf] }
  0x18   : > { %12774 = vmatprep.subr.bf16.mxu0 %v14157_v3  ;;  %v300_v21 = vor.u32 %v299_v14, %v296_v13  ;;  %v310_v26 = vor.u32 %v309_v19, %v305_v18  ;;  %v320_v28 = vrot.slane %v318_v20, 4  ;;  %v337_v29 = vshll.u32 %v275_v16, 16  ;;  %v276_v44 = vld [vmem:[%s14513_s29 + $0x20] sm:$0x1]  ;;  %v14565_v46 = vld [vmem:[%s14513_s29 + $0x24] sm:$0xf] }
  0x19   : > { %v323_v32 = vrot.slane %v321_v22, 5  ;;  %v329_v33 = vrot.slane %v327_v23, 5  ;;  %v333_v34 = vrot.slane %v331_v24, 4  ;;  %v342_v39 = vshrl.u32 %v14550_v30, 16  ;;  %v14571_v51 = vld [vmem:[%s14513_s29 + $0x28] sm:$0xf] }
  0x1a   : > { %v301_v31 = vrot.slane %v300_v21, 4  ;;  %v311_v37 = vrot.slane %v310_v26, 4  ;;  %v339_v38 = vrot.slane %v337_v29, 5  ;;  %v345_v40 = vshll.u32 %v14550_v30, 16  ;;  %v14582_v63 = vld [vmem:[%s14513_s29 + $0x2c] sm:$0x1] }
  0x1b   : > { %12775 = vmatpush3.bf16.msra.mxu0 %v14157_v3  ;;  %v324_v42 = vor.u32 %v323_v32, %v320_v28  ;;  %v334_v43 = vor.u32 %v333_v34, %v329_v33  ;;  %v351_v45 = vshll.u32 %v14553_v35, 16  ;;  %v344_v48 = vrot.slane %v342_v39, 4  ;;  %v14587_v2 = vld [vmem:[%s14513_s29 + $0x30] sm:$0xf]  ;;  %v14592_v9 = vld [vmem:[%s14513_s29 + $0x34] sm:$0xf] }
  0x1c   : > { %12776 = vmatprep.subr.bf16.mxu0 %v14158_v17  ;;  %v306_v41 = vsel %vm14545_vm2, %v301_v31, %v305_v18  ;;  %v316_v47 = vsel %vm14545_vm2, %v311_v37, %v315_v27  ;;  %v347_v49 = vrot.slane %v345_v40, 5  ;;  %v355_v50 = vshrl.u32 %v14553_v35, 16  ;;  %v14596_v16 = vld [vmem:[%s14513_s29 + $0x38] sm:$0x1]  ;;  %v14606_v22 = vld [vmem:[%s14513_s29 + $0x3c] sm:$0xf] }
  0x1d   : > { %v11259_v52 = vcombine.low %v306_v41, %v316_v47  ;;  %v325_v53 = vrot.slane %v324_v42, 4  ;;  %v335_v54 = vrot.slane %v334_v43, 4  ;;  %v353_v55 = vrot.slane %v351_v45, 5  ;;  %v14162_v39 = vld [vmem:[%s18511_s1] sm:$0xff]  }
  0x1e   : > { %v348_v57 = vor.u32 %v347_v49, %v344_v48  ;;  %v357_v58 = vrot.slane %v355_v50, 4  ;;  %v361_v59 = vshll.u32 %v276_v44, 16  ;;  %v366_v60 = vshrl.u32 %v14565_v46, 16  ;;  %v14624_v48 = vld [vmem:[%s14513_s29 + $0x44] sm:$0x1] }
  0x1f   : > { %12777 = vmatpush3.bf16.msra.mxu0 %v14158_v17  ;;  %12784 = vmatprep.mubr.bf16.mxu0 %v11259_v52  ;;  %v330_v61 = vsel %vm14545_vm2, %v325_v53, %v329_v33  ;;  %v340_v62 = vsel %vm14545_vm2, %v335_v54, %v339_v38  ;;  %v369_v0 = vshll.u32 %v14565_v46, 16  ;;  %v375_v1 = vshll.u32 %v14571_v51, 16  ;;  %v14161_v17 = vld [vmem:[%s18511_s1 + $0x78] sm:$0xff]   ;;  %v14614_v38 = vld [vmem:[%s14513_s29 + $0x40] sm:$0xf] }
  0x20   : > { %12778 = vmatprep.subr.bf16.mxu0 %v14159_v36  ;;  %v14589_v3 = vcombine.low %v330_v61, %v340_v62  ;;  %v349_v6 = vrot.slane %v348_v57, 4  ;;  %v358_v7 = vor.u32 %v357_v58, %v353_v55  ;;  %v363_v8 = vrot.slane %v361_v59, 5  ;;  %v14628_v50 = vld [vmem:[%s14513_s29 + $0x48] sm:$0xf] }
  0x21   : > { %v368_v10 = vrot.slane %v366_v60, 4  ;;  %v371_v11 = vrot.slane %v369_v0, 5  ;;  %v377_v13 = vrot.slane %v375_v1, 5  ;;  %v379_v14 = vshrl.u32 %v14571_v51, 16  ;;  %v14163_v62 = vld [vmem:[%s18511_s1 + $0x8] sm:$0xff]  }
  0x22   : > { %v354_v18 = vsel %vm14545_vm2, %v349_v6, %v353_v55  ;;  %v359_v19 = vrot.slane %v358_v7, 4  ;;  %v385_v20 = vshll.u32 %v14582_v63, 16  ;;  %v390_v21 = vshrl.u32 %v14587_v2, 16 }
  0x23   : > { %12779 = vmatpush3.bf16.msra.mxu0 %v14159_v36  ;;  %v372_v23 = vor.u32 %v371_v11, %v368_v10  ;;  %v381_v24 = vrot.slane %v379_v14, 4  ;;  %v393_v26 = vshll.u32 %v14587_v2, 16  ;;  %v399_v27 = vshll.u32 %v14592_v9, 16  ;;  %v14644_v11 = vld [vmem:[%s14513_s29 + $0x50] sm:$0x1] }
  0x24   : > { %12780 = vmatprep.subr.bf16.mxu0 %v14160_v56  ;;  %v364_v28 = vsel %vm14545_vm2, %v359_v19, %v363_v8  ;;  %v387_v29 = vrot.slane %v385_v20, 5  ;;  %v392_v31 = vrot.slane %v390_v21, 4  ;;  %v403_v32 = vshrl.u32 %v14592_v9, 16  ;;  %v14653_v20 = vld [vmem:[%s14513_s29 + $0x54] sm:$0xf] }
  0x25   : > { %v11261_v33 = vcombine.low %v354_v18, %v364_v28  ;;  %v373_v34 = vrot.slane %v372_v23, 4  ;;  %v382_v36 = vor.u32 %v381_v24, %v377_v13  ;;  %v395_v37 = vrot.slane %v393_v26, 5 }
  0x26   : > { %v401_v40 = vrot.slane %v399_v27, 5  ;;  %v405_v41 = vrot.slane %v403_v32, 4  ;;  %v409_v42 = vshll.u32 %v14596_v16, 16  ;;  %v414_v43 = vshrl.u32 %v14606_v22, 16  ;;  %v14659_v27 = vld [vmem:[%s14513_s29 + $0x58] sm:$0xf] }
  0x27   : > { %12781 = vmatpush3.bf16.msra.mxu0 %v14160_v56  ;;  %v378_v44 = vsel %vm14545_vm2, %v373_v34, %v377_v13  ;;  %v383_v45 = vrot.slane %v382_v36, 4  ;;  %v396_v47 = vor.u32 %v395_v37, %v392_v31  ;;  %v417_v49 = vshll.u32 %v14606_v22, 16  ;;  %v14632_v56 = vld [vmem:[%s14513_s29 + $0x4c] sm:$0xf]  ;;  %v14664_v34 = vld [vmem:[%s14513_s29 + $0x5c] sm:$0x1] }
  0x28   : > { %12782 = vmatprep.subr.bf16.mxu0 %v14161_v17  ;;  %v406_v52 = vor.u32 %v405_v41, %v401_v40  ;;  %v411_v53 = vrot.slane %v409_v42, 5  ;;  %v416_v54 = vrot.slane %v414_v43, 4  ;;  %v423_v55 = vshll.u32 %v14614_v38, 16 }
  0x29   : > { %v388_v57 = vsel %vm14545_vm2, %v383_v45, %v387_v29  ;;  %v397_v58 = vrot.slane %v396_v47, 4  ;;  %v419_v59 = vrot.slane %v417_v49, 5  ;;  %v427_v60 = vshrl.u32 %v14614_v38, 16 }
  0x2a   : > { %v11262_v61 = vcombine.low %v378_v44, %v388_v57  ;;  %v407_v0 = vrot.slane %v406_v52, 4  ;;  %v425_v1 = vrot.slane %v423_v55, 5  ;;  %v433_v6 = vshll.u32 %v14624_v48, 16 }
  0x2b   : > { %12783 = vmatpush3.bf16.msra.mxu0 %v14161_v17  ;;  %v402_v7 = vsel %vm14545_vm2, %v397_v58, %v401_v40  ;;  %v420_v8 = vor.u32 %v419_v59, %v416_v54  ;;  %v429_v10 = vrot.slane %v427_v60, 4  ;;  %v438_v13 = vshrl.u32 %v14628_v50, 16  ;;  %v14165_v59 = vld [vmem:[%s18511_s1 + $0x18] sm:$0xff]  }
  0x2c   : > { %12816 = vmatprep.subr.bf16.mxu0 %v14162_v39  ;;  %v412_v14 = vsel %vm14545_vm2, %v407_v0, %v411_v53  ;;  %v435_v17 = vrot.slane %v433_v6, 5  ;;  %v441_v18 = vshll.u32 %v14628_v50, 16  ;;  %v447_v19 = vshll.u32 %v14632_v56, 16  ;;  %v14678_v53 = vld [vmem:[%s14513_s29 + $0x64] sm:$0xf] }
  0x2d   : > { %v11263_v21 = vcombine.low %v402_v7, %v412_v14  ;;  %v421_v23 = vrot.slane %v420_v8, 4  ;;  %v430_v24 = vor.u32 %v429_v10, %v425_v1  ;;  %v440_v26 = vrot.slane %v438_v13, 4  ;;  %v14693_v14 = vld [vmem:[%s14513_s29 + $0x6c] sm:$0xf] }
  0x2e   : > { %12785 = vmatmul.mubr.bf16.vlgmr.msra.gmra.mrb[0].mxu0 %v14589_v3  ;;  %v14164_v3 = vld [vmem:[%s18511_s1 + $0x10] sm:$0xff]   ;;  %v443_v28 = vrot.slane %v441_v18, 5  ;;  %v449_v29 = vrot.slane %v447_v19, 5  ;;  %v451_v31 = vshrl.u32 %v14632_v56, 16  ;;  %v457_v32 = vshll.u32 %v14644_v11, 16 }
  0x2f   : > { %12817 = vmatpush3.bf16.msra.mxu0 %v14162_v39  ;;  %12788 = vmatprep.mubr.bf16.mxu0 %v11261_v33  ;;  %v14667_v33 = vld [vmem:[%s14513_s29 + $0x60] sm:$0xf]  ;;  %v426_v36 = vsel %vm14545_vm2, %v421_v23, %v425_v1  ;;  %v431_v37 = vrot.slane %v430_v24, 4  ;;  %v462_v39 = vshrl.u32 %v14653_v20, 16  ;;  %v465_v40 = vshll.u32 %v14653_v20, 16 }
  0x30   : > { %12818 = vmatprep.subr.bf16.mxu0 %v14163_v62  ;;  %v444_v41 = vor.u32 %v443_v28, %v440_v26  ;;  %v453_v42 = vrot.slane %v451_v31, 4  ;;  %v459_v43 = vrot.slane %v457_v32, 5  ;;  %v471_v44 = vshll.u32 %v14659_v27, 16  ;;  %v14685_v1 = vld [vmem:[%s14513_s29 + $0x68] sm:$0x1] }
  0x31   : > { %v436_v45 = vsel %vm14545_vm2, %v431_v37, %v435_v17  ;;  %v464_v47 = vrot.slane %v462_v39, 4  ;;  %v467_v49 = vrot.slane %v465_v40, 5  ;;  %v475_v52 = vshrl.u32 %v14659_v27, 16  ;;  %18623 = vst [vmem:[#allocation4_spill] sm:$0xff] %v14685_v1  ;;  %v14696_v24 = vld [vmem:[%s14513_s29 + $0x70] sm:$0xf] }
  0x32   : > { %v11264_v54 = vcombine.low %v426_v36, %v436_v45  ;;  %v445_v55 = vrot.slane %v444_v41, 4  ;;  %v454_v57 = vor.u32 %v453_v42, %v449_v29  ;;  %v473_v58 = vrot.slane %v471_v44, 5  ;;  %v14708_v40 = vld [vmem:[%s14513_s29 + $0x74] sm:$0x1] }
  0x33   : > { %12819 = vmatpush3.bf16.msra.mxu0 %v14163_v62  ;;  %v468_v60 = vor.u32 %v467_v49, %v464_v47  ;;  %v477_v62 = vrot.slane %v475_v52, 4  ;;  %v481_v0 = vshll.u32 %v14664_v34, 16  ;;  %v486_v6 = vshrl.u32 %v14667_v33, 16  ;;  %18624 = vst [vmem:[#allocation5_spill] sm:$0xff] %v14708_v40  ;;  %v14717_v49 = vld [vmem:[%s14513_s29 + $0x78] sm:$0xf] }
  0x34   : > { %12820 = vmatprep.subr.bf16.mxu0 %v14164_v3  ;;  %v450_v7 = vsel %vm14545_vm2, %v445_v55, %v449_v29  ;;  %v455_v8 = vrot.slane %v454_v57, 4  ;;  %v489_v10 = vshll.u32 %v14667_v33, 16  ;;  %v495_v13 = vshll.u32 %v14678_v53, 16 }
  0x35   : > { %v469_v17 = vrot.slane %v468_v60, 4  ;;  %v478_v18 = vor.u32 %v477_v62, %v473_v58  ;;  %v483_v19 = vrot.slane %v481_v0, 5  ;;  %v488_v23 = vrot.slane %v486_v6, 4  ;;  %v14720_v60 = vld [vmem:[%s14513_s29 + $0x7c] sm:$0xf]  ;;  %v14167_v62 = vld [vmem:[%s18511_s1 + $0x28] sm:$0xff]  }
  0x36   : > { %12789 = vmatmul.mubr.bf16.gmra.mrb[4].mxu0 %v11262_v61  ;;  %v460_v61 = vsel %vm14545_vm2, %v455_v8, %v459_v43  ;;  %v491_v26 = vrot.slane %v489_v10, 5  ;;  %v497_v28 = vrot.slane %v495_v13, 5  ;;  %v499_v29 = vshrl.u32 %v14678_v53, 16  ;;  %v14727_v8 = vld [vmem:[%s14513_s29 + $0x80] sm:$0x1] }
  0x37   : > { %12792 = vmatprep.mubr.bf16.mxu0 %v11263_v21  ;;  %12821 = vmatpush3.bf16.msra.mxu0 %v14164_v3  ;;  %v14166_v21 = vld [vmem:[%s18511_s1 + $0x20] sm:$0xff]   ;;  %v11265_v3 = vcombine.low %v450_v7, %v460_v61  ;;  %v474_v31 = vsel %vm14545_vm2, %v469_v17, %v473_v58  ;;  %v479_v32 = vrot.slane %v478_v18, 4  ;;  %v505_v36 = vshll.u32 %v14685_v1, 16  ;;  %18625 = vst [vmem:[#allocation6_spill] sm:$0xff] %v14727_v8 }
  0x38   : > { %12822 = vmatprep.subr.bf16.mxu0 %v14165_v59  ;;  %v492_v37 = vor.u32 %v491_v26, %v488_v23  ;;  %v501_v39 = vrot.slane %v499_v29, 4  ;;  %v510_v41 = vshrl.u32 %v14693_v14, 16  ;;  %v513_v42 = vshll.u32 %v14693_v14, 16  ;;  %v14735_v29 = vld [vmem:[%s14513_s29 + $0x84] sm:$0xf] }
  0x39   : > { %v484_v43 = vsel %vm14545_vm2, %v479_v32, %v483_v19  ;;  %v507_v44 = vrot.slane %v505_v36, 5  ;;  %v519_v45 = vshll.u32 %v14696_v24, 16  ;;  %v523_v47 = vshrl.u32 %v14696_v24, 16  ;;  %v14741_v36 = vld [vmem:[%s14513_s29 + $0x88] sm:$0xf] }
  0x3a   : > { %v11266_v52 = vcombine.low %v474_v31, %v484_v43  ;;  %v493_v55 = vrot.slane %v492_v37, 4  ;;  %v502_v57 = vor.u32 %v501_v39, %v497_v28  ;;  %v512_v58 = vrot.slane %v510_v41, 4 }
  0x3b   : > { %12823 = vmatpush3.bf16.msra.mxu0 %v14165_v59  ;;  %v515_v59 = vrot.slane %v513_v42, 5  ;;  %v521_v0 = vrot.slane %v519_v45, 5  ;;  %v525_v6 = vrot.slane %v523_v47, 4  ;;  %v529_v7 = vshll.u32 %v14708_v40, 16  ;;  %v14748_v45 = vld [vmem:[%s14513_s29 + $0x8c] sm:$0x1] }
  0x3c   : > { %12824 = vmatprep.subr.bf16.mxu0 %v14166_v21  ;;  %v498_v10 = vsel %vm14545_vm2, %v493_v55, %v497_v28  ;;  %v503_v13 = vrot.slane %v502_v57, 4  ;;  %v534_v17 = vshrl.u32 %v14717_v49, 16  ;;  %v537_v18 = vshll.u32 %v14717_v49, 16  ;;  %18626 = vst [vmem:[#allocation7_spill] sm:$0xff] %v14748_v45  ;;  %v14169_v55 = vld [vmem:[%s18511_s1 + $0x38] sm:$0xff]  }
  0x3d   : > { %v516_v19 = vor.u32 %v515_v59, %v512_v58  ;;  %v526_v23 = vor.u32 %v525_v6, %v521_v0  ;;  %v531_v61 = vrot.slane %v529_v7, 5  ;;  %v543_v26 = vshll.u32 %v14720_v60, 16  ;;  %v14761_v7 = vld [vmem:[%s14513_s29 + $0x90] sm:$0xf] }
  0x3e   : > { %12793 = vmatmul.mubr.bf16.gmra.mrb[8].mxu0 %v11264_v54  ;;  %v508_v54 = vsel %vm14545_vm2, %v503_v13, %v507_v44  ;;  %v536_v31 = vrot.slane %v534_v17, 4  ;;  %v539_v28 = vrot.slane %v537_v18, 5  ;;  %v547_v32 = vshrl.u32 %v14720_v60, 16 }
  0x3f   : > { %12796 = vmatprep.mubr.bf16.mxu0 %v11265_v3  ;;  %12825 = vmatpush3.bf16.msra.mxu0 %v14166_v21  ;;  %v14168_v3 = vld [vmem:[%s18511_s1 + $0x30] sm:$0xff]   ;;  %v11267_v21 = vcombine.low %v498_v10, %v508_v54  ;;  %v517_v37 = vrot.slane %v516_v19, 4  ;;  %v527_v39 = vrot.slane %v526_v23, 4  ;;  %v545_v41 = vrot.slane %v543_v26, 5  ;;  %v14768_v54 = vld [vmem:[%s14513_s29 + $0x98] sm:$0x1] }
  0x40   : > { %12826 = vmatprep.subr.bf16.mxu0 %v14167_v62  ;;  %v540_v42 = vor.u32 %v539_v28, %v536_v31  ;;  %v549_v43 = vrot.slane %v547_v32, 4  ;;  %v553_v44 = vshll.u32 %v14727_v8, 16  ;;  %v558_v47 = vshrl.u32 %v14735_v29, 16  ;;  %v14764_v10 = vld [vmem:[%s14513_s29 + $0x94] sm:$0xf]  ;;  %18627 = vst [vmem:[#allocation8_spill] sm:$0xff] %v14768_v54 }
  0x41   : > { %v522_v57 = vsel %vm14545_vm2, %v517_v37, %v521_v0  ;;  %v532_v58 = vsel %vm14545_vm2, %v527_v39, %v531_v61  ;;  %v561_v59 = vshll.u32 %v14735_v29, 16  ;;  %v567_v6 = vshll.u32 %v14741_v36, 16  ;;  %v14771_v31 = vld [vmem:[%s14513_s29 + $0x9c] sm:$0xf] }
  0x42   : > { %v11268_v13 = vcombine.low %v522_v57, %v532_v58  ;;  %v541_v17 = vrot.slane %v540_v42, 4  ;;  %v550_v18 = vor.u32 %v549_v43, %v545_v41  ;;  %v555_v19 = vrot.slane %v553_v44, 5 }
  0x43   : > { %12827 = vmatpush3.bf16.msra.mxu0 %v14167_v62  ;;  %v560_v0 = vrot.slane %v558_v47, 4  ;;  %v563_v23 = vrot.slane %v561_v59, 5  ;;  %v569_v26 = vrot.slane %v567_v6, 5  ;;  %v571_v61 = vshrl.u32 %v14741_v36, 16  ;;  %v14780_v47 = vld [vmem:[%s14513_s29 + $0xa0] sm:$0xf] }
  0x44   : > { %12828 = vmatprep.subr.bf16.mxu0 %v14168_v3  ;;  %v546_v62 = vsel %vm14545_vm2, %v541_v17, %v545_v41  ;;  %v551_v28 = vrot.slane %v550_v18, 4  ;;  %v577_v32 = vshll.u32 %v14748_v45, 16  ;;  %v582_v37 = vshrl.u32 %v14761_v7, 16 }
  0x45   : > { %v564_v39 = vor.u32 %v563_v23, %v560_v0  ;;  %v573_v42 = vrot.slane %v571_v61, 4  ;;  %v585_v43 = vshll.u32 %v14761_v7, 16  ;;  %v591_v44 = vshll.u32 %v14764_v10, 16 }
  0x46   : > { %12797 = vmatmul.mubr.bf16.gmra.mrb[12].mxu0 %v11266_v52  ;;  %v556_v52 = vsel %vm14545_vm2, %v551_v28, %v555_v19  ;;  %v579_v41 = vrot.slane %v577_v32, 5  ;;  %v584_v57 = vrot.slane %v582_v37, 4  ;;  %v595_v58 = vshrl.u32 %v14764_v10, 16  ;;  %v14796_v28 = vld [vmem:[%s14513_s29 + $0xa8] sm:$0xf] }
  0x47   : > { %12800 = vmatprep.mubr.bf16.mxu0 %v11267_v21  ;;  %12829 = vmatpush3.bf16.msra.mxu0 %v14168_v3  ;;  %v14788_v21 = vld [vmem:[%s18511_s1 + $0x80] sm:$0xff]   ;;  %v11269_v59 = vcombine.low %v546_v62, %v556_v52  ;;  %v565_v6 = vrot.slane %v564_v39, 4  ;;  %v574_v17 = vor.u32 %v573_v42, %v569_v26  ;;  %v587_v18 = vrot.slane %v585_v43, 5  ;;  %v14802_v39 = vld [vmem:[%s14513_s29 + $0xac] sm:$0xf] }
  0x48   : > { %12830 = vmatprep.subr.bf16.mxu0 %v14169_v55  ;;  %18628 = vst [vmem:[#allocation9_spill] sm:$0xff] %v14788_v21  ;;  %v14791_v3 = vld [vmem:[%s14513_s29 + $0xa4] sm:$0x1]  ;;  %v593_v0 = vrot.slane %v591_v44, 5  ;;  %v597_v23 = vrot.slane %v595_v58, 4  ;;  %v601_v19 = vshll.u32 %v14768_v54, 16 }
  0x49   : > { %18629 = vst [vmem:[#allocation10_spill] sm:$0xff] %v14791_v3  ;;  %v606_v61 = vshrl.u32 %v14771_v31, 16  ;;  %v570_v32 = vsel %vm14545_vm2, %v565_v6, %v569_v26  ;;  %v575_v37 = vrot.slane %v574_v17, 4  ;;  %v588_v45 = vor.u32 %v587_v18, %v584_v57  ;;  %v14810_v6 = vld [vmem:[%s14513_s29 + $0xb0] sm:$0x1] }
  0x4a   : > { %v609_v62 = vshll.u32 %v14771_v31, 16  ;;  %v598_v42 = vor.u32 %v597_v23, %v593_v0  ;;  %v603_v43 = vrot.slane %v601_v19, 5  ;;  %v615_v52 = vshll.u32 %v14780_v47, 16  ;;  %18630 = vst [vmem:[#allocation11_spill] sm:$0xff] %v14810_v6  ;;  %v14814_v23 = vld [vmem:[%s14513_s29 + $0xb4] sm:$0xf] }
  0x4b   : > { %12831 = vmatpush3.bf16.msra.mxu0 %v14169_v55  ;;  %v608_v44 = vrot.slane %v606_v61, 4  ;;  %v580_v58 = vsel %vm14545_vm2, %v575_v37, %v579_v41  ;;  %v589_v54 = vrot.slane %v588_v45, 4  ;;  %v619_v57 = vshrl.u32 %v14780_v47, 16 }
  0x4c   : > { %12864 = vmatprep.subr.bf16.mxu0 %v14788_v21  ;;  %v611_v26 = vrot.slane %v609_v62, 5  ;;  %v599_v17 = vrot.slane %v598_v42, 4  ;;  %v617_v55 = vrot.slane %v615_v52, 5  ;;  %v625_v18 = vshll.u32 %v14791_v3, 16  ;;  %v14824_v42 = vld [vmem:[%s14513_s29 + $0xb8] sm:$0xf] }
  0x4d   : > { %v11270_v19 = vcombine.low %v570_v32, %v580_v58  ;;  %v621_v8 = vrot.slane %v619_v57, 4  ;;  %v630_v41 = vshrl.u32 %v14796_v28, 16  ;;  %v594_v45 = vsel %vm14545_vm2, %v589_v54, %v593_v0 }
  0x4e   : > { %12801 = vmatmul.mubr.bf16.gmra.mrb[16].mxu0 %v11268_v13  ;;  %v612_v61 = vor.u32 %v611_v26, %v608_v44  ;;  %v604_v37 = vsel %vm14545_vm2, %v599_v17, %v603_v43  ;;  %v633_v13 = vshll.u32 %v14796_v28, 16  ;;  %v639_v62 = vshll.u32 %v14802_v39, 16 }
  0x4f   : > { %12804 = vmatprep.mubr.bf16.mxu0 %v11269_v59  ;;  %v622_v59 = vor.u32 %v621_v8, %v617_v55  ;;  %v627_v32 = vrot.slane %v625_v18, 5  ;;  %v632_v44 = vrot.slane %v630_v41, 4  ;;  %v643_v57 = vshrl.u32 %v14802_v39, 16  ;;  %v14833_v8 = vld [vmem:[%s14513_s29 + $0xbc] sm:$0x1] }
  0x50   : > { %v613_v52 = vrot.slane %v612_v61, 4  ;;  %v635_v58 = vrot.slane %v633_v13, 5  ;;  %v641_v26 = vrot.slane %v639_v62, 5  ;;  %v649_v54 = vshll.u32 %v14810_v6, 16 }
  0x51   : > { %v11271_v0 = vcombine.low %v594_v45, %v604_v37  ;;  %v623_v3 = vrot.slane %v622_v59, 4  ;;  %v654_v43 = vshrl.u32 %v14814_v23, 16  ;;  %v657_v17 = vshll.u32 %v14814_v23, 16 }
  0x52   : > { %v618_v21 = vsel %vm14545_vm2, %v613_v52, %v617_v55  ;;  %v636_v40 = vor.u32 %v635_v58, %v632_v44  ;;  %v645_v61 = vrot.slane %v643_v57, 4  ;;  %v663_v18 = vshll.u32 %v14824_v42, 16 }
  0x53   : > { %v651_v41 = vrot.slane %v649_v54, 5  ;;  %v656_v13 = vrot.slane %v654_v43, 4  ;;  %v659_v62 = vrot.slane %v657_v17, 5  ;;  %v667_v6 = vshrl.u32 %v14824_v42, 16  ;;  %v1287_v54 = vld [vmem:[%s14513_s29 + $0xb4] sm:$0xe] }
  0x54   : > { %v628_v45 = vsel %vm14545_vm2, %v623_v3, %v627_v32  ;;  %v637_v37 = vrot.slane %v636_v40, 4  ;;  %v646_v59 = vor.u32 %v645_v61, %v641_v26  ;;  %v665_v1 = vrot.slane %v663_v18, 5 }
  0x55   : > { %v660_v55 = vor.u32 %v659_v62, %v656_v13  ;;  %v669_v52 = vrot.slane %v667_v6, 4  ;;  %v673_v44 = vshll.u32 %v14833_v8, 16  ;;  %v11272_v43 = vcombine.low %v618_v21, %v628_v45 }
  0x56   : > { %12805 = vmatmul.mubr.bf16.gmra.mrb[20].mxu0 %v11270_v19  ;;  %v642_v58 = vsel %vm14545_vm2, %v637_v37, %v641_v26  ;;  %v647_v57 = vrot.slane %v646_v59, 4  ;;  %v1277_v59 = vld [vmem:[%s14513_s29 + $0x3c] sm:$0xe]  ;;  %v11285_v45 = vcombine.low %v14550_v30, %v14553_v35  ;;  %v1363_v30 = vrot.slane %v14624_v48, 5  ;;  %v14175_v48 = vld [vmem:[%s18511_s1 + $0x88] sm:$0xff]  }
  0x57   : > { %12808 = vmatprep.mubr.bf16.mxu0 %v11271_v0  ;;  %v661_v19 = vrot.slane %v660_v55, 4  ;;  %v670_v17 = vor.u32 %v669_v52, %v665_v1  ;;  %v675_v61 = vrot.slane %v673_v44, 5  ;;  %v1275_v52 = vld [vmem:[%s14513_s29 + $0x24] sm:$0xe]  ;;  %v1409_v6 = vrot.slane %v14764_v10, 5 }
  0x58   : > { %v652_v3 = vsel %vm14545_vm2, %v647_v57, %v651_v41  ;;  %v11310_v57 = vrot.slane %v1275_v52, 9  ;;  %v1279_v52 = vld [vmem:[%s14513_s29 + $0x54] sm:$0xe]  ;;  %v1423_v25 = vrot.slane %v14802_v39, 5 }
  0x59   : > { %v11273_v0 = vcombine.low %v642_v58, %v652_v3  ;;  %v671_v21 = vrot.slane %v670_v17, 4  ;;  %v666_v44 = vsel %vm14545_vm2, %v661_v19, %v665_v1  ;;  %v1346_v17 = vrot.slane %v14571_v51, 5  ;;  %v1276_v3 = vld [vmem:[%s14513_s29 + $0x30] sm:$0xe] }
  0x5a   : > { %v11283_v1 = vcombine.low %v14519_v4, %v14522_v5  ;;  %v1356_v5 = vrot.slane %v14596_v16, 5  ;;  %v1367_v16 = vrot.slane %v14632_v56, 5 }
  0x5b   : > { %v676_v58 = vsel %vm14545_vm2, %v671_v21, %v675_v61  ;;  %v14887_v19 = vsel %vm14878_vm5, %v11310_v57, %v1346_v17  ;;  %v1349_v21 = vrot.slane %v14582_v63, 5  ;;  %v11311_v61 = vrot.slane %v1276_v3, 9 }
  0x5c   : > { %v11274_v37 = vcombine.low %v666_v44, %v676_v58  ;;  %v11284_v44 = vcombine.low %v14530_v12, %v14533_v15  ;;  %v1353_v58 = vrot.slane %v14592_v9, 5  ;;  %v11312_v57 = vrot.slane %v1277_v59, 9 }
  0x5d   : > { %v1370_v59 = vrot.slane %v14644_v11, 5  ;;  %v1369_v11 = vrot.slane %v1367_v16, 4 }
  0x5e   : > { %12809 = vmatmul.mubr.bf16.gmra.mrb[24].mxu0 %v11272_v43  ;;  %v1348_v43 = vrot.slane %v1346_v17, 4  ;;  %v14905_v12 = vsel %vm14878_vm5, %v11311_v61, %v1353_v58  ;;  %v1355_v15 = vrot.slane %v1353_v58, 4  ;;  %v1360_v17 = vrot.slane %v14614_v38, 5 }
  0x5f   : > { %12812 = vmatprep.mubr.bf16.mxu0 %v11273_v0  ;;  %v1278_v0 = vld [vmem:[%s14513_s29 + $0x48] sm:$0xe]  ;;  %v11314_v61 = vrot.slane %v1279_v52, 9  ;;  %v1374_v58 = vrot.slane %v14659_v27, 5 }
  0x60   : > { %v14898_v4 = vsel %vm14878_vm5, %v1348_v43, %v1349_v21  ;;  %v11313_v35 = vrot.slane %v1278_v0, 9  ;;  %v14914_v3 = vsel %vm14878_vm5, %v1355_v15, %v1356_v5  ;;  %v14918_v43 = vsel %vm14878_vm5, %v11312_v57, %v1360_v17  ;;  %v1282_v5 = vld [vmem:[%s14513_s29 + $0x78] sm:$0xe] }
  0x61   : > { %v1362_v21 = vrot.slane %v1360_v17, 4  ;;  %v1377_v57 = vrot.slane %v14664_v34, 5  ;;  %v1381_v17 = vrot.slane %v14678_v53, 5  ;;  %v1376_v34 = vrot.slane %v1374_v58, 4 }
  0x62   : > { %v14925_v0 = vsel %vm14878_vm5, %v11313_v35, %v1367_v16  ;;  %v14942_v16 = vsel %vm14878_vm5, %v1369_v11, %v1370_v59  ;;  %v18633_v35 = vld [vmem:[#allocation4_spill] sm:$0xff]  ;;  %v1388_v11 = vrot.slane %v14696_v24, 5 }
  0x63   : > { %v14931_v15 = vsel %vm14878_vm5, %v1362_v21, %v1363_v30  ;;  %v14946_v30 = vsel %vm14878_vm5, %v11314_v61, %v1374_v58  ;;  %v1383_v62 = vrot.slane %v1381_v17, 4  ;;  %v1384_v41 = vrot.slane %v18633_v35, 5  ;;  %v18634_v58 = vld [vmem:[#allocation5_spill] sm:$0xff]  ;;  %v18636_v21 = vld [vmem:[#allocation6_spill] sm:$0xff] }
  0x64   : > { %v14958_v59 = vsel %vm14878_vm5, %v1376_v34, %v1377_v57  ;;  %v1391_v13 = vrot.slane %v18634_v58, 5  ;;  %v1395_v35 = vrot.slane %v14720_v60, 5  ;;  %v1284_v57 = vld [vmem:[%s14513_s29 + $0x90] sm:$0xe]  ;;  %v18635_v34 = vld [vmem:[#allocation9_spill] sm:$0xff]  ;;  %v1390_v58 = vrot.slane %v1388_v11, 4 }
  0x65   : > { %v1398_v18 = vrot.slane %v18636_v21, 5  ;;  %v18637_v21 = vld [vmem:[#allocation7_spill] sm:$0xff]  ;;  %v11319_v32 = vrot.slane %v1284_v57, 9 }
  0x66   : > { %12813 = vmatmul.mubr.bf16.gmra.mrb[28].mxu0 %v11274_v37  ;;  %v1280_v37 = vld [vmem:[%s14513_s29 + $0x60] sm:$0xe]  ;;  %v1405_v26 = vrot.slane %v18637_v21, 5 }
  0x67   : > { %12832 = vmatprep.mubr.bf16.mxu0 %v11283_v1  ;;  %v1281_v1 = vld [vmem:[%s14513_s29 + $0x6c] sm:$0xe]  ;;  %v11315_v52 = vrot.slane %v1280_v37, 9  ;;  %v1283_v37 = vld [vmem:[%s14513_s29 + $0x84] sm:$0xe]  ;;  %v15009_v57 = vsel %vm14878_vm5, %v11319_v32, %v1409_v6 }
  0x68   : > { %v11316_v61 = vrot.slane %v1281_v1, 9  ;;  %v1402_v1 = vrot.slane %v14741_v36, 5  ;;  %v18639_v21 = vld [vmem:[#allocation8_spill] sm:$0xff] }
  0x69   : > { %v14953_v63 = vsel %vm14878_vm5, %v11315_v52, %v1381_v17  ;;  %v14966_v52 = vsel %vm14878_vm5, %v1383_v62, %v1384_v41  ;;  %v11317_v17 = vrot.slane %v1282_v5, 9  ;;  %v1285_v41 = vld [vmem:[%s14513_s29 + $0x9c] sm:$0xe]  ;;  %v14178_v62 = vld [vmem:[%s18511_s1 + $0x90] sm:$0xff]   ;;  %v1397_v5 = vrot.slane %v1395_v35, 4 }
  0x6a   : > { %v1412_v40 = vrot.slane %v18639_v21, 5 }
  0x6e   : > { %12833 = vmatmul.mubr.bf16.vlgmr.msra.gmra.mrb[0].mxu0 %v11284_v44  ;;  %v14975_v44 = vsel %vm14878_vm5, %v11316_v61, %v1388_v11  ;;  %v1286_v61 = vld [vmem:[%s14513_s29 + $0xa8] sm:$0xe]  ;;  %v14990_v11 = vsel %vm14878_vm5, %v1390_v58, %v1391_v13  ;;  %v1411_v58 = vrot.slane %v1409_v6, 4 }
  0x6f   : > { %12865 = vmatpush3.bf16.msra.mxu0 %v18635_v34  ;;  %12836 = vmatprep.mubr.bf16.mxu0 %v11285_v45  ;;  %v14984_v45 = vsel %vm14878_vm5, %v11317_v17, %v1395_v35  ;;  %v11318_v34 = vrot.slane %v1283_v37, 9  ;;  %v14998_v17 = vsel %vm14878_vm5, %v1397_v5, %v1398_v18  ;;  %v1404_v35 = vrot.slane %v1402_v1, 4  ;;  %v14181_v18 = vld [vmem:[%s18511_s1 + $0x98] sm:$0xff]  }
  0x70   : > { %12866 = vmatprep.subr.bf16.mxu0 %v14175_v48  ;;  %18638 = vst [vmem:[#allocation4_spill] sm:$0xff] %v14998_v17  ;;  %v1416_v5 = vrot.slane %v14780_v47, 5  ;;  %v15025_v6 = vsel %vm14878_vm5, %v1411_v58, %v1412_v40  ;;  %v11321_v21 = vrot.slane %v1286_v61, 9  ;;  %v18641_v17 = vcombine.low %v14565_v46, %v14571_v51  ;;  %v14184_v58 = vld [vmem:[%s18511_s1 + $0xa0] sm:$0xff]  }
  0x71   : > { %v15002_v37 = vsel %vm14878_vm5, %v11318_v34, %v1402_v1  ;;  %v15017_v1 = vsel %vm14878_vm5, %v1404_v35, %v1405_v26  ;;  %v18640_v34 = vld [vmem:[#allocation10_spill] sm:$0xff]  ;;  %v11351_v26 = vcombine.low %v15009_v57, %v15025_v6  ;;  %v18643_v40 = vcombine.low %v14587_v2, %v14592_v9 }
  0x72   : > { %v1419_v13 = vrot.slane %v18640_v34, 5  ;;  %v1418_v35 = vrot.slane %v1416_v5, 4  ;;  %v18642_v34 = vld [vmem:[#allocation11_spill] sm:$0xff]  ;;  %v15043_v61 = vsel %vm14878_vm5, %v11321_v21, %v1423_v25  ;;  %v1425_v46 = vrot.slane %v1423_v25, 4  ;;  %v14202_v57 = vld [vmem:[%s14513_s29 + $0xc] sm:$0xff]  }
  0x73   : > { %12867 = vmatpush3.bf16.msra.mxu0 %v14175_v48  ;;  %v11320_v48 = vrot.slane %v1285_v41, 9  ;;  %v1426_v32 = vrot.slane %v18642_v34, 5  ;;  %v11322_v51 = vrot.slane %v1287_v54, 9  ;;  %v1433_v2 = vrot.slane %v14833_v8, 5  ;;  %v14193_v34 = vld [vmem:[%s18511_s1 + $0xb8] sm:$0xff]  }
  0x74   : > { %12868 = vmatprep.subr.bf16.mxu0 %v14178_v62  ;;  %v18644_v21 = vcombine.low %v14606_v22, %v14614_v38  ;;  %v18646_v22 = vcombine.low %v14653_v20, %v14659_v27  ;;  %v18647_v38 = vcombine.low %v14667_v33, %v14678_v53  ;;  %v18649_v20 = vcombine.low %v14717_v49, %v14720_v60  ;;  %v14394_v27 = vld [vmem:[%s14513_s29 + $0x4] sm:$0xf]  ;;  %v1272_v53 = vld [vmem:[%s14513_s29] sm:$0xe]  ;;  %v1273_v60 = vld [vmem:[%s14513_s29 + $0xc] sm:$0xe] }
  0x75   : > { %v15035_v41 = vsel %vm14878_vm5, %v11320_v48, %v1416_v5  ;;  %v15051_v48 = vsel %vm14878_vm5, %v1418_v35, %v1419_v13  ;;  %v15058_v25 = vsel %vm14878_vm5, %v1425_v46, %v1426_v32  ;;  %v14187_v5 = vld [vmem:[%s18511_s1 + $0xa8] sm:$0xff]   ;;  %v18645_v35 = vcombine.low %v14628_v50, %v14632_v56  ;;  %v14194_v50 = vld [vmem:[%s18511_s1 + $0xc0] sm:$0xff]  }
  0x76   : > { %12837 = vmatmul.mubr.bf16.gmra.mrb[4].mxu0 %v18641_v17  ;;  %v1430_v17 = vrot.slane %v14824_v42, 5  ;;  %v11352_v9 = vcombine.low %v15035_v41, %v15051_v48  ;;  %v11353_v13 = vcombine.low %v15043_v61, %v15058_v25  ;;  %v18648_v56 = vcombine.low %v14693_v14, %v14696_v24  ;;  %v11440_v61 = vld [vmem:[%s14513_s29 + $0x20] sm:$0x1] }
  0x77   : > { %12840 = vmatprep.mubr.bf16.mxu0 %v18643_v40  ;;  %12869 = vmatpush3.bf16.msra.mxu0 %v14178_v62  ;;  %v1325_v33 = vrot.slane %v14394_v27, 5  ;;  %v14395_v40 = vld [vmem:[%s14513_s29 + $0x8] sm:$0x1]  ;;  %v18651_v14 = vcombine.low %v14761_v7, %v14764_v10  ;;  %v11307_v24 = vrot.slane %v1272_v53, 9  ;;  %v18652_v49 = vcombine.low %v14771_v31, %v14780_v47 }
  0x78   : > { %12870 = vmatprep.subr.bf16.mxu0 %v14181_v18  ;;  %v15062_v54 = vsel %vm14878_vm5, %v11322_v51, %v1430_v17  ;;  %v1432_v62 = vrot.slane %v1430_v17, 4  ;;  %v1328_v46 = vrot.slane %v14395_v40, 5  ;;  %v18650_v51 = vcombine.low %v14735_v29, %v14741_v36  ;;  %v14397_v29 = vld [vmem:[%s14513_s29 + $0x1c] sm:$0xf] }
  0x79   : > { %v1327_v17 = vrot.slane %v1325_v33, 4  ;;  %v1339_v36 = vrot.slane %v14397_v29, 5  ;;  %v1326_v7 = vsel %vm14878_vm5, %v11307_v24, %v1325_v33  ;;  %v14199_v24 = vld [vmem:[%s18511_s1 + $0xe8] sm:$0xff]  }
  0x7a   : > { %v15071_v8 = vsel %vm14878_vm5, %v1432_v62, %v1433_v2  ;;  %v14396_v2 = vld [vmem:[%s14513_s29 + $0x10] sm:$0xf] }
  0x7b   : > { %12871 = vmatpush3.bf16.msra.mxu0 %v14181_v18  ;;  %v11354_v32 = vcombine.low %v15062_v54, %v15071_v8  ;;  %v14190_v18 = vld [vmem:[%s18511_s1 + $0xb0] sm:$0xff]   ;;  %v1332_v62 = vrot.slane %v14396_v2, 5  ;;  %v1329_v10 = vsel %vm14878_vm5, %v1327_v17, %v1328_v46  ;;  %v14197_v46 = vld [vmem:[%s18511_s1 + $0xd8] sm:$0xff]   ;;  %v2236_v54 = vshll.u32 %v11440_v61, 16  ;;  %v14207_v8 = vld [vmem:[%s18511_s1 + $0x108] sm:$0xff]  }
  0x7c   : > { %12872 = vmatprep.subr.bf16.mxu0 %v14184_v58  ;;  %v11339_v47 = vcombine.low %v1326_v7, %v1329_v10  ;;  %v11437_v2 = vld [vmem:[%s14513_s29 + $0x14] sm:$0x1]  ;;  %v14203_v7 = vld [vmem:[%s14513_s29 + $0x18] sm:$0xff]   ;;  %v15292_v61 = vld [vmem:[%s14513_s29 + $0x68] sm:$0x1] }
  0x7d   : > { %v2212_v10 = vshll.u32 %v11437_v2, 16  ;;  %v14222_v2 = vld [vmem:[%s18511_s1 + $0x130] sm:$0xff]  }
  0x7e   : > { %12841 = vmatmul.mubr.bf16.gmra.mrb[8].mxu0 %v18644_v21  ;;  %v14398_v21 = vld [vmem:[%s14513_s29 + $0x14] sm:$0x1] }
  0x7f   : > { %12844 = vmatprep.mubr.bf16.mxu0 %v18645_v35  ;;  %12873 = vmatpush3.bf16.msra.mxu0 %v14184_v58  ;;  %v18653_v58 = vcombine.low %v14796_v28, %v14802_v39  ;;  %v1335_v31 = vrot.slane %v14398_v21, 5  ;;  %v11308_v35 = vrot.slane %v1273_v60, 9  ;;  %v1341_v28 = vrot.slane %v1339_v36, 4  ;;  %v14399_v39 = vld [vmem:[%s14513_s29 + $0x20] sm:$0x1] }
  0x80   : > { %12874 = vmatprep.subr.bf16.mxu0 %v14187_v5 }
  0x83   : > { %12875 = vmatpush3.bf16.msra.mxu0 %v14187_v5  ;;  %v1274_v5 = vld [vmem:[%s14513_s29 + $0x18] sm:$0xe] }
  0x84   : > { %12876 = vmatprep.subr.bf16.mxu0 %v14190_v18 }
  0x86   : > { %12845 = vmatmul.mubr.bf16.gmra.mrb[12].mxu0 %v18646_v22  ;;  %v1342_v22 = vrot.slane %v14399_v39, 5 }
  0x87   : > { %12848 = vmatprep.mubr.bf16.mxu0 %v18647_v38  ;;  %12877 = vmatpush3.bf16.msra.mxu0 %v14190_v18  ;;  %v1334_v18 = vrot.slane %v1332_v62, 4  ;;  %v18654_v38 = vcombine.low %v14814_v23, %v14824_v42  ;;  %v14195_v23 = vld [vmem:[%s18511_s1 + $0xc8] sm:$0xff]   ;;  %v14196_v42 = vld [vmem:[%s18511_s1 + $0xd0] sm:$0xff]  }
  0x88   : > { %12878 = vmatprep.subr.bf16.mxu0 %v14193_v34  ;;  %v1343_v33 = vsel %vm14878_vm5, %v1341_v28, %v1342_v22  ;;  %v11442_v28 = vld [vmem:[%s14513_s29 + $0x28] sm:$0xf]  ;;  %v11444_v22 = vld [vmem:[%s14513_s29 + $0x30] sm:$0xf] }
  0x8b   : > { %12879 = vmatpush3.bf16.msra.mxu0 %v14193_v34  ;;  %v11309_v34 = vrot.slane %v1274_v5, 9 }
  0x8c   : > { %12912 = vmatprep.subr.bf16.mxu0 %v14194_v50 }
  0x8d   : > { %v1340_v27 = vsel %vm14878_vm5, %v11309_v34, %v1339_v36  ;;  %v11441_v36 = vld [vmem:[%s14513_s29 + $0x24] sm:$0xf] }
  0x8e   : > { %12849 = vmatmul.mubr.bf16.gmra.mrb[16].mxu0 %v18648_v56  ;;  %v1333_v56 = vsel %vm14878_vm5, %v11308_v35, %v1332_v62  ;;  %v11341_v40 = vcombine.low %v1340_v27, %v1343_v33  ;;  %v2244_v35 = vshll.u32 %v11441_v36, 16  ;;  %v15233_v33 = vrot.slane %v2236_v54, 5  ;;  %v14214_v54 = vld [vmem:[%s14513_s29 + $0x6c] sm:$0xff]  }
  0x8f   : > { %12852 = vmatprep.mubr.bf16.mxu0 %v18649_v20  ;;  %v1336_v20 = vsel %vm14878_vm5, %v1334_v18, %v1335_v31  ;;  %v14205_v31 = vld [vmem:[%s14513_s29 + $0x24] sm:$0xff]  }
  0x90   : > { %v11340_v53 = vcombine.low %v1333_v56, %v1336_v20  ;;  %v15229_v20 = vrot.slane %v2212_v10, 5  ;;  %v14212_v10 = vld [vmem:[%s14513_s29 + $0x60] sm:$0xff]  }
  0x96   : > { %12853 = vmatmul.mubr.bf16.gmra.mrb[20].mxu0 %v18650_v51  ;;  %v18655_v51 = vcombine.low %v14887_v19, %v14898_v4  ;;  %v18657_v19 = vcombine.low %v14918_v43, %v14931_v15  ;;  %v18658_v4 = vcombine.low %v14925_v0, %v14942_v16  ;;  %v18659_v43 = vcombine.low %v14946_v30, %v14958_v59  ;;  %v14204_v15 = vld [vmem:[%s18511_s1 + $0x100] sm:$0xff]  }
  0x97   : > { %12856 = vmatprep.mubr.bf16.mxu0 %v18651_v14  ;;  %v18656_v14 = vcombine.low %v14905_v12, %v14914_v3  ;;  %v14200_v12 = vld [vmem:[%s18511_s1 + $0xf0] sm:$0xff]   ;;  %v14201_v3 = vld [vmem:[%s18511_s1 + $0xf8] sm:$0xff]   ;;  %v18660_v0 = vcombine.low %v14953_v63, %v14966_v52  ;;  %v18661_v16 = vcombine.low %v14975_v44, %v14990_v11  ;;  %v18662_v30 = vld [vmem:[#allocation4_spill] sm:$0xff]  ;;  %v18664_v59 = vcombine.low %v15002_v37, %v15017_v1 }
  0x98   : > { %v18663_v63 = vcombine.low %v14984_v45, %v18662_v30  ;;  %v11435_v52 = vld [vmem:[%s14513_s29 + $0xc] sm:$0xf]  ;;  %v11436_v44 = vld [vmem:[%s14513_s29 + $0x10] sm:$0xf]  ;;  %v11438_v45 = vld [vmem:[%s14513_s29 + $0x18] sm:$0xf] }
  0x99   : > { %v2193_v17 = vshrl.u32 %v11435_v52, 16  ;;  %v11439_v11 = vld [vmem:[%s14513_s29 + $0x1c] sm:$0xf]  ;;  %v2202_v6 = vshll.u32 %v11436_v44, 16  ;;  %v2217_v60 = vshrl.u32 %v11438_v45, 16 }
  0x9a   : > { %v2226_v41 = vshll.u32 %v11439_v11, 16  ;;  %v2230_v48 = vshrl.u32 %v11439_v11, 16 }
  0x9b   : > { %v2195_v37 = vrot.slane %v2193_v17, 4  ;;  %v15208_v25 = vrot.slane %v2202_v6, 5  ;;  %v2219_v62 = vrot.slane %v2217_v60, 4  ;;  %v14209_v17 = vld [vmem:[%s14513_s29 + $0x48] sm:$0xff]   ;;  %v15277_v60 = vld [vmem:[%s14513_s29 + $0x38] sm:$0x1] }
  0x9c   : > { %v15212_v5 = vrot.slane %v2226_v41, 5  ;;  %v2232_v21 = vrot.slane %v2230_v48, 4 }
  0x9e   : > { %12857 = vmatmul.mubr.bf16.gmra.mrb[24].mxu0 %v18652_v49  ;;  %v2196_v49 = vshll.u32 %v11435_v52, 16  ;;  %v2233_v39 = vor.u32 %v2232_v21, %v15212_v5 }
  0x9f   : > { %12860 = vmatprep.mubr.bf16.mxu0 %v18653_v58  ;;  %v2220_v58 = vshll.u32 %v11438_v45, 16  ;;  %v14211_v45 = vld [vmem:[%s14513_s29 + $0x54] sm:$0xff]  }
  0xa0   : > { %v2198_v1 = vrot.slane %v2196_v49, 5 }
  0xa1   : > { %v2222_v29 = vrot.slane %v2220_v58, 5 }
  0xa3   : > { %v2223_v34 = vor.u32 %v2222_v29, %v2219_v62  ;;  %v11530_v29 = vld [vmem:[%s14513_s29 + $0x60] sm:$0xe] }
  0xa5   : > { %v15231_v27 = vrot.slane %v2223_v34, 4 }
  0xa6   : > { %12861 = vmatmul.mubr.bf16.gmra.mrb[28].mxu0 %v18654_v38  ;;  %v14210_v38 = vld [vmem:[%s18511_s1 + $0x110] sm:$0xff]  }
  0xa7   : > { %12880 = vmatprep.mubr.bf16.mxu0 %v11339_v47 }
  0xae   : > { %12881 = vmatmul.mubr.bf16.vlgmr.msra.gmra.mrb[0].mxu0 %v11340_v53  ;;  %v14206_v53 = vld [vmem:[%s14513_s29 + $0x30] sm:$0xff]  }
  0xaf   : > { %12913 = vmatpush3.bf16.msra.mxu0 %v14194_v50  ;;  %12884 = vmatprep.mubr.bf16.mxu0 %v11341_v40  ;;  %v14198_v50 = vld [vmem:[%s18511_s1 + $0xe0] sm:$0xff]   ;;  %v15236_v40 = vrot.slane %v2233_v39, 4 }
  0xb0   : > { %12914 = vmatprep.subr.bf16.mxu0 %v14195_v23 }
  0xb3   : > { %12915 = vmatpush3.bf16.msra.mxu0 %v14195_v23 }
  0xb4   : > { %12916 = vmatprep.subr.bf16.mxu0 %v14196_v42 }
  0xb6   : > { %12885 = vmatmul.mubr.bf16.gmra.mrb[4].mxu0 %v18655_v51  ;;  %v14208_v51 = vld [vmem:[%s14513_s29 + $0x3c] sm:$0xff]  }
  0xb7   : > { %12888 = vmatprep.mubr.bf16.mxu0 %v18656_v14  ;;  %12917 = vmatpush3.bf16.msra.mxu0 %v14196_v42  ;;  %v2246_v42 = vrot.slane %v2244_v35, 5  ;;  %v2254_v14 = vshrl.u32 %v11442_v28, 16  ;;  %v14225_v35 = vld [vmem:[%s18511_s1 + $0x138] sm:$0xff]  }
  0xb8   : > { %12918 = vmatprep.subr.bf16.mxu0 %v14197_v46 }
  0xbb   : > { %12919 = vmatpush3.bf16.msra.mxu0 %v14197_v46  ;;  %v2250_v46 = vshll.u32 %v11442_v28, 16 }
  0xbc   : > { %12920 = vmatprep.subr.bf16.mxu0 %v14198_v50 }
  0xbe   : > { %12889 = vmatmul.mubr.bf16.gmra.mrb[8].mxu0 %v18657_v19  ;;  %v15243_v19 = vld [vmem:[%s14513_s29 + $0x34] sm:$0xf] }
  0xbf   : > { %12892 = vmatprep.mubr.bf16.mxu0 %v18658_v4  ;;  %12921 = vmatpush3.bf16.msra.mxu0 %v14198_v50  ;;  %v2265_v50 = vshrl.u32 %v11444_v22, 16  ;;  %v11443_v4 = vld [vmem:[%s14513_s29 + $0x2c] sm:$0x1]  ;;  %v2274_v30 = vshll.u32 %v15243_v19, 16  ;;  %v2278_v62 = vshrl.u32 %v15243_v19, 16 }
  0xc0   : > { %12922 = vmatprep.subr.bf16.mxu0 %v14199_v24  ;;  %v2260_v49 = vshll.u32 %v11443_v4, 16 }
  0xc1   : > { %v15263_v11 = vrot.slane %v2265_v50, 4  ;;  %v15286_v48 = vrot.slane %v2274_v30, 5 }
  0xc2   : > { %v15301_v21 = vrot.slane %v2260_v49, 5  ;;  %v15364_v49 = vld [vmem:[%s14513_s29 + $0x94] sm:$0xf] }
  0xc3   : > { %12923 = vmatpush3.bf16.msra.mxu0 %v14199_v24  ;;  %v14213_v24 = vld [vmem:[%s18511_s1 + $0x118] sm:$0xff]  }
  0xc4   : > { %12924 = vmatprep.subr.bf16.mxu0 %v14200_v12 }
  0xc6   : > { %12893 = vmatmul.mubr.bf16.gmra.mrb[12].mxu0 %v18659_v43  ;;  %v2268_v43 = vshll.u32 %v11444_v22, 16  ;;  %v15322_v22 = vld [vmem:[%s18511_s1 + $0x140] sm:$0xff]  }
  0xc7   : > { %12896 = vmatprep.mubr.bf16.mxu0 %v18660_v0  ;;  %12925 = vmatpush3.bf16.msra.mxu0 %v14200_v12  ;;  %v14216_v12 = vld [vmem:[%s18511_s1 + $0x120] sm:$0xff]   ;;  %v15252_v0 = vld [vmem:[%s14513_s29 + $0x4c] sm:$0xf] }
  0xc8   : > { %12926 = vmatprep.subr.bf16.mxu0 %v14201_v3  ;;  %v15284_v41 = vrot.slane %v2268_v43, 5 }
  0xcb   : > { %12927 = vmatpush3.bf16.msra.mxu0 %v14201_v3  ;;  %v15249_v3 = vrot.slane %v2250_v46, 5  ;;  %v15335_v46 = vrot.slane %v2278_v62, 4 }
  0xcc   : > { %12960 = vmatprep.subr.bf16.mxu0 %v14204_v15 }
  0xce   : > { %12897 = vmatmul.mubr.bf16.gmra.mrb[16].mxu0 %v18661_v16  ;;  %v2256_v16 = vrot.slane %v2254_v14, 4 }
  0xcf   : > { %12900 = vmatprep.mubr.bf16.mxu0 %v18663_v63  ;;  %v11528_v63 = vld [vmem:[%s14513_s29 + $0x48] sm:$0xe] }
  0xd0   : > { %v2257_v34 = vor.u32 %v2256_v16, %v15249_v3 }
  0xd6   : > { %12901 = vmatmul.mubr.bf16.gmra.mrb[20].mxu0 %v18664_v59  ;;  %v2999_v59 = vrot.slane %v15252_v0, 5 }
  0xd7   : > { %12904 = vmatprep.mubr.bf16.mxu0 %v11351_v26  ;;  %v2206_v26 = vshrl.u32 %v11436_v44, 16  ;;  %v11544_v44 = vrot.slane %v11528_v63, 9  ;;  %v15350_v63 = vld [vmem:[%s14513_s29 + $0x88] sm:$0xf] }
  0xde   : > { %12905 = vmatmul.mubr.bf16.gmra.mrb[24].mxu0 %v11352_v9  ;;  %v2199_v9 = vor.u32 %v2198_v1, %v2195_v37  ;;  %v3001_v37 = vrot.slane %v2999_v59, 4  ;;  %v14219_v1 = vld [vmem:[%s18511_s1 + $0x128] sm:$0xff]  }
  0xdf   : > { %12908 = vmatprep.mubr.bf16.mxu0 %v11353_v13  ;;  %v2208_v13 = vrot.slane %v2206_v26, 4 }
  0xe0   : > { %v15215_v47 = vrot.slane %v2199_v9, 4  ;;  %v15289_v9 = vld [vmem:[%s14513_s29 + $0x64] sm:$0xf] }
  0xe1   : > { %v2209_v18 = vor.u32 %v2208_v13, %v15208_v25 }
  0xe2   : > { %v2205_v58 = vsel %vm14545_vm2, %v15215_v47, %v15208_v25  ;;  %v11453_v25 = vld [vmem:[%s14513_s29 + $0x54] sm:$0xf] }
  0xe3   : > { %v15227_v56 = vrot.slane %v2209_v18, 4 }
  0xe6   : > { %12909 = vmatmul.mubr.bf16.gmra.mrb[28].mxu0 %v11354_v32  ;;  %v2241_v32 = vshrl.u32 %v11441_v36, 16  ;;  %v3013_v36 = vrot.slane %v15289_v9, 5 }
  0xe7   : > { %12928 = vmatprep.mubr.bf16.mxu0 %v14202_v57  ;;  %v15270_v57 = vsel %vm14878_vm5, %v11544_v44, %v2999_v59  ;;  %v15353_v59 = vld [vmem:[%s14513_s29 + $0x8c] sm:$0x1] }
  0xe8   : > { %v2243_v23 = vrot.slane %v2241_v32, 4  ;;  %v3015_v32 = vrot.slane %v3013_v36, 4 }
  0xea   : > { %v2247_v6 = vor.u32 %v2246_v42, %v2243_v23  ;;  %v15331_v23 = vld [vmem:[%s14513_s29 + $0x80] sm:$0x1]  ;;  %v15333_v42 = vrot.slane %v2257_v34, 4 }
  0xeb   : > { %v3030_v50 = vrot.slane %v15331_v23, 5 }
  0xec   : > { %v15294_v13 = vrot.slane %v2247_v6, 4  ;;  %v3037_v6 = vrot.slane %v15353_v59, 5 }
  0xee   : > { %12929 = vmatmul.mubr.bf16.vlgmr.msra.gmra.mrb[0].mxu0 %v14203_v7  ;;  %v3016_v7 = vrot.slane %v15292_v61, 5 }
  0xef   : > { %12961 = vmatpush3.bf16.msra.mxu0 %v14204_v15  ;;  %12932 = vmatprep.mubr.bf16.mxu0 %v14205_v31  ;;  %v15255_v15 = vld [vmem:[%s14513_s29 + $0x50] sm:$0x1]  ;;  %v11546_v31 = vrot.slane %v11530_v29, 9  ;;  %v11534_v29 = vld [vmem:[%s14513_s29 + $0x90] sm:$0xe] }
  0xf0   : > { %12962 = vmatprep.subr.bf16.mxu0 %v14207_v8  ;;  %v3002_v52 = vrot.slane %v15255_v15, 5  ;;  %v15315_v28 = vsel %vm14878_vm5, %v3015_v32, %v3016_v7 }
  0xf1   : > { %v15310_v18 = vsel %vm14878_vm5, %v11546_v31, %v3013_v36  ;;  %v3041_v36 = vrot.slane %v15364_v49, 5 }
  0xf2   : > { %v15274_v26 = vsel %vm14878_vm5, %v3001_v37, %v3002_v52  ;;  %v11533_v37 = vld [vmem:[%s14513_s29 + $0x84] sm:$0xe] }
  0xf3   : > { %12963 = vmatpush3.bf16.msra.mxu0 %v14207_v8  ;;  %v2284_v8 = vshll.u32 %v15277_v60, 16  ;;  %v11549_v62 = vrot.slane %v11533_v37, 9  ;;  %v3043_v34 = vrot.slane %v3041_v36, 4  ;;  %v15411_v37 = vld [vmem:[%s14513_s29 + $0xb0] sm:$0x1] }
  0xf4   : > { %12964 = vmatprep.subr.bf16.mxu0 %v14210_v38 }
  0xf5   : > { %v15341_v19 = vrot.slane %v2284_v8, 5  ;;  %v14220_v8 = vld [vmem:[%s14513_s29 + $0x9c] sm:$0xff]  }
  0xf6   : > { %12933 = vmatmul.mubr.bf16.gmra.mrb[4].mxu0 %v14206_v53  ;;  %v15328_v53 = vld [vmem:[%s14513_s29 + $0x7c] sm:$0xf] }
  0xf7   : > { %12936 = vmatprep.mubr.bf16.mxu0 %v14208_v51  ;;  %12965 = vmatpush3.bf16.msra.mxu0 %v14210_v38  ;;  %v15325_v38 = vld [vmem:[%s14513_s29 + $0x3c] sm:$0xf]  ;;  %v11532_v51 = vld [vmem:[%s14513_s29 + $0x78] sm:$0xe]  ;;  %v3027_v14 = vrot.slane %v15328_v53, 5 }
  0xf8   : > { %12966 = vmatprep.subr.bf16.mxu0 %v14213_v24  ;;  %v11548_v4 = vrot.slane %v11532_v51, 9  ;;  %v2289_v43 = vshrl.u32 %v15325_v38, 16 }
  0xf9   : > { %v3029_v16 = vrot.slane %v3027_v14, 4 }
  0xfa   : > { %v15347_v30 = vsel %vm14878_vm5, %v11548_v4, %v3027_v14  ;;  %v15394_v14 = vld [vmem:[%s14513_s29 + $0xa0] sm:$0xf]  ;;  %v15422_v44 = vrot.slane %v2289_v43, 4 }
  0xfb   : > { %12967 = vmatpush3.bf16.msra.mxu0 %v14213_v24  ;;  %v14215_v24 = vld [vmem:[%s14513_s29 + $0x78] sm:$0xff]   ;;  %18665 = vst [vmem:[#allocation5_spill] sm:$0xff] %v15347_v30  ;;  %v15357_v52 = vsel %vm14878_vm5, %v3029_v16, %v3030_v50  ;;  %v15397_v50 = vld [vmem:[%s14513_s29 + $0xa4] sm:$0x1] }
  0xfc   : > { %12968 = vmatprep.subr.bf16.mxu0 %v14216_v12  ;;  %18666 = vst [vmem:[#allocation9_spill] sm:$0xff] %v15357_v52 }
  0xfe   : > { %12937 = vmatmul.mubr.bf16.gmra.mrb[8].mxu0 %v14209_v17  ;;  %v15361_v17 = vld [vmem:[%s14513_s29 + $0x40] sm:$0xf] }
  0xff   : > { %12940 = vmatprep.mubr.bf16.mxu0 %v14211_v45  ;;  %12969 = vmatpush3.bf16.msra.mxu0 %v14216_v12  ;;  %v14217_v12 = vld [vmem:[%s14513_s29 + $0x84] sm:$0xff]   ;;  %v15369_v45 = vld [vmem:[%s14513_s29 + $0x98] sm:$0x1]  ;;  %v2298_v32 = vshll.u32 %v15361_v17, 16 }
 0x100   : > { %12970 = vmatprep.subr.bf16.mxu0 %v14219_v1  ;;  %v3044_v7 = vrot.slane %v15369_v45, 5 }
 0x102   : > { %v15403_v4 = vsel %vm14878_vm5, %v3043_v34, %v3044_v7  ;;  %v11536_v7 = vld [vmem:[%s14513_s29 + $0xa8] sm:$0xe] }
 0x103   : > { %12971 = vmatpush3.bf16.msra.mxu0 %v14219_v1  ;;  %v3034_v1 = vrot.slane %v15350_v63, 5  ;;  %18670 = vst [vmem:[#allocation10_spill] sm:$0xff] %v15403_v4  ;;  %v14221_v34 = vld [vmem:[%s14513_s29 + $0xa8] sm:$0xff]   ;;  %v11552_v16 = vrot.slane %v11536_v7, 9  ;;  %v2215_v4 = vsel %vm14545_vm2, %v15227_v56, %v15229_v20  ;;  %v15454_v20 = vrot.slane %v2298_v32, 5 }
 0x104   : > { %12972 = vmatprep.subr.bf16.mxu0 %v14222_v2  ;;  %v11450_v7 = vld [vmem:[%s14513_s29 + $0x48] sm:$0xf]  ;;  %v15469_v32 = vld [vmem:[%s14513_s29 + $0xb8] sm:$0xf] }
 0x105   : > { %v3036_v31 = vrot.slane %v3034_v1, 4 }
 0x106   : > { %12941 = vmatmul.mubr.bf16.gmra.mrb[12].mxu0 %v14212_v10  ;;  %v14218_v10 = vld [vmem:[%s14513_s29 + $0x90] sm:$0xff]  }
 0x107   : > { %12944 = vmatprep.mubr.bf16.mxu0 %v14214_v54  ;;  %12973 = vmatpush3.bf16.msra.mxu0 %v14222_v2  ;;  %v2292_v2 = vshll.u32 %v15325_v38, 16  ;;  %v11550_v54 = vrot.slane %v11534_v29, 9  ;;  %v15387_v38 = vsel %vm14878_vm5, %v3036_v31, %v3037_v6  ;;  %v3048_v6 = vrot.slane %v15394_v14, 5 }
 0x108   : > { %12974 = vmatprep.subr.bf16.mxu0 %v14225_v35  ;;  %18668 = vst [vmem:[#allocation7_spill] sm:$0xff] %v15387_v38  ;;  %v2302_v29 = vshrl.u32 %v15361_v17, 16  ;;  %v14224_v38 = vld [vmem:[%s14513_s29 + $0xc0] sm:$0xff]  }
 0x109   : > { %v15391_v51 = vsel %vm14878_vm5, %v11550_v54, %v3041_v36  ;;  %v3058_v54 = vrot.slane %v15411_v37, 5  ;;  %v2294_v56 = vrot.slane %v2292_v2, 5  ;;  %v2271_v2 = vor.u32 %v15284_v41, %v15263_v11 }
 0x10a   : > { %18669 = vst [vmem:[#allocation8_spill] sm:$0xff] %v15391_v51  ;;  %v3062_v11 = vrot.slane %v15469_v32, 5  ;;  %v2313_v41 = vshrl.u32 %v11450_v7, 16  ;;  %v15497_v51 = vld [vmem:[%s14513_s29 + $0x58] sm:$0xf] }
 0x10b   : > { %12975 = vmatpush3.bf16.msra.mxu0 %v14225_v35  ;;  %v15383_v35 = vsel %vm14878_vm5, %v11549_v62, %v3034_v1  ;;  %v11535_v1 = vld [vmem:[%s14513_s29 + $0x9c] sm:$0xe]  ;;  %v3051_v62 = vrot.slane %v15397_v50, 5 }
 0x10c   : > { %13008 = vmatprep.subr.bf16.mxu0 %v15322_v22  ;;  %18667 = vst [vmem:[#allocation6_spill] sm:$0xff] %v15383_v35  ;;  %v11551_v36 = vrot.slane %v11535_v1, 9  ;;  %v2322_v35 = vshll.u32 %v15252_v0, 16 }
 0x10e   : > { %12945 = vmatmul.mubr.bf16.gmra.mrb[16].mxu0 %v14215_v24  ;;  %v14223_v24 = vld [vmem:[%s14513_s29 + $0xb4] sm:$0xff]   ;;  %v15426_v39 = vsel %vm14878_vm5, %v11551_v36, %v3048_v6  ;;  %v15446_v36 = vld [vmem:[%s14513_s29 + $0x44] sm:$0x1] }
 0x10f   : > { %12948 = vmatprep.mubr.bf16.mxu0 %v14217_v12  ;;  %v15406_v12 = vld [vmem:[%s14513_s29 + $0xac] sm:$0xf]  ;;  %18671 = vst [vmem:[#allocation11_spill] sm:$0xff] %v15426_v39  ;;  %v2316_v39 = vshll.u32 %v11450_v7, 16 }
 0x110   : > { %v3055_v31 = vrot.slane %v15406_v12, 5 }
 0x116   : > { %12949 = vmatmul.mubr.bf16.gmra.mrb[20].mxu0 %v14218_v10  ;;  %v3050_v10 = vrot.slane %v3048_v6, 4  ;;  %v15443_v6 = vsel %vm14878_vm5, %v11552_v16, %v3055_v31  ;;  %v11499_v16 = vcombine.low %v2205_v58, %v2215_v4 }
 0x117   : > { %12952 = vmatprep.mubr.bf16.mxu0 %v14220_v8  ;;  %v3057_v8 = vrot.slane %v3055_v31, 4  ;;  %18674 = vst [vmem:[#allocation3_spill] sm:$0xff] %v15443_v6  ;;  %v2229_v31 = vsel %vm14545_vm2, %v15231_v27, %v15212_v5  ;;  %v2253_v5 = vsel %vm14545_vm2, %v15294_v13, %v15249_v3  ;;  %v2281_v27 = vor.u32 %v15335_v46, %v15286_v48 }
 0x118   : > { %v15439_v43 = vsel %vm14878_vm5, %v3050_v10, %v3051_v62  ;;  %v2304_v62 = vrot.slane %v2302_v29, 4  ;;  %v15472_v29 = vld [vmem:[%s14513_s29 + $0xbc] sm:$0x1]  ;;  %v2295_v13 = vor.u32 %v2294_v56, %v15422_v44  ;;  %v2308_v46 = vshll.u32 %v15446_v36, 16 }
 0x119   : > { %18673 = vst [vmem:[#allocation4_spill] sm:$0xff] %v15439_v43  ;;  %v15452_v47 = vsel %vm14878_vm5, %v3057_v8, %v3058_v54  ;;  %v2239_v54 = vsel %vm14545_vm2, %v15236_v40, %v15233_v33  ;;  %v15475_v8 = vld [vmem:[%s14513_s29 + $0xc4] sm:$0xf]  ;;  %v15484_v33 = vld [vmem:[%s14513_s29 + $0xc8] sm:$0x1]  ;;  %v3065_v58 = vrot.slane %v15472_v29, 5 }
 0x11a   : > { %18675 = vst [vmem:[#allocation12_spill] sm:$0xff] %v15452_v47  ;;  %v11537_v40 = vld [vmem:[%s14513_s29 + $0xb4] sm:$0xe]  ;;  %v3069_v10 = vrot.slane %v15475_v8, 5  ;;  %v3072_v3 = vrot.slane %v15484_v33, 5  ;;  %v3064_v47 = vrot.slane %v3062_v11, 4  ;;  %v2305_v43 = vor.u32 %v2304_v62, %v15454_v20 }
 0x11b   : > { %v11553_v4 = vrot.slane %v11537_v40, 9  ;;  %v2326_v44 = vshrl.u32 %v15252_v0, 16  ;;  %v2337_v62 = vshrl.u32 %v11453_v25, 16  ;;  %v2263_v0 = vsel %vm14545_vm2, %v15333_v42, %v15301_v21 }
 0x11c   : > { %v3071_v40 = vrot.slane %v3069_v10, 4  ;;  %v15508_v56 = vsel %vm14878_vm5, %v3064_v47, %v3065_v58  ;;  %v15524_v47 = vrot.slane %v2271_v2, 4  ;;  %v2346_v58 = vshll.u32 %v15497_v51, 16 }
 0x11d   : > { %18677 = vst [vmem:[#allocation14_spill] sm:$0xff] %v15508_v56  ;;  %v2296_v56 = vrot.slane %v2295_v13, 4  ;;  %v2318_v21 = vrot.slane %v2316_v39, 5  ;;  %v15535_v42 = vrot.slane %v2322_v35, 5  ;;  %v2328_v2 = vrot.slane %v2326_v44, 4 }
 0x11e   : > { %12953 = vmatmul.mubr.bf16.gmra.mrb[24].mxu0 %v14221_v34  ;;  %v11538_v34 = vld [vmem:[%s14513_s29 + $0xc0] sm:$0xe]  ;;  %v15541_v52 = vrot.slane %v2346_v58, 5  ;;  %v2370_v35 = vshll.u32 %v15289_v9, 16 }
 0x11f   : > { %12956 = vmatprep.mubr.bf16.mxu0 %v14223_v24  ;;  %v11554_v6 = vrot.slane %v11538_v34, 9  ;;  %v15501_v24 = vsel %vm14878_vm5, %v11553_v4, %v3062_v11  ;;  %v2340_v34 = vshll.u32 %v11453_v25, 16  ;;  %v15518_v4 = vsel %vm14878_vm5, %v3071_v40, %v3072_v3  ;;  %v11456_v40 = vld [vmem:[%s14513_s29 + $0x60] sm:$0xf] }
 0x120   : > { %18676 = vst [vmem:[#allocation13_spill] sm:$0xff] %v15501_v24  ;;  %18679 = vst [vmem:[#allocation16_spill] sm:$0xff] %v15518_v4  ;;  %v15529_v25 = vrot.slane %v2281_v27, 4  ;;  %v2315_v11 = vrot.slane %v2313_v41, 4  ;;  %v2350_v3 = vshrl.u32 %v15497_v51, 16  ;;  %v2306_v24 = vrot.slane %v2305_v43, 4 }
 0x121   : > { %v15512_v7 = vsel %vm14878_vm5, %v11554_v6, %v3069_v10  ;;  %v15531_v10 = vrot.slane %v2308_v46, 5  ;;  %v2332_v6 = vshll.u32 %v15255_v15, 16  ;;  %v2339_v27 = vrot.slane %v2337_v62, 4  ;;  %v15539_v41 = vld [vmem:[%s14513_s29 + $0x5c] sm:$0x1] }
 0x122   : > { %18678 = vst [vmem:[#allocation15_spill] sm:$0xff] %v15512_v7  ;;  %v2342_v4 = vrot.slane %v2340_v34, 5  ;;  %v11500_v46 = vcombine.low %v2229_v31, %v2239_v54  ;;  %v11501_v7 = vcombine.low %v2253_v5, %v2263_v0  ;;  %v2361_v30 = vshrl.u32 %v11456_v40, 16  ;;  %v15557_v62 = vld [vmem:[%s14513_s29 + $0x70] sm:$0xf] }
 0x123   : > { %v2352_v13 = vrot.slane %v2350_v3, 4  ;;  %v2364_v39 = vshll.u32 %v11456_v40, 16  ;;  %v2277_v15 = vsel %vm14545_vm2, %v15524_v47, %v15286_v48  ;;  %v2287_v43 = vsel %vm14545_vm2, %v15529_v25, %v15341_v19  ;;  %v14227_v48 = vld [vmem:[%s18511_s1 + $0x148] sm:$0xff]   ;;  %v11462_v40 = vld [vmem:[%s14513_s29 + $0x78] sm:$0xf] }
 0x124   : > { %v2319_v31 = vor.u32 %v2318_v21, %v2315_v11  ;;  %v2329_v54 = vor.u32 %v2328_v2, %v15535_v42  ;;  %v2343_v5 = vor.u32 %v2342_v4, %v2339_v27  ;;  %v2356_v44 = vshll.u32 %v15539_v41, 16 }
 0x125   : > { %v2301_v0 = vsel %vm14545_vm2, %v2296_v56, %v15454_v20  ;;  %v2311_v19 = vsel %vm14545_vm2, %v2306_v24, %v15531_v10  ;;  %v15568_v11 = vrot.slane %v2332_v6, 5  ;;  %v2363_v4 = vrot.slane %v2361_v30, 4  ;;  %v14228_v10 = vld [vmem:[%s18511_s1 + $0x150] sm:$0xff]  }
 0x126   : > { %12957 = vmatmul.mubr.bf16.gmra.mrb[28].mxu0 %v14224_v38  ;;  %v11459_v38 = vld [vmem:[%s14513_s29 + $0x6c] sm:$0xf]  ;;  %v2353_v47 = vor.u32 %v2352_v13, %v15541_v52  ;;  %v2366_v58 = vrot.slane %v2364_v39, 5  ;;  %v15571_v25 = vrot.slane %v2370_v35, 5  ;;  %v2320_v21 = vrot.slane %v2319_v31, 4 }
 0x127   : > { %12976 = vmatprep.mubr.bf16.mxu0 %v11499_v16  ;;  %v2374_v16 = vshrl.u32 %v15289_v9, 16  ;;  %v2385_v9 = vshrl.u32 %v11459_v38, 16  ;;  %v2388_v34 = vshll.u32 %v11459_v38, 16  ;;  %v2330_v2 = vrot.slane %v2329_v54, 4 }
 0x128   : > { %v2394_v27 = vshll.u32 %v15557_v62, 16  ;;  %v2398_v20 = vshrl.u32 %v15557_v62, 16  ;;  %v2344_v24 = vrot.slane %v2343_v5, 4  ;;  %v2358_v56 = vrot.slane %v2356_v44, 5 }
 0x129   : > { %v2376_v3 = vrot.slane %v2374_v16, 4  ;;  %v2387_v30 = vrot.slane %v2385_v9, 4  ;;  %v2390_v6 = vrot.slane %v2388_v34, 5  ;;  %v2409_v38 = vshrl.u32 %v11462_v40, 16 }
 0x12a   : > { %v2418_v13 = vshll.u32 %v15328_v53, 16  ;;  %v2422_v39 = vshrl.u32 %v15328_v53, 16  ;;  %v2354_v35 = vrot.slane %v2353_v47, 4  ;;  %v2380_v16 = vshll.u32 %v15292_v61, 16 }
 0x12b   : > { %v11502_v31 = vcombine.low %v2277_v15, %v2287_v43  ;;  %v11503_v54 = vcombine.low %v2301_v0, %v2311_v19  ;;  %v15584_v5 = vrot.slane %v2394_v27, 5  ;;  %v2400_v44 = vrot.slane %v2398_v20, 4  ;;  %v11465_v15 = vld [vmem:[%s14513_s29 + $0x84] sm:$0xf]  ;;  %v14229_v43 = vld [vmem:[%s18511_s1 + $0x158] sm:$0xff]  }
 0x12c   : > { %v2325_v9 = vsel %vm14545_vm2, %v2320_v21, %v15535_v42  ;;  %v2335_v53 = vsel %vm14545_vm2, %v2330_v2, %v15568_v11  ;;  %v2349_v34 = vsel %vm14545_vm2, %v2344_v24, %v15541_v52  ;;  %v2391_v61 = vor.u32 %v2390_v6, %v2387_v30 }
 0x12d   : > { %v15602_v42 = vrot.slane %v2418_v13, 5  ;;  %v2424_v19 = vrot.slane %v2422_v39, 4  ;;  %v2359_v11 = vsel %vm14545_vm2, %v2354_v35, %v2358_v56  ;;  %v2382_v52 = vrot.slane %v2380_v16, 5 }
 0x12e   : > { %12977 = vmatmul.mubr.bf16.vlgmr.msra.gmra.mrb[0].mxu0 %v11500_v46  ;;  %v2412_v46 = vshll.u32 %v11462_v40, 16  ;;  %v2433_v21 = vshrl.u32 %v11465_v15, 16  ;;  %v2436_v2 = vshll.u32 %v11465_v15, 16  ;;  %v2442_v27 = vshll.u32 %v15350_v63, 16  ;;  %v14231_v15 = vld [vmem:[%s18511_s1 + $0x168] sm:$0xff]  }
 0x12f   : > { %13009 = vmatpush3.bf16.msra.mxu0 %v15322_v22  ;;  %12980 = vmatprep.mubr.bf16.mxu0 %v11501_v7  ;;  %v2367_v22 = vor.u32 %v2366_v58, %v2363_v4  ;;  %v2377_v7 = vor.u32 %v2376_v3, %v15571_v25  ;;  %v15596_v4 = vld [vmem:[%s14513_s29 + $0x74] sm:$0x1]  ;;  %v2401_v3 = vor.u32 %v2400_v44, %v15584_v5  ;;  %v2446_v20 = vshrl.u32 %v15350_v63, 16 }
 0x130   : > { %13010 = vmatprep.subr.bf16.mxu0 %v14227_v48  ;;  %v2414_v0 = vrot.slane %v2412_v46, 5  ;;  %v2404_v40 = vshll.u32 %v15596_v4, 16  ;;  %v2392_v24 = vrot.slane %v2391_v61, 4  ;;  %v2425_v30 = vor.u32 %v2424_v19, %v15602_v42  ;;  %v11468_v46 = vld [vmem:[%s14513_s29 + $0x90] sm:$0xf] }
 0x131   : > { %v2368_v47 = vrot.slane %v2367_v22, 4  ;;  %v2378_v58 = vrot.slane %v2377_v7, 4  ;;  %v2428_v6 = vshll.u32 %v15331_v23, 16  ;;  %v11504_v13 = vcombine.low %v2325_v9, %v2335_v53 }
 0x132   : > { %v11505_v39 = vcombine.low %v2349_v34, %v2359_v11  ;;  %v2402_v35 = vrot.slane %v2401_v3, 4  ;;  %v2406_v22 = vrot.slane %v2404_v40, 5  ;;  %v2435_v7 = vrot.slane %v2433_v21, 4 }
 0x133   : > { %13011 = vmatpush3.bf16.msra.mxu0 %v14227_v48  ;;  %v2411_v48 = vrot.slane %v2409_v38, 4  ;;  %v14230_v38 = vld [vmem:[%s18511_s1 + $0x160] sm:$0xff]   ;;  %v2383_v63 = vsel %vm14545_vm2, %v2378_v58, %v2382_v52  ;;  %v2438_v16 = vrot.slane %v2436_v2, 5  ;;  %v15622_v23 = vrot.slane %v2442_v27, 5 }
 0x134   : > { %13012 = vmatprep.subr.bf16.mxu0 %v14228_v10  ;;  %v2457_v44 = vshrl.u32 %v11468_v46, 16  ;;  %v2460_v61 = vshll.u32 %v11468_v46, 16  ;;  %v2397_v9 = vsel %vm14545_vm2, %v2392_v24, %v15584_v5  ;;  %v2430_v34 = vrot.slane %v2428_v6, 5 }
 0x135   : > { %v2415_v56 = vor.u32 %v2414_v0, %v2411_v48  ;;  %v2466_v48 = vshll.u32 %v15364_v49, 16  ;;  %v2407_v11 = vsel %vm14545_vm2, %v2402_v35, %v2406_v22  ;;  %v2452_v5 = vshll.u32 %v15353_v59, 16  ;;  %v14233_v22 = vld [vmem:[%s18511_s1 + $0x178] sm:$0xff]  }
 0x136   : > { %12981 = vmatmul.mubr.bf16.gmra.mrb[4].mxu0 %v11502_v31  ;;  %v11471_v31 = vld [vmem:[%s14513_s29 + $0x9c] sm:$0xf]  ;;  %v2494_v58 = vshrl.u32 %v15394_v14, 16  ;;  %v2439_v52 = vor.u32 %v2438_v16, %v2435_v7  ;;  %v2459_v40 = vrot.slane %v2457_v44, 4  ;;  %v11477_v44 = vld [vmem:[%s14513_s29 + $0xb4] sm:$0xf] }
 0x137   : > { %12984 = vmatprep.mubr.bf16.mxu0 %v11503_v54  ;;  %13013 = vmatpush3.bf16.msra.mxu0 %v14228_v10  ;;  %v2373_v10 = vsel %vm14545_vm2, %v2368_v47, %v15571_v25  ;;  %v2448_v54 = vrot.slane %v2446_v20, 4  ;;  %v2416_v53 = vrot.slane %v2415_v56, 4  ;;  %v2426_v25 = vrot.slane %v2425_v30, 4 }
 0x138   : > { %13014 = vmatprep.subr.bf16.mxu0 %v14229_v43  ;;  %v2481_v0 = vshrl.u32 %v11471_v31, 16  ;;  %v2484_v19 = vshll.u32 %v11471_v31, 16  ;;  %v2490_v47 = vshll.u32 %v15394_v14, 16  ;;  %v11506_v21 = vcombine.low %v2373_v10, %v2383_v63  ;;  %v14232_v14 = vld [vmem:[%s18511_s1 + $0x170] sm:$0xff]  }
 0x139   : > { %v2449_v3 = vor.u32 %v2448_v54, %v15622_v23  ;;  %v2421_v2 = vsel %vm14545_vm2, %v2416_v53, %v15602_v42  ;;  %v2431_v59 = vsel %vm14545_vm2, %v2426_v25, %v2430_v34  ;;  %v15646_v27 = vrot.slane %v2466_v48, 5  ;;  %v11474_v42 = vld [vmem:[%s14513_s29 + $0xa8] sm:$0xf] }
 0x13a   : > { %v2483_v24 = vrot.slane %v2481_v0, 4  ;;  %v2486_v56 = vrot.slane %v2484_v19, 5  ;;  %v11507_v30 = vcombine.low %v2397_v9, %v2407_v11  ;;  %v2454_v6 = vrot.slane %v2452_v5, 5 }
 0x13b   : > { %13015 = vmatpush3.bf16.msra.mxu0 %v14229_v43  ;;  %v2470_v43 = vshrl.u32 %v15364_v49, 16  ;;  %v2462_v49 = vrot.slane %v2460_v61, 5  ;;  %v2496_v46 = vrot.slane %v2494_v58, 4  ;;  %v2476_v63 = vshll.u32 %v15369_v45, 16 }
 0x13c   : > { %13016 = vmatprep.subr.bf16.mxu0 %v14230_v38  ;;  %v11508_v35 = vcombine.low %v2421_v2, %v2431_v59  ;;  %v2487_v16 = vor.u32 %v2486_v56, %v2483_v24  ;;  %v2500_v31 = vshll.u32 %v15397_v50, 16  ;;  %v2505_v54 = vshrl.u32 %v11474_v42, 16 }
 0x13d   : > { %v2472_v20 = vrot.slane %v2470_v43, 4  ;;  %v2463_v10 = vor.u32 %v2462_v49, %v2459_v40  ;;  %v2508_v9 = vshll.u32 %v11474_v42, 16  ;;  %v2514_v45 = vshll.u32 %v15406_v12, 16 }
 0x13e   : > { %12985 = vmatmul.mubr.bf16.gmra.mrb[8].mxu0 %v11504_v13  ;;  %v2440_v13 = vrot.slane %v2439_v52, 4  ;;  %v2518_v53 = vshrl.u32 %v15406_v12, 16  ;;  %v2478_v50 = vrot.slane %v2476_v63, 5  ;;  %v2529_v48 = vshrl.u32 %v11477_v44, 16  ;;  %v15671_v12 = vld [vmem:[%s18511_s1 + $0x180] sm:$0xff]  }
 0x13f   : > { %12988 = vmatprep.mubr.bf16.mxu0 %v11505_v39  ;;  %13017 = vmatpush3.bf16.msra.mxu0 %v14230_v38  ;;  %v15648_v38 = vrot.slane %v2490_v47, 5  ;;  %v2450_v39 = vrot.slane %v2449_v3, 4  ;;  %v2473_v7 = vor.u32 %v2472_v20, %v15646_v27  ;;  %v2532_v43 = vshll.u32 %v11477_v44, 16 }
 0x140   : > { %13018 = vmatprep.subr.bf16.mxu0 %v14231_v15  ;;  %v2445_v25 = vsel %vm14545_vm2, %v2440_v13, %v15622_v23  ;;  %v2538_v0 = vshll.u32 %v15469_v32, 16  ;;  %v2542_v19 = vshrl.u32 %v15469_v32, 16  ;;  %v2488_v11 = vrot.slane %v2487_v16, 4 }
 0x141   : > { %v2497_v61 = vor.u32 %v2496_v46, %v15648_v38  ;;  %v2455_v34 = vsel %vm14545_vm2, %v2450_v39, %v2454_v6  ;;  %v2474_v23 = vrot.slane %v2473_v7, 4  ;;  %v2502_v5 = vrot.slane %v2500_v31, 5 }
 0x142   : > { %v2507_v47 = vrot.slane %v2505_v54, 4  ;;  %v2510_v52 = vrot.slane %v2508_v9, 5  ;;  %v2516_v3 = vrot.slane %v2514_v45, 5  ;;  %v2520_v40 = vrot.slane %v2518_v53, 4 }
 0x143   : > { %13019 = vmatpush3.bf16.msra.mxu0 %v14231_v15  ;;  %v2464_v15 = vrot.slane %v2463_v10, 4  ;;  %v2498_v58 = vrot.slane %v2497_v61, 4  ;;  %v11509_v49 = vcombine.low %v2445_v25, %v2455_v34  ;;  %v2534_v2 = vrot.slane %v2532_v43, 5 }
 0x144   : > { %13020 = vmatprep.subr.bf16.mxu0 %v14232_v14  ;;  %v2540_v32 = vrot.slane %v2538_v0, 5  ;;  %v2544_v59 = vrot.slane %v2542_v19, 4  ;;  %v2479_v24 = vsel %vm14545_vm2, %v2474_v23, %v2478_v50  ;;  %v2524_v56 = vshll.u32 %v15411_v37, 16  ;;  %v14400_v0 = vld [vmem:[%s14513_s29 + $0x10] sm:$0xf] }
 0x145   : > { %v2469_v20 = vsel %vm14545_vm2, %v2464_v15, %v15646_v27  ;;  %v2503_v6 = vsel %vm14545_vm2, %v2498_v58, %v2502_v5  ;;  %v2511_v46 = vor.u32 %v2510_v52, %v2507_v47  ;;  %v2521_v42 = vor.u32 %v2520_v40, %v2516_v3  ;;  %v11523_v23 = vld [vmem:[%s14513_s29 + $0xc] sm:$0xe]  ;;  %v14401_v40 = vld [vmem:[%s14513_s29 + $0x14] sm:$0x1] }
 0x146   : > { %12989 = vmatmul.mubr.bf16.gmra.mrb[12].mxu0 %v11506_v21  ;;  %v2531_v21 = vrot.slane %v2529_v48, 4  ;;  %v2562_v27 = vshll.u32 %v15475_v8, 16  ;;  %v2566_v10 = vshrl.u32 %v15475_v8, 16  ;;  %v2548_v37 = vshll.u32 %v15472_v29, 16 }
 0x147   : > { %12992 = vmatprep.mubr.bf16.mxu0 %v11507_v30  ;;  %13021 = vmatpush3.bf16.msra.mxu0 %v14232_v14  ;;  %v11480_v14 = vld [vmem:[%s14513_s29 + $0xc0] sm:$0xf]  ;;  %v2493_v30 = vsel %vm14545_vm2, %v2488_v11, %v15648_v38  ;;  %v2512_v16 = vrot.slane %v2511_v46, 4  ;;  %v2522_v38 = vrot.slane %v2521_v42, 4  ;;  %v2526_v31 = vrot.slane %v2524_v56, 5 }
 0x148   : > { %13022 = vmatprep.subr.bf16.mxu0 %v14233_v22  ;;  %v2553_v13 = vshrl.u32 %v11480_v14, 16  ;;  %v2556_v39 = vshll.u32 %v11480_v14, 16  ;;  %v2535_v63 = vor.u32 %v2534_v2, %v2531_v21  ;;  %v11511_v7 = vcombine.low %v2493_v30, %v2503_v6  ;;  %v14403_v56 = vld [vmem:[%s14513_s29 + $0x28] sm:$0xf]  ;;  %v11525_v6 = vld [vmem:[%s14513_s29 + $0x24] sm:$0xe] }
 0x149   : > { %v2564_v61 = vrot.slane %v2562_v27, 5  ;;  %v2568_v9 = vrot.slane %v2566_v10, 4  ;;  %v2550_v25 = vrot.slane %v2548_v37, 5  ;;  %v2517_v8 = vsel %vm14545_vm2, %v2512_v16, %v2516_v3  ;;  %v14404_v27 = vld [vmem:[%s14513_s29 + $0x20] sm:$0x1] }
 0x14a   : > { %v2555_v54 = vrot.slane %v2553_v13, 4  ;;  %v2558_v44 = vrot.slane %v2556_v39, 5  ;;  %v2536_v45 = vrot.slane %v2535_v63, 4  ;;  %v2527_v29 = vsel %vm14545_vm2, %v2522_v38, %v2526_v31  ;;  %v14405_v37 = vld [vmem:[%s14513_s29 + $0x2c] sm:$0x1] }
 0x14b   : > { %13023 = vmatpush3.bf16.msra.mxu0 %v14233_v22  ;;  %v2545_v22 = vor.u32 %v2544_v59, %v2540_v32  ;;  %v2569_v15 = vor.u32 %v2568_v9, %v2564_v61  ;;  %v2572_v50 = vshll.u32 %v15484_v33, 16  ;;  %v2964_v19 = vrot.slane %v14400_v0, 5  ;;  %v14406_v38 = vld [vmem:[%s14513_s29 + $0x34] sm:$0xf] }
 0x14c   : > { %13056 = vmatprep.subr.bf16.mxu0 %v15671_v12  ;;  %v2559_v34 = vor.u32 %v2558_v44, %v2555_v54  ;;  %v2541_v48 = vsel %vm14545_vm2, %v2536_v45, %v2540_v32  ;;  %v11512_v11 = vcombine.low %v2517_v8, %v2527_v29  ;;  %v11539_v3 = vrot.slane %v11523_v23, 9  ;;  %v14402_v32 = vld [vmem:[%s14513_s29 + $0x1c] sm:$0xf]  ;;  %v11529_v23 = vld [vmem:[%s14513_s29 + $0x54] sm:$0xe] }
 0x14d   : > { %v2546_v53 = vrot.slane %v2545_v22, 4  ;;  %v2570_v58 = vrot.slane %v2569_v15, 4  ;;  %v2574_v52 = vrot.slane %v2572_v50, 5  ;;  %v2966_v33 = vrot.slane %v2964_v19, 4  ;;  %v11527_v45 = vld [vmem:[%s14513_s29 + $0x3c] sm:$0xe] }
 0x14e   : > { %12993 = vmatmul.mubr.bf16.gmra.mrb[16].mxu0 %v11508_v35  ;;  %v11510_v35 = vcombine.low %v2469_v20, %v2479_v24  ;;  %v2560_v47 = vrot.slane %v2559_v34, 4  ;;  %v2971_v59 = vrot.slane %v14402_v32, 5  ;;  %v2965_v14 = vsel %vm14878_vm5, %v11539_v3, %v2964_v19  ;;  %v11524_v24 = vld [vmem:[%s14513_s29 + $0x18] sm:$0xe]  ;;  %v14235_v15 = vld [vmem:[%s18511_s1 + $0x188] sm:$0xff]  }
 0x14f   : > { %12996 = vmatprep.mubr.bf16.mxu0 %v11509_v49  ;;  %v2551_v43 = vsel %vm14545_vm2, %v2546_v53, %v2550_v25  ;;  %v2967_v49 = vrot.slane %v14401_v40, 5  ;;  %v2575_v2 = vsel %vm14545_vm2, %v2570_v58, %v2574_v52  ;;  %v2978_v30 = vrot.slane %v14403_v56, 5  ;;  %v14237_v3 = vld [vmem:[%s18511_s1 + $0x198] sm:$0xff]  }
 0x150   : > { %v11513_v5 = vcombine.low %v2541_v48, %v2551_v43  ;;  %v2565_v21 = vsel %vm14545_vm2, %v2560_v47, %v2564_v61  ;;  %v11540_v13 = vrot.slane %v11524_v24, 9  ;;  %v2973_v39 = vrot.slane %v2971_v59, 4  ;;  %v11526_v61 = vld [vmem:[%s14513_s29 + $0x30] sm:$0xe] }
 0x151   : > { %v2968_v20 = vsel %vm14878_vm5, %v2966_v33, %v2967_v49  ;;  %v11514_v46 = vcombine.low %v2565_v21, %v2575_v2  ;;  %v2974_v10 = vrot.slane %v14404_v27, 5  ;;  %v11541_v63 = vrot.slane %v11525_v6, 9  ;;  %v11531_v49 = vld [vmem:[%s14513_s29 + $0x6c] sm:$0xe] }
 0x152   : > { %v11571_v42 = vcombine.low %v2965_v14, %v2968_v20  ;;  %v2980_v22 = vrot.slane %v2978_v30, 4  ;;  %v2985_v31 = vrot.slane %v14406_v38, 5  ;;  %v2992_v9 = vrot.slane %v15361_v17, 5  ;;  %v14239_v14 = vld [vmem:[%s18511_s1 + $0x1a8] sm:$0xff]  }
 0x153   : > { %v2975_v16 = vsel %vm14878_vm5, %v2973_v39, %v2974_v10  ;;  %v2979_v54 = vsel %vm14878_vm5, %v11541_v63, %v2978_v30  ;;  %v11542_v8 = vrot.slane %v11526_v61, 9  ;;  %v2988_v34 = vrot.slane %v15277_v60, 5  ;;  %v14244_v30 = vld [vmem:[%s18511_s1 + $0x1c0] sm:$0xff]   ;;  %v18682_v6 = vld [vmem:[#allocation5_spill] sm:$0xff]  ;;  %v18686_v39 = vld [vmem:[#allocation7_spill] sm:$0xff] }
 0x154   : > { %v2987_v29 = vrot.slane %v2985_v31, 4  ;;  %v11543_v50 = vrot.slane %v11527_v45, 9  ;;  %v2994_v48 = vrot.slane %v2992_v9, 4  ;;  %v2995_v43 = vrot.slane %v15446_v36, 5  ;;  %v14236_v36 = vld [vmem:[%s18511_s1 + $0x190] sm:$0xff]   ;;  %v18691_v63 = vld [vmem:[#allocation11_spill] sm:$0xff] }
 0x155   : > { %v2986_v17 = vsel %vm14878_vm5, %v11542_v8, %v2985_v31  ;;  %v11545_v47 = vrot.slane %v11529_v23, 9  ;;  %v3009_v52 = vrot.slane %v15539_v41, 5  ;;  %v3020_v40 = vrot.slane %v15557_v62, 5  ;;  %v14238_v41 = vld [vmem:[%s18511_s1 + $0x1a0] sm:$0xff]   ;;  %v18697_v38 = vld [vmem:[#allocation13_spill] sm:$0xff]  ;;  %v18698_v31 = vld [vmem:[#allocation14_spill] sm:$0xff] }
 0x156   : > { %12997 = vmatmul.mubr.bf16.gmra.mrb[20].mxu0 %v11510_v35  ;;  %v2981_v35 = vrot.slane %v14405_v37, 5  ;;  %v2989_v0 = vsel %vm14878_vm5, %v2987_v29, %v2988_v34  ;;  %v2993_v60 = vsel %vm14878_vm5, %v11543_v50, %v2992_v9  ;;  %v2996_v19 = vsel %vm14878_vm5, %v2994_v48, %v2995_v43  ;;  %v18700_v61 = vld [vmem:[#allocation15_spill] sm:$0xff]  ;;  %v18701_v9 = vld [vmem:[#allocation16_spill] sm:$0xff]  ;;  %v14247_v8 = vld [vmem:[%s18511_s1 + $0x1c8] sm:$0xff]  }
 0x157   : > { %13000 = vmatprep.mubr.bf16.mxu0 %v11511_v7  ;;  %v2972_v7 = vsel %vm14878_vm5, %v11540_v13, %v2971_v59  ;;  %v11547_v2 = vrot.slane %v11531_v49, 9  ;;  %v3022_v32 = vrot.slane %v3020_v40, 4  ;;  %v3023_v59 = vrot.slane %v15596_v4, 5  ;;  %v14240_v4 = vld [vmem:[%s18511_s1 + $0x1b0] sm:$0xff]   ;;  %v14246_v34 = vld [vmem:[%s14513_s29 + $0x3c] sm:$0xff]  }
 0x158   : > { %v2982_v44 = vsel %vm14878_vm5, %v2980_v22, %v2981_v35  ;;  %v11572_v53 = vcombine.low %v2972_v7, %v2975_v16  ;;  %v18680_v20 = vcombine.low %v15270_v57, %v15274_v26  ;;  %v14241_v57 = vld [vmem:[%s18511_s1 + $0x1b8] sm:$0xff]   ;;  %v18681_v26 = vcombine.low %v15310_v18, %v15315_v28  ;;  %v18685_v13 = vld [vmem:[#allocation6_spill] sm:$0xff]  ;;  %v18688_v18 = vld [vmem:[#allocation8_spill] sm:$0xff] }
 0x159   : > { %v11573_v25 = vcombine.low %v2979_v54, %v2982_v44  ;;  %v3021_v62 = vsel %vm14878_vm5, %v11547_v2, %v3020_v40  ;;  %v3024_v24 = vsel %vm14878_vm5, %v3022_v32, %v3023_v59  ;;  %v18687_v27 = vcombine.low %v18685_v13, %v18686_v39  ;;  %v18689_v28 = vld [vmem:[#allocation10_spill] sm:$0xff]  ;;  %v18692_v22 = vld [vmem:[#allocation4_spill] sm:$0xff]  ;;  %v18694_v35 = vld [vmem:[#allocation3_spill] sm:$0xff] }
 0x15a   : > { %v11579_v56 = vcombine.low %v3021_v62, %v3024_v24  ;;  %v18690_v10 = vcombine.low %v18688_v18, %v18689_v28  ;;  %v18693_v37 = vcombine.low %v18691_v63, %v18692_v22  ;;  %v18695_v7 = vld [vmem:[#allocation12_spill] sm:$0xff]  ;;  %v18699_v54 = vcombine.low %v18697_v38, %v18698_v31  ;;  %v14242_v44 = vld [vmem:[%s14513_s29 + $0x18] sm:$0xff]   ;;  %v14250_v29 = vld [vmem:[%s18511_s1 + $0x1d0] sm:$0xff]  }
 0x15b   : > { %v18696_v16 = vcombine.low %v18694_v35, %v18695_v7  ;;  %v18702_v45 = vcombine.low %v18700_v61, %v18701_v9  ;;  %v14253_v50 = vld [vmem:[%s18511_s1 + $0x1d8] sm:$0xff]   ;;  %v15848_v40 = vld [vmem:[%s14513_s29 + $0x28] sm:$0xf]  ;;  %v15872_v18 = vld [vmem:[%s14513_s29 + $0x20] sm:$0x1] }
 0x15c   : > { %v15818_v48 = vld [vmem:[%s14513_s29 + $0x58] sm:$0xf]  ;;  %v15821_v43 = vld [vmem:[%s14513_s29 + $0x5c] sm:$0x1]  ;;  %v3865_v62 = vshll.u32 %v15848_v40, 16  ;;  %v3869_v24 = vshrl.u32 %v15848_v40, 16 }
 0x15d   : > { %v14254_v22 = vld [vmem:[%s14513_s29 + $0x78] sm:$0xff]   ;;  %v11673_v31 = vld [vmem:[%s14513_s29 + $0x30] sm:$0xf]  ;;  %v3851_v9 = vshll.u32 %v15872_v18, 16 }
 0x15e   : > { %13001 = vmatmul.mubr.bf16.gmra.mrb[24].mxu0 %v11512_v11  ;;  %v11574_v11 = vcombine.low %v2986_v17, %v2989_v0  ;;  %v11760_v17 = vld [vmem:[%s14513_s29 + $0x54] sm:$0xe]  ;;  %v4638_v0 = vrot.slane %v15818_v48, 5  ;;  %v15882_v35 = vrot.slane %v3865_v62, 5  ;;  %v3871_v7 = vrot.slane %v3869_v24, 4  ;;  %v14265_v38 = vld [vmem:[%s18511_s1 + $0x1f8] sm:$0xff]  }
 0x15f   : > { %13004 = vmatprep.mubr.bf16.mxu0 %v11513_v5  ;;  %v11575_v5 = vcombine.low %v2993_v60, %v2996_v19  ;;  %v4641_v60 = vrot.slane %v15821_v43, 5  ;;  %v14256_v19 = vld [vmem:[%s18511_s1 + $0x1e0] sm:$0xff]  }
 0x160   : > { %v4640_v23 = vrot.slane %v4638_v0, 4 }
 0x166   : > { %13005 = vmatmul.mubr.bf16.gmra.mrb[28].mxu0 %v11514_v46  ;;  %v18683_v46 = vld [vmem:[#allocation9_spill] sm:$0xff] }
 0x167   : > { %13024 = vmatprep.mubr.bf16.mxu0 %v11571_v42  ;;  %v18684_v42 = vcombine.low %v18682_v6, %v18683_v46 }
 0x16e   : > { %13025 = vmatmul.mubr.bf16.vlgmr.msra.gmra.mrb[0].mxu0 %v11572_v53  ;;  %v14243_v53 = vld [vmem:[%s14513_s29 + $0x24] sm:$0xff]  }
 0x16f   : > { %13057 = vmatpush3.bf16.msra.mxu0 %v15671_v12  ;;  %13028 = vmatprep.mubr.bf16.mxu0 %v11573_v25  ;;  %v3006_v12 = vrot.slane %v15497_v51, 5  ;;  %v14245_v25 = vld [vmem:[%s14513_s29 + $0x30] sm:$0xff]  }
 0x170   : > { %13058 = vmatprep.subr.bf16.mxu0 %v14235_v15 }
 0x171   : > { %v3008_v58 = vrot.slane %v3006_v12, 4  ;;  %v3007_v51 = vsel %vm14878_vm5, %v11545_v47, %v3006_v12  ;;  %v11667_v12 = vld [vmem:[%s14513_s29 + $0x18] sm:$0xf] }
 0x172   : > { %v3835_v49 = vshll.u32 %v11667_v12, 16 }
 0x173   : > { %13059 = vmatpush3.bf16.msra.mxu0 %v14235_v15  ;;  %v3010_v33 = vsel %vm14878_vm5, %v3008_v58, %v3009_v52  ;;  %v14248_v15 = vld [vmem:[%s14513_s29 + $0x48] sm:$0xff]   ;;  %v14251_v58 = vld [vmem:[%s14513_s29 + $0x60] sm:$0xff]  }
 0x174   : > { %13060 = vmatprep.subr.bf16.mxu0 %v14236_v36  ;;  %v11577_v21 = vcombine.low %v3007_v51, %v3010_v33  ;;  %v11670_v52 = vld [vmem:[%s14513_s29 + $0x24] sm:$0xf]  ;;  %v14259_v51 = vld [vmem:[%s18511_s1 + $0x1e8] sm:$0xff]   ;;  %v3832_v33 = vshrl.u32 %v11667_v12, 16  ;;  %v3837_v46 = vrot.slane %v3835_v49, 5  ;;  %v3883_v49 = vshll.u32 %v11673_v31, 16 }
 0x175   : > { %v3856_v32 = vshrl.u32 %v11670_v52, 16  ;;  %v3859_v59 = vshll.u32 %v11670_v52, 16  ;;  %v14255_v52 = vld [vmem:[%s14513_s29 + $0x84] sm:$0xff]  }
 0x176   : > { %13029 = vmatmul.mubr.bf16.gmra.mrb[4].mxu0 %v11574_v11  ;;  %v14249_v11 = vld [vmem:[%s14513_s29 + $0x54] sm:$0xff]  }
 0x177   : > { %13032 = vmatprep.mubr.bf16.mxu0 %v11575_v5  ;;  %13061 = vmatpush3.bf16.msra.mxu0 %v14236_v36  ;;  %v11776_v36 = vrot.slane %v11760_v17, 9  ;;  %v15832_v5 = vld [vmem:[%s14513_s29 + $0x1c] sm:$0xf]  ;;  %v3858_v28 = vrot.slane %v3856_v32, 4 }
 0x178   : > { %13062 = vmatprep.subr.bf16.mxu0 %v14237_v3  ;;  %v3845_v2 = vshrl.u32 %v15832_v5, 16 }
 0x179   : > { %v15836_v47 = vsel %vm14878_vm5, %v11776_v36, %v4638_v0  ;;  %v15910_v0 = vld [vmem:[%s18511_s1 + $0x200] sm:$0xff]  }
 0x17a   : > { %18703 = vst [vmem:[#allocation5_spill] sm:$0xff] %v15836_v47  ;;  %v3847_v13 = vrot.slane %v3845_v2, 4  ;;  %v14257_v2 = vld [vmem:[%s14513_s29 + $0x90] sm:$0xff]  }
 0x17b   : > { %13063 = vmatpush3.bf16.msra.mxu0 %v14237_v3  ;;  %v15842_v3 = vsel %vm14878_vm5, %v4640_v23, %v4641_v60  ;;  %v15913_v60 = vld [vmem:[%s14513_s29 + $0x34] sm:$0xf]  ;;  %v15919_v23 = vrot.slane %v3851_v9, 5  ;;  %v3885_v9 = vrot.slane %v3883_v49, 5  ;;  %v14264_v47 = vld [vmem:[%s14513_s29 + $0xcc] sm:$0xff]  }
 0x17c   : > { %13064 = vmatprep.subr.bf16.mxu0 %v14238_v41  ;;  %18704 = vst [vmem:[#allocation9_spill] sm:$0xff] %v15842_v3  ;;  %v3889_v62 = vshll.u32 %v15913_v60, 16  ;;  %v16113_v3 = vld [vmem:[%s14513_s29 + $0x64] sm:$0xf] }
 0x17d   : > { %18719 = vst [vmem:[#allocation19_spill] sm:$0xff] %v16113_v3 }
 0x17e   : > { %13033 = vmatmul.mubr.bf16.gmra.mrb[8].mxu0 %v18680_v20  ;;  %v15858_v20 = vld [vmem:[%s14513_s29 + $0x74] sm:$0x1] }
 0x17f   : > { %13036 = vmatprep.mubr.bf16.mxu0 %v11577_v21  ;;  %13065 = vmatpush3.bf16.msra.mxu0 %v14238_v41  ;;  %v3841_v21 = vshll.u32 %v15832_v5, 16  ;;  %v11768_v41 = vld [vmem:[%s14513_s29 + $0xb4] sm:$0xe] }
 0x180   : > { %13066 = vmatprep.subr.bf16.mxu0 %v14239_v14 }
 0x183   : > { %13067 = vmatpush3.bf16.msra.mxu0 %v14239_v14  ;;  %v15855_v14 = vld [vmem:[%s14513_s29 + $0x70] sm:$0xf] }
 0x184   : > { %13068 = vmatprep.subr.bf16.mxu0 %v14240_v4 }
 0x186   : > { %13037 = vmatmul.mubr.bf16.gmra.mrb[12].mxu0 %v18681_v26  ;;  %v14262_v26 = vld [vmem:[%s18511_s1 + $0x1f0] sm:$0xff]  }
 0x187   : > { %13040 = vmatprep.mubr.bf16.mxu0 %v11579_v56  ;;  %13069 = vmatpush3.bf16.msra.mxu0 %v14240_v4  ;;  %v11762_v4 = vld [vmem:[%s14513_s29 + $0x6c] sm:$0xe]  ;;  %v4652_v56 = vrot.slane %v15855_v14, 5 }
 0x188   : > { %13070 = vmatprep.subr.bf16.mxu0 %v14241_v57  ;;  %v11778_v6 = vrot.slane %v11762_v4, 9  ;;  %v3893_v4 = vshrl.u32 %v15913_v60, 16 }
 0x189   : > { %v4654_v39 = vrot.slane %v4652_v56, 4 }
 0x18a   : > { %v15876_v63 = vsel %vm14878_vm5, %v11778_v6, %v4652_v56  ;;  %v15944_v56 = vld [vmem:[%s14513_s29 + $0x40] sm:$0xf]  ;;  %v15949_v6 = vld [vmem:[%s14513_s29 + $0x38] sm:$0x1] }
 0x18b   : > { %13071 = vmatpush3.bf16.msra.mxu0 %v14241_v57  ;;  %v4655_v57 = vrot.slane %v15858_v20, 5  ;;  %18705 = vst [vmem:[#allocation6_spill] sm:$0xff] %v15876_v63 }
 0x18c   : > { %13104 = vmatprep.subr.bf16.mxu0 %v14244_v30 }
 0x18e   : > { %13041 = vmatmul.mubr.bf16.gmra.mrb[16].mxu0 %v18684_v42  ;;  %v15868_v42 = vrot.slane %v3841_v21, 5 }
 0x18f   : > { %13044 = vmatprep.mubr.bf16.mxu0 %v18687_v27  ;;  %v14252_v27 = vld [vmem:[%s14513_s29 + $0x6c] sm:$0xff]  }
 0x190   : > { %v3848_v61 = vor.u32 %v3847_v13, %v15868_v42  ;;  %v15955_v13 = vld [vmem:[%s14513_s29 + $0x98] sm:$0x1] }
 0x192   : > { %v15917_v12 = vrot.slane %v3848_v61, 4 }
 0x196   : > { %13045 = vmatmul.mubr.bf16.gmra.mrb[20].mxu0 %v18690_v10  ;;  %v3861_v10 = vrot.slane %v3859_v59, 5 }
 0x197   : > { %13048 = vmatprep.mubr.bf16.mxu0 %v18693_v37  ;;  %v15880_v37 = vld [vmem:[%s14513_s29 + $0x2c] sm:$0x1] }
 0x19e   : > { %13049 = vmatmul.mubr.bf16.gmra.mrb[24].mxu0 %v18696_v16  ;;  %v15886_v16 = vsel %vm14878_vm5, %v4654_v39, %v4655_v57  ;;  %v15958_v39 = vld [vmem:[%s14513_s29 + $0xa0] sm:$0xf] }
 0x19f   : > { %13052 = vmatprep.mubr.bf16.mxu0 %v18699_v54  ;;  %18706 = vst [vmem:[#allocation7_spill] sm:$0xff] %v15886_v16  ;;  %v11767_v54 = vld [vmem:[%s14513_s29 + $0xa8] sm:$0xe] }
 0x1a6   : > { %13053 = vmatmul.mubr.bf16.gmra.mrb[28].mxu0 %v18702_v45  ;;  %v3862_v45 = vor.u32 %v3861_v10, %v3858_v28  ;;  %v11765_v28 = vld [vmem:[%s14513_s29 + $0x90] sm:$0xe] }
 0x1a7   : > { %13072 = vmatprep.mubr.bf16.mxu0 %v14242_v44 }
 0x1ae   : > { %13073 = vmatmul.mubr.bf16.vlgmr.msra.gmra.mrb[0].mxu0 %v14243_v53  ;;  %v3875_v53 = vshll.u32 %v15880_v37, 16 }
 0x1af   : > { %13105 = vmatpush3.bf16.msra.mxu0 %v14244_v30  ;;  %13076 = vmatprep.mubr.bf16.mxu0 %v14245_v25  ;;  %v3834_v30 = vrot.slane %v3832_v33, 4  ;;  %v15898_v25 = vld [vmem:[%s14513_s29 + $0x88] sm:$0xf] }
 0x1b0   : > { %13106 = vmatprep.subr.bf16.mxu0 %v14247_v8  ;;  %v15925_v33 = vrot.slane %v3875_v53, 5 }
 0x1b1   : > { %v3838_v44 = vor.u32 %v3837_v46, %v3834_v30  ;;  %v15952_v46 = vld [vmem:[%s14513_s29 + $0x94] sm:$0xf]  ;;  %v16030_v30 = vld [vmem:[%s14513_s29 + $0xbc] sm:$0x1] }
 0x1b2   : > { %v4673_v10 = vrot.slane %v15952_v46, 5 }
 0x1b3   : > { %13107 = vmatpush3.bf16.msra.mxu0 %v14247_v8  ;;  %v15901_v8 = vld [vmem:[%s14513_s29 + $0x8c] sm:$0x1]  ;;  %v15915_v36 = vrot.slane %v3838_v44, 4  ;;  %v4680_v44 = vrot.slane %v15958_v39, 5 }
 0x1b4   : > { %13108 = vmatprep.subr.bf16.mxu0 %v14250_v29  ;;  %v4669_v17 = vrot.slane %v15901_v8, 5  ;;  %v4675_v53 = vrot.slane %v4673_v10, 4 }
 0x1b6   : > { %13077 = vmatmul.mubr.bf16.gmra.mrb[4].mxu0 %v14246_v34  ;;  %v3880_v34 = vshrl.u32 %v11673_v31, 16  ;;  %v11766_v31 = vld [vmem:[%s14513_s29 + $0x9c] sm:$0xe] }
 0x1b7   : > { %13080 = vmatprep.mubr.bf16.mxu0 %v14248_v15  ;;  %13109 = vmatpush3.bf16.msra.mxu0 %v14250_v29  ;;  %v3872_v29 = vor.u32 %v3871_v7, %v15882_v35  ;;  %v11764_v15 = vld [vmem:[%s14513_s29 + $0x84] sm:$0xe]  ;;  %v3913_v7 = vshll.u32 %v15944_v56, 16 }
 0x1b8   : > { %13110 = vmatprep.subr.bf16.mxu0 %v14253_v50  ;;  %v15934_v59 = vrot.slane %v3880_v34, 4  ;;  %v3895_v34 = vrot.slane %v3893_v4, 4 }
 0x1b9   : > { %v15932_v32 = vrot.slane %v3872_v29, 4  ;;  %v11782_v29 = vrot.slane %v11766_v31, 9  ;;  %v16006_v31 = vld [vmem:[%s14513_s29 + $0x4c] sm:$0xf] }
 0x1bb   : > { %13111 = vmatpush3.bf16.msra.mxu0 %v14253_v50  ;;  %v4666_v50 = vrot.slane %v15898_v25, 5 }
 0x1bc   : > { %13112 = vmatprep.subr.bf16.mxu0 %v14256_v19 }
 0x1be   : > { %13081 = vmatmul.mubr.bf16.gmra.mrb[8].mxu0 %v14249_v11  ;;  %v11676_v11 = vld [vmem:[%s14513_s29 + $0x3c] sm:$0xf] }
 0x1bf   : > { %13084 = vmatprep.mubr.bf16.mxu0 %v14251_v58  ;;  %13113 = vmatpush3.bf16.msra.mxu0 %v14256_v19  ;;  %v11780_v19 = vrot.slane %v11764_v15, 9  ;;  %v4668_v58 = vrot.slane %v4666_v50, 4  ;;  %v3904_v57 = vshrl.u32 %v11676_v11, 16  ;;  %v15973_v15 = vld [vmem:[%s14513_s29 + $0x44] sm:$0x1] }
 0x1c0   : > { %13114 = vmatprep.subr.bf16.mxu0 %v14259_v51  ;;  %18709 = vst [vmem:[#allocation11_spill] sm:$0xff] %v15973_v15 }
 0x1c1   : > { %v15929_v21 = vsel %vm14878_vm5, %v11780_v19, %v4666_v50  ;;  %v15939_v24 = vsel %vm14878_vm5, %v4668_v58, %v4669_v17  ;;  %v11679_v50 = vld [vmem:[%s14513_s29 + $0x48] sm:$0xf]  ;;  %v4682_v19 = vrot.slane %v4680_v44, 4  ;;  %v3899_v58 = vshll.u32 %v15949_v6, 16 }
 0x1c2   : > { %18707 = vst [vmem:[#allocation8_spill] sm:$0xff] %v15929_v21  ;;  %18708 = vst [vmem:[#allocation10_spill] sm:$0xff] %v15939_v24 }
 0x1c3   : > { %13115 = vmatpush3.bf16.msra.mxu0 %v14259_v51  ;;  %v15923_v51 = vrot.slane %v3862_v45, 4  ;;  %v15970_v45 = vrot.slane %v3889_v62, 5  ;;  %v14260_v62 = vld [vmem:[%s14513_s29 + $0xa8] sm:$0xff]  }
 0x1c4   : > { %13116 = vmatprep.subr.bf16.mxu0 %v14262_v26 }
 0x1c6   : > { %13085 = vmatmul.mubr.bf16.gmra.mrb[12].mxu0 %v14252_v27  ;;  %v15961_v27 = vld [vmem:[%s14513_s29 + $0xa4] sm:$0x1] }
 0x1c7   : > { %13088 = vmatprep.mubr.bf16.mxu0 %v14254_v22  ;;  %13117 = vmatpush3.bf16.msra.mxu0 %v14262_v26  ;;  %v3907_v26 = vshll.u32 %v11676_v11, 16  ;;  %v4676_v22 = vrot.slane %v15955_v13, 5  ;;  %v4683_v61 = vrot.slane %v15961_v27, 5  ;;  %v14258_v11 = vld [vmem:[%s14513_s29 + $0x9c] sm:$0xff]  }
 0x1c8   : > { %13118 = vmatprep.subr.bf16.mxu0 %v14265_v38 }
 0x1c9   : > { %v15986_v49 = vsel %vm14878_vm5, %v4675_v53, %v4676_v22  ;;  %v15993_v4 = vrot.slane %v3907_v26, 5  ;;  %v3917_v22 = vshrl.u32 %v15944_v56, 16  ;;  %v3886_v53 = vor.u32 %v3885_v9, %v15934_v59 }
 0x1ca   : > { %18711 = vst [vmem:[#allocation3_spill] sm:$0xff] %v15986_v49  ;;  %v3854_v26 = vsel %vm14545_vm2, %v15917_v12, %v15919_v23  ;;  %v3931_v59 = vshll.u32 %v11679_v50, 16  ;;  %v11783_v9 = vrot.slane %v11767_v54, 9  ;;  %v3937_v12 = vshll.u32 %v16006_v31, 16 }
 0x1cb   : > { %13119 = vmatpush3.bf16.msra.mxu0 %v14265_v38  ;;  %v11781_v38 = vrot.slane %v11765_v28, 9  ;;  %v15995_v28 = vrot.slane %v3913_v7, 5  ;;  %v3844_v7 = vsel %vm14545_vm2, %v15915_v36, %v15868_v42  ;;  %v3941_v23 = vshrl.u32 %v16006_v31, 16 }
 0x1cc   : > { %13152 = vmatprep.subr.bf16.mxu0 %v15910_v0  ;;  %v16040_v49 = vrot.slane %v3886_v53, 4  ;;  %v3919_v21 = vrot.slane %v3917_v22, 4 }
 0x1cd   : > { %v15978_v17 = vsel %vm14878_vm5, %v11781_v38, %v4673_v10  ;;  %v16001_v10 = vsel %vm14878_vm5, %v4682_v19, %v4683_v61  ;;  %v3923_v38 = vshll.u32 %v15973_v15, 16  ;;  %v16016_v61 = vld [vmem:[%s14513_s29 + $0xac] sm:$0xf]  ;;  %v16022_v19 = vld [vmem:[%s14513_s29 + $0xb8] sm:$0xf]  ;;  %v3961_v15 = vshll.u32 %v15818_v48, 16 }
 0x1ce   : > { %13089 = vmatmul.mubr.bf16.gmra.mrb[16].mxu0 %v14255_v52  ;;  %18710 = vst [vmem:[#allocation4_spill] sm:$0xff] %v15978_v17  ;;  %v15982_v52 = vrot.slane %v3904_v57, 4  ;;  %18713 = vst [vmem:[#allocation13_spill] sm:$0xff] %v16001_v10  ;;  %v3896_v57 = vor.u32 %v3895_v34, %v15970_v45  ;;  %v4687_v42 = vrot.slane %v16016_v61, 5  ;;  %v4697_v10 = vrot.slane %v16030_v30, 5 }
 0x1cf   : > { %13092 = vmatprep.mubr.bf16.mxu0 %v14257_v2  ;;  %v15990_v2 = vsel %vm14878_vm5, %v11782_v29, %v4680_v44  ;;  %v3928_v44 = vshrl.u32 %v11679_v50, 16  ;;  %v16019_v29 = vld [vmem:[%s14513_s29 + $0xb0] sm:$0x1]  ;;  %v16042_v17 = vrot.slane %v3899_v58, 5  ;;  %v14263_v58 = vld [vmem:[%s14513_s29 + $0xc0] sm:$0xff]   ;;  %v16060_v53 = vrot.slane %v3923_v38, 5 }
 0x1d0   : > { %18712 = vst [vmem:[#allocation12_spill] sm:$0xff] %v15990_v2  ;;  %v4690_v36 = vrot.slane %v16019_v29, 5  ;;  %v4689_v34 = vrot.slane %v4687_v42, 4  ;;  %v11784_v2 = vrot.slane %v11768_v41, 9  ;;  %v16046_v54 = vsel %vm14878_vm5, %v11783_v9, %v4687_v42  ;;  %v11682_v9 = vld [vmem:[%s14513_s29 + $0x54] sm:$0xf] }
 0x1d1   : > { %18714 = vst [vmem:[#allocation14_spill] sm:$0xff] %v16046_v54  ;;  %v16049_v24 = vrot.slane %v3896_v57, 4  ;;  %v3930_v42 = vrot.slane %v3928_v44, 4  ;;  %v11731_v44 = vcombine.low %v3844_v7, %v3854_v26  ;;  %v3868_v57 = vsel %vm14545_vm2, %v15923_v51, %v15882_v35  ;;  %v16101_v26 = vld [vmem:[%s14513_s29 + $0xd4] sm:$0x1] }
 0x1d2   : > { %v16053_v16 = vsel %vm14878_vm5, %v4689_v34, %v4690_v36  ;;  %v16070_v36 = vld [vmem:[%s14513_s29 + $0x50] sm:$0x1]  ;;  %v3943_v34 = vrot.slane %v3941_v23, 4  ;;  %v16090_v23 = vld [vmem:[%s14513_s29 + $0xc8] sm:$0x1]  ;;  %v3892_v35 = vsel %vm14545_vm2, %v16040_v49, %v15970_v45  ;;  %v3920_v51 = vor.u32 %v3919_v21, %v15995_v28 }
 0x1d3   : > { %18715 = vst [vmem:[#allocation15_spill] sm:$0xff] %v16053_v16  ;;  %18718 = vst [vmem:[#allocation18_spill] sm:$0xff] %v16070_v36  ;;  %v3947_v21 = vshll.u32 %v16070_v36, 16  ;;  %v11685_v49 = vld [vmem:[%s14513_s29 + $0x60] sm:$0xf]  ;;  %v3955_v63 = vshll.u32 %v11682_v9, 16 }
 0x1d6   : > { %13093 = vmatmul.mubr.bf16.gmra.mrb[20].mxu0 %v14258_v11  ;;  %v4694_v11 = vrot.slane %v16022_v19, 5 }
 0x1d7   : > { %13096 = vmatprep.mubr.bf16.mxu0 %v14260_v62  ;;  %v14261_v62 = vld [vmem:[%s14513_s29 + $0xb4] sm:$0xff]  }
 0x1d8   : > { %v4696_v50 = vrot.slane %v4694_v11, 4  ;;  %v16057_v41 = vsel %vm14878_vm5, %v11784_v2, %v4694_v11  ;;  %v3933_v2 = vrot.slane %v3931_v59, 5  ;;  %v16072_v11 = vrot.slane %v3937_v12, 5  ;;  %v16087_v12 = vld [vmem:[%s14513_s29 + $0xc4] sm:$0xf] }
 0x1d9   : > { %18716 = vst [vmem:[#allocation16_spill] sm:$0xff] %v16057_v41  ;;  %v3910_v59 = vor.u32 %v15993_v4, %v15982_v52  ;;  %v4704_v52 = vrot.slane %v16090_v23, 5  ;;  %v3952_v4 = vshrl.u32 %v11682_v9, 16 }
 0x1da   : > { %v16067_v22 = vsel %vm14878_vm5, %v4696_v50, %v4697_v10  ;;  %v3878_v10 = vsel %vm14545_vm2, %v15932_v32, %v15925_v33  ;;  %v16093_v50 = vld [vmem:[%s14513_s29 + $0xd0] sm:$0xf]  ;;  %v11769_v33 = vld [vmem:[%s14513_s29 + $0xc0] sm:$0xe]  ;;  %v4701_v32 = vrot.slane %v16087_v12, 5  ;;  %v3934_v45 = vor.u32 %v3933_v2, %v3930_v42 }
 0x1db   : > { %18717 = vst [vmem:[#allocation17_spill] sm:$0xff] %v16067_v22  ;;  %v11785_v7 = vrot.slane %v11769_v33, 9  ;;  %v4708_v38 = vrot.slane %v16093_v50, 5  ;;  %v4711_v22 = vrot.slane %v16101_v26, 5  ;;  %v3944_v54 = vor.u32 %v3943_v34, %v16072_v11 }
 0x1dc   : > { %v4703_v41 = vrot.slane %v4701_v32, 4  ;;  %v3965_v42 = vshrl.u32 %v15818_v48, 16  ;;  %v3976_v34 = vshrl.u32 %v11685_v49, 16  ;;  %v3902_v48 = vsel %vm14545_vm2, %v16049_v24, %v16042_v17 }
 0x1dd   : > { %v4710_v33 = vrot.slane %v4708_v38, 4  ;;  %v3957_v24 = vrot.slane %v3955_v63, 5  ;;  %v16151_v17 = vrot.slane %v3961_v15, 5  ;;  %v4009_v15 = vshll.u32 %v15855_v14, 16 }
 0x1de   : > { %13097 = vmatmul.mubr.bf16.gmra.mrb[24].mxu0 %v14261_v62  ;;  %v11770_v62 = vld [vmem:[%s14513_s29 + $0xcc] sm:$0xe]  ;;  %v16124_v2 = vsel %vm14878_vm5, %v4703_v41, %v4704_v52  ;;  %v16140_v41 = vrot.slane %v3910_v59, 4  ;;  %v3985_v52 = vshll.u32 %v16113_v3, 16  ;;  %v3967_v59 = vrot.slane %v3965_v42, 4 }
 0x1df   : > { %13100 = vmatprep.mubr.bf16.mxu0 %v14263_v58  ;;  %v11786_v16 = vrot.slane %v11770_v62, 9  ;;  %v16117_v58 = vsel %vm14878_vm5, %v11785_v7, %v4701_v32  ;;  %18721 = vst [vmem:[#allocation21_spill] sm:$0xff] %v16124_v2  ;;  %v3979_v62 = vshll.u32 %v11685_v49, 16  ;;  %v16134_v7 = vsel %vm14878_vm5, %v4710_v33, %v4711_v22  ;;  %v11688_v33 = vld [vmem:[%s14513_s29 + $0x6c] sm:$0xf] }
 0x1e0   : > { %18720 = vst [vmem:[#allocation20_spill] sm:$0xff] %v16117_v58  ;;  %18723 = vst [vmem:[#allocation23_spill] sm:$0xff] %v16134_v7  ;;  %v16147_v49 = vrot.slane %v3947_v21, 5  ;;  %v3954_v32 = vrot.slane %v3952_v4, 4  ;;  %v3989_v22 = vshrl.u32 %v16113_v3, 16  ;;  %v3935_v2 = vrot.slane %v3934_v45, 4 }
 0x1e1   : > { %v16128_v9 = vsel %vm14878_vm5, %v11786_v16, %v4708_v38  ;;  %v16145_v38 = vrot.slane %v3920_v51, 4  ;;  %v3945_v58 = vrot.slane %v3944_v54, 4  ;;  %v3971_v16 = vshll.u32 %v15821_v43, 16  ;;  %v16155_v4 = vld [vmem:[%s14513_s29 + $0x68] sm:$0x1] }
 0x1e2   : > { %18722 = vst [vmem:[#allocation22_spill] sm:$0xff] %v16128_v9  ;;  %v3978_v51 = vrot.slane %v3976_v34, 4  ;;  %v3981_v7 = vrot.slane %v3979_v62, 5  ;;  %v11732_v21 = vcombine.low %v3868_v57, %v3878_v10  ;;  %v11733_v9 = vcombine.low %v3892_v35, %v3902_v48  ;;  %v16173_v34 = vld [vmem:[%s14513_s29 + $0x7c] sm:$0xf] }
 0x1e3   : > { %v16157_v3 = vrot.slane %v3985_v52, 5  ;;  %v4000_v36 = vshrl.u32 %v11688_v33, 16  ;;  %v3991_v45 = vrot.slane %v3989_v22, 4  ;;  %v4003_v63 = vshll.u32 %v11688_v33, 16  ;;  %v11694_v33 = vld [vmem:[%s14513_s29 + $0x84] sm:$0xf] }
 0x1e4   : > { %v3916_v43 = vsel %vm14545_vm2, %v16140_v41, %v15995_v28  ;;  %v3926_v54 = vsel %vm14545_vm2, %v16145_v38, %v16060_v53  ;;  %v3958_v57 = vor.u32 %v3957_v24, %v3954_v32  ;;  %v3968_v10 = vor.u32 %v3967_v59, %v16151_v17  ;;  %v14267_v28 = vld [vmem:[%s18511_s1 + $0x208] sm:$0xff]  }
 0x1e5   : > { %v3982_v35 = vor.u32 %v3981_v7, %v3978_v51  ;;  %v3995_v42 = vshll.u32 %v16155_v4, 16  ;;  %v3940_v48 = vsel %vm14545_vm2, %v3935_v2, %v16072_v11  ;;  %v3950_v53 = vsel %vm14545_vm2, %v3945_v58, %v16147_v49  ;;  %v14268_v49 = vld [vmem:[%s18511_s1 + $0x210] sm:$0xff]  }
 0x1e6   : > { %13101 = vmatmul.mubr.bf16.gmra.mrb[28].mxu0 %v14264_v47  ;;  %v11691_v47 = vld [vmem:[%s14513_s29 + $0x78] sm:$0xf]  ;;  %v16184_v32 = vrot.slane %v3971_v16, 5  ;;  %v4002_v7 = vrot.slane %v4000_v36, 4  ;;  %v3992_v41 = vor.u32 %v3991_v45, %v16157_v3  ;;  %v4005_v52 = vrot.slane %v4003_v63, 5 }
 0x1e7   : > { %13120 = vmatprep.mubr.bf16.mxu0 %v11731_v44  ;;  %v4013_v44 = vshrl.u32 %v15855_v14, 16  ;;  %v4024_v14 = vshrl.u32 %v11691_v47, 16  ;;  %v4027_v62 = vshll.u32 %v11691_v47, 16  ;;  %v16187_v38 = vrot.slane %v4009_v15, 5 }
 0x1e8   : > { %v3959_v24 = vrot.slane %v3958_v57, 4  ;;  %v3969_v59 = vrot.slane %v3968_v10, 4  ;;  %v4033_v51 = vshll.u32 %v16173_v34, 16  ;;  %v4037_v11 = vshrl.u32 %v16173_v34, 16 }
 0x1e9   : > { %v4015_v22 = vrot.slane %v4013_v44, 4  ;;  %v3983_v58 = vrot.slane %v3982_v35, 4  ;;  %v3997_v2 = vrot.slane %v3995_v42, 5  ;;  %v4026_v36 = vrot.slane %v4024_v14, 4 }
 0x1ea   : > { %v4029_v16 = vrot.slane %v4027_v62, 5  ;;  %v4048_v47 = vshrl.u32 %v11694_v33, 16  ;;  %v4057_v45 = vshll.u32 %v15898_v25, 16  ;;  %v4061_v63 = vshrl.u32 %v15898_v25, 16 }
 0x1eb   : > { %v3993_v15 = vrot.slane %v3992_v41, 4  ;;  %v4019_v44 = vshll.u32 %v15858_v20, 16  ;;  %v11734_v57 = vcombine.low %v3916_v43, %v3926_v54  ;;  %v11735_v10 = vcombine.low %v3940_v48, %v3950_v53  ;;  %v11697_v43 = vld [vmem:[%s14513_s29 + $0x90] sm:$0xf]  ;;  %v14269_v54 = vld [vmem:[%s18511_s1 + $0x218] sm:$0xff]  }
 0x1ec   : > { %v16200_v35 = vrot.slane %v4033_v51, 5  ;;  %v4039_v42 = vrot.slane %v4037_v11, 4  ;;  %v3964_v14 = vsel %vm14545_vm2, %v3959_v24, %v16151_v17  ;;  %v3974_v25 = vsel %vm14545_vm2, %v3969_v59, %v16184_v32 }
 0x1ed   : > { %v3988_v62 = vsel %vm14545_vm2, %v3983_v58, %v16157_v3  ;;  %v4030_v20 = vor.u32 %v4029_v16, %v4026_v36  ;;  %v16218_v17 = vrot.slane %v4057_v45, 5  ;;  %v4063_v53 = vrot.slane %v4061_v63, 4 }
 0x1ee   : > { %13121 = vmatmul.mubr.bf16.vlgmr.msra.gmra.mrb[0].mxu0 %v11732_v21  ;;  %v4051_v21 = vshll.u32 %v11694_v33, 16  ;;  %v3998_v32 = vsel %vm14545_vm2, %v3993_v15, %v3997_v2  ;;  %v4021_v3 = vrot.slane %v4019_v44, 5  ;;  %v4072_v24 = vshrl.u32 %v11697_v43, 16 }
 0x1ef   : > { %13153 = vmatpush3.bf16.msra.mxu0 %v15910_v0  ;;  %13124 = vmatprep.mubr.bf16.mxu0 %v11733_v9  ;;  %v4006_v0 = vor.u32 %v4005_v52, %v4002_v7  ;;  %v4016_v9 = vor.u32 %v4015_v22, %v16187_v38  ;;  %v16212_v7 = vld [vmem:[%s14513_s29 + $0x80] sm:$0x1]  ;;  %v4040_v22 = vor.u32 %v4039_v42, %v16200_v35  ;;  %v4075_v59 = vshll.u32 %v11697_v43, 16  ;;  %v14271_v43 = vld [vmem:[%s18511_s1 + $0x228] sm:$0xff]  }
 0x1f0   : > { %13154 = vmatprep.subr.bf16.mxu0 %v14267_v28  ;;  %v4053_v48 = vrot.slane %v4051_v21, 5  ;;  %v4043_v33 = vshll.u32 %v16212_v7, 16  ;;  %v4081_v51 = vshll.u32 %v15952_v46, 16  ;;  %v4085_v11 = vshrl.u32 %v15952_v46, 16  ;;  %v11700_v21 = vld [vmem:[%s14513_s29 + $0x9c] sm:$0xf] }
 0x1f1   : > { %v4007_v41 = vrot.slane %v4006_v0, 4  ;;  %v4017_v52 = vrot.slane %v4016_v9, 4  ;;  %v4031_v58 = vrot.slane %v4030_v20, 4  ;;  %v4064_v36 = vor.u32 %v4063_v53, %v16218_v17 }
 0x1f2   : > { %v4067_v16 = vshll.u32 %v15901_v8, 16  ;;  %v11736_v45 = vcombine.low %v3964_v14, %v3974_v25  ;;  %v11737_v63 = vcombine.low %v3988_v62, %v3998_v32  ;;  %v4041_v15 = vrot.slane %v4040_v22, 4 }
 0x1f3   : > { %13155 = vmatpush3.bf16.msra.mxu0 %v14267_v28  ;;  %v4050_v28 = vrot.slane %v4048_v47, 4  ;;  %v14270_v47 = vld [vmem:[%s18511_s1 + $0x220] sm:$0xff]   ;;  %v4022_v46 = vsel %vm14545_vm2, %v4017_v52, %v4021_v3  ;;  %v4045_v0 = vrot.slane %v4043_v33, 5  ;;  %v4074_v9 = vrot.slane %v4072_v24, 4 }
 0x1f4   : > { %13156 = vmatprep.subr.bf16.mxu0 %v14268_v49  ;;  %v4077_v44 = vrot.slane %v4075_v59, 5  ;;  %v16238_v8 = vrot.slane %v4081_v51, 5  ;;  %v4096_v42 = vshrl.u32 %v11700_v21, 16  ;;  %v4099_v20 = vshll.u32 %v11700_v21, 16 }
 0x1f5   : > { %v4054_v2 = vor.u32 %v4053_v48, %v4050_v28  ;;  %v4036_v14 = vsel %vm14545_vm2, %v4031_v58, %v16200_v35  ;;  %v4069_v62 = vrot.slane %v4067_v16, 5  ;;  %v4105_v28 = vshll.u32 %v15958_v39, 16 }
 0x1f6   : > { %13125 = vmatmul.mubr.bf16.gmra.mrb[4].mxu0 %v11734_v57  ;;  %v11703_v57 = vld [vmem:[%s14513_s29 + $0xa8] sm:$0xf]  ;;  %v4046_v32 = vsel %vm14545_vm2, %v4041_v15, %v4045_v0  ;;  %v4091_v35 = vshll.u32 %v15955_v13, 16  ;;  %v4133_v52 = vshrl.u32 %v16016_v61, 16  ;;  %v4078_v3 = vor.u32 %v4077_v44, %v4074_v9  ;;  %v14273_v0 = vld [vmem:[%s18511_s1 + $0x238] sm:$0xff]  }
 0x1f7   : > { %13128 = vmatprep.mubr.bf16.mxu0 %v11735_v10  ;;  %13157 = vmatpush3.bf16.msra.mxu0 %v14268_v49  ;;  %v4012_v49 = vsel %vm14545_vm2, %v4007_v41, %v16187_v38  ;;  %v4087_v10 = vrot.slane %v4085_v11, 4  ;;  %v4055_v25 = vrot.slane %v4054_v2, 4  ;;  %v4065_v38 = vrot.slane %v4064_v36, 4 }
 0x1f8   : > { %13158 = vmatprep.subr.bf16.mxu0 %v14269_v54  ;;  %v4120_v48 = vshrl.u32 %v11703_v57, 16  ;;  %v4123_v53 = vshll.u32 %v11703_v57, 16  ;;  %v4129_v41 = vshll.u32 %v16016_v61, 16  ;;  %v4098_v33 = vrot.slane %v4096_v42, 4  ;;  %v14272_v61 = vld [vmem:[%s18511_s1 + $0x230] sm:$0xff]  }
 0x1f9   : > { %v4088_v22 = vor.u32 %v4087_v10, %v16238_v8  ;;  %v11738_v24 = vcombine.low %v4012_v49, %v4022_v46  ;;  %v4060_v59 = vsel %vm14545_vm2, %v4055_v25, %v16218_v17  ;;  %v4070_v13 = vsel %vm14545_vm2, %v4065_v38, %v4069_v62  ;;  %v11706_v17 = vld [vmem:[%s14513_s29 + $0xb4] sm:$0xf]  ;;  %v11709_v42 = vld [vmem:[%s14513_s29 + $0xc0] sm:$0xf] }
 0x1fa   : > { %v16262_v51 = vrot.slane %v4105_v28, 5  ;;  %v4122_v58 = vrot.slane %v4120_v48, 4  ;;  %v4125_v2 = vrot.slane %v4123_v53, 5  ;;  %v11739_v36 = vcombine.low %v4036_v14, %v4046_v32 }
 0x1fb   : > { %13159 = vmatpush3.bf16.msra.mxu0 %v14269_v54  ;;  %v4109_v54 = vshrl.u32 %v15958_v39, 16  ;;  %v4101_v39 = vrot.slane %v4099_v20, 5  ;;  %v4093_v16 = vrot.slane %v4091_v35, 5  ;;  %v4135_v21 = vrot.slane %v4133_v52, 4 }
 0x1fc   : > { %13160 = vmatprep.subr.bf16.mxu0 %v14270_v47  ;;  %v4115_v46 = vshll.u32 %v15961_v27, 16  ;;  %v11740_v15 = vcombine.low %v4060_v59, %v4070_v13  ;;  %v4126_v44 = vor.u32 %v4125_v2, %v4122_v58  ;;  %v4139_v57 = vshll.u32 %v16019_v29, 16 }
 0x1fd   : > { %v4111_v11 = vrot.slane %v4109_v54, 4  ;;  %v4102_v49 = vor.u32 %v4101_v39, %v4098_v33  ;;  %v4144_v10 = vshrl.u32 %v11706_v17, 16  ;;  %v4147_v14 = vshll.u32 %v11706_v17, 16 }
 0x1fe   : > { %13129 = vmatmul.mubr.bf16.gmra.mrb[8].mxu0 %v11736_v45  ;;  %v4079_v45 = vrot.slane %v4078_v3, 4  ;;  %v4153_v27 = vshll.u32 %v16022_v19, 16  ;;  %v4157_v25 = vshrl.u32 %v16022_v19, 16  ;;  %v4117_v29 = vrot.slane %v4115_v46, 5 }
 0x1ff   : > { %13132 = vmatprep.mubr.bf16.mxu0 %v11737_v63  ;;  %13161 = vmatpush3.bf16.msra.mxu0 %v14270_v47  ;;  %v16264_v47 = vrot.slane %v4129_v41, 5  ;;  %v4089_v63 = vrot.slane %v4088_v22, 4  ;;  %v4112_v9 = vor.u32 %v4111_v11, %v16262_v51  ;;  %v4168_v28 = vshrl.u32 %v11709_v42, 16 }
 0x200   : > { %13162 = vmatprep.subr.bf16.mxu0 %v14271_v43  ;;  %v4084_v38 = vsel %vm14545_vm2, %v4079_v45, %v16238_v8  ;;  %v4171_v54 = vshll.u32 %v11709_v42, 16  ;;  %v4177_v48 = vshll.u32 %v16087_v12, 16  ;;  %v4181_v53 = vshrl.u32 %v16087_v12, 16 }
 0x201   : > { %v4136_v20 = vor.u32 %v4135_v21, %v16264_v47  ;;  %v4094_v62 = vsel %vm14545_vm2, %v4089_v63, %v4093_v16  ;;  %v4113_v19 = vrot.slane %v4112_v9, 4  ;;  %v4127_v32 = vrot.slane %v4126_v44, 4 }
 0x202   : > { %v4141_v35 = vrot.slane %v4139_v57, 5  ;;  %v4146_v41 = vrot.slane %v4144_v10, 4  ;;  %v4149_v8 = vrot.slane %v4147_v14, 5  ;;  %v4155_v3 = vrot.slane %v4153_v27, 5 }
 0x203   : > { %13163 = vmatpush3.bf16.msra.mxu0 %v14271_v43  ;;  %v4103_v43 = vrot.slane %v4102_v49, 4  ;;  %v4137_v52 = vrot.slane %v4136_v20, 4  ;;  %v4159_v22 = vrot.slane %v4157_v25, 4  ;;  %v11741_v33 = vcombine.low %v4084_v38, %v4094_v62 }
 0x204   : > { %13164 = vmatprep.subr.bf16.mxu0 %v14272_v61  ;;  %v4170_v39 = vrot.slane %v4168_v28, 4  ;;  %v4179_v59 = vrot.slane %v4177_v48, 5  ;;  %v4183_v13 = vrot.slane %v4181_v53, 4  ;;  %v4118_v11 = vsel %vm14545_vm2, %v4113_v19, %v4117_v29  ;;  %v11755_v48 = vld [vmem:[%s14513_s29 + $0x18] sm:$0xe] }
 0x205   : > { %v4108_v12 = vsel %vm14545_vm2, %v4103_v43, %v16262_v51  ;;  %v4163_v58 = vshll.u32 %v16030_v30, 16  ;;  %v4132_v2 = vsel %vm14545_vm2, %v4127_v32, %v16264_v47  ;;  %v4150_v16 = vor.u32 %v4149_v8, %v4146_v41 }
 0x206   : > { %13133 = vmatmul.mubr.bf16.gmra.mrb[12].mxu0 %v11738_v24  ;;  %v4173_v24 = vrot.slane %v4171_v54, 5  ;;  %v4160_v21 = vor.u32 %v4159_v22, %v4155_v3  ;;  %v4201_v51 = vshll.u32 %v16093_v50, 16  ;;  %v4205_v63 = vshrl.u32 %v16093_v50, 16 }
 0x207   : > { %13136 = vmatprep.mubr.bf16.mxu0 %v11739_v36  ;;  %13165 = vmatpush3.bf16.msra.mxu0 %v14272_v61  ;;  %v11712_v61 = vld [vmem:[%s14513_s29 + $0xcc] sm:$0xf]  ;;  %v4142_v36 = vsel %vm14545_vm2, %v4137_v52, %v4141_v35  ;;  %v4184_v46 = vor.u32 %v4183_v13, %v4179_v59  ;;  %v4187_v30 = vshll.u32 %v16090_v23, 16  ;;  %v4151_v9 = vrot.slane %v4150_v16, 4 }
 0x208   : > { %13166 = vmatprep.subr.bf16.mxu0 %v14273_v0  ;;  %v4192_v17 = vshrl.u32 %v11712_v61, 16  ;;  %v4195_v45 = vshll.u32 %v11712_v61, 16  ;;  %v4174_v49 = vor.u32 %v4173_v24, %v4170_v39  ;;  %v4161_v47 = vrot.slane %v4160_v21, 4  ;;  %v11756_v24 = vld [vmem:[%s14513_s29 + $0x24] sm:$0xe] }
 0x209   : > { %v4165_v44 = vrot.slane %v4163_v58, 5  ;;  %v4203_v42 = vrot.slane %v4201_v51, 5  ;;  %v4207_v20 = vrot.slane %v4205_v63, 4  ;;  %v4185_v27 = vrot.slane %v4184_v46, 4 }
 0x20a   : > { %v4194_v57 = vrot.slane %v4192_v17, 4  ;;  %v4197_v10 = vrot.slane %v4195_v45, 5  ;;  %v4175_v14 = vrot.slane %v4174_v49, 4  ;;  %v4189_v25 = vrot.slane %v4187_v30, 5  ;;  %v11758_v45 = vld [vmem:[%s14513_s29 + $0x3c] sm:$0xe] }
 0x20b   : > { %13167 = vmatpush3.bf16.msra.mxu0 %v14273_v0  ;;  %v11743_v0 = vcombine.low %v4132_v2, %v4142_v36  ;;  %v4156_v50 = vsel %vm14545_vm2, %v4151_v9, %v4155_v3  ;;  %v4166_v23 = vsel %vm14545_vm2, %v4161_v47, %v4165_v44  ;;  %v4208_v62 = vor.u32 %v4207_v20, %v4203_v42  ;;  %v18726_v20 = vld [vmem:[#allocation19_spill] sm:$0xff] }
 0x20c   : > { %v4198_v38 = vor.u32 %v4197_v10, %v4194_v57  ;;  %v4211_v43 = vshll.u32 %v16101_v26, 16  ;;  %v4180_v29 = vsel %vm14545_vm2, %v4175_v14, %v4179_v59  ;;  %v4190_v28 = vsel %vm14545_vm2, %v4185_v27, %v4189_v25  ;;  %v11761_v27 = vld [vmem:[%s14513_s29 + $0x60] sm:$0xe] }
 0x20d   : > { %v4603_v54 = vrot.slane %v15832_v5, 5  ;;  %v11744_v53 = vcombine.low %v4156_v50, %v4166_v23  ;;  %v11745_v19 = vcombine.low %v4180_v29, %v4190_v28  ;;  %v4209_v35 = vrot.slane %v4208_v62, 4 }
 0x20e   : > { %13137 = vmatmul.mubr.bf16.gmra.mrb[16].mxu0 %v11740_v15  ;;  %v11742_v15 = vcombine.low %v4108_v12, %v4118_v11  ;;  %v4199_v32 = vrot.slane %v4198_v38, 4  ;;  %v4213_v41 = vrot.slane %v4211_v43, 5  ;;  %v11771_v52 = vrot.slane %v11755_v48, 9 }
 0x20f   : > { %13140 = vmatprep.mubr.bf16.mxu0 %v11741_v33  ;;  %v4605_v8 = vrot.slane %v4603_v54, 4  ;;  %v4606_v26 = vrot.slane %v15872_v18, 5  ;;  %v4610_v22 = vrot.slane %v15848_v40, 5  ;;  %v4617_v59 = vrot.slane %v15913_v60, 5  ;;  %v11757_v18 = vld [vmem:[%s14513_s29 + $0x30] sm:$0xe] }
 0x210   : > { %v4204_v3 = vsel %vm14545_vm2, %v4199_v32, %v4203_v42  ;;  %v4214_v5 = vsel %vm14545_vm2, %v4209_v35, %v4213_v41  ;;  %v4604_v33 = vsel %vm14878_vm5, %v11771_v52, %v4603_v54  ;;  %v11772_v12 = vrot.slane %v11756_v24, 9  ;;  %v11763_v54 = vld [vmem:[%s14513_s29 + $0x78] sm:$0xe]  ;;  %v18727_v35 = vld [vmem:[#allocation5_spill] sm:$0xff] }
 0x211   : > { %v4607_v39 = vsel %vm14878_vm5, %v4605_v8, %v4606_v26  ;;  %v11746_v13 = vcombine.low %v4204_v3, %v4214_v5  ;;  %v4612_v11 = vrot.slane %v4610_v22, 4  ;;  %v4613_v58 = vrot.slane %v15880_v37, 5  ;;  %v18728_v41 = vld [vmem:[#allocation9_spill] sm:$0xff]  ;;  %v18730_v3 = vld [vmem:[#allocation6_spill] sm:$0xff]  ;;  %v18737_v24 = vld [vmem:[#allocation3_spill] sm:$0xff] }
 0x212   : > { %v11803_v61 = vcombine.low %v4604_v33, %v4607_v39  ;;  %v11773_v2 = vrot.slane %v11757_v18, 9  ;;  %v4619_v40 = vrot.slane %v4617_v59, 4  ;;  %v4620_v36 = vrot.slane %v15949_v6, 5  ;;  %v11759_v6 = vld [vmem:[%s14513_s29 + $0x48] sm:$0xe]  ;;  %v18734_v33 = vld [vmem:[#allocation10_spill] sm:$0xff] }
 0x213   : > { %v4611_v16 = vsel %vm14878_vm5, %v11772_v12, %v4610_v22  ;;  %v4614_v60 = vsel %vm14878_vm5, %v4612_v11, %v4613_v58  ;;  %v4624_v21 = vrot.slane %v15944_v56, 5  ;;  %v4631_v51 = vrot.slane %v16006_v31, 5  ;;  %v18725_v56 = vld [vmem:[#allocation18_spill] sm:$0xff]  ;;  %v18733_v22 = vld [vmem:[#allocation8_spill] sm:$0xff]  ;;  %v18743_v11 = vld [vmem:[#allocation15_spill] sm:$0xff] }
 0x214   : > { %v4618_v17 = vsel %vm14878_vm5, %v11773_v2, %v4617_v59  ;;  %v4621_v37 = vsel %vm14878_vm5, %v4619_v40, %v4620_v36  ;;  %v11804_v63 = vcombine.low %v4611_v16, %v4614_v60  ;;  %v11774_v46 = vrot.slane %v11758_v45, 9  ;;  %v18736_v39 = vld [vmem:[#allocation4_spill] sm:$0xff]  ;;  %v18742_v12 = vld [vmem:[#allocation14_spill] sm:$0xff]  ;;  %v18746_v40 = vld [vmem:[#allocation17_spill] sm:$0xff] }
 0x215   : > { %v11805_v49 = vcombine.low %v4618_v17, %v4621_v37  ;;  %v4626_v30 = vrot.slane %v4624_v21, 4  ;;  %v11775_v9 = vrot.slane %v11759_v6, 9  ;;  %v4633_v47 = vrot.slane %v4631_v51, 4  ;;  %v18739_v18 = vld [vmem:[#allocation12_spill] sm:$0xff]  ;;  %v18749_v60 = vld [vmem:[#allocation21_spill] sm:$0xff]  ;;  %v18751_v17 = vld [vmem:[#allocation22_spill] sm:$0xff] }
 0x216   : > { %13141 = vmatmul.mubr.bf16.gmra.mrb[20].mxu0 %v11742_v15  ;;  %v18724_v15 = vld [vmem:[#allocation11_spill] sm:$0xff]  ;;  %v4634_v44 = vrot.slane %v18725_v56, 5  ;;  %v4625_v57 = vsel %vm14878_vm5, %v11774_v46, %v4624_v21  ;;  %v4645_v14 = vrot.slane %v18726_v20, 5  ;;  %v11777_v23 = vrot.slane %v11761_v27, 9  ;;  %v18745_v2 = vld [vmem:[#allocation16_spill] sm:$0xff]  ;;  %v14275_v56 = vld [vmem:[%s18513_s3 + $0x48] sm:$0xff]  }
 0x217   : > { %13144 = vmatprep.mubr.bf16.mxu0 %v11743_v0  ;;  %v4627_v0 = vrot.slane %v18724_v15, 5  ;;  %v4632_v10 = vsel %vm14878_vm5, %v11775_v9, %v4631_v51  ;;  %v4648_v62 = vrot.slane %v16155_v4, 5  ;;  %v4659_v28 = vrot.slane %v16173_v34, 5  ;;  %v18731_v34 = vld [vmem:[#allocation7_spill] sm:$0xff]  ;;  %v18748_v16 = vld [vmem:[#allocation20_spill] sm:$0xff]  ;;  %v14276_v20 = vld [vmem:[%s18513_s3 + $0x50] sm:$0xff]  }
 0x218   : > { %v4635_v42 = vsel %vm14878_vm5, %v4633_v47, %v4634_v44  ;;  %v4647_v38 = vrot.slane %v4645_v14, 4  ;;  %v4646_v43 = vsel %vm14878_vm5, %v11777_v23, %v4645_v14  ;;  %v4662_v32 = vrot.slane %v16212_v7, 5  ;;  %v18752_v37 = vld [vmem:[#allocation23_spill] sm:$0xff]  ;;  %v14274_v51 = vld [vmem:[%s18513_s3 + $0x40] sm:$0xff]   ;;  %v5183_v47 = vld [vmem:[#allocation2 + $0x14] sm:$0x1] }
 0x219   : > { %v4628_v31 = vsel %vm14878_vm5, %v4626_v30, %v4627_v0  ;;  %v11807_v50 = vcombine.low %v4632_v10, %v4635_v42  ;;  %v18729_v52 = vcombine.low %v18727_v35, %v18728_v41  ;;  %v18732_v5 = vcombine.low %v18730_v3, %v18731_v34  ;;  %v5133_v30 = vld [vmem:[#allocation2 + $0xc] sm:$0x1]  ;;  %13200 = vmatprep.subr.bf16.mxu1 %v14274_v51  ;;  %v5186_v0 = vld [vmem:[#allocation2 + $0x20] sm:$0x1]  ;;  %v5139_v10 = vld [vmem:[#allocation2 + $0x24] sm:$0x1] }
 0x21a   : > { %v11806_v25 = vcombine.low %v4625_v57, %v4628_v31  ;;  %v4649_v29 = vsel %vm14878_vm5, %v4647_v38, %v4648_v62  ;;  %v18735_v7 = vcombine.low %v18733_v22, %v18734_v33  ;;  %v18738_v59 = vcombine.low %v18736_v39, %v18737_v24  ;;  %13201 = vmatpush3.bf16.msra.mxu1 %v14274_v51  ;;  %v5142_v57 = vld [vmem:[#allocation2 + $0x30] sm:$0x1]  ;;  %v5192_v14 = vld [vmem:[#allocation2 + $0x38] sm:$0x1]  ;;  %v5148_v38 = vld [vmem:[#allocation2 + $0x48] sm:$0x1] }
 0x21b   : > { %v11809_v48 = vcombine.low %v4646_v43, %v4649_v29  ;;  %v18744_v58 = vcombine.low %v18742_v12, %v18743_v11  ;;  %v18747_v36 = vcombine.low %v18745_v2, %v18746_v40  ;;  %v18750_v21 = vcombine.low %v18748_v16, %v18749_v60  ;;  %13202 = vmatprep.subr.bf16.mxu1 %v14275_v56  ;;  %v14278_v62 = vld [vmem:[%s18513_s3 + $0x60] sm:$0xff]   ;;  %v5145_v29 = vld [vmem:[#allocation2 + $0x3c] sm:$0x1]  ;;  %v14280_v41 = vld [vmem:[%s18513_s3 + $0x70] sm:$0xff]  }
 0x21c   : > { %v18753_v45 = vcombine.low %v18751_v17, %v18752_v37  ;;  %v5134_v15 = vsel %vm16392_vm8, 0, %v5133_v30  ;;  %v5187_v9 = vsel %vm16399_vm10, 0, %v5186_v0  ;;  %v5184_v44 = vsel %vm16399_vm10, 0, %v5183_v47  ;;  %v5201_v39 = vld [vmem:[#allocation2 + $0x5c] sm:$0x1] }
 0x21d   : > { %5135 = vst [vmem:[#allocation2 + $0xc] sm:$0x1] %v5134_v15  ;;  %5188 = vst [vmem:[#allocation2 + $0x20] sm:$0x1] %v5187_v9  ;;  %v5143_v31 = vsel %vm16392_vm8, 0, %v5142_v57  ;;  %v5140_v42 = vsel %vm16392_vm8, 0, %v5139_v10 }
 0x21e   : > { %13145 = vmatmul.mubr.bf16.gmra.mrb[24].mxu0 %v11744_v53  ;;  %v11779_v53 = vrot.slane %v11763_v54, 9  ;;  %5185 = vst [vmem:[#allocation2 + $0x14] sm:$0x1] %v5184_v44  ;;  %13203 = vmatpush3.bf16.msra.mxu1 %v14275_v56  ;;  %5144 = vst [vmem:[#allocation2 + $0x30] sm:$0x1] %v5143_v31  ;;  %v5193_v27 = vsel %vm16399_vm10, 0, %v5192_v14 }
 0x21f   : > { %13148 = vmatprep.mubr.bf16.mxu0 %v11745_v19  ;;  %v4661_v19 = vrot.slane %v4659_v28, 4  ;;  %5141 = vst [vmem:[#allocation2 + $0x24] sm:$0x1] %v5140_v42  ;;  %13204 = vmatprep.subr.bf16.mxu1 %v14276_v20  ;;  %5194 = vst [vmem:[#allocation2 + $0x38] sm:$0x1] %v5193_v27  ;;  %v5149_v43 = vsel %vm16392_vm8, 0, %v5148_v38 }
 0x220   : > { %v4660_v4 = vsel %vm14878_vm5, %v11779_v53, %v4659_v28  ;;  %5150 = vst [vmem:[#allocation2 + $0x48] sm:$0x1] %v5149_v43  ;;  %v5146_v28 = vsel %vm16392_vm8, 0, %v5145_v29  ;;  %v5198_v54 = vld [vmem:[#allocation2 + $0x50] sm:$0x1]  ;;  %v14281_v24 = vld [vmem:[%s18513_s3 + $0x78] sm:$0xff]  }
 0x221   : > { %v4663_v8 = vsel %vm14878_vm5, %v4661_v19, %v4662_v32  ;;  %5147 = vst [vmem:[#allocation2 + $0x3c] sm:$0x1] %v5146_v28  ;;  %v5199_v53 = vsel %vm16399_vm10, 0, %v5198_v54  ;;  %v5195_v19 = vld [vmem:[#allocation2 + $0x44] sm:$0x1]  ;;  %v14279_v32 = vld [vmem:[%s18513_s3 + $0x68] sm:$0xff]  }
 0x222   : > { %v11811_v26 = vcombine.low %v4660_v4, %v4663_v8  ;;  %13205 = vmatpush3.bf16.msra.mxu1 %v14276_v20  ;;  %5200 = vst [vmem:[#allocation2 + $0x50] sm:$0x1] %v5199_v53  ;;  %v5196_v35 = vsel %vm16399_vm10, 0, %v5195_v19  ;;  %v5160_v16 = vld [vmem:[#allocation2 + $0x78] sm:$0x1]  ;;  %v16469_v44 = vld [vmem:[%s18513_s3] sm:$0xff]  }
 0x223   : > { %5197 = vst [vmem:[#allocation2 + $0x44] sm:$0x1] %v5196_v35  ;;  %v5161_v60 = vsel %vm16392_vm8, 0, %v5160_v16  ;;  %v5210_v30 = vld [vmem:[#allocation2 + $0x80] sm:$0x1] }
 0x224   : > { %5162 = vst [vmem:[#allocation2 + $0x78] sm:$0x1] %v5161_v60  ;;  %v5211_v0 = vsel %vm16399_vm10, 0, %v5210_v30  ;;  %v5207_v47 = vld [vmem:[#allocation2 + $0x74] sm:$0x1] }
 0x225   : > { %5212 = vst [vmem:[#allocation2 + $0x80] sm:$0x1] %v5211_v0  ;;  %v5208_v56 = vsel %vm16399_vm10, 0, %v5207_v47  ;;  %v5166_v57 = vld [vmem:[#allocation2 + $0x90] sm:$0x1] }
 0x226   : > { %13149 = vmatmul.mubr.bf16.gmra.mrb[28].mxu0 %v11746_v13  ;;  %v18740_v13 = vld [vmem:[#allocation13_spill] sm:$0xff]  ;;  %5209 = vst [vmem:[#allocation2 + $0x74] sm:$0x1] %v5208_v56  ;;  %v5167_v31 = vsel %vm16392_vm8, 0, %v5166_v57  ;;  %v5163_v10 = vld [vmem:[#allocation2 + $0x84] sm:$0x1] }
 0x227   : > { %13168 = vmatprep.mubr.bf16.mxu0 %v11803_v61  ;;  %v18741_v61 = vcombine.low %v18739_v18, %v18740_v13  ;;  %5168 = vst [vmem:[#allocation2 + $0x90] sm:$0x1] %v5167_v31  ;;  %v5216_v42 = vld [vmem:[#allocation2 + $0x98] sm:$0x1]  ;;  %v5164_v20 = vsel %vm16392_vm8, 0, %v5163_v10 }
 0x228   : > { %v5217_v14 = vsel %vm16399_vm10, 0, %v5216_v42  ;;  %v5213_v27 = vld [vmem:[#allocation2 + $0x8c] sm:$0x1]  ;;  %5165 = vst [vmem:[#allocation2 + $0x84] sm:$0x1] %v5164_v20 }
 0x229   : > { %5218 = vst [vmem:[#allocation2 + $0x98] sm:$0x1] %v5217_v14  ;;  %v5169_v38 = vld [vmem:[#allocation2 + $0x9c] sm:$0x1]  ;;  %v5219_v28 = vld [vmem:[#allocation2 + $0xa4] sm:$0x1] }
 0x22a   : > { %v5170_v43 = vsel %vm16392_vm8, 0, %v5169_v38  ;;  %v5220_v54 = vsel %vm16399_vm10, 0, %v5219_v28  ;;  %v5175_v19 = vld [vmem:[#allocation2 + $0xb4] sm:$0x1]  ;;  %v5228_v35 = vld [vmem:[#allocation2 + $0xc8] sm:$0x1] }
 0x22b   : > { %5171 = vst [vmem:[#allocation2 + $0x9c] sm:$0x1] %v5170_v43  ;;  %5221 = vst [vmem:[#allocation2 + $0xa4] sm:$0x1] %v5220_v54  ;;  %v5635_v57 = vld [vmem:[#allocation2 + $0xc] sm:$0xf] }
 0x22e   : > { %13169 = vmatmul.mubr.bf16.vlgmr.msra.gmra.mrb[0].mxu0 %v11804_v63  ;;  %v5136_v63 = vld [vmem:[#allocation2 + $0x18] sm:$0x1] }
 0x22f   : > { %13172 = vmatprep.mubr.bf16.mxu0 %v11805_v49  ;;  %v5137_v49 = vsel %vm16392_vm8, 0, %v5136_v63 }
 0x230   : > { %5138 = vst [vmem:[#allocation2 + $0x18] sm:$0x1] %v5137_v49 }
 0x236   : > { %13173 = vmatmul.mubr.bf16.gmra.mrb[4].mxu0 %v11806_v25  ;;  %v5189_v25 = vld [vmem:[#allocation2 + $0x2c] sm:$0x1] }
 0x237   : > { %13176 = vmatprep.mubr.bf16.mxu0 %v11807_v50  ;;  %v14277_v50 = vld [vmem:[%s18513_s3 + $0x58] sm:$0xff]   ;;  %v5190_v23 = vsel %vm16399_vm10, 0, %v5189_v25  ;;  %v5214_v25 = vsel %vm16399_vm10, 0, %v5213_v27 }
 0x238   : > { %5191 = vst [vmem:[#allocation2 + $0x2c] sm:$0x1] %v5190_v23  ;;  %13206 = vmatprep.subr.bf16.mxu1 %v14277_v50  ;;  %5215 = vst [vmem:[#allocation2 + $0x8c] sm:$0x1] %v5214_v25  ;;  %v5646_v25 = vld [vmem:[#allocation2 + $0x20] sm:$0x1] }
 0x239   : > { %13207 = vmatpush3.bf16.msra.mxu1 %v14277_v50  ;;  %v5172_v50 = vld [vmem:[#allocation2 + $0xa8] sm:$0x1] }
 0x23a   : > { %13208 = vmatprep.subr.bf16.mxu1 %v14278_v62  ;;  %v5173_v23 = vsel %vm16392_vm8, 0, %v5172_v50 }
 0x23b   : > { %5174 = vst [vmem:[#allocation2 + $0xa8] sm:$0x1] %v5173_v23 }
 0x23d   : > { %13209 = vmatpush3.bf16.msra.mxu1 %v14278_v62  ;;  %v5222_v62 = vld [vmem:[#allocation2 + $0xb0] sm:$0x1] }
 0x23e   : > { %13177 = vmatmul.mubr.bf16.gmra.mrb[8].mxu0 %v18729_v52  ;;  %13210 = vmatprep.subr.bf16.mxu1 %v14279_v32  ;;  %v5154_v52 = vld [vmem:[#allocation2 + $0x60] sm:$0x1]  ;;  %v5223_v29 = vsel %vm16399_vm10, 0, %v5222_v62 }
 0x23f   : > { %13180 = vmatprep.mubr.bf16.mxu0 %v11809_v48  ;;  %v14459_v48 = vmov 0   ;;  %v5155_v8 = vsel %vm16392_vm8, 0, %v5154_v52  ;;  %5224 = vst [vmem:[#allocation2 + $0xb0] sm:$0x1] %v5223_v29  ;;  %v5229_v52 = vsel %vm16399_vm10, 0, %v5228_v35 }
 0x240   : > { %5122 = vst [vmem:[#allocation2] sm:$0xf] %v14459_v48  ;;  %5123 = vst [vmem:[#allocation2 + $0x4] sm:$0xf] %v14459_v48  ;;  %v5639_v29 = vld [vmem:[#allocation2 + $0x14] sm:$0x1] }
 0x241   : > { %5124 = vst [vmem:[#allocation2 + $0x8] sm:$0xf] %v14459_v48  ;;  %5126 = vst [vmem:[#allocation2 + $0xcc] sm:$0xf] %v14459_v48  ;;  %13211 = vmatpush3.bf16.msra.mxu1 %v14279_v32  ;;  %v5176_v32 = vsel %vm16392_vm8, 0, %v5175_v19 }
 0x242   : > { %5127 = vst [vmem:[#allocation2 + $0xd0] sm:$0xf] %v14459_v48  ;;  %5128 = vst [vmem:[#allocation2 + $0xd4] sm:$0xf] %v14459_v48  ;;  %13212 = vmatprep.subr.bf16.mxu1 %v14280_v41  ;;  %v5178_v48 = vld [vmem:[#allocation2 + $0xc0] sm:$0x1] }
 0x243   : > { %5156 = vst [vmem:[#allocation2 + $0x60] sm:$0x1] %v5155_v8  ;;  %v5179_v53 = vsel %vm16392_vm8, 0, %v5178_v48  ;;  %5177 = vst [vmem:[#allocation2 + $0xb4] sm:$0x1] %v5176_v32 }
 0x244   : > { %5180 = vst [vmem:[#allocation2 + $0xc0] sm:$0x1] %v5179_v53  ;;  %5230 = vst [vmem:[#allocation2 + $0xc8] sm:$0x1] %v5229_v52  ;;  %v16499_v8 = vld [vmem:[%s18512_s2] ss:$0 sm:$0xff] }
 0x245   : > { %13213 = vmatpush3.bf16.msra.mxu1 %v14280_v41  ;;  %v5225_v41 = vld [vmem:[#allocation2 + $0xbc] sm:$0x1] }
 0x246   : > { %13181 = vmatmul.mubr.bf16.gmra.mrb[12].mxu0 %v18732_v5  ;;  %v5204_v5 = vld [vmem:[#allocation2 + $0x68] sm:$0x1]  ;;  %13214 = vmatprep.subr.bf16.mxu1 %v14281_v24 }
 0x247   : > { %13184 = vmatprep.mubr.bf16.mxu0 %v11811_v26  ;;  %v5747_v4 = vld [vmem:[#allocation2] sm:$0xf]  ;;  %v5151_v26 = vld [vmem:[#allocation2 + $0x54] sm:$0x1]  ;;  %v5748_v22 = vld [vmem:[#allocation2 + $0x4] sm:$0xf] }
 0x248   : > { %v5812_v3 = vshrl.u32 %v5747_v4, 16  ;;  %v5152_v34 = vsel %vm16392_vm8, 0, %v5151_v26  ;;  %v5815_v33 = vshll.u32 %v5747_v4, 16  ;;  %v5795_v18 = vld [vmem:[#allocation2 + $0x8] sm:$0x1]  ;;  %v5821_v12 = vshll.u32 %v5748_v22, 16 }
 0x249   : > { %5153 = vst [vmem:[#allocation2 + $0x54] sm:$0x1] %v5152_v34  ;;  %v5825_v11 = vshrl.u32 %v5748_v22, 16  ;;  %13215 = vmatpush3.bf16.msra.mxu1 %v14281_v24  ;;  %v5226_v4 = vsel %vm16399_vm10, 0, %v5225_v41 }
 0x24a   : > { %v5814_v13 = vrot.slane %v5812_v3, 4  ;;  %v5823_v40 = vrot.slane %v5821_v12, 5  ;;  %13248 = vmatprep.subr.bf16.mxu1 %v16469_v44  ;;  %5227 = vst [vmem:[#allocation2 + $0xbc] sm:$0x1] %v5226_v4 }
 0x24e   : > { %13185 = vmatmul.mubr.bf16.gmra.mrb[16].mxu0 %v18735_v7  ;;  %v5205_v7 = vsel %vm16399_vm10, 0, %v5204_v5 }
 0x24f   : > { %13188 = vmatprep.mubr.bf16.mxu0 %v18738_v59  ;;  %5206 = vst [vmem:[#allocation2 + $0x68] sm:$0x1] %v5205_v7  ;;  %v5202_v59 = vsel %vm16399_vm10, 0, %v5201_v39 }
 0x250   : > { %5203 = vst [vmem:[#allocation2 + $0x5c] sm:$0x1] %v5202_v59 }
 0x256   : > { %13189 = vmatmul.mubr.bf16.gmra.mrb[20].mxu0 %v18741_v61  ;;  %v5817_v61 = vrot.slane %v5815_v33, 5 }
 0x257   : > { %13192 = vmatprep.mubr.bf16.mxu0 %v18744_v58  ;;  %v5831_v58 = vshll.u32 %v5795_v18, 16 }
 0x258   : > { %v5818_v2 = vor.u32 %v5817_v61, %v5814_v13 }
 0x25a   : > { %v5819_v17 = vrot.slane %v5818_v2, 4 }
 0x25c   : > { %v5824_v63 = vsel %vm14545_vm2, %v5819_v17, %v5823_v40 }
 0x25e   : > { %13193 = vmatmul.mubr.bf16.gmra.mrb[24].mxu0 %v18747_v36  ;;  %v5827_v36 = vrot.slane %v5825_v11, 4 }
 0x25f   : > { %13196 = vmatprep.mubr.bf16.mxu0 %v18750_v21  ;;  %v5157_v21 = vld [vmem:[#allocation2 + $0x6c] sm:$0x1] }
 0x260   : > { %v5828_v37 = vor.u32 %v5827_v36, %v5823_v40  ;;  %v5158_v51 = vsel %vm16392_vm8, 0, %v5157_v21 }
 0x261   : > { %5159 = vst [vmem:[#allocation2 + $0x6c] sm:$0x1] %v5158_v51 }
 0x262   : > { %v5829_v49 = vrot.slane %v5828_v37, 4 }
 0x266   : > { %13197 = vmatmul.mubr.bf16.gmra.mrb[28].mxu0 %v18753_v45  ;;  %v5833_v45 = vrot.slane %v5831_v58, 5 }
 0x268   : > { %v5834_v15 = vsel %vm14545_vm2, %v5829_v49, %v5833_v45 }
 0x269   : > { %v11876_v9 = vcombine.low %v5824_v63, %v5834_v15  ;;  %v5642_v63 = vld [vmem:[#allocation2 + $0x18] sm:$0xf] }
 0x26b   : > { %13216 = vmatprep.mubr.bf16.mxu1 %v11876_v9 }
 0x301   : > { %v13170_v26 = vpop.f32.mrb[0].mxu0 }
 0x302   : > { %v5044_v3 = vadd.f32 %v13170_v26, %v16499_v8  ;;  %v4876_v34 = vpop.f32.mrb[1].mxu0 }
 0x303   : > { %v5042_v5 = vadd.f32 %v16499_v8, %v4876_v34  ;;  %v13171_v22 = vpop.f32.mrb[2].mxu0 }
 0x304   : > { %v5076_v33 = vmax.f32 %v5044_v3, 0.0  ;;  %v5045_v7 = vadd.f32 %v13171_v22, %v16499_v8  ;;  %v4879_v39 = vpop.f32.mrb[3].mxu0 }
 0x305   : > { %v5074_v46 = vmax.f32 %v5042_v5, 0.0  ;;  %v5043_v24 = vadd.f32 %v16499_v8, %v4879_v39 }
 0x306   : > { %v12306_v59 = vpack.c.bf16 %v5076_v33, %v5076_v33  ;;  %v5077_v18 = vmax.f32 %v5045_v7, 0.0 }
 0x307   : > { %v12304_v13 = vpack.c.bf16 %v5074_v46, %v5074_v46  ;;  %v5075_v61 = vmax.f32 %v5043_v24, 0.0  ;;  %v5656_v46 = vld [vmem:[#allocation2 + $0x30] sm:$0xf] }
 0x308   : > { %v5331_v12 = vshrl.u32 %v12306_v59, 16  ;;  %v12307_v11 = vpack.c.bf16 %v5077_v18, %v5077_v18  ;;  %v5334_v58 = vshll.u32 %v12306_v59, 16 }
 0x309   : > { %v5314_v2 = vshrl.u32 %v12304_v13, 16  ;;  %v5317_v40 = vshll.u32 %v12304_v13, 16  ;;  %v12305_v36 = vpack.c.bf16 %v5075_v61, %v5075_v61  ;;  %v13174_v16 = vpop.f32.mrb[4].mxu0 }
 0x30a   : > { %v5333_v60 = vrot.slane %v5331_v12, 7  ;;  %v5339_v21 = vshrl.u32 %v12307_v11, 16  ;;  %v5342_v17 = vshll.u32 %v12307_v11, 16  ;;  %v5048_v37 = vadd.f32 %v13174_v16, %v16499_v8  ;;  %v4892_v45 = vpop.f32.mrb[5].mxu0  ;;  %v5649_v11 = vld [vmem:[#allocation2 + $0x24] sm:$0xf] }
 0x30b   : > { %v5316_v49 = vrot.slane %v5314_v2, 7  ;;  %v5322_v30 = vshrl.u32 %v12305_v36, 16  ;;  %v5325_v15 = vshll.u32 %v12305_v36, 16  ;;  %v5046_v0 = vadd.f32 %v16499_v8, %v4892_v45  ;;  %v13175_v9 = vpop.f32.mrb[6].mxu0 }
 0x30c   : > { %v5336_v47 = vor.u32 %v5334_v58, %v5333_v60  ;;  %v5337_v56 = vrot.slane %v5333_v60, 4  ;;  %v5341_v31 = vrot.slane %v5339_v21, 7  ;;  %v5080_v10 = vmax.f32 %v5048_v37, 0.0  ;;  %v4895_v42 = vpop.f32.mrb[7].mxu0 }
 0x30d   : > { %v5319_v20 = vor.u32 %v5317_v40, %v5316_v49  ;;  %v5320_v14 = vrot.slane %v5316_v49, 4  ;;  %v5324_v50 = vrot.slane %v5322_v30, 7  ;;  %v5078_v23 = vmax.f32 %v5046_v0, 0.0 }
 0x30e   : > { %v5643_v38 = vsel %vm16507_vm13, %v5336_v47, %v5642_v63  ;;  %v5344_v62 = vor.u32 %v5342_v17, %v5341_v31  ;;  %v5346_v43 = vrot.slane %v5341_v31, 4  ;;  %v12310_v28 = vpack.c.bf16 %v5080_v10, %v5080_v10  ;;  %v5660_v31 = vld [vmem:[#allocation2 + $0x38] sm:$0x1]  ;;  %v5653_v10 = vld [vmem:[#allocation2 + $0x2c] sm:$0x1] }
 0x30f   : > { %5644 = vst [vmem:[#allocation2 + $0x18] sm:$0xf] %v5643_v38  ;;  %v5636_v54 = vsel %vm16507_vm13, %v5319_v20, %v5635_v57  ;;  %v5327_v48 = vor.u32 %v5325_v15, %v5324_v50  ;;  %v5329_v53 = vrot.slane %v5324_v50, 4  ;;  %v12308_v19 = vpack.c.bf16 %v5078_v23, %v5078_v23 }
 0x310   : > { %5637 = vst [vmem:[#allocation2 + $0xc] sm:$0xf] %v5636_v54  ;;  %v5345_v32 = vsel %vm16514_vm14, %v5337_v56, %v5344_v62  ;;  %v5647_v35 = vsel %vm16392_vm8, %v5346_v43, %v5646_v25  ;;  %v5365_v41 = vshrl.u32 %v12310_v28, 16  ;;  %v5368_v26 = vshll.u32 %v12310_v28, 16  ;;  %v5670_v54 = vld [vmem:[#allocation2 + $0x48] sm:$0xf] }
 0x311   : > { %5645 = vst [vmem:[#allocation2 + $0x1c] sm:$0xf] %v5345_v32  ;;  %5648 = vst [vmem:[#allocation2 + $0x20] sm:$0x1] %v5647_v35  ;;  %v5328_v52 = vsel %vm16514_vm14, %v5320_v14, %v5327_v48  ;;  %v5640_v4 = vsel %vm16392_vm8, %v5329_v53, %v5639_v29  ;;  %v5348_v3 = vshrl.u32 %v12308_v19, 16  ;;  %v13178_v34 = vpop.f32.mrb[8].mxu0  ;;  %v5049_v22 = vadd.f32 %v13175_v9, %v16499_v8 }
 0x312   : > { %5638 = vst [vmem:[#allocation2 + $0x10] sm:$0xf] %v5328_v52  ;;  %5641 = vst [vmem:[#allocation2 + $0x14] sm:$0x1] %v5640_v4  ;;  %v16530_v5 = vrot.slane %v5365_v41, 7  ;;  %v5047_v33 = vadd.f32 %v16499_v8, %v4895_v42  ;;  %v5052_v7 = vadd.f32 %v13178_v34, %v16499_v8  ;;  %v4908_v39 = vpop.f32.mrb[9].mxu0 }
 0x313   : > { %v5350_v24 = vrot.slane %v5348_v3, 7  ;;  %v5351_v59 = vshll.u32 %v12308_v19, 16  ;;  %v5050_v18 = vadd.f32 %v16499_v8, %v4908_v39  ;;  %v13179_v13 = vpop.f32.mrb[10].mxu0  ;;  %v5081_v58 = vmax.f32 %v5049_v22, 0.0 }
 0x314   : > { %v5370_v61 = vor.u32 %v5368_v26, %v16530_v5  ;;  %v5371_v12 = vrot.slane %v16530_v5, 4  ;;  %v5079_v2 = vmax.f32 %v5047_v33, 0.0  ;;  %v4911_v40 = vpop.f32.mrb[11].mxu0  ;;  %v5084_v60 = vmax.f32 %v5052_v7, 0.0  ;;  %v5663_v26 = vld [vmem:[#allocation2 + $0x3c] sm:$0xf] }
 0x315   : > { %v5353_v36 = vor.u32 %v5351_v59, %v5350_v24  ;;  %v5354_v16 = vrot.slane %v5350_v24, 4  ;;  %v5082_v21 = vmax.f32 %v5050_v18, 0.0  ;;  %v12311_v37 = vpack.c.bf16 %v5081_v58, %v5081_v58 }
 0x316   : > { %v5657_v17 = vsel %vm16507_vm13, %v5370_v61, %v5656_v46  ;;  %v12309_v45 = vpack.c.bf16 %v5079_v2, %v5079_v2  ;;  %v5053_v63 = vadd.f32 %v13179_v13, %v16499_v8  ;;  %v12314_v30 = vpack.c.bf16 %v5084_v60, %v5084_v60 }
 0x317   : > { %5658 = vst [vmem:[#allocation2 + $0x30] sm:$0xf] %v5657_v17  ;;  %v5650_v49 = vsel %vm16507_vm13, %v5353_v36, %v5649_v11  ;;  %v12312_v15 = vpack.c.bf16 %v5082_v21, %v5082_v21  ;;  %v5051_v0 = vadd.f32 %v16499_v8, %v4911_v40  ;;  %v5373_v9 = vshrl.u32 %v12311_v37, 16  ;;  %v5674_v17 = vld [vmem:[#allocation2 + $0x50] sm:$0x1] }
 0x318   : > { %5651 = vst [vmem:[#allocation2 + $0x24] sm:$0xf] %v5650_v49  ;;  %v5376_v47 = vshll.u32 %v12311_v37, 16  ;;  %v5356_v56 = vshrl.u32 %v12309_v45, 16  ;;  %v5359_v57 = vshll.u32 %v12309_v45, 16  ;;  %v5399_v42 = vshrl.u32 %v12314_v30, 16 }
 0x319   : > { %v5402_v20 = vshll.u32 %v12314_v30, 16  ;;  %v5382_v14 = vshrl.u32 %v12312_v15, 16  ;;  %v5385_v25 = vshll.u32 %v12312_v15, 16  ;;  %v13182_v50 = vpop.f32.mrb[12].mxu0  ;;  %v5375_v23 = vrot.slane %v5373_v9, 7 }
 0x31a   : > { %v5358_v38 = vrot.slane %v5356_v56, 7  ;;  %v5085_v62 = vmax.f32 %v5053_v63, 0.0  ;;  %v5083_v43 = vmax.f32 %v5051_v0, 0.0  ;;  %v4924_v29 = vpop.f32.mrb[13].mxu0  ;;  %v16544_v28 = vrot.slane %v5399_v42, 7 }
 0x31b   : > { %v16546_v48 = vrot.slane %v5382_v14, 7  ;;  %v5056_v53 = vadd.f32 %v13182_v50, %v16499_v8  ;;  %v5054_v19 = vadd.f32 %v16499_v8, %v4924_v29  ;;  %v13183_v32 = vpop.f32.mrb[14].mxu0  ;;  %v5378_v35 = vor.u32 %v5376_v47, %v5375_v23  ;;  %v5667_v9 = vld [vmem:[#allocation2 + $0x44] sm:$0x1] }
 0x31c   : > { %v5380_v41 = vrot.slane %v5375_v23, 4  ;;  %v5361_v52 = vor.u32 %v5359_v57, %v5358_v38  ;;  %v5363_v4 = vrot.slane %v5358_v38, 4  ;;  %v4927_v3 = vpop.f32.mrb[15].mxu0  ;;  %v5404_v34 = vor.u32 %v5402_v20, %v16544_v28 }
 0x31d   : > { %v5405_v5 = vrot.slane %v16544_v28, 4  ;;  %v5387_v22 = vor.u32 %v5385_v25, %v16546_v48  ;;  %v5388_v33 = vrot.slane %v16546_v48, 4  ;;  %v5379_v7 = vsel %vm16514_vm14, %v5371_v12, %v5378_v35  ;;  %v5677_v35 = vld [vmem:[#allocation2 + $0x54] sm:$0xf] }
 0x31e   : > { %v5661_v39 = vsel %vm16392_vm8, %v5380_v41, %v5660_v31  ;;  %v5362_v46 = vsel %vm16514_vm14, %v5354_v16, %v5361_v52  ;;  %v5654_v24 = vsel %vm16392_vm8, %v5363_v4, %v5653_v10  ;;  %5659 = vst [vmem:[#allocation2 + $0x34] sm:$0xf] %v5379_v7  ;;  %v5671_v59 = vsel %vm16507_vm13, %v5404_v34, %v5670_v54 }
 0x31f   : > { %5662 = vst [vmem:[#allocation2 + $0x38] sm:$0x1] %v5661_v39  ;;  %5652 = vst [vmem:[#allocation2 + $0x28] sm:$0xf] %v5362_v46  ;;  %v5664_v18 = vsel %vm16507_vm13, %v5387_v22, %v5663_v26  ;;  %v12315_v13 = vpack.c.bf16 %v5085_v62, %v5085_v62  ;;  %v12313_v61 = vpack.c.bf16 %v5083_v43, %v5083_v43  ;;  %v5088_v12 = vmax.f32 %v5056_v53, 0.0 }
 0x320   : > { %5655 = vst [vmem:[#allocation2 + $0x2c] sm:$0x1] %v5654_v24  ;;  %5672 = vst [vmem:[#allocation2 + $0x48] sm:$0xf] %v5671_v59  ;;  %v5086_v11 = vmax.f32 %v5054_v19, 0.0  ;;  %v5057_v58 = vadd.f32 %v13183_v32, %v16499_v8  ;;  %v5055_v2 = vadd.f32 %v16499_v8, %v4927_v3 }
 0x321   : > { %5665 = vst [vmem:[#allocation2 + $0x3c] sm:$0xf] %v5664_v18  ;;  %v5407_v40 = vshrl.u32 %v12315_v13, 16  ;;  %v5410_v36 = vshll.u32 %v12315_v13, 16  ;;  %v5390_v16 = vshrl.u32 %v12313_v61, 16  ;;  %v5393_v60 = vshll.u32 %v12313_v61, 16 }
 0x322   : > { %v13186_v21 = vpop.f32.mrb[16].mxu0  ;;  %v12318_v37 = vpack.c.bf16 %v5088_v12, %v5088_v12  ;;  %v12316_v45 = vpack.c.bf16 %v5086_v11, %v5086_v11  ;;  %v5089_v63 = vmax.f32 %v5057_v58, 0.0  ;;  %v5087_v49 = vmax.f32 %v5055_v2, 0.0  ;;  %v5684_v32 = vld [vmem:[#allocation2 + $0x60] sm:$0xf] }
 0x323   : > { %v4940_v30 = vpop.f32.mrb[17].mxu0  ;;  %v5409_v15 = vrot.slane %v5407_v40, 7  ;;  %v5392_v0 = vrot.slane %v5390_v16, 7  ;;  %v5060_v47 = vadd.f32 %v13186_v21, %v16499_v8  ;;  %v5749_v3 = vld [vmem:[#allocation2 + $0xc] sm:$0xf] }
 0x324   : > { %v5058_v56 = vadd.f32 %v16499_v8, %v4940_v30  ;;  %v13187_v57 = vpop.f32.mrb[18].mxu0  ;;  %v5433_v31 = vshrl.u32 %v12318_v37, 16  ;;  %v5436_v10 = vshll.u32 %v12318_v37, 16  ;;  %v5416_v42 = vshrl.u32 %v12316_v45, 16  ;;  %v5688_v24 = vld [vmem:[#allocation2 + $0x68] sm:$0x1] }
 0x325   : > { %v5419_v20 = vshll.u32 %v12316_v45, 16  ;;  %v4943_v14 = vpop.f32.mrb[19].mxu0  ;;  %v5412_v25 = vor.u32 %v5410_v36, %v5409_v15  ;;  %v5414_v50 = vrot.slane %v5409_v15, 4  ;;  %v5395_v23 = vor.u32 %v5393_v60, %v5392_v0  ;;  %v5681_v11 = vld [vmem:[#allocation2 + $0x5c] sm:$0x1] }
 0x326   : > { %v5397_v38 = vrot.slane %v5392_v0, 4  ;;  %v5435_v62 = vrot.slane %v5433_v31, 7  ;;  %v5418_v43 = vrot.slane %v5416_v42, 7  ;;  %v12319_v29 = vpack.c.bf16 %v5089_v63, %v5089_v63  ;;  %v5750_v60 = vld [vmem:[#allocation2 + $0x10] sm:$0xf] }
 0x327   : > { %v12317_v28 = vpack.c.bf16 %v5087_v49, %v5087_v49  ;;  %v5413_v54 = vsel %vm16514_vm14, %v5405_v5, %v5412_v25  ;;  %v5675_v48 = vsel %vm16392_vm8, %v5414_v50, %v5674_v17  ;;  %v5396_v53 = vsel %vm16514_vm14, %v5388_v33, %v5395_v23  ;;  %v5698_v42 = vld [vmem:[#allocation2 + $0x78] sm:$0xf] }
 0x328   : > { %v5668_v19 = vsel %vm16392_vm8, %v5397_v38, %v5667_v9  ;;  %5673 = vst [vmem:[#allocation2 + $0x4c] sm:$0xf] %v5413_v54  ;;  %5676 = vst [vmem:[#allocation2 + $0x50] sm:$0x1] %v5675_v48  ;;  %v5438_v41 = vor.u32 %v5436_v10, %v5435_v62  ;;  %v5439_v52 = vrot.slane %v5435_v62, 4  ;;  %v5421_v4 = vor.u32 %v5419_v20, %v5418_v43 }
 0x329   : > { %5666 = vst [vmem:[#allocation2 + $0x40] sm:$0xf] %v5396_v53  ;;  %5669 = vst [vmem:[#allocation2 + $0x44] sm:$0x1] %v5668_v19  ;;  %v5422_v26 = vrot.slane %v5418_v43, 4  ;;  %v5441_v34 = vshrl.u32 %v12319_v29, 16  ;;  %v5061_v58 = vadd.f32 %v13187_v57, %v16499_v8  ;;  %v5059_v2 = vadd.f32 %v16499_v8, %v4943_v14 }
 0x32a   : > { %v5444_v5 = vshll.u32 %v12319_v29, 16  ;;  %v5424_v22 = vshrl.u32 %v12317_v28, 16  ;;  %v5427_v7 = vshll.u32 %v12317_v28, 16  ;;  %v16578_v39 = vpop.f32.mrb[20].mxu0  ;;  %v5685_v33 = vsel %vm16507_vm13, %v5438_v41, %v5684_v32  ;;  %v5691_v20 = vld [vmem:[#allocation2 + $0x6c] sm:$0xf] }
 0x32b   : > { %v5678_v46 = vsel %vm16507_vm13, %v5421_v4, %v5677_v35  ;;  %v5092_v59 = vmax.f32 %v5060_v47, 0.0  ;;  %v5090_v18 = vmax.f32 %v5058_v56, 0.0  ;;  %v16584_v13 = vpop.f32.mrb[21].mxu0  ;;  %5686 = vst [vmem:[#allocation2 + $0x60] sm:$0xf] %v5685_v33  ;;  %v5443_v61 = vrot.slane %v5441_v34, 7 }
 0x32c   : > { %5679 = vst [vmem:[#allocation2 + $0x54] sm:$0xf] %v5678_v46  ;;  %v5426_v12 = vrot.slane %v5424_v22, 7  ;;  %v16588_v40 = vpop.f32.mrb[22].mxu0  ;;  %v5836_v21 = vshrl.u32 %v5749_v3, 16  ;;  %v5839_v17 = vshll.u32 %v5749_v3, 16 }
 0x32d   : > { %v12322_v36 = vpack.c.bf16 %v5092_v59, %v5092_v59  ;;  %v12320_v16 = vpack.c.bf16 %v5090_v18, %v5090_v18  ;;  %v16590_v37 = vpop.f32.mrb[23].mxu0  ;;  %v5446_v45 = vor.u32 %v5444_v5, %v5443_v61  ;;  %v5448_v63 = vrot.slane %v5443_v61, 4  ;;  %v5796_v38 = vld [vmem:[#allocation2 + $0x14] sm:$0x1]  ;;  %v5752_v33 = vld [vmem:[#allocation2 + $0x1c] sm:$0xf] }
 0x32e   : > { %v5429_v49 = vor.u32 %v5427_v7, %v5426_v12  ;;  %v5431_v30 = vrot.slane %v5426_v12, 4  ;;  %v5093_v50 = vmax.f32 %v5061_v58, 0.0  ;;  %v5091_v23 = vmax.f32 %v5059_v2, 0.0 }
 0x32f   : > { %v5467_v15 = vshrl.u32 %v12322_v36, 16  ;;  %v5470_v0 = vshll.u32 %v12322_v36, 16  ;;  %v5450_v9 = vshrl.u32 %v12320_v16, 16  ;;  %v5453_v47 = vshll.u32 %v12320_v16, 16  ;;  %v5702_v16 = vld [vmem:[#allocation2 + $0x80] sm:$0x1] }
 0x330   : > { %v5447_v56 = vsel %vm16514_vm14, %v5439_v52, %v5446_v45  ;;  %v5689_v57 = vsel %vm16392_vm8, %v5448_v63, %v5688_v24  ;;  %v5430_v31 = vsel %vm16514_vm14, %v5422_v26, %v5429_v49  ;;  %v5682_v10 = vsel %vm16392_vm8, %v5431_v30, %v5681_v11  ;;  %v5751_v26 = vld [vmem:[#allocation2 + $0x18] sm:$0xf]  ;;  %v5695_v45 = vld [vmem:[#allocation2 + $0x74] sm:$0x1] }
 0x331   : > { %5687 = vst [vmem:[#allocation2 + $0x64] sm:$0xf] %v5447_v56  ;;  %5690 = vst [vmem:[#allocation2 + $0x68] sm:$0x1] %v5689_v57  ;;  %v5469_v14 = vrot.slane %v5467_v15, 7  ;;  %v5452_v25 = vrot.slane %v5450_v9, 7  ;;  %v12323_v35 = vpack.c.bf16 %v5093_v50, %v5093_v50  ;;  %v12321_v41 = vpack.c.bf16 %v5091_v23, %v5091_v23 }
 0x332   : > { %5680 = vst [vmem:[#allocation2 + $0x58] sm:$0xf] %v5430_v31  ;;  %5683 = vst [vmem:[#allocation2 + $0x5c] sm:$0x1] %v5682_v10  ;;  %v5838_v62 = vrot.slane %v5836_v21, 4  ;;  %v5841_v43 = vrot.slane %v5839_v17, 5 }
 0x333   : > { %v5845_v29 = vshll.u32 %v5750_v60, 16  ;;  %v5849_v28 = vshrl.u32 %v5750_v60, 16  ;;  %v16600_v54 = vpop.f32.mrb[24].mxu0  ;;  %v5472_v48 = vor.u32 %v5470_v0, %v5469_v14  ;;  %v5473_v53 = vrot.slane %v5469_v14, 4  ;;  %v5797_v57 = vld [vmem:[#allocation2 + $0x20] sm:$0x1] }
 0x334   : > { %v5455_v19 = vor.u32 %v5453_v47, %v5452_v25  ;;  %v16602_v32 = vpop.f32.mrb[25].mxu0  ;;  %v5842_v52 = vor.u32 %v5841_v43, %v5838_v62  ;;  %v5855_v7 = vshll.u32 %v5796_v38, 16  ;;  %v5456_v24 = vrot.slane %v5452_v25, 4  ;;  %v5753_v25 = vld [vmem:[#allocation2 + $0x24] sm:$0xf] }
 0x335   : > { %v5847_v4 = vrot.slane %v5845_v29, 5  ;;  %v16604_v3 = vpop.f32.mrb[26].mxu0  ;;  %v5699_v34 = vsel %vm16507_vm13, %v5472_v48, %v5698_v42  ;;  %v5851_v22 = vrot.slane %v5849_v28, 4  ;;  %v5475_v59 = vshrl.u32 %v12323_v35, 16 }
 0x336   : > { %v5692_v5 = vsel %vm16507_vm13, %v5455_v19, %v5691_v20  ;;  %v16610_v46 = vpop.f32.mrb[27].mxu0  ;;  %5700 = vst [vmem:[#allocation2 + $0x78] sm:$0xf] %v5699_v34  ;;  %v5478_v18 = vshll.u32 %v12323_v35, 16  ;;  %v5458_v61 = vshrl.u32 %v12321_v41, 16  ;;  %v5461_v12 = vshll.u32 %v12321_v41, 16 }
 0x337   : > { %5693 = vst [vmem:[#allocation2 + $0x6c] sm:$0xf] %v5692_v5  ;;  %v5843_v11 = vrot.slane %v5842_v52, 4  ;;  %v5852_v58 = vor.u32 %v5851_v22, %v5847_v4  ;;  %v5857_v2 = vrot.slane %v5855_v7, 5  ;;  %v5477_v36 = vrot.slane %v5475_v59, 7 }
 0x338   : > { %v5460_v60 = vrot.slane %v5458_v61, 7  ;;  %v5860_v21 = vshrl.u32 %v5751_v26, 16  ;;  %v5863_v17 = vshll.u32 %v5751_v26, 16  ;;  %v5869_v30 = vshll.u32 %v5752_v33, 16  ;;  %v5754_v5 = vld [vmem:[#allocation2 + $0x28] sm:$0xf] }
 0x339   : > { %v5848_v63 = vsel %vm14545_vm2, %v5843_v11, %v5847_v4  ;;  %v5853_v49 = vrot.slane %v5852_v58, 4  ;;  %v5873_v15 = vshrl.u32 %v5752_v33, 16  ;;  %v5480_v0 = vor.u32 %v5478_v18, %v5477_v36  ;;  %v16614_v31 = vpop.f32.mrb[28].mxu0 }
 0x33a   : > { %v5482_v9 = vrot.slane %v5477_v36, 4  ;;  %v5463_v47 = vor.u32 %v5461_v12, %v5460_v60  ;;  %v5465_v56 = vrot.slane %v5460_v60, 4  ;;  %v5862_v42 = vrot.slane %v5860_v21, 4  ;;  %v16618_v50 = vpop.f32.mrb[29].mxu0 }
 0x33b   : > { %v5858_v10 = vsel %vm14545_vm2, %v5853_v49, %v5857_v2  ;;  %v5865_v20 = vrot.slane %v5863_v17, 5  ;;  %v5871_v14 = vrot.slane %v5869_v30, 5  ;;  %v5481_v23 = vsel %vm16514_vm14, %v5473_v53, %v5480_v0  ;;  %v16628_v29 = vpop.f32.mrb[30].mxu0  ;;  %v14283_v53 = vld [vmem:[%s18513_s3 + $0x8] sm:$0xff]  }
 0x33c   : > { %v5703_v38 = vsel %vm16392_vm8, %v5482_v9, %v5702_v16  ;;  %v5464_v62 = vsel %vm16514_vm14, %v5456_v24, %v5463_v47  ;;  %v5696_v43 = vsel %vm16392_vm8, %v5465_v56, %v5695_v45  ;;  %5701 = vst [vmem:[#allocation2 + $0x7c] sm:$0xf] %v5481_v23  ;;  %v11877_v28 = vcombine.low %v5848_v63, %v5858_v10  ;;  %v16633_v41 = vpop.f32.mrb[31].mxu0  ;;  %v5705_v9 = vld [vmem:[#allocation2 + $0x84] sm:$0xf]  ;;  %v14285_v10 = vld [vmem:[%s18513_s3 + $0x18] sm:$0xff]  }
 0x33d   : > { %5704 = vst [vmem:[#allocation2 + $0x80] sm:$0x1] %v5703_v38  ;;  %5694 = vst [vmem:[#allocation2 + $0x70] sm:$0xf] %v5464_v62  ;;  %v5866_v48 = vor.u32 %v5865_v20, %v5862_v42  ;;  %v5875_v19 = vrot.slane %v5873_v15, 4  ;;  %v5879_v35 = vshll.u32 %v5797_v57, 16  ;;  %v5064_v52 = vadd.f32 %v16578_v39, %v16499_v8 }
 0x33e   : > { %5697 = vst [vmem:[#allocation2 + $0x74] sm:$0x1] %v5696_v43  ;;  %v5062_v4 = vadd.f32 %v16499_v8, %v16584_v13  ;;  %v5065_v26 = vadd.f32 %v16588_v40, %v16499_v8  ;;  %v5063_v34 = vadd.f32 %v16499_v8, %v16590_v37  ;;  %13217 = vmatmul.mubr.bf16.vlgmr.msra.gmra.mrb[0].mxu1 %v11877_v28  ;;  %v5884_v24 = vshrl.u32 %v5753_v25, 16  ;;  %v14284_v37 = vld [vmem:[%s18513_s3 + $0x10] sm:$0xff]   ;;  %v5709_v23 = vld [vmem:[#allocation2 + $0x8c] sm:$0x1] }
 0x33f   : > { %v5867_v22 = vrot.slane %v5866_v48, 4  ;;  %v5876_v7 = vor.u32 %v5875_v19, %v5871_v14  ;;  %v5881_v33 = vrot.slane %v5879_v35, 5  ;;  %13249 = vmatpush3.bf16.msra.mxu1 %v16469_v44  ;;  %v5096_v59 = vmax.f32 %v5064_v52, 0.0  ;;  %v5712_v15 = vld [vmem:[#allocation2 + $0x90] sm:$0xf]  ;;  %v14286_v19 = vld [vmem:[%s18513_s3 + $0x20] sm:$0xff]  }
 0x340   : > { %v5094_v18 = vmax.f32 %v5062_v4, 0.0  ;;  %v5097_v39 = vmax.f32 %v5065_v26, 0.0  ;;  %v5095_v61 = vmax.f32 %v5063_v34, 0.0  ;;  %v5886_v40 = vrot.slane %v5884_v24, 4  ;;  %13250 = vmatprep.subr.bf16.mxu1 %v14283_v53 }
 0x341   : > { %v5872_v13 = vsel %vm14545_vm2, %v5867_v22, %v5871_v14  ;;  %v5877_v12 = vrot.slane %v5876_v7, 4  ;;  %v5887_v11 = vshll.u32 %v5753_v25, 16  ;;  %v12326_v58 = vpack.c.bf16 %v5096_v59, %v5096_v59  ;;  %v5716_v14 = vld [vmem:[#allocation2 + $0x98] sm:$0x1]  ;;  %v5798_v7 = vld [vmem:[#allocation2 + $0x2c] sm:$0x1] }
 0x342   : > { %v12324_v2 = vpack.c.bf16 %v5094_v18, %v5094_v18  ;;  %v12327_v36 = vpack.c.bf16 %v5097_v39, %v5097_v39  ;;  %v12325_v16 = vpack.c.bf16 %v5095_v61, %v5095_v61  ;;  %v5893_v21 = vshll.u32 %v5754_v5, 16  ;;  %v16663_v61 = vld [vmem:[#allocation2 + $0x34] sm:$0xf] }
 0x343   : > { %v5882_v44 = vsel %vm14545_vm2, %v5877_v12, %v5881_v33  ;;  %v5889_v60 = vrot.slane %v5887_v11, 5  ;;  %v5897_v17 = vshrl.u32 %v5754_v5, 16  ;;  %v5501_v63 = vshrl.u32 %v12326_v58, 16  ;;  %13251 = vmatpush3.bf16.msra.mxu1 %v14283_v53  ;;  %v16657_v33 = vld [vmem:[#allocation2 + $0x30] sm:$0xf] }
 0x344   : > { %v11878_v45 = vcombine.low %v5872_v13, %v5882_v44  ;;  %v5504_v49 = vshll.u32 %v12326_v58, 16  ;;  %v5484_v30 = vshrl.u32 %v12324_v2, 16  ;;  %v5487_v0 = vshll.u32 %v12324_v2, 16  ;;  %13252 = vmatprep.subr.bf16.mxu1 %v14284_v37  ;;  %v5799_v13 = vld [vmem:[#allocation2 + $0x38] sm:$0x1] }
 0x345   : > { %v5509_v47 = vshrl.u32 %v12327_v36, 16  ;;  %v5512_v56 = vshll.u32 %v12327_v36, 16  ;;  %v5492_v57 = vshrl.u32 %v12325_v16, 16  ;;  %v5503_v42 = vrot.slane %v5501_v63, 7 }
 0x346   : > { %13220 = vmatprep.mubr.bf16.mxu1 %v11878_v45  ;;  %v5486_v20 = vrot.slane %v5484_v30, 7  ;;  %v5495_v25 = vshll.u32 %v12325_v16, 16  ;;  %v5890_v38 = vor.u32 %v5889_v60, %v5886_v40  ;;  %v5895_v28 = vrot.slane %v5893_v21, 5  ;;  %v14287_v45 = vld [vmem:[%s18513_s3 + $0x28] sm:$0xff]  }
 0x347   : > { %v5511_v62 = vrot.slane %v5509_v47, 7  ;;  %v5494_v43 = vrot.slane %v5492_v57, 7  ;;  %v5899_v48 = vrot.slane %v5897_v17, 4  ;;  %v5506_v35 = vor.u32 %v5504_v49, %v5503_v42  ;;  %13253 = vmatpush3.bf16.msra.mxu1 %v14284_v37  ;;  %v16686_v57 = vld [vmem:[#allocation2 + $0x3c] sm:$0xf] }
 0x348   : > { %v5507_v53 = vrot.slane %v5503_v42, 4  ;;  %v5489_v52 = vor.u32 %v5487_v0, %v5486_v20  ;;  %v5490_v4 = vrot.slane %v5486_v20, 4  ;;  %13254 = vmatprep.subr.bf16.mxu1 %v14285_v10  ;;  %v5891_v18 = vrot.slane %v5890_v38, 4  ;;  %v14288_v38 = vld [vmem:[%s18513_s3 + $0x30] sm:$0xff]  }
 0x349   : > { %v5514_v26 = vor.u32 %v5512_v56, %v5511_v62  ;;  %v5516_v34 = vrot.slane %v5511_v62, 4  ;;  %v5497_v5 = vor.u32 %v5495_v25, %v5494_v43  ;;  %v5499_v22 = vrot.slane %v5494_v43, 4 }
 0x34a   : > { %v5713_v24 = vsel %vm16507_vm13, %v5506_v35, %v5712_v15  ;;  %v5706_v59 = vsel %vm16507_vm13, %v5489_v52, %v5705_v9  ;;  %v5900_v39 = vor.u32 %v5899_v48, %v5895_v28  ;;  %v5896_v58 = vsel %vm14545_vm2, %v5891_v18, %v5895_v28  ;;  %v14289_v18 = vld [vmem:[%s18513_s3 + $0x38] sm:$0xff]  }
 0x34b   : > { %5714 = vst [vmem:[#allocation2 + $0x90] sm:$0xf] %v5713_v24  ;;  %5707 = vst [vmem:[#allocation2 + $0x84] sm:$0xf] %v5706_v59  ;;  %v5515_v12 = vsel %vm16514_vm14, %v5507_v53, %v5514_v26  ;;  %v5717_v40 = vsel %vm16392_vm8, %v5516_v34, %v5716_v14  ;;  %v5498_v11 = vsel %vm16514_vm14, %v5490_v4, %v5497_v5  ;;  %v5903_v36 = vshll.u32 %v5798_v7, 16 }
 0x34c   : > { %v5710_v37 = vsel %vm16392_vm8, %v5499_v22, %v5709_v23  ;;  %5715 = vst [vmem:[#allocation2 + $0x94] sm:$0xf] %v5515_v12  ;;  %5718 = vst [vmem:[#allocation2 + $0x98] sm:$0x1] %v5717_v40  ;;  %v5901_v2 = vrot.slane %v5900_v39, 4  ;;  %v5908_v16 = vshrl.u32 %v16657_v33, 16  ;;  %13255 = vmatpush3.bf16.msra.mxu1 %v14285_v10  ;;  %v5068_v30 = vadd.f32 %v16600_v54, %v16499_v8 }
 0x34d   : > { %5708 = vst [vmem:[#allocation2 + $0x88] sm:$0xf] %v5498_v11  ;;  %5711 = vst [vmem:[#allocation2 + $0x8c] sm:$0x1] %v5710_v37  ;;  %v5911_v44 = vshll.u32 %v16657_v33, 16  ;;  %v5917_v60 = vshll.u32 %v16663_v61, 16  ;;  %13256 = vmatprep.subr.bf16.mxu1 %v14286_v19  ;;  %v5066_v15 = vadd.f32 %v16499_v8, %v16602_v32  ;;  %v5069_v14 = vadd.f32 %v16604_v3, %v16499_v8 }
 0x34e   : > { %v5921_v21 = vshrl.u32 %v16663_v61, 16  ;;  %v5927_v17 = vshll.u32 %v5799_v13, 16  ;;  %v5905_v63 = vrot.slane %v5903_v36, 5  ;;  %v5910_v49 = vrot.slane %v5908_v16, 4  ;;  %v5726_v5 = vld [vmem:[#allocation2 + $0xa8] sm:$0xf] }
 0x34f   : > { %v5913_v0 = vrot.slane %v5911_v44, 5  ;;  %v5919_v9 = vrot.slane %v5917_v60, 5  ;;  %v5100_v42 = vmax.f32 %v5068_v30, 0.0  ;;  %v5098_v20 = vmax.f32 %v5066_v15, 0.0  ;;  %v5719_v22 = vld [vmem:[#allocation2 + $0x9c] sm:$0xf] }
 0x350   : > { %v5923_v47 = vrot.slane %v5921_v21, 4  ;;  %v5929_v56 = vrot.slane %v5927_v17, 5  ;;  %v5906_v10 = vsel %vm14545_vm2, %v5901_v2, %v5905_v63  ;;  %13257 = vmatpush3.bf16.msra.mxu1 %v14286_v19  ;;  %v5067_v32 = vadd.f32 %v16499_v8, %v16610_v46  ;;  %v16703_v59 = vld [vmem:[#allocation2 + $0x40] sm:$0xf]  ;;  %v5800_v40 = vld [vmem:[#allocation2 + $0x44] sm:$0x1] }
 0x351   : > { %v11879_v25 = vcombine.low %v5896_v58, %v5906_v10  ;;  %v5914_v54 = vor.u32 %v5913_v0, %v5910_v49  ;;  %13258 = vmatprep.subr.bf16.mxu1 %v14287_v45  ;;  %v12330_v62 = vpack.c.bf16 %v5100_v42, %v5100_v42  ;;  %v12328_v43 = vpack.c.bf16 %v5098_v20, %v5098_v20  ;;  %v5730_v17 = vld [vmem:[#allocation2 + $0xb0] sm:$0x1]  ;;  %v16712_v15 = vld [vmem:[%s18513_s3 + $0x80] sm:$0xff]  }
 0x352   : > { %v5924_v23 = vor.u32 %v5923_v47, %v5919_v9  ;;  %v5101_v28 = vmax.f32 %v5069_v14, 0.0  ;;  %v5932_v48 = vshrl.u32 %v16686_v57, 16  ;;  %v5099_v19 = vmax.f32 %v5067_v32, 0.0  ;;  %v5723_v47 = vld [vmem:[#allocation2 + $0xa4] sm:$0x1] }
 0x353   : > { %13221 = vmatmul.mubr.bf16.gmra.mrb[4].mxu1 %v11879_v25  ;;  %v5915_v35 = vrot.slane %v5914_v54, 4  ;;  %v5935_v53 = vshll.u32 %v16686_v57, 16  ;;  %v5535_v52 = vshrl.u32 %v12330_v62, 16  ;;  %v5538_v4 = vshll.u32 %v12330_v62, 16  ;;  %v16719_v54 = vld [vmem:[#allocation2 + $0x48] sm:$0xf] }
 0x354   : > { %v5925_v3 = vrot.slane %v5924_v23, 4  ;;  %v5518_v26 = vshrl.u32 %v12328_v43, 16  ;;  %v5521_v8 = vshll.u32 %v12328_v43, 16  ;;  %13259 = vmatpush3.bf16.msra.mxu1 %v14287_v45  ;;  %v12331_v7 = vpack.c.bf16 %v5101_v28, %v5101_v28  ;;  %v16721_v23 = vld [vmem:[#allocation2 + $0x4c] sm:$0xf] }
 0x355   : > { %v5920_v46 = vsel %vm14545_vm2, %v5915_v35, %v5919_v9  ;;  %v12329_v24 = vpack.c.bf16 %v5099_v19, %v5099_v19  ;;  %13260 = vmatprep.subr.bf16.mxu1 %v14288_v38  ;;  %v5537_v13 = vrot.slane %v5535_v52, 7  ;;  %v5934_v11 = vrot.slane %v5932_v48, 4  ;;  %v16723_v28 = vld [vmem:[#allocation2 + $0x50] sm:$0x1] }
 0x356   : > { %v5930_v34 = vsel %vm14545_vm2, %v5925_v3, %v5929_v56  ;;  %v5520_v12 = vrot.slane %v5518_v26, 7  ;;  %v5543_v37 = vshrl.u32 %v12331_v7, 16  ;;  %v5546_v58 = vshll.u32 %v12331_v7, 16 }
 0x357   : > { %v11880_v39 = vcombine.low %v5920_v46, %v5930_v34  ;;  %v5526_v2 = vshrl.u32 %v12329_v24, 16  ;;  %v5529_v36 = vshll.u32 %v12329_v24, 16  ;;  %v5540_v16 = vor.u32 %v5538_v4, %v5537_v13 }
 0x358   : > { %v5541_v44 = vrot.slane %v5537_v13, 4  ;;  %v5523_v60 = vor.u32 %v5521_v8, %v5520_v12  ;;  %v5524_v21 = vrot.slane %v5520_v12, 4  ;;  %13261 = vmatpush3.bf16.msra.mxu1 %v14288_v38  ;;  %v5545_v45 = vrot.slane %v5543_v37, 7  ;;  %v16745_v37 = vld [vmem:[#allocation2 + $0x54] sm:$0xf] }
 0x359   : > { %13224 = vmatprep.mubr.bf16.mxu1 %v11880_v39  ;;  %v5528_v63 = vrot.slane %v5526_v2, 7  ;;  %v5937_v49 = vrot.slane %v5935_v53, 5  ;;  %v5941_v30 = vshll.u32 %v16703_v59, 16  ;;  %13262 = vmatprep.subr.bf16.mxu1 %v14289_v18  ;;  %v5727_v0 = vsel %vm16507_vm13, %v5540_v16, %v5726_v5  ;;  %v14407_v5 = vld [vmem:[%s18512_s2] ss:$0 sm:$0xff] }
 0x35a   : > { %v5720_v9 = vsel %vm16507_vm13, %v5523_v60, %v5719_v22  ;;  %v5945_v56 = vshrl.u32 %v16703_v59, 16  ;;  %v5951_v10 = vshll.u32 %v5800_v40, 16  ;;  %5728 = vst [vmem:[#allocation2 + $0xa8] sm:$0xf] %v5727_v0  ;;  %v5548_v42 = vor.u32 %v5546_v58, %v5545_v45 }
 0x35b   : > { %5721 = vst [vmem:[#allocation2 + $0x9c] sm:$0xf] %v5720_v9  ;;  %v5550_v20 = vrot.slane %v5545_v45, 4  ;;  %v5531_v14 = vor.u32 %v5529_v36, %v5528_v63  ;;  %v5533_v25 = vrot.slane %v5528_v63, 4  ;;  %v5938_v32 = vor.u32 %v5937_v49, %v5934_v11 }
 0x35c   : > { %v5943_v38 = vrot.slane %v5941_v30, 5  ;;  %v5947_v62 = vrot.slane %v5945_v56, 4  ;;  %v5953_v43 = vrot.slane %v5951_v10, 5  ;;  %13263 = vmatpush3.bf16.msra.mxu1 %v14289_v18  ;;  %v5549_v48 = vsel %vm16514_vm14, %v5541_v44, %v5548_v42  ;;  %v5740_v56 = vld [vmem:[#allocation2 + $0xc0] sm:$0xf] }
 0x35d   : > { %v5731_v35 = vsel %vm16392_vm8, %v5550_v20, %v5730_v17  ;;  %v5532_v3 = vsel %vm16514_vm14, %v5524_v21, %v5531_v14  ;;  %v5724_v19 = vsel %vm16392_vm8, %v5533_v25, %v5723_v47  ;;  %13296 = vmatprep.subr.bf16.mxu1 %v16712_v15  ;;  %5729 = vst [vmem:[#allocation2 + $0xac] sm:$0xf] %v5549_v48  ;;  %v5939_v53 = vrot.slane %v5938_v32, 4  ;;  %v16757_v25 = vld [vmem:[#allocation2 + $0x58] sm:$0xf] }
 0x35e   : > { %5732 = vst [vmem:[#allocation2 + $0xb0] sm:$0x1] %v5731_v35  ;;  %5722 = vst [vmem:[#allocation2 + $0xa0] sm:$0xf] %v5532_v3  ;;  %v5948_v52 = vor.u32 %v5947_v62, %v5943_v38  ;;  %v5956_v4 = vshrl.u32 %v16719_v54, 16  ;;  %v5959_v26 = vshll.u32 %v16719_v54, 16  ;;  %v5072_v22 = vadd.f32 %v14407_v5, %v16614_v31 }
 0x35f   : > { %5725 = vst [vmem:[#allocation2 + $0xa4] sm:$0x1] %v5724_v19  ;;  %v5965_v8 = vshll.u32 %v16721_v23, 16  ;;  %v5969_v46 = vshrl.u32 %v16721_v23, 16  ;;  %v5975_v34 = vshll.u32 %v16723_v28, 16  ;;  %v5944_v7 = vsel %vm14545_vm2, %v5939_v53, %v5943_v38 }
 0x360   : > { %v5949_v24 = vrot.slane %v5948_v52, 4  ;;  %v5958_v18 = vrot.slane %v5956_v4, 4  ;;  %v5961_v39 = vrot.slane %v5959_v26, 5  ;;  %v5104_v11 = vmax.f32 %v5072_v22, 0.0  ;;  %v5733_v4 = vld [vmem:[#allocation2 + $0xb4] sm:$0xf] }
 0x361   : > { %v5967_v13 = vrot.slane %v5965_v8, 5  ;;  %v5971_v12 = vrot.slane %v5969_v46, 4  ;;  %v5977_v40 = vrot.slane %v5975_v34, 5  ;;  %v5070_v36 = vadd.f32 %v14407_v5, %v16618_v50 }
 0x362   : > { %v5954_v58 = vsel %vm14545_vm2, %v5949_v24, %v5953_v43  ;;  %v5962_v2 = vor.u32 %v5961_v39, %v5958_v18  ;;  %v5073_v31 = vadd.f32 %v14407_v5, %v16628_v29  ;;  %v12334_v60 = vpack.c.bf16 %v5104_v11, %v5104_v11  ;;  %v16764_v11 = vld [vmem:[#allocation2 + $0x5c] sm:$0x1] }
 0x363   : > { %v11881_v16 = vcombine.low %v5944_v7, %v5954_v58  ;;  %v5972_v44 = vor.u32 %v5971_v12, %v5967_v13  ;;  %v5071_v21 = vadd.f32 %v14407_v5, %v16633_v41  ;;  %v5102_v45 = vmax.f32 %v5070_v36, 0.0  ;;  %v5744_v5 = vld [vmem:[#allocation2 + $0xc8] sm:$0x1] }
 0x364   : > { %v5963_v17 = vrot.slane %v5962_v2, 4  ;;  %v5105_v63 = vmax.f32 %v5073_v31, 0.0  ;;  %v5980_v49 = vshrl.u32 %v16745_v37, 16  ;;  %v5569_v0 = vshrl.u32 %v12334_v60, 16 }
 0x365   : > { %13225 = vmatmul.mubr.bf16.gmra.mrb[8].mxu1 %v11881_v16  ;;  %v5973_v30 = vrot.slane %v5972_v44, 4  ;;  %v5572_v9 = vshll.u32 %v12334_v60, 16  ;;  %v5103_v47 = vmax.f32 %v5071_v21, 0.0  ;;  %v12332_v29 = vpack.c.bf16 %v5102_v45, %v5102_v45  ;;  %v16766_v16 = vld [vmem:[#allocation2 + $0x60] sm:$0xf] }
 0x366   : > { %v5968_v50 = vsel %vm14545_vm2, %v5963_v17, %v5967_v13  ;;  %v12335_v10 = vpack.c.bf16 %v5105_v63, %v5105_v63  ;;  %v5982_v42 = vrot.slane %v5980_v49, 4  ;;  %v5571_v20 = vrot.slane %v5569_v0, 7  ;;  %v16768_v44 = vld [vmem:[#allocation2 + $0x64] sm:$0xf]  ;;  %v16776_v63 = vld [vmem:[#allocation2 + $0x68] sm:$0x1] }
 0x367   : > { %v5978_v41 = vsel %vm14545_vm2, %v5973_v30, %v5977_v40  ;;  %v12333_v14 = vpack.c.bf16 %v5103_v47, %v5103_v47  ;;  %v5983_v32 = vshll.u32 %v16745_v37, 16  ;;  %v5552_v62 = vshrl.u32 %v12332_v29, 16  ;;  %v5737_v40 = vld [vmem:[#allocation2 + $0xbc] sm:$0x1] }
 0x368   : > { %v11882_v38 = vcombine.low %v5968_v50, %v5978_v41  ;;  %v5555_v43 = vshll.u32 %v12332_v29, 16  ;;  %v5577_v48 = vshrl.u32 %v12335_v10, 16  ;;  %v5574_v35 = vor.u32 %v5572_v9, %v5571_v20  ;;  %v16783_v9 = vld [vmem:[#allocation2 + $0x6c] sm:$0xf] }
 0x369   : > { %v5575_v3 = vrot.slane %v5571_v20, 4  ;;  %v5580_v19 = vshll.u32 %v12335_v10, 16  ;;  %v5560_v53 = vshrl.u32 %v12333_v14, 16  ;;  %v5554_v52 = vrot.slane %v5552_v62, 7  ;;  %v16788_v10 = vld [vmem:[#allocation2 + $0x70] sm:$0xf] }
 0x36a   : > { %13228 = vmatprep.mubr.bf16.mxu1 %v11882_v38  ;;  %v5579_v26 = vrot.slane %v5577_v48, 7  ;;  %v5563_v8 = vshll.u32 %v12333_v14, 16  ;;  %v5985_v46 = vrot.slane %v5983_v32, 5  ;;  %v5741_v34 = vsel %vm16507_vm13, %v5574_v35, %v5740_v56  ;;  %v16794_v62 = vld [vmem:[#allocation2 + $0x74] sm:$0x1] }
 0x36b   : > { %v5562_v22 = vrot.slane %v5560_v53, 7  ;;  %v5989_v7 = vshll.u32 %v16757_v25, 16  ;;  %v5993_v24 = vshrl.u32 %v16757_v25, 16  ;;  %5742 = vst [vmem:[#allocation2 + $0xc0] sm:$0xf] %v5741_v34  ;;  %v5557_v18 = vor.u32 %v5555_v43, %v5554_v52 }
 0x36c   : > { %v5558_v39 = vrot.slane %v5554_v52, 4  ;;  %v5582_v13 = vor.u32 %v5580_v19, %v5579_v26  ;;  %v5584_v12 = vrot.slane %v5579_v26, 4  ;;  %v5986_v36 = vor.u32 %v5985_v46, %v5982_v42  ;;  %v16796_v43 = vld [vmem:[#allocation2 + $0x78] sm:$0xf] }
 0x36d   : > { %v5565_v58 = vor.u32 %v5563_v8, %v5562_v22  ;;  %v5567_v2 = vrot.slane %v5562_v22, 4  ;;  %v5991_v31 = vrot.slane %v5989_v7, 5  ;;  %v5734_v60 = vsel %vm16507_vm13, %v5557_v18, %v5733_v4  ;;  %v16804_v8 = vld [vmem:[#allocation2 + $0x7c] sm:$0xf] }
 0x36e   : > { %v5583_v21 = vsel %vm16514_vm14, %v5575_v3, %v5582_v13  ;;  %v5745_v17 = vsel %vm16392_vm8, %v5584_v12, %v5744_v5  ;;  %v5995_v45 = vrot.slane %v5993_v24, 4  ;;  %5735 = vst [vmem:[#allocation2 + $0xb4] sm:$0xf] %v5734_v60  ;;  %v5987_v51 = vrot.slane %v5986_v36, 4 }
 0x36f   : > { %5743 = vst [vmem:[#allocation2 + $0xc4] sm:$0xf] %v5583_v21  ;;  %5746 = vst [vmem:[#allocation2 + $0xc8] sm:$0x1] %v5745_v17  ;;  %v5566_v49 = vsel %vm16514_vm14, %v5558_v39, %v5565_v58  ;;  %v5738_v30 = vsel %vm16392_vm8, %v5567_v2, %v5737_v40  ;;  %v5999_v0 = vshll.u32 %v16764_v11, 16  ;;  %v6004_v50 = vshrl.u32 %v16766_v16, 16 }
 0x370   : > { %5736 = vst [vmem:[#allocation2 + $0xb8] sm:$0xf] %v5566_v49  ;;  %5739 = vst [vmem:[#allocation2 + $0xbc] sm:$0x1] %v5738_v30  ;;  %v5996_v47 = vor.u32 %v5995_v45, %v5991_v31  ;;  %v6007_v56 = vshll.u32 %v16766_v16, 16  ;;  %v6013_v29 = vshll.u32 %v16768_v44, 16  ;;  %v5992_v6 = vsel %vm14545_vm2, %v5987_v51, %v5991_v31 }
 0x371   : > { %v6001_v27 = vrot.slane %v5999_v0, 5  ;;  %v6017_v42 = vshrl.u32 %v16768_v44, 16  ;;  %v6023_v41 = vshll.u32 %v16776_v63, 16  ;;  %v6006_v14 = vrot.slane %v6004_v50, 4  ;;  %v16807_v40 = vld [vmem:[#allocation2 + $0x80] sm:$0x1] }
 0x372   : > { %v5997_v20 = vrot.slane %v5996_v47, 4  ;;  %v6009_v32 = vrot.slane %v6007_v56, 5  ;;  %v6015_v38 = vrot.slane %v6013_v29, 5  ;;  %v6028_v3 = vshrl.u32 %v16783_v9, 16  ;;  %v16814_v17 = vld [vmem:[#allocation2 + $0x84] sm:$0xf] }
 0x373   : > { %v6019_v48 = vrot.slane %v6017_v42, 4  ;;  %v6025_v35 = vrot.slane %v6023_v41, 5  ;;  %v6031_v19 = vshll.u32 %v16783_v9, 16  ;;  %v6037_v4 = vshll.u32 %v16788_v10, 16  ;;  %v16816_v45 = vld [vmem:[#allocation2 + $0x88] sm:$0xf] }
 0x374   : > { %v6002_v53 = vsel %vm14545_vm2, %v5997_v20, %v6001_v27  ;;  %v6010_v52 = vor.u32 %v6009_v32, %v6006_v14  ;;  %v6041_v26 = vshrl.u32 %v16788_v10, 16  ;;  %v6030_v5 = vrot.slane %v6028_v3, 4  ;;  %v16825_v20 = vld [vmem:[#allocation2 + $0x90] sm:$0xf] }
 0x375   : > { %v11883_v46 = vcombine.low %v5992_v6, %v6002_v53  ;;  %v6020_v34 = vor.u32 %v6019_v48, %v6015_v38  ;;  %v6033_v22 = vrot.slane %v6031_v19, 5  ;;  %v6039_v24 = vrot.slane %v6037_v4, 5  ;;  %v16833_v4 = vld [vmem:[#allocation2 + $0x94] sm:$0xf] }
 0x376   : > { %v6011_v7 = vrot.slane %v6010_v52, 4  ;;  %v6043_v18 = vrot.slane %v6041_v26, 4  ;;  %v6047_v39 = vshll.u32 %v16794_v62, 16  ;;  %v6052_v58 = vshrl.u32 %v16796_v43, 16 }
 0x377   : > { %13229 = vmatmul.mubr.bf16.gmra.mrb[12].mxu1 %v11883_v46  ;;  %v6021_v13 = vrot.slane %v6020_v34, 4  ;;  %v6034_v12 = vor.u32 %v6033_v22, %v6030_v5  ;;  %v6055_v2 = vshll.u32 %v16796_v43, 16  ;;  %v6061_v21 = vshll.u32 %v16804_v8, 16 }
 0x378   : > { %v6016_v36 = vsel %vm14545_vm2, %v6011_v7, %v6015_v38  ;;  %v6044_v31 = vor.u32 %v6043_v18, %v6039_v24  ;;  %v6049_v60 = vrot.slane %v6047_v39, 5  ;;  %v6054_v51 = vrot.slane %v6052_v58, 4  ;;  %v16829_v38 = vld [vmem:[#allocation2 + $0x8c] sm:$0x1]  ;;  %v16841_v58 = vld [vmem:[#allocation2 + $0x98] sm:$0x1] }
 0x379   : > { %v6026_v49 = vsel %vm14545_vm2, %v6021_v13, %v6025_v35  ;;  %v6035_v30 = vrot.slane %v6034_v12, 4  ;;  %v6057_v0 = vrot.slane %v6055_v2, 5  ;;  %v6063_v56 = vrot.slane %v6061_v21, 5 }
 0x37a   : > { %v11884_v47 = vcombine.low %v6016_v36, %v6026_v49  ;;  %v6045_v50 = vrot.slane %v6044_v31, 4  ;;  %v6065_v29 = vshrl.u32 %v16804_v8, 16  ;;  %v6071_v42 = vshll.u32 %v16807_v40, 16  ;;  %v16845_v49 = vld [vmem:[#allocation2 + $0x9c] sm:$0xf] }
 0x37b   : > { %v6040_v6 = vsel %vm14545_vm2, %v6035_v30, %v6039_v24  ;;  %v6058_v27 = vor.u32 %v6057_v0, %v6054_v51  ;;  %v6076_v41 = vshrl.u32 %v16814_v17, 16  ;;  %v6079_v48 = vshll.u32 %v16814_v17, 16 }
 0x37c   : > { %13232 = vmatprep.mubr.bf16.mxu1 %v11884_v47  ;;  %v6050_v14 = vsel %vm14545_vm2, %v6045_v50, %v6049_v60  ;;  %v6067_v32 = vrot.slane %v6065_v29, 4  ;;  %v6085_v35 = vshll.u32 %v16816_v45, 16  ;;  %v6073_v53 = vrot.slane %v6071_v42, 5  ;;  %v16849_v50 = vld [vmem:[#allocation2 + $0xa0] sm:$0xf] }
 0x37d   : > { %v11885_v3 = vcombine.low %v6040_v6, %v6050_v14  ;;  %v6059_v19 = vrot.slane %v6058_v27, 4  ;;  %v6078_v52 = vrot.slane %v6076_v41, 4  ;;  %v6081_v46 = vrot.slane %v6079_v48, 5  ;;  %v16852_v42 = vld [vmem:[#allocation2 + $0xa8] sm:$0xf] }
 0x37e   : > { %v6068_v26 = vor.u32 %v6067_v32, %v6063_v56  ;;  %v6087_v34 = vrot.slane %v6085_v35, 5  ;;  %v6089_v5 = vshrl.u32 %v16816_v45, 16  ;;  %v6095_v7 = vshll.u32 %v16829_v38, 16 }
 0x37f   : > { %13233 = vmatmul.mubr.bf16.gmra.mrb[16].mxu1 %v11885_v3  ;;  %v6064_v22 = vsel %vm14545_vm2, %v6059_v19, %v6063_v56  ;;  %v6100_v24 = vshrl.u32 %v16825_v20, 16  ;;  %v6103_v18 = vshll.u32 %v16825_v20, 16  ;;  %v6082_v13 = vor.u32 %v6081_v46, %v6078_v52 }
 0x380   : > { %v6069_v39 = vrot.slane %v6068_v26, 4  ;;  %v6091_v12 = vrot.slane %v6089_v5, 4  ;;  %v6109_v2 = vshll.u32 %v16833_v4, 16  ;;  %v6097_v36 = vrot.slane %v6095_v7, 5 }
 0x381   : > { %v6102_v31 = vrot.slane %v6100_v24, 4  ;;  %v6105_v60 = vrot.slane %v6103_v18, 5  ;;  %v6113_v21 = vshrl.u32 %v16833_v4, 16  ;;  %v6083_v51 = vrot.slane %v6082_v13, 4  ;;  %v16868_v13 = vld [vmem:[#allocation2 + $0xb0] sm:$0x1] }
 0x382   : > { %v6074_v30 = vsel %vm14545_vm2, %v6069_v39, %v6073_v53  ;;  %v6092_v0 = vor.u32 %v6091_v12, %v6087_v34  ;;  %v6111_v47 = vrot.slane %v6109_v2, 5  ;;  %v6119_v27 = vshll.u32 %v16841_v58, 16  ;;  %v16858_v53 = vld [vmem:[#allocation2 + $0xa4] sm:$0x1]  ;;  %v16870_v12 = vld [vmem:[#allocation2 + $0xb4] sm:$0xf] }
 0x383   : > { %v11886_v56 = vcombine.low %v6064_v22, %v6074_v30  ;;  %v6106_v29 = vor.u32 %v6105_v60, %v6102_v31  ;;  %v6115_v6 = vrot.slane %v6113_v21, 4  ;;  %v6088_v41 = vsel %vm14545_vm2, %v6083_v51, %v6087_v34  ;;  %v16864_v22 = vld [vmem:[#allocation2 + $0xac] sm:$0xf]  ;;  %v16874_v21 = vld [vmem:[#allocation2 + $0xb8] sm:$0xf] }
 0x384   : > { %v6093_v14 = vrot.slane %v6092_v0, 4  ;;  %v6124_v32 = vshrl.u32 %v16845_v49, 16  ;;  %v6127_v48 = vshll.u32 %v16845_v49, 16  ;;  %v6121_v19 = vrot.slane %v6119_v27, 5 }
 0x385   : > { %13236 = vmatprep.mubr.bf16.mxu1 %v11886_v56  ;;  %v6107_v35 = vrot.slane %v6106_v29, 4  ;;  %v6116_v3 = vor.u32 %v6115_v6, %v6111_v47  ;;  %v6133_v52 = vshll.u32 %v16849_v50, 16  ;;  %v6137_v34 = vshrl.u32 %v16849_v50, 16 }
 0x386   : > { %v6098_v26 = vsel %vm14545_vm2, %v6093_v14, %v6097_v36  ;;  %v6126_v46 = vrot.slane %v6124_v32, 4  ;;  %v6129_v5 = vrot.slane %v6127_v48, 5  ;;  %v6143_v36 = vshll.u32 %v16858_v53, 16 }
 0x387   : > { %v11887_v7 = vcombine.low %v6088_v41, %v6098_v26  ;;  %v6112_v24 = vsel %vm14545_vm2, %v6107_v35, %v6111_v47  ;;  %v6117_v18 = vrot.slane %v6116_v3, 4  ;;  %v6135_v39 = vrot.slane %v6133_v52, 5 }
 0x388   : > { %v6130_v2 = vor.u32 %v6129_v5, %v6126_v46  ;;  %v6139_v31 = vrot.slane %v6137_v34, 4  ;;  %v6148_v60 = vshrl.u32 %v16852_v42, 16  ;;  %v6151_v51 = vshll.u32 %v16852_v42, 16  ;;  %v16885_v5 = vld [vmem:[#allocation2 + $0xbc] sm:$0x1] }
 0x389   : > { %13237 = vmatmul.mubr.bf16.gmra.mrb[20].mxu1 %v11887_v7  ;;  %v6122_v30 = vsel %vm14545_vm2, %v6117_v18, %v6121_v19  ;;  %v6157_v0 = vshll.u32 %v16864_v22, 16  ;;  %v6161_v47 = vshrl.u32 %v16864_v22, 16  ;;  %v6145_v27 = vrot.slane %v6143_v36, 5 }
 0x38a   : > { %v11888_v56 = vcombine.low %v6112_v24, %v6122_v30  ;;  %v6131_v29 = vrot.slane %v6130_v2, 4  ;;  %v6140_v6 = vor.u32 %v6139_v31, %v6135_v39  ;;  %v6150_v41 = vrot.slane %v6148_v60, 4 }
 0x38b   : > { %v6153_v14 = vrot.slane %v6151_v51, 5  ;;  %v6159_v32 = vrot.slane %v6157_v0, 5  ;;  %v6163_v48 = vrot.slane %v6161_v47, 4  ;;  %v6167_v19 = vshll.u32 %v16868_v13, 16 }
 0x38c   : > { %13240 = vmatprep.mubr.bf16.mxu1 %v11888_v56  ;;  %v6136_v35 = vsel %vm14545_vm2, %v6131_v29, %v6135_v39  ;;  %v6141_v3 = vrot.slane %v6140_v6, 4  ;;  %v6172_v52 = vshrl.u32 %v16870_v12, 16  ;;  %v6175_v34 = vshll.u32 %v16870_v12, 16 }
 0x38d   : > { %v6154_v26 = vor.u32 %v6153_v14, %v6150_v41  ;;  %v6164_v46 = vor.u32 %v6163_v48, %v6159_v32  ;;  %v6181_v7 = vshll.u32 %v16874_v21, 16  ;;  %v6169_v18 = vrot.slane %v6167_v19, 5  ;;  %v14408_v48 = vld [vmem:[#allocation2] sm:$0xf] }
 0x38e   : > { %v6146_v24 = vsel %vm14545_vm2, %v6141_v3, %v6145_v27  ;;  %v6174_v2 = vrot.slane %v6172_v52, 4  ;;  %v6185_v39 = vshrl.u32 %v16874_v21, 16  ;;  %v6177_v30 = vrot.slane %v6175_v34, 5 }
 0x38f   : > { %v11889_v31 = vcombine.low %v6136_v35, %v6146_v24  ;;  %v6155_v36 = vrot.slane %v6154_v26, 4  ;;  %v6165_v60 = vrot.slane %v6164_v46, 4  ;;  %v6183_v51 = vrot.slane %v6181_v7, 5  ;;  %v16897_v35 = vld [vmem:[#allocation2 + $0x4] sm:$0xf] }
 0x390   : > { %v6187_v0 = vrot.slane %v6185_v39, 4  ;;  %v6191_v47 = vshll.u32 %v16885_v5, 16  ;;  %v6178_v6 = vor.u32 %v6177_v30, %v6174_v2  ;;  %v11900_v3 = vcombine.low %v14408_v48, %v16897_v35  ;;  %v14410_v30 = vld [vmem:[#allocation2 + $0xc] sm:$0xf]  ;;  %v14298_v48 = vld [vmem:[%s18513_s3 + $0x90] sm:$0xff]  }
 0x391   : > { %13241 = vmatmul.mubr.bf16.gmra.mrb[24].mxu1 %v11889_v31  ;;  %v6160_v56 = vsel %vm14545_vm2, %v6155_v36, %v6159_v32  ;;  %v6170_v29 = vsel %vm14545_vm2, %v6165_v60, %v6169_v18  ;;  %v11907_v26 = vcombine.low %v16745_v37, %v16757_v25  ;;  %v11908_v32 = vcombine.low %v16766_v16, %v16768_v44  ;;  %v6800_v31 = vld [vmem:[#allocation2 + $0x78] sm:$0xe]  ;;  %v6790_v16 = vld [vmem:[#allocation2] sm:$0xe] }
 0x392   : > { %v11890_v27 = vcombine.low %v6160_v56, %v6170_v29  ;;  %v6188_v41 = vor.u32 %v6187_v0, %v6183_v51  ;;  %v6179_v14 = vrot.slane %v6178_v6, 4  ;;  %v6193_v52 = vrot.slane %v6191_v47, 5  ;;  %v14295_v47 = vld [vmem:[%s18513_s3 + $0x88] sm:$0xff]   ;;  %v14412_v56 = vld [vmem:[#allocation2 + $0x18] sm:$0xf] }
 0x393   : > { %v11909_v34 = vcombine.low %v16783_v9, %v16788_v10  ;;  %v11910_v7 = vcombine.low %v16796_v43, %v16804_v8  ;;  %v11911_v24 = vcombine.low %v16814_v17, %v16816_v45  ;;  %v16928_v29 = vld [vmem:[#allocation2 + $0x1c] sm:$0xf]  ;;  %v6899_v60 = vrot.slane %v16776_v63, 5 }
 0x394   : > { %13244 = vmatprep.mubr.bf16.mxu1 %v11890_v27  ;;  %v6189_v19 = vrot.slane %v6188_v41, 4  ;;  %v6184_v46 = vsel %vm14545_vm2, %v6179_v14, %v6183_v51  ;;  %v16922_v51 = vld [vmem:[#allocation2 + $0x10] sm:$0xf]  ;;  %v11902_v6 = vcombine.low %v14412_v56, %v16928_v29  ;;  %v6797_v27 = vld [vmem:[#allocation2 + $0x54] sm:$0xe]  ;;  %v6889_v14 = vrot.slane %v16757_v25, 5 }
 0x395   : > { %v11901_v0 = vcombine.low %v14410_v30, %v16922_v51  ;;  %v6798_v41 = vld [vmem:[#allocation2 + $0x60] sm:$0xe]  ;;  %v11904_v56 = vcombine.low %v16657_v33, %v16663_v61  ;;  %v6903_v33 = vrot.slane %v16788_v10, 5  ;;  %v6801_v61 = vld [vmem:[#allocation2 + $0x84] sm:$0xe]  ;;  %v18762_v37 = vcombine.low %v16825_v20, %v16833_v4 }
 0x396   : > { %v6194_v18 = vsel %vm14545_vm2, %v6189_v19, %v6193_v52  ;;  %v6896_v19 = vrot.slane %v16768_v44, 5  ;;  %v6799_v52 = vld [vmem:[#allocation2 + $0x6c] sm:$0xe]  ;;  %v6891_v30 = vrot.slane %v6889_v14, 4  ;;  %v6840_v25 = vrot.slane %v16897_v35, 5 }
 0x397   : > { %v11891_v36 = vcombine.low %v6184_v46, %v6194_v18  ;;  %v14414_v46 = vld [vmem:[#allocation2 + $0x24] sm:$0xf]  ;;  %v16937_v18 = vld [vmem:[#allocation2 + $0x28] sm:$0xf]  ;;  %v18763_v10 = vcombine.low %v16845_v49, %v16849_v50  ;;  %v18764_v43 = vcombine.low %v16852_v42, %v16864_v22  ;;  %v6854_v20 = vrot.slane %v16928_v29, 5 }
 0x398   : > { %v14416_v44 = vld [vmem:[#allocation2 + $0x8] sm:$0x1]  ;;  %v6842_v9 = vrot.slane %v6840_v25, 4  ;;  %v18765_v49 = vcombine.low %v16870_v12, %v16874_v21  ;;  %v14417_v42 = vld [vmem:[#allocation2 + $0x14] sm:$0x1]  ;;  %v6861_v29 = vrot.slane %v16937_v18, 5 }
 0x399   : > { %13245 = vmatmul.mubr.bf16.gmra.mrb[28].mxu1 %v11891_v36  ;;  %v11903_v36 = vcombine.low %v14414_v46, %v16937_v18  ;;  %v6905_v46 = vrot.slane %v6903_v33, 4  ;;  %v14419_v12 = vld [vmem:[#allocation2 + $0x34] sm:$0xf]  ;;  %v6793_v18 = vld [vmem:[#allocation2 + $0x24] sm:$0xe] }
 0x39a   : > { %13264 = vmatprep.mubr.bf16.mxu1 %v11900_v3  ;;  %v11931_v3 = vrot.slane %v6797_v27, 9  ;;  %v6898_v27 = vrot.slane %v6896_v19, 4 }
 0x3a1   : > { %13265 = vmatmul.mubr.bf16.vlgmr.msra.gmra.mrb[0].mxu1 %v11901_v0  ;;  %v6892_v0 = vrot.slane %v16764_v11, 5 }
 0x3a2   : > { %13268 = vmatprep.mubr.bf16.mxu1 %v11902_v6  ;;  %13297 = vmatpush3.bf16.msra.mxu1 %v16712_v15  ;;  %v11932_v15 = vrot.slane %v6798_v41, 9  ;;  %v16945_v6 = vsel %vm14878_vm5, %v11931_v3, %v6889_v14  ;;  %v11933_v41 = vrot.slane %v6799_v52, 9  ;;  %v14301_v14 = vld [vmem:[%s18513_s3 + $0x98] sm:$0xff]   ;;  %v6906_v3 = vrot.slane %v16794_v62, 5  ;;  %v6804_v52 = vld [vmem:[#allocation2 + $0xa8] sm:$0xe] }
 0x3a3   : > { %13298 = vmatprep.subr.bf16.mxu1 %v14295_v47  ;;  %v16950_v39 = vsel %vm14878_vm5, %v6891_v30, %v6892_v0  ;;  %v11934_v30 = vrot.slane %v6800_v31, 9  ;;  %v6913_v0 = vrot.slane %v16807_v40, 5  ;;  %v6920_v40 = vrot.slane %v16829_v38, 5 }
 0x3a4   : > { %v16954_v11 = vsel %vm14878_vm5, %v11932_v15, %v6896_v19  ;;  %v6910_v19 = vrot.slane %v16804_v8, 5  ;;  %v6802_v15 = vld [vmem:[#allocation2 + $0x90] sm:$0xe]  ;;  %v16973_v63 = vsel %vm14878_vm5, %v11933_v41, %v6903_v33  ;;  %v16978_v62 = vsel %vm14878_vm5, %v6905_v46, %v6906_v3  ;;  %v14304_v41 = vld [vmem:[%s18513_s3 + $0xa0] sm:$0xff]   ;;  %v6803_v3 = vld [vmem:[#allocation2 + $0x9c] sm:$0xe] }
 0x3a5   : > { %v11905_v38 = vcombine.low %v16686_v57, %v16703_v59  ;;  %v6931_v57 = vrot.slane %v16849_v50, 5  ;;  %v6945_v59 = vrot.slane %v16874_v21, 5  ;;  %v6791_v50 = vld [vmem:[#allocation2 + $0xc] sm:$0xe]  ;;  %v6868_v21 = vrot.slane %v14419_v12, 5 }
 0x3a6   : > { %13299 = vmatpush3.bf16.msra.mxu1 %v14295_v47  ;;  %v16964_v47 = vsel %vm14878_vm5, %v6898_v27, %v6899_v60  ;;  %v6912_v2 = vrot.slane %v6910_v19, 4  ;;  %v11935_v60 = vrot.slane %v6801_v61, 9  ;;  %v6917_v27 = vrot.slane %v16816_v45, 5 }
 0x3a7   : > { %13300 = vmatprep.subr.bf16.mxu1 %v14298_v48  ;;  %v16982_v31 = vsel %vm14878_vm5, %v11934_v30, %v6910_v19  ;;  %v11936_v61 = vrot.slane %v6802_v15, 9  ;;  %v6927_v30 = vrot.slane %v16841_v58, 5  ;;  %v11937_v15 = vrot.slane %v6803_v3, 9 }
 0x3a8   : > { %v6919_v33 = vrot.slane %v6917_v27, 4  ;;  %v6941_v3 = vrot.slane %v16868_v13, 5  ;;  %v6847_v45 = vrot.slane %v16922_v51, 5 }
 0x3a9   : > { %13269 = vmatmul.mubr.bf16.gmra.mrb[4].mxu1 %v11903_v36  ;;  %v6924_v36 = vrot.slane %v16833_v4, 5  ;;  %v17032_v19 = vsel %vm14878_vm5, %v11937_v15, %v6931_v57  ;;  %v14310_v15 = vld [vmem:[%s18513_s3 + $0xb0] sm:$0xff]  }
 0x3aa   : > { %13272 = vmatprep.mubr.bf16.mxu1 %v11904_v56  ;;  %13301 = vmatpush3.bf16.msra.mxu1 %v14298_v48  ;;  %v16993_v56 = vsel %vm14878_vm5, %v6912_v2, %v6913_v0  ;;  %v17002_v48 = vsel %vm14878_vm5, %v11935_v60, %v6917_v27  ;;  %v17006_v2 = vsel %vm14878_vm5, %v6919_v33, %v6920_v40  ;;  %v6938_v60 = vrot.slane %v16864_v22, 5  ;;  %v6805_v27 = vld [vmem:[#allocation2 + $0xb4] sm:$0xe]  ;;  %v14307_v40 = vld [vmem:[%s18513_s3 + $0xa8] sm:$0xff]  }
 0x3ab   : > { %13302 = vmatprep.subr.bf16.mxu1 %v14301_v14  ;;  %v6926_v46 = vrot.slane %v6924_v36, 4  ;;  %v17010_v0 = vsel %vm14878_vm5, %v11936_v61, %v6924_v36  ;;  %v6934_v33 = vrot.slane %v16858_v53, 5  ;;  %v11938_v61 = vrot.slane %v6804_v52, 9 }
 0x3ac   : > { %v11939_v52 = vrot.slane %v6805_v27, 9  ;;  %v6849_v35 = vrot.slane %v6847_v45, 4  ;;  %v6850_v22 = vrot.slane %v14417_v42, 5  ;;  %v6795_v42 = vld [vmem:[#allocation2 + $0x3c] sm:$0xe] }
 0x3ad   : > { %v17017_v58 = vsel %vm14878_vm5, %v6926_v46, %v6927_v30  ;;  %v11906_v46 = vcombine.low %v16719_v54, %v16721_v23  ;;  %v6940_v30 = vrot.slane %v6938_v60, 4  ;;  %v17040_v53 = vsel %vm14878_vm5, %v11938_v61, %v6938_v60 }
 0x3ae   : > { %13303 = vmatpush3.bf16.msra.mxu1 %v14301_v14  ;;  %v6933_v14 = vrot.slane %v6931_v57, 4  ;;  %v6948_v57 = vrot.slane %v16885_v5, 5  ;;  %v14313_v5 = vld [vmem:[%s18513_s3 + $0xb8] sm:$0xff]   ;;  %v6851_v51 = vsel %vm14878_vm5, %v6849_v35, %v6850_v22  ;;  %v18779_v60 = vcombine.low %v17002_v48, %v17006_v2  ;;  %v8426_v48 = vld [vmem:[#allocation2 + $0xb4] sm:$0xe] }
 0x3af   : > { %13304 = vmatprep.subr.bf16.mxu1 %v14304_v41  ;;  %v17046_v13 = vsel %vm14878_vm5, %v6940_v30, %v6941_v3 }
 0x3b0   : > { %v17036_v36 = vsel %vm14878_vm5, %v6933_v14, %v6934_v33  ;;  %v11925_v33 = vrot.slane %v6791_v50, 9 }
 0x3b1   : > { %13273 = vmatmul.mubr.bf16.gmra.mrb[8].mxu1 %v11905_v38  ;;  %v6947_v38 = vrot.slane %v6945_v59, 4 }
 0x3b2   : > { %13276 = vmatprep.mubr.bf16.mxu1 %v11906_v46  ;;  %13305 = vmatpush3.bf16.msra.mxu1 %v14304_v41  ;;  %v17056_v41 = vsel %vm14878_vm5, %v11939_v52, %v6945_v59  ;;  %v14314_v59 = vld [vmem:[%s18513_s3 + $0xc0] sm:$0xff]   ;;  %v6848_v30 = vsel %vm14878_vm5, %v11925_v33, %v6847_v45  ;;  %v6882_v45 = vrot.slane %v16721_v23, 5 }
 0x3b3   : > { %13306 = vmatprep.subr.bf16.mxu1 %v14307_v40  ;;  %v17060_v27 = vsel %vm14878_vm5, %v6947_v38, %v6948_v57  ;;  %v11957_v3 = vcombine.low %v6848_v30, %v6851_v51  ;;  %v14315_v38 = vld [vmem:[%s18513_s3 + $0xc8] sm:$0xff]   ;;  %v14423_v23 = vld [vmem:[#allocation2 + $0x44] sm:$0x1]  ;;  %v11929_v51 = vrot.slane %v6795_v42, 9 }
 0x3b4   : > { %v6884_v22 = vrot.slane %v6882_v45, 4  ;;  %v14318_v33 = vld [vmem:[%s18513_s3 + $0xe0] sm:$0xff]   ;;  %v14319_v30 = vld [vmem:[%s18513_s3 + $0xe8] sm:$0xff]  }
 0x3b6   : > { %13307 = vmatpush3.bf16.msra.mxu1 %v14307_v40 }
 0x3b7   : > { %13308 = vmatprep.subr.bf16.mxu1 %v14310_v15 }
 0x3b9   : > { %13277 = vmatmul.mubr.bf16.gmra.mrb[12].mxu1 %v11907_v26  ;;  %v6843_v26 = vrot.slane %v14416_v44, 5  ;;  %v14421_v44 = vld [vmem:[#allocation2 + $0x38] sm:$0x1] }
 0x3ba   : > { %13280 = vmatprep.mubr.bf16.mxu1 %v11908_v32  ;;  %13309 = vmatpush3.bf16.msra.mxu1 %v14310_v15  ;;  %v11924_v32 = vrot.slane %v6790_v16, 9  ;;  %v6863_v15 = vrot.slane %v6861_v29, 4  ;;  %v6794_v16 = vld [vmem:[#allocation2 + $0x30] sm:$0xe] }
 0x3bb   : > { %13310 = vmatprep.subr.bf16.mxu1 %v14313_v5  ;;  %v6844_v17 = vsel %vm14878_vm5, %v6842_v9, %v6843_v26  ;;  %v6871_v26 = vrot.slane %v14421_v44, 5  ;;  %v11927_v9 = vrot.slane %v6793_v18, 9  ;;  %v17156_v18 = vld [vmem:[#allocation2 + $0x34] sm:$0xf]  ;;  %v18766_v44 = vcombine.low %v16945_v6, %v16950_v39  ;;  %v17177_v39 = vld [vmem:[%s18513_s3 + $0x100] sm:$0xff]  }
 0x3bc   : > { %v6841_v8 = vsel %vm14878_vm5, %v11924_v32, %v6840_v25  ;;  %v14316_v32 = vld [vmem:[%s18513_s3 + $0xd0] sm:$0xff]  }
 0x3bd   : > { %v11956_v4 = vcombine.low %v6841_v8, %v6844_v17  ;;  %v11928_v17 = vrot.slane %v6794_v16, 9  ;;  %v17179_v6 = vld [vmem:[#allocation2 + $0x50] sm:$0x1] }
 0x3be   : > { %13311 = vmatpush3.bf16.msra.mxu1 %v14313_v5  ;;  %v6870_v5 = vrot.slane %v6868_v21, 4 }
 0x3bf   : > { %13344 = vmatprep.subr.bf16.mxu1 %v14314_v59  ;;  %v6869_v35 = vsel %vm14878_vm5, %v11928_v17, %v6868_v21 }
 0x3c1   : > { %13281 = vmatmul.mubr.bf16.gmra.mrb[16].mxu1 %v11909_v34  ;;  %v6856_v34 = vrot.slane %v6854_v20, 4 }
 0x3c2   : > { %13284 = vmatprep.mubr.bf16.mxu1 %v11910_v7  ;;  %v6792_v7 = vld [vmem:[#allocation2 + $0x18] sm:$0xe] }
 0x3c3   : > { %v11926_v61 = vrot.slane %v6792_v7, 9  ;;  %v6878_v7 = vrot.slane %v14423_v23, 5 }
 0x3c5   : > { %v6855_v52 = vsel %vm14878_vm5, %v11926_v61, %v6854_v20  ;;  %v6862_v20 = vsel %vm14878_vm5, %v11927_v9, %v6861_v29  ;;  %v8415_v9 = vld [vmem:[#allocation2 + $0x30] sm:$0xe] }
 0x3c9   : > { %13285 = vmatmul.mubr.bf16.gmra.mrb[20].mxu1 %v11911_v24  ;;  %v14418_v24 = vld [vmem:[#allocation2 + $0x20] sm:$0x1] }
 0x3ca   : > { %13288 = vmatprep.mubr.bf16.mxu1 %v18762_v37  ;;  %v6857_v40 = vrot.slane %v14418_v24, 5  ;;  %v14420_v37 = vld [vmem:[#allocation2 + $0x2c] sm:$0x1]  ;;  %v6796_v24 = vld [vmem:[#allocation2 + $0x48] sm:$0xe] }
 0x3cb   : > { %v6864_v25 = vrot.slane %v14420_v37, 5  ;;  %v11930_v61 = vrot.slane %v6796_v24, 9  ;;  %v17158_v37 = vld [vmem:[#allocation2 + $0x38] sm:$0x1]  ;;  %v17198_v24 = vld [vmem:[#allocation2 + $0x64] sm:$0xf] }
 0x3cc   : > { %v6858_v46 = vsel %vm14878_vm5, %v6856_v34, %v6857_v40  ;;  %v6885_v40 = vrot.slane %v16723_v28, 5 }
 0x3cd   : > { %v11958_v57 = vcombine.low %v6855_v52, %v6858_v46  ;;  %v6883_v28 = vsel %vm14878_vm5, %v11930_v61, %v6882_v45  ;;  %v14320_v52 = vld [vmem:[%s18513_s3 + $0xf0] sm:$0xff]   ;;  %v8499_v45 = vrot.slane %v17156_v18, 5 }
 0x3ce   : > { %v6886_v46 = vsel %vm14878_vm5, %v6884_v22, %v6885_v40 }
 0x3cf   : > { %v8501_v42 = vrot.slane %v8499_v45, 4 }
 0x3d1   : > { %13289 = vmatmul.mubr.bf16.gmra.mrb[24].mxu1 %v18763_v10  ;;  %v6865_v10 = vsel %vm14878_vm5, %v6863_v15, %v6864_v25  ;;  %v14321_v15 = vld [vmem:[%s18513_s3 + $0xf8] sm:$0xff]   ;;  %v17160_v25 = vld [vmem:[#allocation2 + $0x40] sm:$0xf] }
 0x3d2   : > { %13292 = vmatprep.mubr.bf16.mxu1 %v18764_v43  ;;  %v14422_v43 = vld [vmem:[#allocation2 + $0x40] sm:$0xf]  ;;  %v8506_v23 = vrot.slane %v17160_v25, 5 }
 0x3d3   : > { %v6875_v8 = vrot.slane %v14422_v43, 5 }
 0x3d5   : > { %v6877_v34 = vrot.slane %v6875_v8, 4  ;;  %v6876_v12 = vsel %vm14878_vm5, %v11929_v51, %v6875_v8 }
 0x3d7   : > { %v6879_v29 = vsel %vm14878_vm5, %v6877_v34, %v6878_v7  ;;  %v8418_v7 = vld [vmem:[#allocation2 + $0x54] sm:$0xe] }
 0x3d8   : > { %v11961_v21 = vcombine.low %v6876_v12, %v6879_v29  ;;  %v8508_v12 = vrot.slane %v8506_v23, 4 }
 0x3d9   : > { %13293 = vmatmul.mubr.bf16.gmra.mrb[28].mxu1 %v18765_v49  ;;  %v14317_v49 = vld [vmem:[%s18513_s3 + $0xd8] sm:$0xff]  }
 0x3da   : > { %13312 = vmatprep.mubr.bf16.mxu1 %v11956_v4  ;;  %v11959_v4 = vcombine.low %v6862_v20, %v6865_v10  ;;  %v18767_v10 = vcombine.low %v16954_v11, %v16964_v47  ;;  %v8417_v20 = vld [vmem:[#allocation2 + $0x48] sm:$0xe]  ;;  %v17184_v11 = vld [vmem:[#allocation2 + $0x5c] sm:$0x1] }
 0x3db   : > { %v12065_v51 = vrot.slane %v8417_v20, 9 }
 0x3e1   : > { %13313 = vmatmul.mubr.bf16.vlgmr.msra.gmra.mrb[0].mxu1 %v11957_v3  ;;  %v11962_v3 = vcombine.low %v6883_v28, %v6886_v46  ;;  %v8419_v28 = vld [vmem:[#allocation2 + $0x60] sm:$0xe] }
 0x3e2   : > { %13316 = vmatprep.mubr.bf16.mxu1 %v11958_v57  ;;  %13345 = vmatpush3.bf16.msra.mxu1 %v14314_v59  ;;  %v6872_v59 = vsel %vm14878_vm5, %v6870_v5, %v6871_v26  ;;  %v17151_v57 = vld [vmem:[#allocation2 + $0x2c] sm:$0x1]  ;;  %v8414_v5 = vld [vmem:[#allocation2 + $0x24] sm:$0xe]  ;;  %v17166_v26 = vld [vmem:[#allocation2 + $0x44] sm:$0x1] }
 0x3e3   : > { %13346 = vmatprep.subr.bf16.mxu1 %v14315_v38  ;;  %v11960_v50 = vcombine.low %v6869_v35, %v6872_v59  ;;  %v12062_v43 = vrot.slane %v8414_v5, 9  ;;  %v8495_v17 = vrot.slane %v17151_v57, 5  ;;  %v8416_v59 = vld [vmem:[#allocation2 + $0x3c] sm:$0xe] }
 0x3e4   : > { %v12064_v22 = vrot.slane %v8416_v59, 9  ;;  %v18770_v59 = vcombine.low %v16982_v31, %v16993_v56 }
 0x3e6   : > { %13347 = vmatpush3.bf16.msra.mxu1 %v14315_v38  ;;  %v17149_v38 = vld [vmem:[#allocation2 + $0x28] sm:$0xf]  ;;  %v17213_v46 = vsel %vm14878_vm5, %v12064_v22, %v8506_v23  ;;  %v17249_v22 = vld [vmem:[#allocation2 + $0x80] sm:$0x1] }
 0x3e7   : > { %13348 = vmatprep.subr.bf16.mxu1 %v14316_v32  ;;  %v8492_v16 = vrot.slane %v17149_v38, 5 }
 0x3e9   : > { %13317 = vmatmul.mubr.bf16.gmra.mrb[4].mxu1 %v11959_v4  ;;  %v8494_v8 = vrot.slane %v8492_v16, 4  ;;  %v17182_v4 = vld [vmem:[#allocation2 + $0x58] sm:$0xf]  ;;  %v17188_v47 = vsel %vm14878_vm5, %v12062_v43, %v8492_v16  ;;  %v18768_v16 = vcombine.low %v16973_v63, %v16978_v62  ;;  %v8523_v43 = vrot.slane %v17184_v11, 5  ;;  %v17239_v63 = vld [vmem:[#allocation2 + $0x7c] sm:$0xf] }
 0x3ea   : > { %13320 = vmatprep.mubr.bf16.mxu1 %v11960_v50  ;;  %13349 = vmatpush3.bf16.msra.mxu1 %v14316_v32  ;;  %v17168_v32 = vld [vmem:[#allocation2 + $0x4c] sm:$0xf]  ;;  %v8502_v50 = vrot.slane %v17158_v37, 5  ;;  %v8520_v5 = vrot.slane %v17182_v4, 5  ;;  %v17285_v62 = vld [vmem:[#allocation2 + $0xa0] sm:$0xf] }
 0x3eb   : > { %13350 = vmatprep.subr.bf16.mxu1 %v14317_v49  ;;  %v17192_v35 = vsel %vm14878_vm5, %v8494_v8, %v8495_v17  ;;  %v8513_v29 = vrot.slane %v17168_v32, 5  ;;  %v8527_v8 = vrot.slane %v17198_v24, 5  ;;  %v8420_v17 = vld [vmem:[#allocation2 + $0x6c] sm:$0xe] }
 0x3ec   : > { %v17209_v61 = vsel %vm14878_vm5, %v8501_v42, %v8502_v50  ;;  %v8522_v20 = vrot.slane %v8520_v5, 4  ;;  %v8421_v50 = vld [vmem:[#allocation2 + $0x78] sm:$0xe]  ;;  %v17247_v42 = vld [vmem:[#allocation2 + $0x74] sm:$0x1] }
 0x3ed   : > { %v8529_v23 = vrot.slane %v8527_v8, 4  ;;  %v8537_v31 = vrot.slane %v17247_v42, 5 }
 0x3ee   : > { %13351 = vmatpush3.bf16.msra.mxu1 %v14317_v49  ;;  %v12063_v49 = vrot.slane %v8415_v9, 9 }
 0x3ef   : > { %13352 = vmatprep.subr.bf16.mxu1 %v14318_v33 }
 0x3f0   : > { %v17202_v40 = vsel %vm14878_vm5, %v12063_v49, %v8499_v45  ;;  %v12067_v49 = vrot.slane %v8419_v28, 9 }
 0x3f1   : > { %13321 = vmatmul.mubr.bf16.gmra.mrb[8].mxu1 %v11961_v21  ;;  %v8516_v21 = vrot.slane %v17179_v6, 5 }
 0x3f2   : > { %13324 = vmatprep.mubr.bf16.mxu1 %v11962_v3  ;;  %13353 = vmatpush3.bf16.msra.mxu1 %v14318_v33  ;;  %v8509_v33 = vrot.slane %v17166_v26, 5 }
 0x3f3   : > { %13354 = vmatprep.subr.bf16.mxu1 %v14319_v30 }
 0x3f4   : > { %v17228_v9 = vsel %vm14878_vm5, %v8508_v12, %v8509_v33  ;;  %v17258_v33 = vld [vmem:[#allocation2 + $0x88] sm:$0xf]  ;;  %v17266_v12 = vsel %vm14878_vm5, %v12067_v49, %v8527_v8  ;;  %v7696_v8 = vld [vmem:[#allocation2 + $0xa4] sm:$0x1] }
 0x3f5   : > { %18774 = vst [vmem:[#allocation9_spill] sm:$0xff] %v17266_v12  ;;  %v8548_v3 = vrot.slane %v17258_v33, 5 }
 0x3f6   : > { %13355 = vmatpush3.bf16.msra.mxu1 %v14319_v30  ;;  %v17216_v30 = vld [vmem:[#allocation2 + $0x68] sm:$0x1] }
 0x3f7   : > { %13356 = vmatprep.subr.bf16.mxu1 %v14320_v52 }
 0x3f9   : > { %13325 = vmatmul.mubr.bf16.gmra.mrb[12].mxu1 %v18766_v44  ;;  %v17224_v44 = vld [vmem:[#allocation2 + $0x70] sm:$0xf] }
 0x3fa   : > { %13328 = vmatprep.mubr.bf16.mxu1 %v18767_v10  ;;  %13357 = vmatpush3.bf16.msra.mxu1 %v14320_v52  ;;  %v8515_v52 = vrot.slane %v8513_v29, 4  ;;  %v17232_v10 = vsel %vm14878_vm5, %v12065_v51, %v8513_v29  ;;  %v7690_v51 = vld [vmem:[#allocation2 + $0x8c] sm:$0x1]  ;;  %v17262_v29 = vsel %vm14878_vm5, %v8522_v20, %v8523_v43  ;;  %v8534_v28 = vrot.slane %v17224_v44, 5  ;;  %v7693_v20 = vld [vmem:[#allocation2 + $0x98] sm:$0x1] }
 0x3fb   : > { %13358 = vmatprep.subr.bf16.mxu1 %v14321_v15  ;;  %18769 = vst [vmem:[#allocation11_spill] sm:$0xff] %v17232_v10  ;;  %18773 = vst [vmem:[#allocation5_spill] sm:$0xff] %v17262_v29  ;;  %v8541_v43 = vrot.slane %v17239_v63, 5  ;;  %v8551_v34 = vrot.slane %v7690_v51, 5  ;;  %v18781_v51 = vcombine.low %v17010_v0, %v17017_v58  ;;  %v17312_v29 = vld [vmem:[#allocation2 + $0xb8] sm:$0xf] }
 0x3fc   : > { %v17245_v45 = vsel %vm14878_vm5, %v8515_v52, %v8516_v21  ;;  %v12068_v21 = vrot.slane %v8420_v17, 9  ;;  %v17269_v52 = vld [vmem:[#allocation2 + $0x94] sm:$0xf]  ;;  %v8536_v49 = vrot.slane %v8534_v28, 4  ;;  %v8562_v58 = vrot.slane %v17285_v62, 5 }
 0x3fd   : > { %18771 = vst [vmem:[#allocation18_spill] sm:$0xff] %v17245_v45  ;;  %v8555_v14 = vrot.slane %v17269_v52, 5 }
 0x3fe   : > { %13359 = vmatpush3.bf16.msra.mxu1 %v14321_v15  ;;  %v12066_v15 = vrot.slane %v8418_v7, 9  ;;  %v8530_v7 = vrot.slane %v17216_v30, 5  ;;  %v17282_v17 = vsel %vm14878_vm5, %v12068_v21, %v8534_v28  ;;  %v17295_v21 = vsel %vm14878_vm5, %v8536_v49, %v8537_v31  ;;  %v8424_v31 = vld [vmem:[#allocation2 + $0x9c] sm:$0xe]  ;;  %v8425_v49 = vld [vmem:[#allocation2 + $0xa8] sm:$0xe] }
 0x3ff   : > { %13392 = vmatprep.subr.bf16.mxu1 %v17177_v39  ;;  %18776 = vst [vmem:[#allocation7_spill] sm:$0xff] %v17282_v17  ;;  %18778 = vst [vmem:[#allocation10_spill] sm:$0xff] %v17295_v21  ;;  %v8557_v2 = vrot.slane %v8555_v14, 4 }
 0x400   : > { %v17255_v56 = vsel %vm14878_vm5, %v12066_v15, %v8520_v5  ;;  %v17275_v5 = vsel %vm14878_vm5, %v8529_v23, %v8530_v7  ;;  %v8423_v15 = vld [vmem:[#allocation2 + $0x90] sm:$0xe]  ;;  %v8543_v23 = vrot.slane %v8541_v43, 4  ;;  %v8544_v7 = vrot.slane %v17249_v22, 5 }
 0x401   : > { %13329 = vmatmul.mubr.bf16.gmra.mrb[16].mxu1 %v18768_v16  ;;  %18772 = vst [vmem:[#allocation19_spill] sm:$0xff] %v17255_v56  ;;  %18775 = vst [vmem:[#allocation6_spill] sm:$0xff] %v17275_v5  ;;  %v12069_v16 = vrot.slane %v8421_v50, 9  ;;  %v8550_v5 = vrot.slane %v8548_v3, 4  ;;  %v12071_v12 = vrot.slane %v8423_v15, 9 }
 0x402   : > { %13332 = vmatprep.mubr.bf16.mxu1 %v18770_v59  ;;  %v8422_v59 = vld [vmem:[#allocation2 + $0x84] sm:$0xe]  ;;  %v17305_v54 = vsel %vm14878_vm5, %v8543_v23, %v8544_v7  ;;  %v7682_v56 = vld [vmem:[#allocation2 + $0x6c] sm:$0xf] }
 0x403   : > { %v17289_v50 = vsel %vm14878_vm5, %v12069_v16, %v8541_v43  ;;  %v12070_v28 = vrot.slane %v8422_v59, 9  ;;  %v7698_v16 = vld [vmem:[#allocation2 + $0xac] sm:$0xf]  ;;  %18780 = vst [vmem:[#allocation4_spill] sm:$0xff] %v17305_v54  ;;  %v7699_v59 = vld [vmem:[#allocation2 + $0xb0] sm:$0x1]  ;;  %v17320_v15 = vsel %vm14878_vm5, %v8550_v5, %v8551_v34  ;;  %v17324_v0 = vsel %vm14878_vm5, %v12071_v12, %v8555_v14 }
 0x404   : > { %18777 = vst [vmem:[#allocation8_spill] sm:$0xff] %v17289_v50  ;;  %v7702_v43 = vld [vmem:[#allocation2 + $0xbc] sm:$0x1]  ;;  %18783 = vst [vmem:[#allocation12_spill] sm:$0xff] %v17320_v15  ;;  %v7704_v7 = vld [vmem:[#allocation2 + $0xc4] sm:$0xf]  ;;  %v18790_v34 = vcombine.low %v17032_v19, %v17036_v36 }
 0x405   : > { %v17316_v23 = vsel %vm14878_vm5, %v12070_v28, %v8548_v3  ;;  %18784 = vst [vmem:[#allocation13_spill] sm:$0xff] %v17324_v0  ;;  %v12072_v3 = vrot.slane %v8424_v31, 9  ;;  %v8569_v28 = vrot.slane %v7698_v16, 5  ;;  %v7705_v54 = vld [vmem:[#allocation2 + $0xc8] sm:$0x1]  ;;  %v8564_v5 = vrot.slane %v8562_v58, 4 }
 0x406   : > { %18782 = vst [vmem:[#allocation3_spill] sm:$0xff] %v17316_v23  ;;  %v8565_v14 = vrot.slane %v7696_v8, 5  ;;  %v12073_v12 = vrot.slane %v8425_v49, 9  ;;  %v8576_v15 = vrot.slane %v17312_v29, 5  ;;  %v8583_v8 = vrot.slane %v7704_v7, 5  ;;  %v14335_v23 = vld [vmem:[#allocation2 + $0x78] sm:$0xff]  }
 0x407   : > { %v17337_v50 = vsel %vm14878_vm5, %v12072_v3, %v8562_v58  ;;  %v8571_v21 = vrot.slane %v8569_v28, 4  ;;  %v8579_v3 = vrot.slane %v7702_v43, 5  ;;  %v18791_v7 = vcombine.low %v17040_v53, %v17046_v13  ;;  %v14322_v13 = vld [vmem:[#allocation2 + $0xc] sm:$0xff]  }
 0x408   : > { %18786 = vst [vmem:[#allocation15_spill] sm:$0xff] %v17337_v50  ;;  %v17342_v16 = vsel %vm14878_vm5, %v8564_v5, %v8565_v14  ;;  %v17346_v31 = vsel %vm14878_vm5, %v12073_v12, %v8569_v28  ;;  %v8585_v14 = vrot.slane %v8583_v8, 4  ;;  %v14325_v12 = vld [vmem:[#allocation2 + $0x24] sm:$0xff]   ;;  %v17398_v5 = vld [vmem:[#allocation2 + $0x14] sm:$0x1] }
 0x409   : > { %13333 = vmatmul.mubr.bf16.gmra.mrb[20].mxu1 %v18779_v60  ;;  %v8558_v60 = vrot.slane %v7693_v20, 5  ;;  %v8572_v20 = vrot.slane %v7699_v59, 5  ;;  %18787 = vst [vmem:[#allocation16_spill] sm:$0xff] %v17342_v16  ;;  %18788 = vst [vmem:[#allocation17_spill] sm:$0xff] %v17346_v31  ;;  %v8578_v59 = vrot.slane %v8576_v15, 4  ;;  %v7788_v16 = vshll.u32 %v17156_v18, 16 }
 0x40a   : > { %13336 = vmatprep.mubr.bf16.mxu1 %v18781_v51 }
 0x40b   : > { %v17331_v51 = vsel %vm14878_vm5, %v8557_v2, %v8558_v60  ;;  %v8427_v2 = vld [vmem:[#allocation2 + $0xc0] sm:$0xe]  ;;  %v12074_v60 = vrot.slane %v8426_v48, 9  ;;  %v17352_v58 = vsel %vm14878_vm5, %v8571_v21, %v8572_v20  ;;  %v8586_v48 = vrot.slane %v7705_v54, 5  ;;  %v14323_v20 = vld [vmem:[#allocation2 + $0x18] sm:$0xff]  }
 0x40c   : > { %18785 = vst [vmem:[#allocation14_spill] sm:$0xff] %v17331_v51  ;;  %18789 = vst [vmem:[#allocation20_spill] sm:$0xff] %v17352_v58  ;;  %v12075_v28 = vrot.slane %v8427_v2, 9  ;;  %v17368_v43 = vsel %vm14878_vm5, %v8578_v59, %v8579_v3  ;;  %v14330_v2 = vld [vmem:[%s18513_s3 + $0x110] sm:$0xff]  }
 0x40d   : > { %v17364_v21 = vsel %vm14878_vm5, %v12074_v60, %v8576_v15  ;;  %18793 = vst [vmem:[#allocation22_spill] sm:$0xff] %v17368_v43  ;;  %v17378_v54 = vsel %vm14878_vm5, %v8585_v14, %v8586_v48  ;;  %v18796_v15 = vcombine.low %v17056_v41, %v17060_v27  ;;  %v7658_v60 = vld [vmem:[#allocation2 + $0xc] sm:$0xf]  ;;  %v14326_v14 = vld [vmem:[#allocation2 + $0x30] sm:$0xff]   ;;  %v14333_v48 = vld [vmem:[%s18513_s3 + $0x118] sm:$0xff]   ;;  %v7764_v43 = vshll.u32 %v17149_v38, 16 }
 0x40e   : > { %18792 = vst [vmem:[#allocation21_spill] sm:$0xff] %v17364_v21  ;;  %v17374_v36 = vsel %vm14878_vm5, %v12075_v28, %v8583_v8  ;;  %18795 = vst [vmem:[#allocation24_spill] sm:$0xff] %v17378_v54  ;;  %v7659_v8 = vld [vmem:[#allocation2 + $0x10] sm:$0xf]  ;;  %v7707_v41 = vshrl.u32 %v7658_v60, 16  ;;  %v7710_v27 = vshll.u32 %v7658_v60, 16 }
 0x40f   : > { %18794 = vst [vmem:[#allocation23_spill] sm:$0xff] %v17374_v36  ;;  %v7716_v59 = vshll.u32 %v7659_v8, 16  ;;  %v7720_v3 = vshrl.u32 %v7659_v8, 16  ;;  %v7661_v28 = vld [vmem:[#allocation2 + $0x18] sm:$0xf]  ;;  %v14336_v8 = vld [vmem:[%s18513_s3 + $0x120] sm:$0xff]  }
 0x410   : > { %v17406_v36 = vld [vmem:[#allocation2 + $0x20] sm:$0x1] }
 0x411   : > { %13337 = vmatmul.mubr.bf16.gmra.mrb[24].mxu1 %v18790_v34  ;;  %v14327_v34 = vld [vmem:[%s18513_s3 + $0x108] sm:$0xff]   ;;  %v7722_v60 = vrot.slane %v7720_v3, 4  ;;  %v14331_v3 = vld [vmem:[#allocation2 + $0x54] sm:$0xff]  }
 0x412   : > { %13340 = vmatprep.mubr.bf16.mxu1 %v18791_v7  ;;  %v7662_v7 = vld [vmem:[#allocation2 + $0x1c] sm:$0xf] }
 0x413   : > { %v7740_v53 = vshll.u32 %v7662_v7, 16  ;;  %v7744_v19 = vshrl.u32 %v7662_v7, 16  ;;  %v7726_v7 = vshll.u32 %v17398_v5, 16 }
 0x415   : > { %v7728_v21 = vrot.slane %v7726_v7, 5 }
 0x419   : > { %13341 = vmatmul.mubr.bf16.gmra.mrb[28].mxu1 %v18796_v15  ;;  %v7734_v15 = vshll.u32 %v7661_v28, 16 }
 0x41a   : > { %13360 = vmatprep.mubr.bf16.mxu1 %v14322_v13  ;;  %v7731_v13 = vshrl.u32 %v7661_v28, 16 }
 0x41b   : > { %v7736_v54 = vrot.slane %v7734_v15, 5 }
 0x41c   : > { %v7733_v49 = vrot.slane %v7731_v13, 4 }
 0x421   : > { %13361 = vmatmul.mubr.bf16.vlgmr.msra.gmra.mrb[0].mxu1 %v14323_v20  ;;  %v7709_v20 = vrot.slane %v7707_v41, 4  ;;  %v14339_v41 = vld [vmem:[%s18513_s3 + $0x128] sm:$0xff]  }
 0x422   : > { %13364 = vmatprep.mubr.bf16.mxu1 %v14325_v12  ;;  %13393 = vmatpush3.bf16.msra.mxu1 %v17177_v39  ;;  %v14328_v39 = vld [vmem:[#allocation2 + $0x3c] sm:$0xff]   ;;  %v7718_v12 = vrot.slane %v7716_v59, 5  ;;  %v7746_v59 = vrot.slane %v7744_v19, 4 }
 0x423   : > { %13394 = vmatprep.subr.bf16.mxu1 %v14327_v34 }
 0x426   : > { %13395 = vmatpush3.bf16.msra.mxu1 %v14327_v34  ;;  %v7712_v34 = vrot.slane %v7710_v27, 5  ;;  %v17403_v27 = vrot.slane %v7740_v53, 5  ;;  %v14342_v53 = vld [vmem:[%s18513_s3 + $0x130] sm:$0xff]  }
 0x427   : > { %13396 = vmatprep.subr.bf16.mxu1 %v14330_v2 }
 0x428   : > { %v7713_v28 = vor.u32 %v7712_v34, %v7709_v20  ;;  %v7747_v19 = vor.u32 %v7746_v59, %v17403_v27  ;;  %v14332_v59 = vld [vmem:[#allocation2 + $0x60] sm:$0xff]  }
 0x429   : > { %13365 = vmatmul.mubr.bf16.gmra.mrb[4].mxu1 %v14326_v14  ;;  %v7664_v14 = vld [vmem:[#allocation2 + $0x24] sm:$0xf] }
 0x42a   : > { %13368 = vmatprep.mubr.bf16.mxu1 %v14328_v39  ;;  %13397 = vmatpush3.bf16.msra.mxu1 %v14330_v2  ;;  %v7723_v39 = vor.u32 %v7722_v60, %v7718_v12  ;;  %v14329_v2 = vld [vmem:[#allocation2 + $0x48] sm:$0xff]   ;;  %v7755_v13 = vshrl.u32 %v7664_v14, 16  ;;  %v7758_v15 = vshll.u32 %v7664_v14, 16  ;;  %v7714_v20 = vrot.slane %v7713_v28, 4 }
 0x42b   : > { %13398 = vmatprep.subr.bf16.mxu1 %v14333_v48  ;;  %v7750_v60 = vshll.u32 %v17406_v36, 16  ;;  %v7748_v7 = vrot.slane %v7747_v19, 4  ;;  %v7792_v19 = vshrl.u32 %v17156_v18, 16  ;;  %v7836_v18 = vshll.u32 %v17168_v32, 16 }
 0x42c   : > { %v7724_v34 = vrot.slane %v7723_v39, 4  ;;  %v7757_v58 = vrot.slane %v7755_v13, 4  ;;  %v7760_v14 = vrot.slane %v7758_v15, 5  ;;  %v7719_v28 = vsel %vm14545_vm2, %v7714_v20, %v7718_v12 }
 0x42d   : > { %v7752_v13 = vrot.slane %v7750_v60, 5  ;;  %v17422_v15 = vrot.slane %v7764_v43, 5  ;;  %v7816_v60 = vshrl.u32 %v17160_v25, 16 }
 0x42e   : > { %13399 = vmatpush3.bf16.msra.mxu1 %v14333_v48  ;;  %v7737_v48 = vor.u32 %v7736_v54, %v7733_v49  ;;  %v7768_v49 = vshrl.u32 %v17149_v38, 16  ;;  %v7729_v39 = vsel %vm14545_vm2, %v7724_v34, %v7728_v21  ;;  %v7774_v38 = vshll.u32 %v17151_v57, 16 }
 0x42f   : > { %13400 = vmatprep.subr.bf16.mxu1 %v14336_v8  ;;  %v17425_v21 = vcombine.low %v7719_v28, %v7729_v39  ;;  %v7818_v0 = vrot.slane %v7816_v60, 4 }
 0x430   : > { %v7738_v54 = vrot.slane %v7737_v48, 4  ;;  %v7761_v48 = vor.u32 %v7760_v14, %v7757_v58  ;;  %v7770_v31 = vrot.slane %v7768_v49, 4  ;;  %v7812_v58 = vshll.u32 %v17160_v25, 16  ;;  %v7673_v14 = vld [vmem:[#allocation2 + $0x48] sm:$0xf] }
 0x431   : > { %13369 = vmatmul.mubr.bf16.gmra.mrb[8].mxu1 %v14329_v2  ;;  %v7670_v2 = vld [vmem:[#allocation2 + $0x3c] sm:$0xf]  ;;  %v7753_v49 = vsel %vm14545_vm2, %v7748_v7, %v7752_v13  ;;  %v7794_v7 = vrot.slane %v7792_v19, 4  ;;  %v7827_v13 = vshrl.u32 %v7673_v14, 16  ;;  %v7860_v19 = vshll.u32 %v17182_v4, 16 }
 0x432   : > { %13372 = vmatprep.mubr.bf16.mxu1 %v14331_v3  ;;  %13401 = vmatpush3.bf16.msra.mxu1 %v14336_v8  ;;  %v7667_v8 = vld [vmem:[#allocation2 + $0x30] sm:$0xf]  ;;  %v14345_v3 = vld [vmem:[%s18513_s3 + $0x138] sm:$0xff]   ;;  %v7743_v34 = vsel %vm14545_vm2, %v7738_v54, %v17403_v27  ;;  %v7803_v43 = vshrl.u32 %v7670_v2, 16  ;;  %v7806_v57 = vshll.u32 %v7670_v2, 16  ;;  %v17439_v27 = vld [vmem:[%s18513_s3 + $0x140] sm:$0xff]   ;;  %v7771_v25 = vor.u32 %v7770_v31, %v17422_v15 }
 0x433   : > { %13402 = vmatprep.subr.bf16.mxu1 %v14339_v41  ;;  %v7779_v12 = vshrl.u32 %v7667_v8, 16  ;;  %v7782_v20 = vshll.u32 %v7667_v8, 16  ;;  %v17441_v54 = vrot.slane %v7774_v38, 5  ;;  %v17445_v8 = vrot.slane %v7761_v48, 4  ;;  %v7676_v2 = vld [vmem:[#allocation2 + $0x54] sm:$0xf] }
 0x434   : > { %v7805_v50 = vrot.slane %v7803_v43, 4  ;;  %v7808_v38 = vrot.slane %v7806_v57, 5  ;;  %v17450_v51 = vrot.slane %v7812_v58, 5  ;;  %v7851_v48 = vshrl.u32 %v7676_v2, 16 }
 0x435   : > { %v7781_v28 = vrot.slane %v7779_v12, 4  ;;  %v7784_v39 = vrot.slane %v7782_v20, 5  ;;  %v7854_v12 = vshll.u32 %v7676_v2, 16  ;;  %v14337_v20 = vld [vmem:[#allocation2 + $0x84] sm:$0xff]   ;;  %v7864_v43 = vshrl.u32 %v17182_v4, 16 }
 0x436   : > { %13403 = vmatpush3.bf16.msra.mxu1 %v14339_v41  ;;  %v14334_v41 = vld [vmem:[#allocation2 + $0x6c] sm:$0xff]   ;;  %v7772_v57 = vrot.slane %v7771_v25, 4  ;;  %v7798_v58 = vshll.u32 %v17158_v37, 16  ;;  %v7829_v60 = vrot.slane %v7827_v13, 4  ;;  %v7822_v2 = vshll.u32 %v17166_v26, 16 }
 0x437   : > { %13404 = vmatprep.subr.bf16.mxu1 %v14342_v53  ;;  %v7853_v17 = vrot.slane %v7851_v48, 4  ;;  %v7856_v4 = vrot.slane %v7854_v12, 5  ;;  %v7866_v25 = vrot.slane %v7864_v43, 4  ;;  %v14340_v43 = vld [vmem:[#allocation2 + $0x9c] sm:$0xff]  }
 0x438   : > { %v7777_v26 = vsel %vm14545_vm2, %v7772_v57, %v17441_v54  ;;  %v7824_v48 = vrot.slane %v7822_v2, 5  ;;  %v7899_v2 = vshrl.u32 %v7682_v56, 16 }
 0x439   : > { %13373 = vmatmul.mubr.bf16.gmra.mrb[12].mxu1 %v14332_v59  ;;  %v17448_v59 = vrot.slane %v7788_v16, 5  ;;  %v17455_v16 = vcombine.low %v7743_v34, %v7753_v49  ;;  %v7819_v49 = vor.u32 %v7818_v0, %v17450_v51  ;;  %v7800_v0 = vrot.slane %v7798_v58, 5 }
 0x43a   : > { %13376 = vmatprep.mubr.bf16.mxu1 %v14334_v41  ;;  %13405 = vmatpush3.bf16.msra.mxu1 %v14342_v53  ;;  %v7840_v53 = vshrl.u32 %v17168_v32, 16  ;;  %v7830_v41 = vshll.u32 %v7673_v14, 16  ;;  %v17453_v32 = vrot.slane %v7836_v18, 5  ;;  %v7679_v18 = vld [vmem:[#allocation2 + $0x60] sm:$0xf] }
 0x43b   : > { %13406 = vmatprep.subr.bf16.mxu1 %v14345_v3  ;;  %v7795_v34 = vor.u32 %v7794_v7, %v17448_v59  ;;  %v7875_v37 = vshrl.u32 %v7679_v18, 16  ;;  %v7878_v13 = vshll.u32 %v7679_v18, 16  ;;  %v7820_v7 = vrot.slane %v7819_v49, 4 }
 0x43c   : > { %v7842_v31 = vrot.slane %v7840_v53, 4  ;;  %v7832_v14 = vrot.slane %v7830_v41, 5  ;;  %v7785_v53 = vor.u32 %v7784_v39, %v7781_v28  ;;  %v7884_v28 = vshll.u32 %v17198_v24, 16 }
 0x43d   : > { %v7888_v39 = vshrl.u32 %v17198_v24, 16  ;;  %v7880_v18 = vrot.slane %v7878_v13, 5  ;;  %v17505_v13 = vld [vmem:[#allocation2 + $0x78] sm:$0xf] }
 0x43e   : > { %13407 = vmatpush3.bf16.msra.mxu1 %v14345_v3  ;;  %v7767_v3 = vsel %vm14545_vm2, %v17445_v8, %v17422_v15  ;;  %v7809_v15 = vor.u32 %v7808_v38, %v7805_v50  ;;  %v7843_v8 = vor.u32 %v7842_v31, %v17453_v32  ;;  %v7833_v41 = vor.u32 %v7832_v14, %v7829_v60  ;;  %v14338_v38 = vld [vmem:[#allocation2 + $0x90] sm:$0xff]  }
 0x43f   : > { %13440 = vmatprep.subr.bf16.mxu1 %v17439_v27  ;;  %v7796_v50 = vrot.slane %v7795_v34, 4  ;;  %v7786_v31 = vrot.slane %v7785_v53, 4  ;;  %v7877_v14 = vrot.slane %v7875_v37, 4  ;;  %v17477_v10 = vrot.slane %v7884_v28, 5 }
 0x440   : > { %v7844_v12 = vrot.slane %v7843_v8, 4  ;;  %v7810_v60 = vrot.slane %v7809_v15, 4  ;;  %v7834_v24 = vrot.slane %v7833_v41, 4  ;;  %v7890_v54 = vrot.slane %v7888_v39, 4 }
 0x441   : > { %13377 = vmatmul.mubr.bf16.gmra.mrb[16].mxu1 %v14335_v23  ;;  %v17468_v23 = vrot.slane %v7860_v19, 5  ;;  %v7857_v19 = vor.u32 %v7856_v4, %v7853_v17  ;;  %v17479_v57 = vcombine.low %v7767_v3, %v7777_v26  ;;  %v7801_v58 = vsel %vm14545_vm2, %v7796_v50, %v7800_v0  ;;  %v17516_v26 = vld [vmem:[#allocation2 + $0x20] sm:$0x1]  ;;  %v14341_v50 = vld [vmem:[#allocation2 + $0xa8] sm:$0xff]  }
 0x442   : > { %13380 = vmatprep.mubr.bf16.mxu1 %v14337_v20  ;;  %v7846_v20 = vshll.u32 %v17179_v6, 16  ;;  %v7825_v17 = vsel %vm14545_vm2, %v7820_v7, %v7824_v48  ;;  %v7870_v53 = vshll.u32 %v17184_v11, 16  ;;  %v7902_v15 = vshll.u32 %v7682_v56, 16  ;;  %18797 = vst [vmem:[#allocation25_spill] sm:$0xff] %v17516_v26  ;;  %v14343_v48 = vld [vmem:[#allocation2 + $0xb4] sm:$0xff]  }
 0x443   : > { %v7867_v6 = vor.u32 %v7866_v25, %v17468_v23  ;;  %v17488_v49 = vrot.slane %v7857_v19, 4  ;;  %v7791_v3 = vsel %vm14545_vm2, %v7786_v31, %v17448_v59  ;;  %v7881_v4 = vor.u32 %v7880_v18, %v7877_v14  ;;  %v17507_v59 = vld [vmem:[#allocation2 + $0x1c] sm:$0xf]  ;;  %v10051_v31 = vld [vmem:[#allocation2 + $0x18] sm:$0xe] }
 0x444   : > { %v7848_v45 = vrot.slane %v7846_v20, 5  ;;  %v7908_v25 = vshll.u32 %v17224_v44, 16  ;;  %v17496_v37 = vcombine.low %v7791_v3, %v7801_v58  ;;  %v7815_v11 = vsel %vm14545_vm2, %v7810_v60, %v17450_v51  ;;  %v17518_v51 = vld [vmem:[#allocation2 + $0x28] sm:$0xf]  ;;  %v17537_v60 = vld [vmem:[#allocation2 + $0x34] sm:$0xf] }
 0x445   : > { %v17493_v8 = vrot.slane %v7867_v6, 4  ;;  %v7891_v56 = vor.u32 %v7890_v54, %v17477_v10  ;;  %v17509_v41 = vcombine.low %v7815_v11, %v7825_v17  ;;  %v17513_v28 = vrot.slane %v7870_v53, 5  ;;  %18798 = vst [vmem:[#allocation26_spill] sm:$0xff] %v17518_v51  ;;  %18799 = vst [vmem:[#allocation27_spill] sm:$0xff] %v17537_v60  ;;  %v10052_v14 = vld [vmem:[#allocation2 + $0x24] sm:$0xe] }
 0x446   : > { %v7849_v34 = vsel %vm14545_vm2, %v7844_v12, %v7848_v45  ;;  %v7839_v45 = vsel %vm14545_vm2, %v7834_v24, %v17453_v32  ;;  %v17524_v0 = vrot.slane %v7899_v2, 4  ;;  %v17526_v7 = vrot.slane %v7902_v15, 5  ;;  %v17545_v58 = vld [vmem:[#allocation2 + $0x2c] sm:$0x1]  ;;  %v17547_v17 = vld [vmem:[#allocation2 + $0x38] sm:$0x1] }
 0x447   : > { %v17511_v20 = vcombine.low %v7839_v45, %v7849_v34  ;;  %v17533_v19 = vrot.slane %v7881_v4, 4  ;;  %v10117_v6 = vrot.slane %v17507_v59, 5  ;;  %v17540_v18 = vrot.slane %v7891_v56, 4  ;;  %18800 = vst [vmem:[#allocation28_spill] sm:$0xff] %v17545_v58  ;;  %18801 = vst [vmem:[#allocation29_spill] sm:$0xff] %v17547_v17  ;;  %v14344_v11 = vld [vmem:[#allocation2 + $0xc0] sm:$0xff]  }
 0x448   : > { %v7923_v24 = vshrl.u32 %v17505_v13, 16  ;;  %v17549_v53 = vld [vmem:[#allocation2 + $0x40] sm:$0xf]  ;;  %v12196_v34 = vrot.slane %v10051_v31, 9  ;;  %v10120_v15 = vrot.slane %v17516_v26, 5  ;;  %v10124_v3 = vrot.slane %v17518_v51, 5 }
 0x449   : > { %13381 = vmatmul.mubr.bf16.gmra.mrb[20].mxu1 %v14338_v38  ;;  %v7912_v38 = vshrl.u32 %v17224_v44, 16  ;;  %18802 = vst [vmem:[#allocation30_spill] sm:$0xff] %v17549_v53  ;;  %v10119_v2 = vrot.slane %v10117_v6, 4  ;;  %v12197_v45 = vrot.slane %v10052_v14, 9  ;;  %v10053_v56 = vld [vmem:[#allocation2 + $0x30] sm:$0xe] }
 0x44a   : > { %13384 = vmatprep.mubr.bf16.mxu1 %v14340_v43  ;;  %v17535_v43 = vrot.slane %v7908_v25, 5  ;;  %v10126_v44 = vrot.slane %v10124_v3, 4  ;;  %v10127_v39 = vrot.slane %v17545_v58, 5  ;;  %v10054_v32 = vld [vmem:[#allocation2 + $0x3c] sm:$0xe]  ;;  %v10138_v54 = vrot.slane %v17549_v53, 5 }
 0x44b   : > { %v17555_v25 = vrot.slane %v7912_v38, 4  ;;  %v17566_v31 = vsel %vm14878_vm5, %v10119_v2, %v10120_v15  ;;  %v17569_v38 = vrot.slane %v7923_v24, 4  ;;  %v17572_v14 = vld [vmem:[#allocation2 + $0x44] sm:$0x1]  ;;  %v17579_v2 = vsel %vm14878_vm5, %v12197_v45, %v10124_v3  ;;  %v10055_v12 = vld [vmem:[#allocation2 + $0x48] sm:$0xe] }
 0x44c   : > { %18805 = vst [vmem:[#allocation33_spill] sm:$0xff] %v17566_v31  ;;  %18806 = vst [vmem:[#allocation34_spill] sm:$0xff] %v17572_v14  ;;  %v17583_v15 = vsel %vm14878_vm5, %v10126_v44, %v10127_v39  ;;  %v12198_v24 = vrot.slane %v10053_v56, 9  ;;  %v17586_v58 = vld [vmem:[#allocation2 + $0x58] sm:$0xf]  ;;  %v10140_v44 = vrot.slane %v10138_v54, 4 }
 0x44d   : > { %18807 = vst [vmem:[#allocation35_spill] sm:$0xff] %v17579_v2  ;;  %18808 = vst [vmem:[#allocation36_spill] sm:$0xff] %v17583_v15  ;;  %v17593_v45 = vld [vmem:[#allocation2 + $0x5c] sm:$0x1]  ;;  %v10141_v56 = vrot.slane %v17572_v14, 5  ;;  %v12200_v3 = vrot.slane %v10055_v12, 9 }
 0x44e   : > { %18809 = vst [vmem:[#allocation37_spill] sm:$0xff] %v17586_v58  ;;  %18810 = vst [vmem:[#allocation38_spill] sm:$0xff] %v17593_v45  ;;  %v10056_v53 = vld [vmem:[#allocation2 + $0x54] sm:$0xe]  ;;  %v17600_v26 = vld [vmem:[#allocation2 + $0x64] sm:$0xf] }
 0x44f   : > { %18812 = vst [vmem:[#allocation40_spill] sm:$0xff] %v17600_v26  ;;  %v17612_v2 = vld [vmem:[#allocation2 + $0x70] sm:$0xf]  ;;  %v9320_v51 = vld [vmem:[#allocation2 + $0x74] sm:$0x1] }
 0x450   : > { %18815 = vst [vmem:[#allocation43_spill] sm:$0xff] %v17612_v2 }
 0x451   : > { %13385 = vmatmul.mubr.bf16.gmra.mrb[24].mxu1 %v14341_v50  ;;  %v17558_v50 = vld [vmem:[#allocation2 + $0x4c] sm:$0xf] }
 0x452   : > { %13388 = vmatprep.mubr.bf16.mxu1 %v14343_v48  ;;  %18803 = vst [vmem:[#allocation31_spill] sm:$0xff] %v17558_v50  ;;  %v17562_v48 = vsel %vm14878_vm5, %v12196_v34, %v10117_v6  ;;  %v10131_v6 = vrot.slane %v17537_v60, 5  ;;  %v9311_v34 = vld [vmem:[#allocation2 + $0x50] sm:$0x1]  ;;  %v12199_v60 = vrot.slane %v10054_v32, 9  ;;  %v10145_v15 = vrot.slane %v17558_v50, 5 }
 0x453   : > { %18804 = vst [vmem:[#allocation32_spill] sm:$0xff] %v17562_v48  ;;  %v10134_v48 = vrot.slane %v17547_v17, 5  ;;  %v12201_v50 = vrot.slane %v10056_v53, 9  ;;  %v10058_v17 = vld [vmem:[#allocation2 + $0x6c] sm:$0xe] }
 0x454   : > { %v10133_v31 = vrot.slane %v10131_v6, 4  ;;  %v17597_v39 = vsel %vm14878_vm5, %v12198_v24, %v10131_v6  ;;  %v17608_v32 = vsel %vm14878_vm5, %v12199_v60, %v10138_v54  ;;  %v10057_v6 = vld [vmem:[#allocation2 + $0x60] sm:$0xe]  ;;  %v9317_v24 = vld [vmem:[#allocation2 + $0x68] sm:$0x1]  ;;  %v10152_v60 = vrot.slane %v17586_v58, 5 }
 0x455   : > { %18811 = vst [vmem:[#allocation39_spill] sm:$0xff] %v17597_v39  ;;  %18814 = vst [vmem:[#allocation42_spill] sm:$0xff] %v17608_v32  ;;  %v9322_v54 = vld [vmem:[#allocation2 + $0x7c] sm:$0xf]  ;;  %v10147_v14 = vrot.slane %v10145_v15, 4  ;;  %v10162_v12 = vrot.slane %v9317_v24, 5 }
 0x456   : > { %v17604_v4 = vsel %vm14878_vm5, %v10133_v31, %v10134_v48  ;;  %v17618_v48 = vsel %vm14878_vm5, %v10140_v44, %v10141_v56  ;;  %v10148_v31 = vrot.slane %v9311_v34, 5  ;;  %v12202_v44 = vrot.slane %v10057_v6, 9  ;;  %v9323_v56 = vld [vmem:[#allocation2 + $0x80] sm:$0x1]  ;;  %v10059_v32 = vld [vmem:[#allocation2 + $0x78] sm:$0xe] }
 0x457   : > { %18813 = vst [vmem:[#allocation41_spill] sm:$0xff] %v17604_v4  ;;  %18816 = vst [vmem:[#allocation44_spill] sm:$0xff] %v17618_v48  ;;  %v10154_v4 = vrot.slane %v10152_v60, 4  ;;  %v10159_v34 = vrot.slane %v17600_v26, 5  ;;  %v17635_v53 = vsel %vm14878_vm5, %v12201_v50, %v10152_v60  ;;  %v10166_v48 = vrot.slane %v17612_v2, 5  ;;  %v14347_v50 = vld [vmem:[%s18513_s3 + $0x148] sm:$0xff]  }
 0x458   : > { %v17631_v39 = vsel %vm14878_vm5, %v10147_v14, %v10148_v31  ;;  %v12203_v14 = vrot.slane %v10058_v17, 9  ;;  %v10169_v2 = vrot.slane %v9320_v51, 5  ;;  %v10061_v58 = vld [vmem:[#allocation2 + $0x90] sm:$0xe]  ;;  %v9329_v24 = vld [vmem:[#allocation2 + $0x98] sm:$0x1] }
 0x459   : > { %13389 = vmatmul.mubr.bf16.gmra.mrb[28].mxu1 %v14344_v11  ;;  %v17626_v11 = vsel %vm14878_vm5, %v12200_v3, %v10145_v15  ;;  %18818 = vst [vmem:[#allocation46_spill] sm:$0xff] %v17631_v39  ;;  %v9326_v15 = vld [vmem:[#allocation2 + $0x8c] sm:$0x1]  ;;  %v10161_v26 = vrot.slane %v10159_v34, 4  ;;  %v17651_v31 = vsel %vm14878_vm5, %v12202_v44, %v10159_v34  ;;  %v10168_v60 = vrot.slane %v10166_v48, 4  ;;  %v14348_v51 = vld [vmem:[%s18513_s3 + $0x150] sm:$0xff]  }
 0x45a   : > { %13408 = vmatprep.mubr.bf16.mxu1 %v17425_v21  ;;  %v10155_v21 = vrot.slane %v17593_v45, 5  ;;  %18817 = vst [vmem:[#allocation45_spill] sm:$0xff] %v17626_v11  ;;  %v9325_v45 = vld [vmem:[#allocation2 + $0x88] sm:$0xf]  ;;  %18819 = vst [vmem:[#allocation47_spill] sm:$0xff] %v17651_v31  ;;  %v17659_v17 = vsel %vm14878_vm5, %v12203_v14, %v10166_v48  ;;  %v10173_v11 = vrot.slane %v9322_v54, 5 }
 0x45b   : > { %v10060_v3 = vld [vmem:[#allocation2 + $0x84] sm:$0xe]  ;;  %v9328_v39 = vld [vmem:[#allocation2 + $0x94] sm:$0xf]  ;;  %18821 = vst [vmem:[#allocation49_spill] sm:$0xff] %v17659_v17  ;;  %v17666_v34 = vsel %vm14878_vm5, %v10168_v60, %v10169_v2  ;;  %v10183_v54 = vrot.slane %v9326_v15, 5 }
 0x45c   : > { %v17642_v6 = vsel %vm14878_vm5, %v10154_v4, %v10155_v21  ;;  %v17655_v4 = vsel %vm14878_vm5, %v10161_v26, %v10162_v12  ;;  %v12204_v21 = vrot.slane %v10059_v32, 9  ;;  %v9331_v44 = vld [vmem:[#allocation2 + $0xa0] sm:$0xf]  ;;  %18822 = vst [vmem:[#allocation50_spill] sm:$0xff] %v17666_v34  ;;  %v10176_v26 = vrot.slane %v9323_v56, 5 }
 0x45d   : > { %18820 = vst [vmem:[#allocation48_spill] sm:$0xff] %v17655_v4  ;;  %v10180_v12 = vrot.slane %v9325_v45, 5  ;;  %v10175_v48 = vrot.slane %v10173_v11, 4  ;;  %v10062_v14 = vld [vmem:[#allocation2 + $0x9c] sm:$0xe]  ;;  %v12206_v56 = vrot.slane %v10061_v58, 9 }
 0x45e   : > { %v9332_v2 = vld [vmem:[#allocation2 + $0xa4] sm:$0x1]  ;;  %v17677_v45 = vsel %vm14878_vm5, %v12204_v21, %v10173_v11  ;;  %v9334_v60 = vld [vmem:[#allocation2 + $0xac] sm:$0xf]  ;;  %v9335_v4 = vld [vmem:[#allocation2 + $0xb0] sm:$0x1] }
 0x45f   : > { %v10190_v32 = vrot.slane %v9329_v24, 5  ;;  %v10194_v34 = vrot.slane %v9331_v44, 5  ;;  %v9337_v17 = vld [vmem:[#allocation2 + $0xb8] sm:$0xf]  ;;  %v12207_v21 = vrot.slane %v10062_v14, 9 }
 0x460   : > { %v10063_v31 = vld [vmem:[#allocation2 + $0xa8] sm:$0xe]  ;;  %v9340_v11 = vld [vmem:[#allocation2 + $0xc4] sm:$0xf] }
 0x461   : > { %13409 = vmatmul.mubr.bf16.vlgmr.msra.gmra.mrb[0].mxu1 %v17455_v16  ;;  %v12205_v16 = vrot.slane %v10060_v3, 9  ;;  %v17681_v3 = vsel %vm14878_vm5, %v10175_v48, %v10176_v26  ;;  %v18826_v26 = vshll.u32 %v17239_v63, 16  ;;  %v10196_v44 = vrot.slane %v10194_v34, 4 }
 0x462   : > { %13412 = vmatprep.mubr.bf16.mxu1 %v17479_v57  ;;  %13441 = vmatpush3.bf16.msra.mxu1 %v17439_v27  ;;  %v10182_v57 = vrot.slane %v10180_v12, 4  ;;  %v10187_v27 = vrot.slane %v9328_v39, 5  ;;  %18823 = vst [vmem:[#allocation51_spill] sm:$0xff] %v17681_v3  ;;  %v10208_v3 = vrot.slane %v9337_v17, 5  ;;  %v7688_v17 = vld [vmem:[#allocation2 + $0x84] sm:$0xf] }
 0x463   : > { %13442 = vmatprep.subr.bf16.mxu1 %v14347_v50  ;;  %v17685_v15 = vsel %vm14878_vm5, %v12205_v16, %v10180_v12  ;;  %v17695_v48 = vrot.slane %v18826_v26, 5  ;;  %v10197_v12 = vrot.slane %v9332_v2, 5  ;;  %v10064_v16 = vld [vmem:[#allocation2 + $0xb4] sm:$0xe]  ;;  %v17712_v26 = vsel %vm14878_vm5, %v12207_v21, %v10194_v34 }
 0x464   : > { %18824 = vst [vmem:[#allocation52_spill] sm:$0xff] %v17685_v15  ;;  %v17691_v58 = vsel %vm14878_vm5, %v10182_v57, %v10183_v54  ;;  %v10189_v39 = vrot.slane %v10187_v27, 4  ;;  %v14349_v54 = vld [vmem:[%s18513_s3 + $0x158] sm:$0xff]   ;;  %v10201_v2 = vrot.slane %v9334_v60, 5  ;;  %v12208_v15 = vrot.slane %v10063_v31, 9 }
 0x465   : > { %18825 = vst [vmem:[#allocation53_spill] sm:$0xff] %v17691_v58  ;;  %v9338_v57 = vld [vmem:[#allocation2 + $0xbc] sm:$0x1]  ;;  %v17718_v58 = vsel %vm14878_vm5, %v10196_v44, %v10197_v12  ;;  %v10204_v34 = vrot.slane %v9335_v4, 5  ;;  %v12209_v21 = vrot.slane %v10064_v16, 9  ;;  %v18827_v60 = vshrl.u32 %v17239_v63, 16 }
 0x466   : > { %13443 = vmatpush3.bf16.msra.mxu1 %v14347_v50  ;;  %v17704_v50 = vsel %vm14878_vm5, %v12206_v56, %v10187_v27  ;;  %v17708_v14 = vsel %vm14878_vm5, %v10189_v39, %v10190_v32  ;;  %v10065_v56 = vld [vmem:[#allocation2 + $0xc0] sm:$0xe]  ;;  %v9341_v27 = vld [vmem:[#allocation2 + $0xc8] sm:$0x1]  ;;  %v10203_v39 = vrot.slane %v10201_v2, 4  ;;  %v10210_v44 = vrot.slane %v10208_v3, 4 }
 0x467   : > { %13444 = vmatprep.subr.bf16.mxu1 %v14348_v51  ;;  %v7938_v24 = vrot.slane %v18827_v60, 4  ;;  %v10211_v12 = vrot.slane %v9338_v57, 5  ;;  %v10215_v31 = vrot.slane %v9340_v11, 5  ;;  %v17731_v32 = vsel %vm14878_vm5, %v12208_v15, %v10201_v2 }
 0x468   : > { %v17739_v63 = vsel %vm14878_vm5, %v12209_v21, %v10208_v3  ;;  %v12210_v4 = vrot.slane %v10065_v56, 9  ;;  %v10218_v57 = vrot.slane %v9341_v27, 5  ;;  %v18828_v15 = vshll.u32 %v17505_v13, 16 }
 0x469   : > { %13413 = vmatmul.mubr.bf16.gmra.mrb[4].mxu1 %v17496_v37  ;;  %v14350_v37 = vld [vmem:[%s18513_s3 + $0x160] sm:$0xff]   ;;  %v17745_v11 = vsel %vm14878_vm5, %v10210_v44, %v10211_v12  ;;  %v10217_v16 = vrot.slane %v10215_v31, 4  ;;  %v7947_v56 = vshrl.u32 %v7688_v17, 16  ;;  %v7950_v21 = vshll.u32 %v7688_v17, 16 }
 0x46a   : > { %13416 = vmatprep.mubr.bf16.mxu1 %v17509_v41  ;;  %13445 = vmatpush3.bf16.msra.mxu1 %v14348_v51  ;;  %v17735_v41 = vsel %vm14878_vm5, %v10203_v39, %v10204_v34  ;;  %v7928_v2 = vrot.slane %v18828_v15, 5  ;;  %v7956_v39 = vshll.u32 %v17258_v33, 16  ;;  %v7960_v34 = vshrl.u32 %v17258_v33, 16 }
 0x46b   : > { %13446 = vmatprep.subr.bf16.mxu1 %v14349_v54  ;;  %v12240_v51 = vcombine.low %v17731_v32, %v17735_v41  ;;  %v12241_v3 = vcombine.low %v17739_v63, %v17745_v11  ;;  %v17755_v60 = vsel %vm14878_vm5, %v12210_v4, %v10215_v31  ;;  %v17759_v27 = vsel %vm14878_vm5, %v10217_v16, %v10218_v57  ;;  %v14351_v31 = vld [vmem:[%s18513_s3 + $0x168] sm:$0xff]   ;;  %v12253_v11 = vld [vmem:[%s14513_s29 + $0x10] sm:$0xf] }
 0x46c   : > { %v18829_v13 = vor.u32 %v17526_v7, %v17524_v0  ;;  %v18830_v33 = vor.u32 %v17555_v25, %v17535_v43  ;;  %v12242_v17 = vcombine.low %v17755_v60, %v17759_v27  ;;  %v18831_v0 = vsel %vm14545_vm2, %v17493_v8, %v17513_v28  ;;  %v7691_v8 = vld [vmem:[#allocation2 + $0x90] sm:$0xf] }
 0x46d   : > { %v18832_v7 = vsel %vm14545_vm2, %v17488_v49, %v17468_v23  ;;  %v18834_v16 = vshll.u32 %v17247_v42, 16  ;;  %v7942_v15 = vshll.u32 %v17249_v22, 16  ;;  %v7887_v23 = vsel %vm14545_vm2, %v17533_v19, %v17477_v10  ;;  %v14352_v10 = vld [vmem:[%s18513_s3 + $0x170] sm:$0xff]  }
 0x46e   : > { %13447 = vmatpush3.bf16.msra.mxu1 %v14349_v54  ;;  %v7906_v44 = vrot.slane %v18829_v13, 4  ;;  %v7916_v12 = vrot.slane %v18830_v33, 4  ;;  %v7939_v54 = vor.u32 %v7938_v24, %v17695_v48  ;;  %v12042_v25 = vcombine.low %v18832_v7, %v18831_v0  ;;  %v12261_v60 = vld [vmem:[%s14513_s29 + $0x30] sm:$0xf] }
 0x46f   : > { %13448 = vmatprep.subr.bf16.mxu1 %v14350_v37  ;;  %v18833_v24 = vshll.u32 %v17216_v30, 16  ;;  %v7920_v57 = vrot.slane %v18834_v16, 5  ;;  %v17789_v13 = vrot.slane %v7956_v39, 5  ;;  %v7962_v33 = vrot.slane %v7960_v34, 4  ;;  %v14353_v16 = vld [vmem:[%s18513_s3 + $0x178] sm:$0xff]  }
 0x470   : > { %v7929_v30 = vor.u32 %v7928_v2, %v17569_v38  ;;  %v7949_v49 = vrot.slane %v7947_v56, 4  ;;  %v7952_v28 = vrot.slane %v7950_v21, 5  ;;  %v7911_v22 = vsel %vm14545_vm2, %v7906_v44, %v17535_v43 }
 0x471   : > { %v7896_v4 = vrot.slane %v18833_v24, 5  ;;  %13417 = vmatmul.mubr.bf16.gmra.mrb[8].mxu1 %v17511_v20  ;;  %v7921_v20 = vsel %vm14545_vm2, %v7916_v12, %v7920_v57  ;;  %v7940_v39 = vrot.slane %v7939_v54, 4  ;;  %v7971_v19 = vshrl.u32 %v7691_v8, 16 }
 0x472   : > { %13420 = vmatprep.mubr.bf16.mxu1 %v12042_v25  ;;  %13449 = vmatpush3.bf16.msra.mxu1 %v14350_v37  ;;  %v7974_v38 = vshll.u32 %v7691_v8, 16  ;;  %v7980_v37 = vshll.u32 %v17269_v52, 16  ;;  %v7984_v2 = vshrl.u32 %v17269_v52, 16  ;;  %v7944_v34 = vrot.slane %v7942_v15, 5  ;;  %v14424_v25 = vld [vmem:[#allocation2 + $0x8c] sm:$0x1] }
 0x473   : > { %v7897_v42 = vsel %vm14545_vm2, %v17540_v18, %v7896_v4  ;;  %13450 = vmatprep.subr.bf16.mxu1 %v14351_v31  ;;  %v7694_v18 = vld [vmem:[#allocation2 + $0x9c] sm:$0xf]  ;;  %v7963_v56 = vor.u32 %v7962_v33, %v17789_v13  ;;  %v8004_v43 = vshll.u32 %v17285_v62, 16  ;;  %v8008_v21 = vshrl.u32 %v17285_v62, 16 }
 0x474   : > { %v12043_v44 = vcombine.low %v7887_v23, %v7897_v42  ;;  %v12044_v12 = vcombine.low %v7911_v22, %v7921_v20  ;;  %v7930_v54 = vrot.slane %v7929_v30, 4  ;;  %v7953_v0 = vor.u32 %v7952_v28, %v7949_v49 }
 0x475   : > { %v7945_v7 = vsel %vm14545_vm2, %v7940_v39, %v7944_v34  ;;  %v7966_v24 = vshll.u32 %v14424_v25, 16  ;;  %v7995_v4 = vshrl.u32 %v7694_v18, 16  ;;  %v7998_v52 = vshll.u32 %v7694_v18, 16  ;;  %v7697_v39 = vld [vmem:[#allocation2 + $0xa8] sm:$0xf] }
 0x476   : > { %13451 = vmatpush3.bf16.msra.mxu1 %v14351_v31  ;;  %v7973_v57 = vrot.slane %v7971_v19, 4  ;;  %v7976_v15 = vrot.slane %v7974_v38, 5  ;;  %v17817_v62 = vrot.slane %v7980_v37, 5  ;;  %v7986_v33 = vrot.slane %v7984_v2, 4  ;;  %v17827_v19 = vld [vmem:[%s18513_s3 + $0x180] sm:$0xff]  }
 0x477   : > { %13452 = vmatprep.subr.bf16.mxu1 %v14352_v10  ;;  %v7964_v8 = vrot.slane %v7963_v56, 4  ;;  %v17819_v31 = vrot.slane %v8004_v43, 5  ;;  %v8010_v23 = vrot.slane %v8008_v21, 4  ;;  %v7935_v30 = vsel %vm14545_vm2, %v7930_v54, %v17695_v48  ;;  %v14425_v2 = vld [vmem:[#allocation2 + $0xac] sm:$0xf] }
 0x478   : > { %v7954_v49 = vrot.slane %v7953_v0, 4  ;;  %v12045_v28 = vcombine.low %v7935_v30, %v7945_v7  ;;  %v7968_v42 = vrot.slane %v7966_v24, 5  ;;  %v7997_v22 = vrot.slane %v7995_v4, 4  ;;  %v7700_v48 = vld [vmem:[#allocation2 + $0xb4] sm:$0xf] }
 0x479   : > { %13421 = vmatmul.mubr.bf16.gmra.mrb[12].mxu1 %v12043_v44  ;;  %v8000_v20 = vrot.slane %v7998_v52, 5  ;;  %v7977_v38 = vor.u32 %v7976_v15, %v7973_v57  ;;  %v7987_v37 = vor.u32 %v7986_v33, %v17817_v62  ;;  %v8028_v18 = vshll.u32 %v14425_v2, 16  ;;  %v14427_v24 = vld [vmem:[#allocation2 + $0xa4] sm:$0x1] }
 0x47a   : > { %13424 = vmatprep.mubr.bf16.mxu1 %v12044_v12  ;;  %13453 = vmatpush3.bf16.msra.mxu1 %v14352_v10  ;;  %v8032_v34 = vshrl.u32 %v14425_v2, 16  ;;  %v7969_v10 = vsel %vm14545_vm2, %v7964_v8, %v7968_v42  ;;  %v8011_v56 = vor.u32 %v8010_v23, %v17819_v31  ;;  %v8052_v43 = vshll.u32 %v17312_v29, 16  ;;  %v14426_v12 = vld [vmem:[#allocation2 + $0x98] sm:$0x1] }
 0x47b   : > { %13454 = vmatprep.subr.bf16.mxu1 %v14353_v16  ;;  %v8056_v21 = vshrl.u32 %v17312_v29, 16  ;;  %v7959_v44 = vsel %vm14545_vm2, %v7954_v49, %v17789_v13  ;;  %v7990_v54 = vshll.u32 %v14426_v12, 16  ;;  %v8019_v0 = vshrl.u32 %v7697_v39, 16 }
 0x47c   : > { %v8022_v7 = vshll.u32 %v7697_v39, 16  ;;  %v8001_v25 = vor.u32 %v8000_v20, %v7997_v22  ;;  %v8014_v4 = vshll.u32 %v14427_v24, 16  ;;  %v8043_v52 = vshrl.u32 %v7700_v48, 16 }
 0x47d   : > { %v8046_v57 = vshll.u32 %v7700_v48, 16  ;;  %v12046_v15 = vcombine.low %v7959_v44, %v7969_v10  ;;  %v7988_v33 = vrot.slane %v7987_v37, 4  ;;  %v8030_v8 = vrot.slane %v8028_v18, 5  ;;  %v7703_v48 = vld [vmem:[#allocation2 + $0xc0] sm:$0xf] }
 0x47e   : > { %13455 = vmatpush3.bf16.msra.mxu1 %v14353_v16  ;;  %v8034_v29 = vrot.slane %v8032_v34, 4  ;;  %v7978_v23 = vrot.slane %v7977_v38, 4  ;;  %v8012_v30 = vrot.slane %v8011_v56, 4  ;;  %v8054_v13 = vrot.slane %v8052_v43, 5  ;;  %v14428_v18 = vld [vmem:[#allocation2 + $0xc4] sm:$0xf] }
 0x47f   : > { %13488 = vmatprep.subr.bf16.mxu1 %v17827_v19  ;;  %v8058_v49 = vrot.slane %v8056_v21, 4  ;;  %v7992_v42 = vrot.slane %v7990_v54, 5  ;;  %v8021_v39 = vrot.slane %v8019_v0, 4  ;;  %v8024_v16 = vrot.slane %v8022_v7, 5  ;;  %v14429_v44 = vld [vmem:[#allocation2 + $0xb0] sm:$0x1] }
 0x480   : > { %v8002_v22 = vrot.slane %v8001_v25, 4  ;;  %v8016_v20 = vrot.slane %v8014_v4, 5  ;;  %v8045_v2 = vrot.slane %v8043_v52, 4  ;;  %v8048_v12 = vrot.slane %v8046_v57, 5  ;;  %v14430_v52 = vld [vmem:[#allocation2 + $0xbc] sm:$0x1] }
 0x481   : > { %13425 = vmatmul.mubr.bf16.gmra.mrb[16].mxu1 %v12045_v28  ;;  %v7993_v10 = vsel %vm14545_vm2, %v7988_v33, %v7992_v42  ;;  %v8035_v37 = vor.u32 %v8034_v29, %v8030_v8  ;;  %v8076_v34 = vshll.u32 %v14428_v18, 16  ;;  %v8080_v28 = vshrl.u32 %v14428_v18, 16  ;;  %v14432_v18 = vld [vmem:[#allocation2 + $0xc8] sm:$0x1] }
 0x482   : > { %13428 = vmatprep.mubr.bf16.mxu1 %v12046_v15  ;;  %v7983_v38 = vsel %vm14545_vm2, %v7978_v23, %v17817_v62  ;;  %v8017_v56 = vsel %vm14545_vm2, %v8012_v30, %v8016_v20  ;;  %v8059_v43 = vor.u32 %v8058_v49, %v8054_v13  ;;  %v8025_v21 = vor.u32 %v8024_v16, %v8021_v39 }
 0x483   : > { %v8038_v54 = vshll.u32 %v14429_v44, 16  ;;  %v8067_v0 = vshrl.u32 %v7703_v48, 16  ;;  %v8070_v7 = vshll.u32 %v7703_v48, 16  ;;  %v12047_v25 = vcombine.low %v7983_v38, %v7993_v10 }
 0x484   : > { %v8007_v24 = vsel %vm14545_vm2, %v8002_v22, %v17819_v31  ;;  %v8049_v4 = vor.u32 %v8048_v12, %v8045_v2  ;;  %v8062_v57 = vshll.u32 %v14430_v52, 16  ;;  %v8036_v33 = vrot.slane %v8035_v37, 4  ;;  %v14431_v2 = vld [vmem:[#allocation2 + $0x10] sm:$0xf] }
 0x485   : > { %v12048_v15 = vcombine.low %v8007_v24, %v8017_v56  ;;  %v8078_v62 = vrot.slane %v8076_v34, 5  ;;  %v8082_v29 = vrot.slane %v8080_v28, 4  ;;  %v8060_v23 = vrot.slane %v8059_v43, 4 }
 0x486   : > { %v8026_v30 = vrot.slane %v8025_v21, 4  ;;  %v8040_v49 = vrot.slane %v8038_v54, 5  ;;  %v8069_v42 = vrot.slane %v8067_v0, 4  ;;  %v8072_v39 = vrot.slane %v8070_v7, 5  ;;  %v8412_v0 = vld [vmem:[#allocation2 + $0xc] sm:$0xe] }
 0x487   : > { %v8050_v16 = vrot.slane %v8049_v4, 4  ;;  %v8064_v20 = vrot.slane %v8062_v57, 5  ;;  %v8083_v31 = vor.u32 %v8082_v29, %v8078_v62  ;;  %v8478_v12 = vrot.slane %v14431_v2, 5  ;;  %v18842_v2 = vld [vmem:[#allocation5_spill] sm:$0xff] }
 0x488   : > { %v8041_v48 = vsel %vm14545_vm2, %v8036_v33, %v8040_v49  ;;  %v8031_v10 = vsel %vm14545_vm2, %v8026_v30, %v8030_v8  ;;  %v8073_v37 = vor.u32 %v8072_v39, %v8069_v42  ;;  %v8086_v34 = vshll.u32 %v14432_v18, 16 }
 0x489   : > { %13429 = vmatmul.mubr.bf16.gmra.mrb[20].mxu1 %v12047_v25  ;;  %v8065_v22 = vsel %vm14545_vm2, %v8060_v23, %v8064_v20  ;;  %v12049_v28 = vcombine.low %v8031_v10, %v8041_v48  ;;  %v8055_v38 = vsel %vm14545_vm2, %v8050_v16, %v8054_v13  ;;  %v8084_v43 = vrot.slane %v8083_v31, 4  ;;  %v14433_v25 = vld [vmem:[#allocation2 + $0x1c] sm:$0xf]  ;;  %v18844_v10 = vld [vmem:[#allocation9_spill] sm:$0xff] }
 0x48a   : > { %13432 = vmatprep.mubr.bf16.mxu1 %v12048_v15  ;;  %v12050_v56 = vcombine.low %v8055_v38, %v8065_v22  ;;  %v8480_v21 = vrot.slane %v8478_v12, 4  ;;  %v8074_v44 = vrot.slane %v8073_v37, 4  ;;  %v8088_v54 = vrot.slane %v8086_v34, 5  ;;  %v14357_v20 = vld [vmem:[%s18513_s3 + $0x198] sm:$0xff]   ;;  %v18839_v22 = vld [vmem:[#allocation18_spill] sm:$0xff] }
 0x48b   : > { %v8481_v7 = vrot.slane %v17398_v5, 5  ;;  %v8485_v24 = vrot.slane %v14433_v25, 5  ;;  %v12060_v4 = vrot.slane %v8412_v0, 9  ;;  %v8413_v5 = vld [vmem:[#allocation2 + $0x18] sm:$0xe]  ;;  %v8488_v23 = vrot.slane %v17406_v36, 5 }
 0x48c   : > { %v8089_v8 = vsel %vm14545_vm2, %v8084_v43, %v8088_v54  ;;  %v8079_v13 = vsel %vm14545_vm2, %v8074_v44, %v8078_v62  ;;  %v12061_v30 = vrot.slane %v8413_v5, 9  ;;  %v14355_v62 = vld [vmem:[%s18513_s3 + $0x188] sm:$0xff]   ;;  %v18835_v16 = vcombine.low %v17188_v47, %v17192_v35  ;;  %v14356_v36 = vld [vmem:[%s18513_s3 + $0x190] sm:$0xff]   ;;  %v14358_v35 = vld [vmem:[%s18513_s3 + $0x1a0] sm:$0xff]  }
 0x48d   : > { %v8482_v52 = vsel %vm14878_vm5, %v8480_v21, %v8481_v7  ;;  %v12051_v57 = vcombine.low %v8079_v13, %v8089_v8  ;;  %v8479_v15 = vsel %vm14878_vm5, %v12060_v4, %v8478_v12  ;;  %v8487_v29 = vrot.slane %v8485_v24, 4  ;;  %v18838_v31 = vld [vmem:[#allocation11_spill] sm:$0xff]  ;;  %v18845_v37 = vld [vmem:[#allocation6_spill] sm:$0xff]  ;;  %v18850_v43 = vld [vmem:[#allocation8_spill] sm:$0xff] }
 0x48e   : > { %v12092_v33 = vcombine.low %v8479_v15, %v8482_v52  ;;  %v8486_v42 = vsel %vm14878_vm5, %v12061_v30, %v8485_v24  ;;  %v18836_v48 = vcombine.low %v17202_v40, %v17209_v61  ;;  %v18837_v47 = vcombine.low %v17213_v46, %v17228_v9  ;;  %v18841_v61 = vld [vmem:[#allocation19_spill] sm:$0xff]  ;;  %v14360_v9 = vld [vmem:[%s18513_s3 + $0x1b0] sm:$0xff]   ;;  %v18851_v21 = vld [vmem:[#allocation4_spill] sm:$0xff] }
 0x48f   : > { %v8489_v49 = vsel %vm14878_vm5, %v8487_v29, %v8488_v23  ;;  %v18840_v40 = vcombine.low %v18838_v31, %v18839_v22  ;;  %v18843_v46 = vcombine.low %v18841_v61, %v18842_v2  ;;  %v14361_v12 = vld [vmem:[%s18513_s3 + $0x1b8] sm:$0xff]   ;;  %v18846_v18 = vcombine.low %v18844_v10, %v18845_v37  ;;  %v18854_v0 = vld [vmem:[#allocation12_spill] sm:$0xff]  ;;  %v18856_v8 = vld [vmem:[#allocation13_spill] sm:$0xff] }
 0x490   : > { %v12093_v39 = vcombine.low %v8486_v42, %v8489_v49  ;;  %v18847_v34 = vld [vmem:[#allocation7_spill] sm:$0xff]  ;;  %v18852_v44 = vcombine.low %v18850_v43, %v18851_v21  ;;  %v18857_v25 = vld [vmem:[#allocation14_spill] sm:$0xff]  ;;  %v18860_v52 = vld [vmem:[#allocation16_spill] sm:$0xff]  ;;  %v9355_v37 = vshll.u32 %v17507_v59, 16 }
 0x491   : > { %13433 = vmatmul.mubr.bf16.gmra.mrb[24].mxu1 %v12049_v28  ;;  %v18848_v28 = vld [vmem:[#allocation10_spill] sm:$0xff]  ;;  %v18853_v54 = vld [vmem:[#allocation3_spill] sm:$0xff]  ;;  %v18858_v24 = vcombine.low %v18856_v8, %v18857_v25  ;;  %v18863_v15 = vld [vmem:[#allocation20_spill] sm:$0xff] }
 0x492   : > { %13436 = vmatprep.mubr.bf16.mxu1 %v12050_v56  ;;  %v18849_v38 = vcombine.low %v18847_v34, %v18848_v28  ;;  %v14364_v56 = vld [vmem:[%s18513_s3 + $0x1c0] sm:$0xff]   ;;  %v18855_v7 = vcombine.low %v18853_v54, %v18854_v0  ;;  %v18859_v4 = vld [vmem:[#allocation15_spill] sm:$0xff]  ;;  %v18865_v29 = vld [vmem:[#allocation21_spill] sm:$0xff]  ;;  %v9357_v21 = vrot.slane %v9355_v37, 5 }
 0x493   : > { %v18861_v13 = vcombine.low %v18859_v4, %v18860_v52  ;;  %v18866_v5 = vld [vmem:[#allocation22_spill] sm:$0xff]  ;;  %v14362_v30 = vld [vmem:[#allocation2 + $0x18] sm:$0xff]   ;;  %v18869_v42 = vld [vmem:[#allocation24_spill] sm:$0xff] }
 0x494   : > { %v18867_v23 = vcombine.low %v18865_v29, %v18866_v5  ;;  %v18868_v49 = vld [vmem:[#allocation23_spill] sm:$0xff]  ;;  %v14379_v22 = vld [vmem:[%s18513_s3 + $0x1e8] sm:$0xff]   ;;  %v14382_v61 = vld [vmem:[%s18513_s3 + $0x1f0] sm:$0xff]  }
 0x495   : > { %v14369_v31 = vld [vmem:[#allocation2 + $0x54] sm:$0xff]   ;;  %v14372_v2 = vld [vmem:[#allocation2 + $0x6c] sm:$0xff]   ;;  %v9300_v34 = vld [vmem:[#allocation2 + $0x24] sm:$0xf] }
 0x496   : > { %v9297_v10 = vld [vmem:[#allocation2 + $0x18] sm:$0xf]  ;;  %v14375_v28 = vld [vmem:[#allocation2 + $0x84] sm:$0xff]   ;;  %v14377_v43 = vld [vmem:[#allocation2 + $0x90] sm:$0xff]   ;;  %v9370_v54 = vshrl.u32 %v9300_v34, 16  ;;  %v9373_v0 = vshll.u32 %v9300_v34, 16 }
 0x497   : > { %v18871_v25 = vld [vmem:[#allocation26_spill] sm:$0xff]  ;;  %v18872_v29 = vld [vmem:[#allocation25_spill] sm:$0xff] }
 0x498   : > { %v9375_v52 = vrot.slane %v9373_v0, 5  ;;  %v9365_v5 = vshll.u32 %v18872_v29, 16 }
 0x499   : > { %13437 = vmatmul.mubr.bf16.gmra.mrb[28].mxu1 %v12051_v57  ;;  %v18862_v57 = vld [vmem:[#allocation17_spill] sm:$0xff] }
 0x49a   : > { %13456 = vmatprep.mubr.bf16.mxu1 %v12092_v33  ;;  %v18864_v33 = vcombine.low %v18862_v57, %v18863_v15  ;;  %v9303_v57 = vld [vmem:[#allocation2 + $0x30] sm:$0xf]  ;;  %v14378_v15 = vld [vmem:[#allocation2 + $0x9c] sm:$0xff]  }
 0x4a1   : > { %13457 = vmatmul.mubr.bf16.vlgmr.msra.gmra.mrb[0].mxu1 %v12093_v39  ;;  %v18870_v39 = vcombine.low %v18868_v49, %v18869_v42  ;;  %v9394_v49 = vshrl.u32 %v9303_v57, 16 }
 0x4a2   : > { %13460 = vmatprep.mubr.bf16.mxu1 %v18835_v16  ;;  %13489 = vmatpush3.bf16.msra.mxu1 %v17827_v19  ;;  %v14359_v19 = vld [vmem:[%s18513_s3 + $0x1a8] sm:$0xff]  }
 0x4a3   : > { %13490 = vmatprep.subr.bf16.mxu1 %v14355_v62  ;;  %v14367_v16 = vld [vmem:[%s18513_s3 + $0x1c8] sm:$0xff]  }
 0x4a6   : > { %13491 = vmatpush3.bf16.msra.mxu1 %v14355_v62  ;;  %v14363_v62 = vld [vmem:[#allocation2 + $0x24] sm:$0xff]  }
 0x4a7   : > { %13492 = vmatprep.subr.bf16.mxu1 %v14356_v36 }
 0x4a9   : > { %13461 = vmatmul.mubr.bf16.gmra.mrb[4].mxu1 %v18836_v48  ;;  %v14366_v48 = vld [vmem:[#allocation2 + $0x3c] sm:$0xff]  }
 0x4aa   : > { %13464 = vmatprep.mubr.bf16.mxu1 %v18837_v47  ;;  %13493 = vmatpush3.bf16.msra.mxu1 %v14356_v36  ;;  %v14365_v36 = vld [vmem:[#allocation2 + $0x30] sm:$0xff]   ;;  %v14373_v47 = vld [vmem:[%s18513_s3 + $0x1d8] sm:$0xff]  }
 0x4ab   : > { %13494 = vmatprep.subr.bf16.mxu1 %v14357_v20 }
 0x4ae   : > { %13495 = vmatpush3.bf16.msra.mxu1 %v14357_v20  ;;  %v14370_v20 = vld [vmem:[%s18513_s3 + $0x1d0] sm:$0xff]  }
 0x4af   : > { %13496 = vmatprep.subr.bf16.mxu1 %v14358_v35 }
 0x4b1   : > { %13465 = vmatmul.mubr.bf16.gmra.mrb[8].mxu1 %v18840_v40  ;;  %v14371_v40 = vld [vmem:[#allocation2 + $0x60] sm:$0xff]  }
 0x4b2   : > { %13468 = vmatprep.mubr.bf16.mxu1 %v18843_v46  ;;  %13497 = vmatpush3.bf16.msra.mxu1 %v14358_v35  ;;  %v14368_v35 = vld [vmem:[#allocation2 + $0x48] sm:$0xff]   ;;  %v14385_v46 = vld [vmem:[%s18513_s3 + $0x1f8] sm:$0xff]  }
 0x4b3   : > { %13498 = vmatprep.subr.bf16.mxu1 %v14359_v19 }
 0x4b6   : > { %13499 = vmatpush3.bf16.msra.mxu1 %v14359_v19  ;;  %v14376_v19 = vld [vmem:[%s18513_s3 + $0x1e0] sm:$0xff]  }
 0x4b7   : > { %13500 = vmatprep.subr.bf16.mxu1 %v14360_v9 }
 0x4b9   : > { %13469 = vmatmul.mubr.bf16.gmra.mrb[12].mxu1 %v18846_v18  ;;  %v9359_v18 = vshrl.u32 %v17507_v59, 16  ;;  %v9372_v59 = vrot.slane %v9370_v54, 4 }
 0x4ba   : > { %13472 = vmatprep.mubr.bf16.mxu1 %v18849_v38  ;;  %13501 = vmatpush3.bf16.msra.mxu1 %v14360_v9  ;;  %v14374_v9 = vld [vmem:[#allocation2 + $0x78] sm:$0xff]   ;;  %v9346_v38 = vshrl.u32 %v9297_v10, 16 }
 0x4bb   : > { %13502 = vmatprep.subr.bf16.mxu1 %v14361_v12 }
 0x4be   : > { %13503 = vmatpush3.bf16.msra.mxu1 %v14361_v12  ;;  %v17962_v12 = vld [vmem:[%s18513_s3 + $0x200] sm:$0xff]  }
 0x4bf   : > { %13536 = vmatprep.subr.bf16.mxu1 %v14364_v56 }
 0x4c1   : > { %13473 = vmatmul.mubr.bf16.gmra.mrb[16].mxu1 %v18852_v44  ;;  %v9361_v44 = vrot.slane %v9359_v18, 4  ;;  %v14381_v18 = vld [vmem:[#allocation2 + $0xb4] sm:$0xff]  }
 0x4c2   : > { %13476 = vmatprep.mubr.bf16.mxu1 %v18855_v7  ;;  %v9348_v7 = vrot.slane %v9346_v38, 4  ;;  %v18875_v38 = vld [vmem:[#allocation29_spill] sm:$0xff] }
 0x4c3   : > { %v9362_v4 = vor.u32 %v9361_v44, %v9357_v21  ;;  %v14383_v44 = vld [vmem:[#allocation2 + $0xc0] sm:$0xff]  }
 0x4c5   : > { %v9363_v42 = vrot.slane %v9362_v4, 4 }
 0x4c9   : > { %13477 = vmatmul.mubr.bf16.gmra.mrb[20].mxu1 %v18858_v24  ;;  %v9379_v24 = vshll.u32 %v18871_v25, 16 }
 0x4ca   : > { %13480 = vmatprep.mubr.bf16.mxu1 %v18861_v13  ;;  %v9383_v13 = vshrl.u32 %v18871_v25, 16 }
 0x4d1   : > { %13481 = vmatmul.mubr.bf16.gmra.mrb[24].mxu1 %v18864_v33 }
 0x4d2   : > { %13484 = vmatprep.mubr.bf16.mxu1 %v18867_v23  ;;  %v14380_v23 = vld [vmem:[#allocation2 + $0xa8] sm:$0xff]  }
 0x4d9   : > { %13485 = vmatmul.mubr.bf16.gmra.mrb[28].mxu1 %v18870_v39  ;;  %v9376_v39 = vor.u32 %v9375_v52, %v9372_v59  ;;  %v18877_v52 = vld [vmem:[#allocation31_spill] sm:$0xff] }
 0x4da   : > { %13504 = vmatprep.mubr.bf16.mxu1 %v14362_v30  ;;  %v17970_v30 = vrot.slane %v9379_v24, 5  ;;  %v9309_v24 = vld [vmem:[#allocation2 + $0x48] sm:$0xf]  ;;  %v9455_v29 = vshrl.u32 %v18877_v52, 16 }
 0x4e1   : > { %13505 = vmatmul.mubr.bf16.vlgmr.msra.gmra.mrb[0].mxu1 %v14363_v62  ;;  %v9385_v62 = vrot.slane %v9383_v13, 4  ;;  %v9451_v13 = vshll.u32 %v18877_v52, 16 }
 0x4e2   : > { %13508 = vmatprep.mubr.bf16.mxu1 %v14365_v36  ;;  %13537 = vmatpush3.bf16.msra.mxu1 %v14364_v56  ;;  %v9349_v56 = vshll.u32 %v9297_v10, 16  ;;  %v18873_v36 = vld [vmem:[#allocation27_spill] sm:$0xff] }
 0x4e3   : > { %13538 = vmatprep.subr.bf16.mxu1 %v14367_v16 }
 0x4e4   : > { %v9351_v8 = vrot.slane %v9349_v56, 5  ;;  %v9413_v56 = vshll.u32 %v18875_v38, 16 }
 0x4e6   : > { %13539 = vmatpush3.bf16.msra.mxu1 %v14367_v16  ;;  %v9352_v33 = vor.u32 %v9351_v8, %v9348_v7  ;;  %v9397_v16 = vshll.u32 %v9303_v57, 16  ;;  %v18876_v7 = vld [vmem:[#allocation30_spill] sm:$0xff] }
 0x4e7   : > { %13540 = vmatprep.subr.bf16.mxu1 %v14370_v20  ;;  %v9427_v8 = vshll.u32 %v18876_v7, 16  ;;  %v9431_v25 = vshrl.u32 %v18876_v7, 16  ;;  %v17994_v57 = vld [vmem:[#allocation2 + $0xd0] sm:$0xf] }
 0x4e9   : > { %13509 = vmatmul.mubr.bf16.gmra.mrb[4].mxu1 %v14366_v48  ;;  %v9407_v48 = vshrl.u32 %v18873_v36, 16 }
 0x4ea   : > { %13512 = vmatprep.mubr.bf16.mxu1 %v14368_v35  ;;  %13541 = vmatpush3.bf16.msra.mxu1 %v14370_v20  ;;  %v9403_v20 = vshll.u32 %v18873_v36, 16  ;;  %v9367_v35 = vrot.slane %v9365_v5, 5  ;;  %v10066_v5 = vld [vmem:[#allocation2 + $0xcc] sm:$0xe] }
 0x4eb   : > { %13542 = vmatprep.subr.bf16.mxu1 %v14373_v47  ;;  %v9409_v37 = vrot.slane %v9407_v48, 4  ;;  %v12211_v36 = vrot.slane %v10066_v5, 9  ;;  %v18004_v48 = vrot.slane %v9427_v8, 5 }
 0x4ec   : > { %v17980_v10 = vrot.slane %v9403_v20, 5 }
 0x4ee   : > { %13543 = vmatpush3.bf16.msra.mxu1 %v14373_v47  ;;  %v9353_v47 = vrot.slane %v9352_v33, 4  ;;  %v9410_v33 = vor.u32 %v9409_v37, %v17980_v10 }
 0x4ef   : > { %13544 = vmatprep.subr.bf16.mxu1 %v14376_v19 }
 0x4f0   : > { %v9358_v34 = vsel %vm14545_vm2, %v9353_v47, %v9357_v21  ;;  %v9433_v47 = vrot.slane %v9431_v25, 4  ;;  %v9411_v8 = vrot.slane %v9410_v33, 4  ;;  %v18879_v25 = vld [vmem:[#allocation34_spill] sm:$0xff] }
 0x4f1   : > { %13513 = vmatmul.mubr.bf16.gmra.mrb[8].mxu1 %v14369_v31 }
 0x4f2   : > { %13516 = vmatprep.mubr.bf16.mxu1 %v14371_v40  ;;  %13545 = vmatpush3.bf16.msra.mxu1 %v14376_v19  ;;  %v18874_v19 = vld [vmem:[#allocation28_spill] sm:$0xff]  ;;  %v9306_v40 = vld [vmem:[#allocation2 + $0x3c] sm:$0xf]  ;;  %v9434_v52 = vor.u32 %v9433_v47, %v18004_v48 }
 0x4f3   : > { %13546 = vmatprep.subr.bf16.mxu1 %v14379_v22  ;;  %v9389_v31 = vshll.u32 %v18874_v19, 16  ;;  %v9421_v0 = vshll.u32 %v9306_v40, 16  ;;  %v14384_v19 = vld [vmem:[#allocation2 + $0xcc] sm:$0xff]  }
 0x4f5   : > { %v9423_v20 = vrot.slane %v9421_v0, 5 }
 0x4f6   : > { %13547 = vmatpush3.bf16.msra.mxu1 %v14379_v22  ;;  %v9396_v22 = vrot.slane %v9394_v49, 4 }
 0x4f7   : > { %13548 = vmatprep.subr.bf16.mxu1 %v14382_v61 }
 0x4f9   : > { %13517 = vmatmul.mubr.bf16.gmra.mrb[12].mxu1 %v14372_v2  ;;  %v17977_v2 = vrot.slane %v9376_v39, 4  ;;  %v18878_v39 = vld [vmem:[#allocation37_spill] sm:$0xff] }
 0x4fa   : > { %13520 = vmatprep.mubr.bf16.mxu1 %v14374_v9  ;;  %13549 = vmatpush3.bf16.msra.mxu1 %v14382_v61  ;;  %v9368_v61 = vsel %vm14545_vm2, %v9363_v42, %v9367_v35  ;;  %v9399_v9 = vrot.slane %v9397_v16, 5  ;;  %v9479_v16 = vshrl.u32 %v18878_v39, 16 }
 0x4fb   : > { %13550 = vmatprep.subr.bf16.mxu1 %v14385_v46  ;;  %v12172_v54 = vcombine.low %v9358_v34, %v9368_v61  ;;  %v9382_v4 = vsel %vm14545_vm2, %v17977_v2, %v17970_v30  ;;  %v9457_v2 = vrot.slane %v9455_v29, 4 }
 0x4fc   : > { %v9400_v59 = vor.u32 %v9399_v9, %v9396_v22  ;;  %v9445_v22 = vshll.u32 %v9309_v24, 16  ;;  %v9481_v38 = vrot.slane %v9479_v16, 4 }
 0x4fe   : > { %13551 = vmatpush3.bf16.msra.mxu1 %v14385_v46  ;;  %v9386_v46 = vor.u32 %v9385_v62, %v17970_v30  ;;  %v9312_v30 = vld [vmem:[#allocation2 + $0x54] sm:$0xf]  ;;  %v9475_v62 = vshll.u32 %v18878_v39, 16  ;;  %v9401_v7 = vrot.slane %v9400_v59, 4 }
 0x4ff   : > { %13584 = vmatprep.subr.bf16.mxu1 %v17962_v12  ;;  %v9469_v9 = vshll.u32 %v9312_v30, 16 }
 0x500   : > { %v9387_v21 = vrot.slane %v9386_v46, 4  ;;  %v9466_v46 = vshrl.u32 %v9312_v30, 16  ;;  %v18016_v34 = vrot.slane %v9475_v62, 5  ;;  %v14434_v62 = vld [vmem:[#allocation2 + $0x50] sm:$0x1] }
 0x501   : > { %13521 = vmatmul.mubr.bf16.gmra.mrb[16].mxu1 %v14375_v28  ;;  %v17984_v28 = vrot.slane %v9389_v31, 5  ;;  %v9442_v31 = vshrl.u32 %v9309_v24, 16  ;;  %v9437_v24 = vshll.u32 %v18879_v25, 16  ;;  %v9461_v16 = vshll.u32 %v14434_v62, 16 }
 0x502   : > { %13524 = vmatprep.mubr.bf16.mxu1 %v14377_v43  ;;  %v9418_v43 = vshrl.u32 %v9306_v40, 16  ;;  %v18006_v40 = vrot.slane %v9451_v13, 5  ;;  %v9447_v13 = vrot.slane %v9445_v22, 5  ;;  %v9468_v5 = vrot.slane %v9466_v46, 4 }
 0x503   : > { %v9392_v0 = vsel %vm14545_vm2, %v9387_v21, %v17984_v28  ;;  %v9482_v30 = vor.u32 %v9481_v38, %v18016_v34  ;;  %v18880_v28 = vld [vmem:[#allocation40_spill] sm:$0xff]  ;;  %v9439_v47 = vrot.slane %v9437_v24, 5 }
 0x504   : > { %v9420_v42 = vrot.slane %v9418_v43, 4  ;;  %v9315_v43 = vld [vmem:[#allocation2 + $0x60] sm:$0xf]  ;;  %v9458_v29 = vor.u32 %v9457_v2, %v18006_v40  ;;  %v9499_v21 = vshll.u32 %v18880_v28, 16  ;;  %v9503_v59 = vshrl.u32 %v18880_v28, 16 }
 0x505   : > { %v9493_v39 = vshll.u32 %v9315_v43, 16  ;;  %v12173_v33 = vcombine.low %v9382_v4, %v9392_v0  ;;  %v14387_v4 = vld [vmem:[%s18513_s3 + $0x208] sm:$0xff]  }
 0x506   : > { %v9424_v55 = vor.u32 %v9423_v20, %v9420_v42  ;;  %v9406_v42 = vsel %vm14545_vm2, %v9401_v7, %v17980_v10  ;;  %v9435_v20 = vrot.slane %v9434_v52, 4  ;;  %v9459_v22 = vrot.slane %v9458_v29, 4  ;;  %v9321_v29 = vld [vmem:[#allocation2 + $0x78] sm:$0xf] }
 0x507   : > { %v9483_v10 = vrot.slane %v9482_v30, 4  ;;  %v9495_v38 = vrot.slane %v9493_v39, 5  ;;  %v9463_v7 = vrot.slane %v9461_v16, 5  ;;  %v9541_v62 = vshll.u32 %v9321_v29, 16 }
 0x509   : > { %13525 = vmatmul.mubr.bf16.gmra.mrb[20].mxu1 %v14378_v15  ;;  %v17996_v15 = vld [vmem:[#allocation2 + $0xd4] sm:$0x1] }
 0x50a   : > { %13528 = vmatprep.mubr.bf16.mxu1 %v14380_v23  ;;  %v10222_v23 = vrot.slane %v17994_v57, 5  ;;  %v10225_v49 = vrot.slane %v17996_v15, 5 }
 0x50c   : > { %v10224_v35 = vrot.slane %v10222_v23, 4  ;;  %v18010_v61 = vsel %vm14878_vm5, %v12211_v36, %v10222_v23  ;;  %v9471_v23 = vrot.slane %v9469_v9, 5  ;;  %v9425_v36 = vrot.slane %v9424_v55, 4  ;;  %v9318_v9 = vld [vmem:[#allocation2 + $0x6c] sm:$0xf] }
 0x50e   : > { %v18014_v37 = vsel %vm14878_vm5, %v10224_v35, %v10225_v49  ;;  %v9490_v49 = vshrl.u32 %v9315_v43, 16  ;;  %v18881_v35 = vld [vmem:[#allocation38_spill] sm:$0xff]  ;;  %v9472_v2 = vor.u32 %v9471_v23, %v9468_v5  ;;  %v18038_v43 = vrot.slane %v9499_v21, 5 }
 0x50f   : > { %v9430_v55 = vsel %vm14545_vm2, %v9425_v36, %v18004_v48  ;;  %v9440_v5 = vsel %vm14545_vm2, %v9435_v20, %v9439_v47  ;;  %v14388_v48 = vld [vmem:[%s18513_s3 + $0x210] sm:$0xff]   ;;  %v14436_v20 = vld [vmem:[#allocation2 + $0x7c] sm:$0xf] }
 0x510   : > { %v9492_v46 = vrot.slane %v9490_v49, 4  ;;  %v9464_v49 = vsel %vm14545_vm2, %v9459_v22, %v9463_v7  ;;  %v9473_v30 = vrot.slane %v9472_v2, 4  ;;  %v9547_v47 = vshll.u32 %v14436_v20, 16 }
 0x511   : > { %13529 = vmatmul.mubr.bf16.gmra.mrb[24].mxu1 %v14381_v18  ;;  %v9415_v18 = vrot.slane %v9413_v56, 5  ;;  %v9444_v56 = vrot.slane %v9442_v31, 4 }
 0x512   : > { %13532 = vmatprep.mubr.bf16.mxu1 %v14383_v44  ;;  %v12243_v44 = vcombine.low %v18010_v61, %v18014_v37  ;;  %v9496_v28 = vor.u32 %v9495_v38, %v9492_v46  ;;  %v9478_v22 = vsel %vm14545_vm2, %v9473_v30, %v18016_v34  ;;  %v14389_v38 = vld [vmem:[%s18513_s3 + $0x218] sm:$0xff]  }
 0x513   : > { %v9448_v31 = vor.u32 %v9447_v13, %v9444_v56  ;;  %v9514_v56 = vshrl.u32 %v9318_v9, 16  ;;  %v9517_v13 = vshll.u32 %v9318_v9, 16 }
 0x514   : > { %v9497_v9 = vrot.slane %v9496_v28, 4  ;;  %v14439_v28 = vld [vmem:[#allocation2 + $0x94] sm:$0xf] }
 0x515   : > { %v9449_v23 = vrot.slane %v9448_v31, 4  ;;  %v9516_v16 = vrot.slane %v9514_v56, 4  ;;  %v9519_v36 = vrot.slane %v9517_v13, 5 }
 0x517   : > { %v9454_v31 = vsel %vm14545_vm2, %v9449_v23, %v18006_v40  ;;  %v9543_v40 = vrot.slane %v9541_v62, 5 }
 0x518   : > { %v12176_v2 = vcombine.low %v9454_v31, %v9464_v49  ;;  %v14390_v49 = vld [vmem:[%s18513_s3 + $0x220] sm:$0xff]  }
 0x519   : > { %13533 = vmatmul.mubr.bf16.gmra.mrb[28].mxu1 %v14384_v19  ;;  %v9485_v19 = vshll.u32 %v18881_v35, 16  ;;  %v9551_v35 = vshrl.u32 %v14436_v20, 16  ;;  %v14440_v20 = vld [vmem:[#allocation2 + $0x80] sm:$0x1] }
 0x51a   : > { %13552 = vmatprep.mubr.bf16.mxu1 %v12172_v54  ;;  %v9416_v54 = vsel %vm14545_vm2, %v9411_v8, %v9415_v18  ;;  %v9505_v18 = vrot.slane %v9503_v59, 4  ;;  %v18882_v8 = vld [vmem:[#allocation43_spill] sm:$0xff] }
 0x51b   : > { %v12174_v0 = vcombine.low %v9406_v42, %v9416_v54  ;;  %v9523_v25 = vshll.u32 %v18882_v8, 16  ;;  %v9527_v24 = vshrl.u32 %v18882_v8, 16  ;;  %v9487_v52 = vrot.slane %v9485_v19, 5 }
 0x51c   : > { %v9506_v21 = vor.u32 %v9505_v18, %v18038_v43  ;;  %v9538_v54 = vshrl.u32 %v9321_v29, 16  ;;  %v12175_v19 = vcombine.low %v9430_v55, %v9440_v5  ;;  %v9324_v18 = vld [vmem:[#allocation2 + $0x84] sm:$0xf]  ;;  %v18068_v55 = vrot.slane %v9547_v47, 5  ;;  %v14438_v29 = vld [vmem:[#allocation2 + $0x88] sm:$0xf] }
 0x51d   : > { %v9488_v39 = vsel %vm14545_vm2, %v9483_v10, %v9487_v52  ;;  %v9529_v42 = vrot.slane %v9527_v24, 4  ;;  %v14437_v24 = vld [vmem:[#allocation2 + $0x74] sm:$0x1]  ;;  %v9553_v52 = vrot.slane %v9551_v35, 4  ;;  %v9562_v56 = vshrl.u32 %v9324_v18, 16 }
 0x51e   : > { %v12177_v46 = vcombine.low %v9478_v22, %v9488_v39  ;;  %v9540_v8 = vrot.slane %v9538_v54, 4  ;;  %v9533_v34 = vshll.u32 %v14437_v24, 16  ;;  %v9565_v13 = vshll.u32 %v9324_v18, 16 }
 0x51f   : > { %v9571_v5 = vshll.u32 %v14438_v29, 16  ;;  %v9575_v23 = vshrl.u32 %v14438_v29, 16  ;;  %v9557_v47 = vshll.u32 %v14440_v20, 16  ;;  %v9564_v35 = vrot.slane %v9562_v56, 4 }
 0x520   : > { %v9544_v54 = vor.u32 %v9543_v40, %v9540_v8 }
 0x521   : > { %13553 = vmatmul.mubr.bf16.vlgmr.msra.gmra.mrb[0].mxu1 %v12173_v33  ;;  %v18056_v33 = vrot.slane %v9523_v25, 5  ;;  %v9520_v25 = vor.u32 %v9519_v36, %v9516_v16  ;;  %v9535_v16 = vrot.slane %v9533_v34, 5  ;;  %v9554_v36 = vor.u32 %v9553_v52, %v18068_v55 }
 0x522   : > { %13556 = vmatprep.mubr.bf16.mxu1 %v12174_v0  ;;  %13585 = vmatpush3.bf16.msra.mxu1 %v17962_v12  ;;  %v14435_v12 = vld [vmem:[#allocation2 + $0x68] sm:$0x1]  ;;  %v9507_v0 = vrot.slane %v9506_v21, 4  ;;  %v9595_v21 = vshll.u32 %v14439_v28, 16  ;;  %v18079_v31 = vrot.slane %v9571_v5, 5  ;;  %v9577_v22 = vrot.slane %v9575_v23, 4 }
 0x523   : > { %13586 = vmatprep.subr.bf16.mxu1 %v14387_v4  ;;  %v9509_v59 = vshll.u32 %v14435_v12, 16  ;;  %v9530_v7 = vor.u32 %v9529_v42, %v18056_v33  ;;  %v9599_v12 = vshrl.u32 %v14439_v28, 16  ;;  %v9521_v62 = vrot.slane %v9520_v25, 4  ;;  %v14441_v23 = vld [vmem:[#allocation2 + $0x8c] sm:$0x1] }
 0x524   : > { %v18081_v18 = vrot.slane %v9595_v21, 5  ;;  %v9545_v8 = vrot.slane %v9544_v54, 4  ;;  %v9578_v24 = vor.u32 %v9577_v22, %v18079_v31  ;;  %v9333_v21 = vld [vmem:[#allocation2 + $0xa8] sm:$0xf] }
 0x525   : > { %v9511_v10 = vrot.slane %v9509_v59, 5  ;;  %v9502_v59 = vsel %vm14545_vm2, %v9497_v9, %v18038_v43  ;;  %v9531_v42 = vrot.slane %v9530_v7, 4  ;;  %v9526_v40 = vsel %vm14545_vm2, %v9521_v62, %v18056_v33 }
 0x526   : > { %13587 = vmatpush3.bf16.msra.mxu1 %v14387_v4  ;;  %v9327_v4 = vld [vmem:[#allocation2 + $0x90] sm:$0xf]  ;;  %v9550_v33 = vsel %vm14545_vm2, %v9545_v8, %v18068_v55  ;;  %v9637_v22 = vshll.u32 %v9333_v21, 16 }
 0x527   : > { %13588 = vmatprep.subr.bf16.mxu1 %v14388_v48  ;;  %v9586_v30 = vshrl.u32 %v9327_v4, 16  ;;  %v9589_v39 = vshll.u32 %v9327_v4, 16  ;;  %v9555_v4 = vrot.slane %v9554_v36, 4  ;;  %v9579_v36 = vrot.slane %v9578_v24, 4 }
 0x529   : > { %13557 = vmatmul.mubr.bf16.gmra.mrb[4].mxu1 %v12175_v19  ;;  %v9567_v19 = vrot.slane %v9565_v13, 5  ;;  %v9588_v43 = vrot.slane %v9586_v30, 4  ;;  %v9591_v9 = vrot.slane %v9589_v39, 5  ;;  %v9559_v13 = vrot.slane %v9557_v47, 5  ;;  %v14442_v39 = vld [vmem:[#allocation2 + $0xa0] sm:$0xf] }
 0x52a   : > { %13560 = vmatprep.mubr.bf16.mxu1 %v12176_v2  ;;  %13589 = vmatpush3.bf16.msra.mxu1 %v14388_v48  ;;  %v9512_v48 = vsel %vm14545_vm2, %v9507_v0, %v9511_v10  ;;  %v9330_v2 = vld [vmem:[#allocation2 + $0x9c] sm:$0xf]  ;;  %v9601_v10 = vrot.slane %v9599_v12, 4  ;;  %v14391_v0 = vld [vmem:[%s18513_s3 + $0x228] sm:$0xff]   ;;  %v9581_v30 = vshll.u32 %v14441_v23, 16  ;;  %v9623_v28 = vshrl.u32 %v14442_v39, 16 }
 0x52b   : > { %13590 = vmatprep.subr.bf16.mxu1 %v14389_v38  ;;  %v12178_v7 = vcombine.low %v9502_v59, %v9512_v48  ;;  %v9568_v25 = vor.u32 %v9567_v19, %v9564_v35  ;;  %v9610_v34 = vshrl.u32 %v9330_v2, 16  ;;  %v9613_v52 = vshll.u32 %v9330_v2, 16  ;;  %v14443_v59 = vld [vmem:[#allocation2 + $0x98] sm:$0x1] }
 0x52c   : > { %v9592_v29 = vor.u32 %v9591_v9, %v9588_v43  ;;  %v9602_v5 = vor.u32 %v9601_v10, %v18081_v18  ;;  %v9560_v12 = vsel %vm14545_vm2, %v9555_v4, %v9559_v13  ;;  %v9605_v48 = vshll.u32 %v14443_v59, 16  ;;  %v14393_v2 = vld [vmem:[%s18513_s3 + $0x238] sm:$0xff]  }
 0x52d   : > { %v9612_v20 = vrot.slane %v9610_v34, 4  ;;  %v9615_v47 = vrot.slane %v9613_v52, 5  ;;  %v9634_v19 = vshrl.u32 %v9333_v21, 16  ;;  %v12180_v43 = vcombine.low %v9550_v33, %v9560_v12  ;;  %v14445_v34 = vld [vmem:[#allocation2 + $0xa4] sm:$0x1] }
 0x52e   : > { %13591 = vmatpush3.bf16.msra.mxu1 %v14389_v38  ;;  %v9536_v38 = vsel %vm14545_vm2, %v9531_v42, %v9535_v16  ;;  %v14444_v42 = vld [vmem:[#allocation2 + $0xac] sm:$0xf]  ;;  %v9569_v16 = vrot.slane %v9568_v25, 4  ;;  %v9593_v55 = vrot.slane %v9592_v29, 4  ;;  %v9603_v35 = vrot.slane %v9602_v5, 4 }
 0x52f   : > { %13592 = vmatprep.subr.bf16.mxu1 %v14390_v49  ;;  %v12179_v56 = vcombine.low %v9526_v40, %v9536_v38  ;;  %v9643_v54 = vshll.u32 %v14444_v42, 16  ;;  %v9647_v62 = vshrl.u32 %v14444_v42, 16  ;;  %v9583_v9 = vrot.slane %v9581_v30, 5  ;;  %v14446_v23 = vld [vmem:[#allocation2 + $0xb8] sm:$0xf] }
 0x530   : > { %v9607_v38 = vrot.slane %v9605_v48, 5  ;;  %v9574_v4 = vsel %vm14545_vm2, %v9569_v16, %v18079_v31  ;;  %v9616_v24 = vor.u32 %v9615_v47, %v9612_v20  ;;  %v9629_v52 = vshll.u32 %v14445_v34, 16  ;;  %v14447_v21 = vld [vmem:[#allocation2 + $0xc4] sm:$0xf]  ;;  %v14448_v16 = vld [vmem:[#allocation2 + $0xb0] sm:$0x1] }
 0x531   : > { %13561 = vmatmul.mubr.bf16.gmra.mrb[8].mxu1 %v12177_v46  ;;  %v14392_v46 = vld [vmem:[%s18513_s3 + $0x230] sm:$0xff]   ;;  %v18106_v8 = vrot.slane %v9643_v54, 5  ;;  %v9649_v40 = vrot.slane %v9647_v62, 4  ;;  %v9584_v25 = vsel %vm14545_vm2, %v9579_v36, %v9583_v9  ;;  %v9636_v29 = vrot.slane %v9634_v19, 4 }
 0x532   : > { %13564 = vmatprep.mubr.bf16.mxu1 %v12178_v7  ;;  %13593 = vmatpush3.bf16.msra.mxu1 %v14390_v49  ;;  %v9619_v49 = vshll.u32 %v14442_v39, 16  ;;  %v9625_v7 = vrot.slane %v9623_v28, 4  ;;  %v9608_v13 = vsel %vm14545_vm2, %v9603_v35, %v9607_v38  ;;  %v9639_v5 = vrot.slane %v9637_v22, 5 }
 0x533   : > { %13594 = vmatprep.subr.bf16.mxu1 %v14391_v0  ;;  %v9667_v30 = vshll.u32 %v14446_v23, 16  ;;  %v9671_v39 = vshrl.u32 %v14446_v23, 16  ;;  %v9650_v28 = vor.u32 %v9649_v40, %v18106_v8  ;;  %v9691_v12 = vshll.u32 %v14447_v21, 16  ;;  %v14449_v23 = vld [vmem:[#allocation2 + $0xbc] sm:$0x1] }
 0x534   : > { %v18104_v10 = vrot.slane %v9619_v49, 5  ;;  %v9339_v49 = vld [vmem:[#allocation2 + $0xc0] sm:$0xf]  ;;  %v9695_v59 = vshrl.u32 %v14447_v21, 16  ;;  %v9617_v42 = vrot.slane %v9616_v24, 4  ;;  %v9631_v54 = vrot.slane %v9629_v52, 5 }
 0x535   : > { %v9640_v62 = vor.u32 %v9639_v5, %v9636_v29  ;;  %v9653_v36 = vshll.u32 %v14448_v16, 16  ;;  %v9682_v20 = vshrl.u32 %v9339_v49, 16  ;;  %v9685_v47 = vshll.u32 %v9339_v49, 16 }
 0x536   : > { %13595 = vmatpush3.bf16.msra.mxu1 %v14391_v0  ;;  %v9336_v0 = vld [vmem:[#allocation2 + $0xb4] sm:$0xf]  ;;  %v9626_v33 = vor.u32 %v9625_v7, %v18104_v10  ;;  %v9669_v22 = vrot.slane %v9667_v30, 5  ;;  %v9651_v9 = vrot.slane %v9650_v28, 4  ;;  %v9693_v38 = vrot.slane %v9691_v12, 5 }
 0x537   : > { %13596 = vmatprep.subr.bf16.mxu1 %v14392_v46  ;;  %v9658_v31 = vshrl.u32 %v9336_v0, 16  ;;  %v9697_v40 = vrot.slane %v9695_v59, 4  ;;  %v9641_v24 = vrot.slane %v9640_v62, 4  ;;  %v9655_v34 = vrot.slane %v9653_v36, 5  ;;  %v14450_v59 = vld [vmem:[#allocation2 + $0xc8] sm:$0x1] }
 0x538   : > { %v9627_v35 = vrot.slane %v9626_v33, 4  ;;  %v9684_v52 = vrot.slane %v9682_v20, 4  ;;  %v9677_v30 = vshll.u32 %v14449_v23, 16  ;;  %v18893_v23 = vld [vmem:[#allocation44_spill] sm:$0xff] }
 0x539   : > { %13565 = vmatmul.mubr.bf16.gmra.mrb[12].mxu1 %v12179_v56  ;;  %v9598_v56 = vsel %vm14545_vm2, %v9593_v55, %v18081_v18  ;;  %v12181_v18 = vcombine.low %v9574_v4, %v9584_v25  ;;  %v9342_v55 = vld [vmem:[#allocation2 + $0xcc] sm:$0xf]  ;;  %v9660_v19 = vrot.slane %v9658_v31, 4  ;;  %v9719_v25 = vshrl.u32 %v17994_v57, 16 }
 0x53a   : > { %13568 = vmatprep.mubr.bf16.mxu1 %v12180_v43  ;;  %13597 = vmatpush3.bf16.msra.mxu1 %v14392_v46  ;;  %v9661_v46 = vshll.u32 %v9336_v0, 16  ;;  %v12182_v48 = vcombine.low %v9598_v56, %v9608_v13  ;;  %v9673_v43 = vrot.slane %v9671_v39, 4  ;;  %v9706_v0 = vshrl.u32 %v9342_v55, 16 }
 0x53b   : > { %13598 = vmatprep.subr.bf16.mxu1 %v14393_v2  ;;  %v9709_v4 = vshll.u32 %v9342_v55, 16  ;;  %v9687_v56 = vrot.slane %v9685_v47, 5  ;;  %v9622_v13 = vsel %vm14545_vm2, %v9617_v42, %v18104_v10  ;;  %v9632_v29 = vsel %vm14545_vm2, %v9627_v35, %v9631_v54 }
 0x53c   : > { %v9663_v7 = vrot.slane %v9661_v46, 5  ;;  %v9674_v5 = vor.u32 %v9673_v43, %v9669_v22  ;;  %v9656_v33 = vsel %vm14545_vm2, %v9651_v9, %v9655_v34  ;;  %v9698_v39 = vor.u32 %v9697_v40, %v9693_v38  ;;  %v18883_v34 = vld [vmem:[#allocation32_spill] sm:$0xff] }
 0x53d   : > { %v9711_v49 = vrot.slane %v9709_v4, 5  ;;  %v9721_v46 = vrot.slane %v9719_v25, 4  ;;  %v12183_v21 = vcombine.low %v9622_v13, %v9632_v29  ;;  %v9646_v10 = vsel %vm14545_vm2, %v9641_v24, %v18106_v8  ;;  %v18887_v13 = vld [vmem:[#allocation36_spill] sm:$0xff] }
 0x53e   : > { %13599 = vmatpush3.bf16.msra.mxu1 %v14393_v2  ;;  %v9715_v2 = vshll.u32 %v17994_v57, 16  ;;  %v9664_v31 = vor.u32 %v9663_v7, %v9660_v19  ;;  %v9708_v57 = vrot.slane %v9706_v0, 4  ;;  %v9688_v12 = vor.u32 %v9687_v56, %v9684_v52  ;;  %v18886_v56 = vld [vmem:[#allocation35_spill] sm:$0xff] }
 0x53f   : > { %v9675_v42 = vrot.slane %v9674_v5, 4  ;;  %v9679_v54 = vrot.slane %v9677_v30, 5  ;;  %v9699_v62 = vrot.slane %v9698_v39, 4  ;;  %v9725_v47 = vshll.u32 %v17996_v15, 16  ;;  %v18890_v5 = vld [vmem:[#allocation41_spill] sm:$0xff] }
 0x540   : > { %v9717_v28 = vrot.slane %v9715_v2, 5  ;;  %v9665_v16 = vrot.slane %v9664_v31, 4  ;;  %v9712_v36 = vor.u32 %v9711_v49, %v9708_v57  ;;  %v9689_v55 = vrot.slane %v9688_v12, 4  ;;  %v18892_v31 = vld [vmem:[#allocation42_spill] sm:$0xff]  ;;  %v18895_v39 = vld [vmem:[#allocation45_spill] sm:$0xff] }
 0x541   : > { %13569 = vmatmul.mubr.bf16.gmra.mrb[16].mxu1 %v12181_v18  ;;  %v9701_v18 = vshll.u32 %v14450_v59, 16  ;;  %v9680_v19 = vsel %vm14545_vm2, %v9675_v42, %v9679_v54  ;;  %v9727_v40 = vrot.slane %v9725_v47, 5  ;;  %v18888_v29 = vcombine.low %v18886_v56, %v18887_v13  ;;  %v18896_v57 = vld [vmem:[#allocation46_spill] sm:$0xff]  ;;  %v18902_v12 = vld [vmem:[#allocation49_spill] sm:$0xff]  ;;  %v18907_v54 = vld [vmem:[#allocation52_spill] sm:$0xff] }
 0x542   : > { %13572 = vmatprep.mubr.bf16.mxu1 %v12182_v48  ;;  %v12184_v48 = vcombine.low %v9646_v10, %v9656_v33  ;;  %v9722_v20 = vor.u32 %v9721_v46, %v9717_v28  ;;  %v9670_v43 = vsel %vm14545_vm2, %v9665_v16, %v9669_v22  ;;  %v9713_v9 = vrot.slane %v9712_v36, 4  ;;  %v18884_v22 = vld [vmem:[#allocation33_spill] sm:$0xff]  ;;  %v18899_v46 = vld [vmem:[#allocation47_spill] sm:$0xff]  ;;  %v18903_v59 = vld [vmem:[#allocation50_spill] sm:$0xff] }
 0x543   : > { %v9703_v35 = vrot.slane %v9701_v18, 5  ;;  %v12185_v0 = vcombine.low %v9670_v43, %v9680_v19  ;;  %v9694_v4 = vsel %vm14545_vm2, %v9689_v55, %v9693_v38  ;;  %v18885_v52 = vcombine.low %v18883_v34, %v18884_v22  ;;  %v18889_v38 = vld [vmem:[#allocation39_spill] sm:$0xff]  ;;  %v12257_v47 = vld [vmem:[%s14513_s29 + $0x20] sm:$0x1] }
 0x544   : > { %v9723_v7 = vrot.slane %v9722_v20, 4  ;;  %v9718_v15 = vsel %vm14545_vm2, %v9713_v9, %v9717_v28  ;;  %v18891_v33 = vcombine.low %v18889_v38, %v18890_v5  ;;  %v18894_v30 = vcombine.low %v18892_v31, %v18893_v23 }
 0x545   : > { %v9704_v8 = vsel %vm14545_vm2, %v9699_v62, %v9703_v35  ;;  %v18897_v49 = vcombine.low %v18895_v39, %v18896_v57  ;;  %v18898_v28 = vcombine.low %v17635_v53, %v17642_v6  ;;  %v18904_v18 = vcombine.low %v18902_v12, %v18903_v59  ;;  %v18908_v62 = vld [vmem:[#allocation53_spill] sm:$0xff] }
 0x546   : > { %v12186_v2 = vcombine.low %v9694_v4, %v9704_v8  ;;  %v9728_v25 = vsel %vm14545_vm2, %v9723_v7, %v9727_v40  ;;  %v18909_v16 = vcombine.low %v18907_v54, %v18908_v62  ;;  %v18910_v53 = vcombine.low %v17704_v50, %v17708_v14  ;;  %v12252_v50 = vld [vmem:[%s14513_s29 + $0xc] sm:$0xf]  ;;  %v12258_v8 = vld [vmem:[%s14513_s29 + $0x24] sm:$0xf] }
 0x547   : > { %v12187_v24 = vcombine.low %v9718_v15, %v9728_v25  ;;  %v18911_v6 = vcombine.low %v17712_v26, %v17718_v58  ;;  %v12256_v58 = vld [vmem:[%s14513_s29 + $0x1c] sm:$0xf]  ;;  %v10601_v63 = vshll.u32 %v12252_v50, 16  ;;  %v10611_v20 = vshrl.u32 %v12253_v11, 16  ;;  %v12260_v59 = vld [vmem:[%s14513_s29 + $0x2c] sm:$0x1] }
 0x548   : > { %v10631_v32 = vshll.u32 %v12256_v58, 16  ;;  %v10635_v41 = vshrl.u32 %v12256_v58, 16  ;;  %v10670_v55 = vshrl.u32 %v12261_v60, 16  ;;  %v10673_v35 = vshll.u32 %v12261_v60, 16 }
 0x549   : > { %13573 = vmatmul.mubr.bf16.gmra.mrb[20].mxu1 %v12183_v21  ;;  %v18900_v21 = vld [vmem:[#allocation48_spill] sm:$0xff]  ;;  %v10603_v37 = vrot.slane %v10601_v63, 5  ;;  %v10641_v9 = vshll.u32 %v12257_v47, 16  ;;  %v10613_v4 = vrot.slane %v10611_v20, 4  ;;  %v10646_v34 = vshrl.u32 %v12258_v8, 16 }
 0x54a   : > { %13576 = vmatprep.mubr.bf16.mxu1 %v12184_v48  ;;  %v18901_v10 = vcombine.low %v18899_v46, %v18900_v21  ;;  %v18905_v48 = vld [vmem:[#allocation51_spill] sm:$0xff]  ;;  %v10633_v27 = vrot.slane %v10631_v32, 5  ;;  %v10672_v15 = vrot.slane %v10670_v55, 4  ;;  %v10675_v25 = vrot.slane %v10673_v35, 5  ;;  %v12270_v35 = vld [vmem:[%s14513_s29 + $0x54] sm:$0xf] }
 0x54b   : > { %v18906_v42 = vcombine.low %v17677_v45, %v18905_v48  ;;  %v12255_v45 = vld [vmem:[%s14513_s29 + $0x18] sm:$0xf]  ;;  %v10649_v22 = vshll.u32 %v12258_v8, 16  ;;  %v10643_v13 = vrot.slane %v10641_v9, 5  ;;  %v10648_v57 = vrot.slane %v10646_v34, 4 }
 0x54c   : > { %v10622_v14 = vshrl.u32 %v12255_v45, 16  ;;  %v10625_v26 = vshll.u32 %v12255_v45, 16  ;;  %v10676_v39 = vor.u32 %v10675_v25, %v10672_v15  ;;  %v10665_v58 = vshll.u32 %v12260_v59, 16  ;;  %v12264_v32 = vld [vmem:[%s14513_s29 + $0x3c] sm:$0xf] }
 0x54d   : > { %v10694_v47 = vshrl.u32 %v12264_v32, 16  ;;  %v10697_v55 = vshll.u32 %v12264_v32, 16  ;;  %v10742_v25 = vshrl.u32 %v12270_v35, 16  ;;  %v12279_v59 = vld [vmem:[%s14513_s29 + $0x78] sm:$0xf] }
 0x54e   : > { %v10627_v36 = vrot.slane %v10625_v26, 5  ;;  %v10817_v32 = vshll.u32 %v12279_v59, 16 }
 0x551   : > { %13577 = vmatmul.mubr.bf16.gmra.mrb[24].mxu1 %v12185_v0  ;;  %v12254_v0 = vld [vmem:[%s14513_s29 + $0x14] sm:$0x1] }
 0x552   : > { %13580 = vmatprep.mubr.bf16.mxu1 %v12186_v2  ;;  %v12262_v2 = vld [vmem:[%s14513_s29 + $0x34] sm:$0xf] }
 0x553   : > { %v10679_v38 = vshll.u32 %v12262_v2, 16 }
 0x555   : > { %v10681_v12 = vrot.slane %v10679_v38, 5 }
 0x559   : > { %13581 = vmatmul.mubr.bf16.gmra.mrb[28].mxu1 %v12187_v24  ;;  %v12259_v24 = vld [vmem:[%s14513_s29 + $0x28] sm:$0xf] }
 0x55a   : > { %13600 = vmatprep.mubr.bf16.mxu1 %v18885_v52  ;;  %v10655_v31 = vshll.u32 %v12259_v24, 16  ;;  %v10659_v23 = vshrl.u32 %v12259_v24, 16  ;;  %v10745_v24 = vshll.u32 %v12270_v35, 16 }
 0x55c   : > { %v10661_v62 = vrot.slane %v10659_v23, 4 }
 0x561   : > { %13601 = vmatmul.mubr.bf16.vlgmr.msra.gmra.mrb[0].mxu1 %v18888_v29  ;;  %v10617_v29 = vshll.u32 %v12254_v0, 16 }
 0x562   : > { %13604 = vmatprep.mubr.bf16.mxu1 %v18891_v33  ;;  %v10683_v33 = vshrl.u32 %v12262_v2, 16 }
 0x564   : > { %v10685_v54 = vrot.slane %v10683_v33, 4 }
 0x566   : > { %v10686_v63 = vor.u32 %v10685_v54, %v10681_v12 }
 0x569   : > { %13605 = vmatmul.mubr.bf16.gmra.mrb[4].mxu1 %v18894_v30 }
 0x56a   : > { %13608 = vmatprep.mubr.bf16.mxu1 %v18897_v49  ;;  %v10651_v49 = vrot.slane %v10649_v22, 5 }
 0x571   : > { %13609 = vmatmul.mubr.bf16.gmra.mrb[8].mxu1 %v18898_v28  ;;  %v12263_v28 = vld [vmem:[%s14513_s29 + $0x38] sm:$0x1] }
 0x572   : > { %13612 = vmatprep.mubr.bf16.mxu1 %v18901_v10  ;;  %v10619_v10 = vrot.slane %v10617_v29, 5  ;;  %v10689_v45 = vshll.u32 %v12263_v28, 16  ;;  %v12274_v29 = vld [vmem:[%s14513_s29 + $0x64] sm:$0xf]  ;;  %v12271_v28 = vld [vmem:[%s14513_s29 + $0x58] sm:$0xf] }
 0x579   : > { %13613 = vmatmul.mubr.bf16.gmra.mrb[12].mxu1 %v18904_v18  ;;  %v12267_v18 = vld [vmem:[%s14513_s29 + $0x48] sm:$0xf] }
 0x57a   : > { %13616 = vmatprep.mubr.bf16.mxu1 %v18906_v42  ;;  %v10657_v42 = vrot.slane %v10655_v31, 5  ;;  %v12266_v31 = vld [vmem:[%s14513_s29 + $0x44] sm:$0x1] }
 0x57b   : > { %v10713_v54 = vshll.u32 %v12266_v31, 16  ;;  %v12277_v31 = vld [vmem:[%s14513_s29 + $0x70] sm:$0xf] }
 0x581   : > { %13617 = vmatmul.mubr.bf16.gmra.mrb[16].mxu1 %v18909_v16 }
 0x582   : > { %13620 = vmatprep.mubr.bf16.mxu1 %v18910_v53  ;;  %v10677_v53 = vrot.slane %v10676_v39, 4 }
 0x584   : > { %v10682_v60 = vsel %vm14545_vm2, %v10677_v53, %v10681_v12  ;;  %v10747_v12 = vrot.slane %v10745_v24, 5  ;;  %v10751_v53 = vshll.u32 %v12271_v28, 16 }
 0x585   : > { %v18235_v22 = vunpack.c.l.bf16 %v10682_v60 }
 0x589   : > { %13621 = vmatmul.mubr.bf16.gmra.mrb[20].mxu1 %v18911_v6  ;;  %v10652_v6 = vor.u32 %v10651_v49, %v10648_v57 }
 0x58a   : > { %13624 = vmatprep.mubr.bf16.mxu1 %v12240_v51  ;;  %v10598_v51 = vshrl.u32 %v12252_v50, 16  ;;  %v10718_v50 = vshrl.u32 %v12267_v18, 16 }
 0x58c   : > { %v10600_v61 = vrot.slane %v10598_v51, 4  ;;  %v10720_v20 = vrot.slane %v10718_v50, 4  ;;  %v10814_v50 = vshrl.u32 %v12279_v59, 16  ;;  %v12281_v59 = vld [vmem:[%s14513_s29 + $0x80] sm:$0x1] }
 0x58e   : > { %v10604_v7 = vor.u32 %v10603_v37, %v10600_v61  ;;  %v10721_v61 = vshll.u32 %v12267_v18, 16  ;;  %v12273_v37 = vld [vmem:[%s14513_s29 + $0x60] sm:$0xf] }
 0x58f   : > { %v10766_v0 = vshrl.u32 %v12273_v37, 16 }
 0x590   : > { %v10605_v30 = vrot.slane %v10604_v7, 4  ;;  %v10687_v7 = vrot.slane %v10686_v63, 4  ;;  %v10723_v15 = vrot.slane %v10721_v61, 5  ;;  %v10715_v61 = vrot.slane %v10713_v54, 5 }
 0x591   : > { %13625 = vmatmul.mubr.bf16.gmra.mrb[24].mxu1 %v12241_v3  ;;  %v10624_v3 = vrot.slane %v10622_v14, 4  ;;  %v10768_v57 = vrot.slane %v10766_v0, 4 }
 0x592   : > { %13628 = vmatprep.mubr.bf16.mxu1 %v12242_v17  ;;  %v10637_v17 = vrot.slane %v10635_v41, 4  ;;  %v10724_v18 = vor.u32 %v10723_v15, %v10720_v20 }
 0x593   : > { %v10628_v19 = vor.u32 %v10627_v36, %v10624_v3  ;;  %v12268_v3 = vld [vmem:[%s14513_s29 + $0x4c] sm:$0xf]  ;;  %v12265_v36 = vld [vmem:[%s14513_s29 + $0x40] sm:$0xf] }
 0x594   : > { %v10638_v43 = vor.u32 %v10637_v17, %v10633_v27  ;;  %v10691_v17 = vrot.slane %v10689_v45, 5  ;;  %v10731_v8 = vshrl.u32 %v12268_v3, 16  ;;  %v10707_v9 = vshrl.u32 %v12265_v36, 16 }
 0x595   : > { %v10629_v52 = vrot.slane %v10628_v19, 4  ;;  %v10727_v19 = vshll.u32 %v12268_v3, 16  ;;  %v12275_v3 = vld [vmem:[%s14513_s29 + $0x68] sm:$0x1]  ;;  %v10725_v60 = vrot.slane %v10724_v18, 4 }
 0x596   : > { %v10639_v56 = vrot.slane %v10638_v43, 4  ;;  %v10703_v43 = vshll.u32 %v12265_v36, 16  ;;  %v10733_v33 = vrot.slane %v10731_v8, 4  ;;  %v10709_v23 = vrot.slane %v10707_v9, 4  ;;  %v12272_v9 = vld [vmem:[%s14513_s29 + $0x5c] sm:$0x1] }
 0x597   : > { %v10634_v46 = vsel %vm14545_vm2, %v10629_v52, %v10633_v27  ;;  %v10653_v27 = vrot.slane %v10652_v6, 4  ;;  %v10696_v52 = vrot.slane %v10694_v47, 4  ;;  %v18239_v38 = vrot.slane %v10727_v19, 5  ;;  %v12280_v19 = vld [vmem:[%s14513_s29 + $0x7c] sm:$0xf] }
 0x598   : > { %v10644_v21 = vsel %vm14545_vm2, %v10639_v56, %v10643_v13  ;;  %v18212_v14 = vunpack.c.l.bf16 %v10634_v46  ;;  %v10699_v56 = vrot.slane %v10697_v55, 5  ;;  %v12269_v13 = vld [vmem:[%s14513_s29 + $0x50] sm:$0x1]  ;;  %v10692_v39 = vsel %vm14545_vm2, %v10687_v7, %v10691_v17 }
 0x599   : > { %13629 = vmatmul.mubr.bf16.gmra.mrb[28].mxu1 %v12243_v44  ;;  %v10607_v44 = vshll.u32 %v12253_v11, 16  ;;  %v18214_v26 = vunpack.c.l.bf16 %v10644_v21  ;;  %v10662_v11 = vor.u32 %v10661_v62, %v10657_v42  ;;  %v10658_v2 = vsel %vm14545_vm2, %v10653_v27, %v10657_v42 }
 0x59a   : > { %v10775_v46 = vshll.u32 %v12274_v29, 16  ;;  %v10779_v21 = vshrl.u32 %v12274_v29, 16  ;;  %v10737_v42 = vshll.u32 %v12269_v13, 16  ;;  %v10734_v62 = vor.u32 %v10733_v33, %v18239_v38 }
 0x59b   : > { %v10609_v40 = vrot.slane %v10607_v44, 5  ;;  %v18226_v44 = vrot.slane %v10665_v58, 5  ;;  %v10755_v6 = vshrl.u32 %v12271_v28, 16  ;;  %v18252_v45 = vunpack.c.l.bf16 %v10692_v39 }
 0x59c   : > { %v10777_v63 = vrot.slane %v10775_v46, 5  ;;  %v10781_v36 = vrot.slane %v10779_v21, 4  ;;  %v10739_v17 = vrot.slane %v10737_v42, 5  ;;  %v10735_v20 = vrot.slane %v10734_v62, 4 }
 0x59d   : > { %v10614_v5 = vor.u32 %v10613_v4, %v10609_v40  ;;  %v10610_v16 = vsel %vm14545_vm2, %v10605_v30, %v10609_v40  ;;  %v18229_v40 = vrot.slane %v10662_v11, 4  ;;  %v10769_v4 = vshll.u32 %v12273_v37, 16  ;;  %v12276_v37 = vld [vmem:[%s14513_s29 + $0x6c] sm:$0xf] }
 0x59e   : > { %v18217_v41 = vunpack.c.l.bf16 %v10610_v16  ;;  %v18244_v30 = vunpack.c.l.bf16 %v10658_v2  ;;  %v10753_v55 = vrot.slane %v10751_v53, 5  ;;  %v10757_v35 = vrot.slane %v10755_v6, 4 }
 0x59f   : > { %v10615_v48 = vrot.slane %v10614_v5, 4  ;;  %v18241_v5 = vrot.slane %v10703_v43, 5  ;;  %v10771_v49 = vrot.slane %v10769_v4, 5  ;;  %v10785_v43 = vshll.u32 %v12275_v3, 16 }
 0x5a0   : > { %v10819_v7 = vrot.slane %v10817_v32, 5  ;;  %v10782_v0 = vor.u32 %v10781_v36, %v10777_v63  ;;  %v10790_v4 = vshrl.u32 %v12276_v37, 16  ;;  %v10793_v2 = vshll.u32 %v12276_v37, 16 }
 0x5a1   : > { %v10620_v51 = vsel %vm14545_vm2, %v10615_v48, %v10619_v10  ;;  %v10744_v10 = vrot.slane %v10742_v25, 4  ;;  %v10700_v48 = vor.u32 %v10699_v56, %v10696_v52  ;;  %v10710_v16 = vor.u32 %v10709_v23, %v18241_v5 }
 0x5a2   : > { %v18233_v34 = vunpack.c.l.bf16 %v10620_v51  ;;  %v10772_v58 = vor.u32 %v10771_v49, %v10768_v57  ;;  %v10668_v51 = vsel %vm14545_vm2, %v18229_v40, %v18226_v44  ;;  %v10816_v44 = vrot.slane %v10814_v50, 4  ;;  %v12285_v50 = vld [vmem:[%s14513_s29 + $0x90] sm:$0xf] }
 0x5a3   : > { %v10748_v11 = vor.u32 %v10747_v12, %v10744_v10  ;;  %v10701_v27 = vrot.slane %v10700_v48, 4  ;;  %v10711_v47 = vrot.slane %v10710_v16, 4  ;;  %v18262_v15 = vunpack.c.l.bf16 %v10668_v51  ;;  %v18294_v51 = vld [vmem:[%s18514_s4] ss:$0 sm:$0xff] }
 0x5a4   : > { %v10773_v8 = vrot.slane %v10772_v58, 4  ;;  %v10730_v25 = vsel %vm14545_vm2, %v10725_v60, %v18239_v38  ;;  %v10823_v24 = vshll.u32 %v12280_v19, 16  ;;  %v10827_v52 = vshrl.u32 %v12280_v19, 16  ;;  %v12278_v60 = vld [vmem:[%s14513_s29 + $0x74] sm:$0x1] }
 0x5a5   : > { %v10749_v40 = vrot.slane %v10748_v11, 4  ;;  %v10706_v56 = vsel %vm14545_vm2, %v10701_v27, %v18241_v5  ;;  %v10740_v13 = vsel %vm14545_vm2, %v10735_v20, %v10739_v17  ;;  %v10758_v29 = vor.u32 %v10757_v35, %v10753_v55 }
 0x5a6   : > { %v10761_v33 = vshll.u32 %v12272_v9, 16  ;;  %v10716_v23 = vsel %vm14545_vm2, %v10711_v47, %v10715_v61  ;;  %v10778_v39 = vsel %vm14545_vm2, %v10773_v8, %v10777_v63  ;;  %v10787_v38 = vrot.slane %v10785_v43, 5 }
 0x5a7   : > { %v10820_v57 = vor.u32 %v10819_v7, %v10816_v44  ;;  %v10754_v49 = vsel %vm14545_vm2, %v10749_v40, %v10753_v55  ;;  %v10783_v28 = vrot.slane %v10782_v0, 4  ;;  %v10792_v5 = vrot.slane %v10790_v4, 4 }
 0x5a8   : > { %v10795_v46 = vrot.slane %v10793_v2, 5  ;;  %v10825_v21 = vrot.slane %v10823_v24, 5  ;;  %v10799_v10 = vshll.u32 %v12277_v31, 16  ;;  %v10803_v12 = vshrl.u32 %v12277_v31, 16 }
 0x5a9   : > { %v10829_v18 = vrot.slane %v10827_v52, 4  ;;  %v18280_v48 = vunpack.c.l.bf16 %v10730_v25  ;;  %v18282_v42 = vunpack.c.l.bf16 %v10706_v56  ;;  %v10759_v54 = vrot.slane %v10758_v29, 4  ;;  %v12286_v29 = vld [vmem:[%s14513_s29 + $0x94] sm:$0xf] }
 0x5aa   : > { %v10763_v62 = vrot.slane %v10761_v33, 5  ;;  %v18284_v16 = vunpack.c.l.bf16 %v10740_v13  ;;  %v18286_v53 = vunpack.c.l.bf16 %v10716_v23  ;;  %v18288_v6 = vunpack.c.l.bf16 %v10778_v39 }
 0x5ab   : > { %v10821_v58 = vrot.slane %v10820_v57, 4  ;;  %v18296_v63 = vunpack.c.l.bf16 %v10754_v49  ;;  %v10788_v11 = vsel %vm14545_vm2, %v10783_v28, %v10787_v38  ;;  %v10796_v3 = vor.u32 %v10795_v46, %v10792_v5  ;;  %v12283_v46 = vld [vmem:[%s14513_s29 + $0x88] sm:$0xf] }
 0x5ac   : > { %v10833_v36 = vshll.u32 %v12281_v59, 16  ;;  %v18303_v61 = vrot.slane %v10799_v10, 5  ;;  %v10830_v37 = vor.u32 %v10829_v18, %v10825_v21  ;;  %v10805_v20 = vrot.slane %v10803_v12, 4 }
 0x5ad   : > { %v10764_v35 = vsel %vm14545_vm2, %v10759_v54, %v10763_v62  ;;  %v10862_v19 = vshrl.u32 %v12285_v50, 16  ;;  %v10865_v8 = vshll.u32 %v12285_v50, 16  ;;  %v10826_v44 = vsel %vm14545_vm2, %v10821_v58, %v10825_v21 }
 0x5ae   : > { %v10809_v7 = vshll.u32 %v12278_v60, 16  ;;  %v10797_v0 = vrot.slane %v10796_v3, 4  ;;  %v18319_v4 = vrot.slane %v10833_v36, 5  ;;  %v18323_v24 = vrot.slane %v10830_v37, 4 }
 0x5af   : > { %v10806_v52 = vor.u32 %v10805_v20, %v18303_v61  ;;  %v10864_v33 = vrot.slane %v10862_v19, 4  ;;  %v18329_v23 = vunpack.c.l.bf16 %v10788_v11  ;;  %v18331_v39 = vunpack.c.l.bf16 %v10764_v35 }
 0x5b0   : > { %v18334_v28 = vunpack.c.l.bf16 %v10826_v44  ;;  %v10811_v5 = vrot.slane %v10809_v7, 5  ;;  %v10802_v59 = vsel %vm14545_vm2, %v10797_v0, %v18303_v61  ;;  %v10871_v54 = vshll.u32 %v12286_v29, 16  ;;  %v12284_v7 = vld [vmem:[%s14513_s29 + $0x8c] sm:$0x1] }
 0x5b1   : > { %v10807_v18 = vrot.slane %v10806_v52, 4  ;;  %v10836_v50 = vsel %vm14545_vm2, %v18323_v24, %v18319_v4  ;;  %v10851_v20 = vshrl.u32 %v12283_v46, 16  ;;  %v18361_v44 = vunpack.c.l.bf16 %v10802_v59 }
 0x5b2   : > { %v18357_v19 = vrot.slane %v10871_v54, 5 }
 0x634   : > { %v13602_v32 = vpop.f32.mrb[0].mxu1 }
 0x635   : > { %v11047_v27 = vadd.f32 %v13602_v32, %v18212_v14  ;;  %v10390_v17 = vpop.f32.mrb[1].mxu1 }
 0x636   : > { %v11045_v47 = vadd.f32 %v18217_v41, %v10390_v17  ;;  %v13603_v55 = vpop.f32.mrb[2].mxu1  ;;  %v12287_v17 = vld [vmem:[%s14513_s29 + $0x98] sm:$0x1] }
 0x637   : > { %v11086_v43 = vadd.f32 %v18294_v51, %v11047_v27  ;;  %v11048_v9 = vadd.f32 %v13603_v55, %v18214_v26  ;;  %v10393_v14 = vpop.f32.mrb[3].mxu1  ;;  %v12282_v26 = vld [vmem:[%s14513_s29 + $0x84] sm:$0xf]  ;;  %v10847_v27 = vshll.u32 %v12283_v46, 16 }
 0x638   : > { %v11084_v41 = vadd.f32 %v18294_v51, %v11045_v47  ;;  %v11046_v40 = vadd.f32 %v18233_v34, %v10393_v14  ;;  %v10867_v34 = vrot.slane %v10865_v8, 5  ;;  %v10838_v38 = vshrl.u32 %v12282_v26, 16  ;;  %v12291_v47 = vld [vmem:[%s14513_s29 + $0xa8] sm:$0xf] }
 0x639   : > { %v11118_v2 = vmax.f32 %v11086_v43, 0.0  ;;  %v11087_v25 = vadd.f32 %v18294_v51, %v11048_v9  ;;  %v10841_v21 = vshll.u32 %v12282_v26, 16  ;;  %v10881_v14 = vshll.u32 %v12287_v17, 16 }
 0x63a   : > { %v11116_v56 = vmax.f32 %v11084_v41, 0.0  ;;  %v11085_v13 = vadd.f32 %v18294_v51, %v11046_v40  ;;  %v10868_v32 = vor.u32 %v10867_v34, %v10864_v33  ;;  %v10840_v60 = vrot.slane %v10838_v38, 4 }
 0x63b   : > { %11150 = vst [vmem:[%s18315_s9 + $0x10] sm:$0xff] %v11118_v2  ;;  %v11119_v31 = vmax.f32 %v11087_v25, 0.0  ;;  %v10843_v37 = vrot.slane %v10841_v21, 5  ;;  %v10910_v41 = vshrl.u32 %v12291_v47, 16  ;;  %v10913_v40 = vshll.u32 %v12291_v47, 16 }
 0x63c   : > { %11148 = vst [vmem:[%s18315_s9] sm:$0xff] %v11116_v56  ;;  %v11117_v57 = vmax.f32 %v11085_v13, 0.0  ;;  %v13606_v49 = vpop.f32.mrb[4].mxu1  ;;  %v18365_v2 = vrot.slane %v10847_v27, 5  ;;  %v10853_v25 = vrot.slane %v10851_v20, 4  ;;  %v18369_v56 = vunpack.c.l.bf16 %v10836_v50  ;;  %v12292_v21 = vld [vmem:[%s14513_s29 + $0xac] sm:$0xf] }
 0x63d   : > { %11151 = vst [vmem:[%s18315_s9 + $0x18] sm:$0xff] %v11119_v31  ;;  %v11051_v10 = vadd.f32 %v13606_v49, %v18235_v22  ;;  %v10406_v12 = vpop.f32.mrb[5].mxu1  ;;  %v10875_v22 = vshrl.u32 %v12286_v29, 16  ;;  %v10844_v26 = vor.u32 %v10843_v37, %v10840_v60  ;;  %v18373_v29 = vrot.slane %v10868_v32, 4  ;;  %v12288_v49 = vld [vmem:[%s14513_s29 + $0x9c] sm:$0xf] }
 0x63e   : > { %11149 = vst [vmem:[%s18315_s9 + $0x8] sm:$0xff] %v11117_v57  ;;  %v11049_v62 = vadd.f32 %v18244_v30, %v10406_v12  ;;  %v13607_v58 = vpop.f32.mrb[6].mxu1  ;;  %v18378_v38 = vrot.slane %v10881_v14, 5  ;;  %v10857_v57 = vshll.u32 %v12284_v7, 16  ;;  %v10915_v12 = vrot.slane %v10913_v40, 5 }
 0x63f   : > { %v11090_v11 = vadd.f32 %v18294_v51, %v11051_v10  ;;  %v11052_v3 = vadd.f32 %v13607_v58, %v18252_v45  ;;  %v10409_v36 = vpop.f32.mrb[7].mxu1  ;;  %v10812_v45 = vsel %vm14545_vm2, %v10807_v18, %v10811_v5  ;;  %v10877_v9 = vrot.slane %v10875_v22, 4 }
 0x640   : > { %v11088_v61 = vadd.f32 %v18294_v51, %v11049_v62  ;;  %v11050_v30 = vadd.f32 %v18262_v15, %v10409_v36  ;;  %v18371_v13 = vunpack.c.l.bf16 %v10812_v45  ;;  %v10912_v10 = vrot.slane %v10910_v41, 4  ;;  %v12289_v62 = vld [vmem:[%s14513_s29 + $0xa0] sm:$0xf]  ;;  %v12290_v41 = vld [vmem:[%s14513_s29 + $0xa4] sm:$0x1] }
 0x641   : > { %v11122_v55 = vmax.f32 %v11090_v11, 0.0  ;;  %v11091_v35 = vadd.f32 %v18294_v51, %v11052_v3  ;;  %v10878_v31 = vor.u32 %v10877_v9, %v18357_v19  ;;  %v10845_v18 = vrot.slane %v10844_v26, 4 }
 0x642   : > { %v11120_v8 = vmax.f32 %v11088_v61, 0.0  ;;  %v11089_v43 = vadd.f32 %v18294_v51, %v11050_v30  ;;  %v10854_v54 = vor.u32 %v10853_v25, %v18365_v2  ;;  %v10886_v32 = vshrl.u32 %v12288_v49, 16 }
 0x643   : > { %11154 = vst [vmem:[%s18315_s9 + $0x30] sm:$0xff] %v11122_v55  ;;  %v11123_v15 = vmax.f32 %v11091_v35, 0.0  ;;  %v10889_v22 = vshll.u32 %v12288_v49, 16  ;;  %v10879_v3 = vrot.slane %v10878_v31, 4  ;;  %v10919_v36 = vshll.u32 %v12292_v21, 16 }
 0x644   : > { %11152 = vst [vmem:[%s18315_s9 + $0x20] sm:$0xff] %v11120_v8  ;;  %v11121_v0 = vmax.f32 %v11089_v43, 0.0  ;;  %v13610_v4 = vpop.f32.mrb[8].mxu1  ;;  %v10916_v27 = vor.u32 %v10915_v12, %v10912_v10  ;;  %v10895_v17 = vshll.u32 %v12289_v62, 16  ;;  %v18396_v37 = vrot.slane %v10854_v54, 4 }
 0x645   : > { %11155 = vst [vmem:[%s18315_s9 + $0x38] sm:$0xff] %v11123_v15  ;;  %v11055_v24 = vadd.f32 %v13610_v4, %v18280_v48  ;;  %v10422_v52 = vpop.f32.mrb[9].mxu1  ;;  %v18398_v20 = vrot.slane %v10857_v57, 5  ;;  %v10923_v47 = vshrl.u32 %v12292_v21, 16  ;;  %v10850_v45 = vsel %vm14545_vm2, %v10845_v18, %v18365_v2  ;;  %v12293_v43 = vld [vmem:[%s14513_s29 + $0xb0] sm:$0x1] }
 0x646   : > { %11153 = vst [vmem:[%s18315_s9 + $0x28] sm:$0xff] %v11121_v0  ;;  %v11053_v33 = vadd.f32 %v18282_v42, %v10422_v52  ;;  %v13611_v34 = vpop.f32.mrb[10].mxu1  ;;  %v10891_v8 = vrot.slane %v10889_v22, 5  ;;  %v10884_v15 = vsel %vm14545_vm2, %v10879_v3, %v18378_v38  ;;  %v18411_v7 = vrot.slane %v10919_v36, 5  ;;  %v12294_v54 = vld [vmem:[%s14513_s29 + $0xb4] sm:$0xf] }
 0x647   : > { %v11094_v48 = vadd.f32 %v18294_v51, %v11055_v24  ;;  %v11056_v5 = vadd.f32 %v13611_v34, %v18284_v16  ;;  %v10425_v46 = vpop.f32.mrb[11].mxu1  ;;  %v18416_v26 = vrot.slane %v10916_v27, 4  ;;  %v18418_v2 = vrot.slane %v10895_v17, 5  ;;  %v12295_v27 = vld [vmem:[%s14513_s29 + $0xb8] sm:$0xf] }
 0x648   : > { %v11092_v59 = vadd.f32 %v18294_v51, %v11053_v33  ;;  %v11054_v42 = vadd.f32 %v18286_v53, %v10425_v46  ;;  %v10874_v53 = vsel %vm14545_vm2, %v18373_v29, %v18357_v19  ;;  %v10888_v19 = vrot.slane %v10886_v32, 4 }
 0x649   : > { %v11126_v58 = vmax.f32 %v11094_v48, 0.0  ;;  %v11095_v50 = vadd.f32 %v18294_v51, %v11056_v5  ;;  %v10925_v52 = vrot.slane %v10923_v47, 4  ;;  %v10929_v29 = vshll.u32 %v12293_v43, 16 }
 0x64a   : > { %v11124_v16 = vmax.f32 %v11092_v59, 0.0  ;;  %v11093_v11 = vadd.f32 %v18294_v51, %v11054_v42  ;;  %v10892_v31 = vor.u32 %v10891_v8, %v10888_v19  ;;  %v10905_v38 = vshll.u32 %v12290_v41, 16 }
 0x64b   : > { %11158 = vst [vmem:[%s18315_s9 + $0x50] sm:$0xff] %v11126_v58  ;;  %v11127_v60 = vmax.f32 %v11095_v50, 0.0  ;;  %v11035_v46 = vunpack.c.l.bf16 %v10874_v53  ;;  %v18426_v21 = vunpack.c.l.bf16 %v10884_v15  ;;  %v10860_v59 = vsel %vm14545_vm2, %v18396_v37, %v18398_v20 }
 0x64c   : > { %11156 = vst [vmem:[%s18315_s9 + $0x40] sm:$0xff] %v11124_v16  ;;  %v11125_v61 = vmax.f32 %v11093_v11, 0.0  ;;  %v13614_v30 = vpop.f32.mrb[12].mxu1  ;;  %v10922_v42 = vsel %vm14545_vm2, %v18416_v26, %v18411_v7  ;;  %v18440_v50 = vrot.slane %v10892_v31, 4  ;;  %v10926_v32 = vor.u32 %v10925_v52, %v18411_v7  ;;  %v12298_v16 = vld [vmem:[%s14513_s29 + $0xc4] sm:$0xf] }
 0x64d   : > { %11159 = vst [vmem:[%s18315_s9 + $0x58] sm:$0xff] %v11127_v60  ;;  %v11059_v55 = vadd.f32 %v13614_v30, %v18288_v6  ;;  %v10438_v35 = vpop.f32.mrb[13].mxu1  ;;  %v10899_v6 = vshrl.u32 %v12289_v62, 16  ;;  %v18443_v22 = vrot.slane %v10929_v29, 5  ;;  %v18449_v60 = vrot.slane %v10905_v38, 5 }
 0x64e   : > { %11157 = vst [vmem:[%s18315_s9 + $0x48] sm:$0xff] %v11125_v61  ;;  %v11057_v9 = vadd.f32 %v18296_v63, %v10438_v35  ;;  %v13615_v14 = vpop.f32.mrb[14].mxu1  ;;  %v12297_v63 = vld [vmem:[%s14513_s29 + $0xc0] sm:$0xf]  ;;  %v10934_v30 = vshrl.u32 %v12294_v54, 16  ;;  %v10937_v37 = vshll.u32 %v12294_v54, 16  ;;  %v10898_v38 = vsel %vm14545_vm2, %v18440_v50, %v18418_v2 }
 0x64f   : > { %v11098_v40 = vadd.f32 %v18294_v51, %v11059_v55  ;;  %v11060_v0 = vadd.f32 %v13615_v14, %v18329_v23  ;;  %v10441_v4 = vpop.f32.mrb[15].mxu1  ;;  %v10901_v49 = vrot.slane %v10899_v6, 4  ;;  %v10958_v48 = vshrl.u32 %v12297_v63, 16  ;;  %v12299_v29 = vld [vmem:[%s14513_s29 + $0xc8] sm:$0x1] }
 0x650   : > { %v11096_v25 = vadd.f32 %v18294_v51, %v11057_v9  ;;  %v11058_v24 = vadd.f32 %v18331_v39, %v10441_v4  ;;  %v11033_v39 = vunpack.c.l.bf16 %v10850_v45  ;;  %v10961_v18 = vshll.u32 %v12297_v63, 16 }
 0x651   : > { %v11130_v33 = vmax.f32 %v11098_v40, 0.0  ;;  %v11099_v34 = vadd.f32 %v18294_v51, %v11060_v0  ;;  %v10902_v36 = vor.u32 %v10901_v49, %v18418_v2  ;;  %v10960_v53 = vrot.slane %v10958_v48, 4  ;;  %v12296_v49 = vld [vmem:[%s14513_s29 + $0xbc] sm:$0x1] }
 0x652   : > { %v11128_v23 = vmax.f32 %v11096_v25, 0.0  ;;  %v11097_v57 = vadd.f32 %v18294_v51, %v11058_v24  ;;  %v10971_v55 = vshrl.u32 %v12298_v16, 16  ;;  %v10943_v19 = vshll.u32 %v12295_v27, 16 }
 0x653   : > { %11162 = vst [vmem:[%s18315_s9 + $0x70] sm:$0xff] %v11130_v33  ;;  %v11131_v5 = vmax.f32 %v11099_v34, 0.0  ;;  %v10947_v8 = vshrl.u32 %v12295_v27, 16  ;;  %v10927_v9 = vrot.slane %v10926_v32, 4  ;;  %v10963_v14 = vrot.slane %v10961_v18, 5 }
 0x654   : > { %11160 = vst [vmem:[%s18315_s9 + $0x60] sm:$0xff] %v11128_v23  ;;  %v11129_v10 = vmax.f32 %v11097_v57, 0.0  ;;  %v13618_v12 = vpop.f32.mrb[16].mxu1  ;;  %v10903_v7 = vrot.slane %v10902_v36, 4  ;;  %v10939_v6 = vrot.slane %v10937_v37, 5  ;;  %v11034_v0 = vunpack.c.l.bf16 %v10860_v59 }
 0x655   : > { %11163 = vst [vmem:[%s18315_s9 + $0x78] sm:$0xff] %v11131_v5  ;;  %v11063_v62 = vadd.f32 %v13618_v12, %v18334_v28  ;;  %v10454_v58 = vpop.f32.mrb[17].mxu1  ;;  %v10973_v26 = vrot.slane %v10971_v55, 4  ;;  %v11039_v24 = vunpack.c.l.bf16 %v10922_v42  ;;  %v10945_v52 = vrot.slane %v10943_v19, 5 }
 0x656   : > { %11161 = vst [vmem:[%s18315_s9 + $0x68] sm:$0xff] %v11129_v10  ;;  %v11061_v11 = vadd.f32 %v18361_v44, %v10454_v58  ;;  %v13619_v3 = vpop.f32.mrb[18].mxu1  ;;  %v10967_v44 = vshll.u32 %v12298_v16, 16  ;;  %v10949_v33 = vrot.slane %v10947_v8, 4  ;;  %v10932_v23 = vsel %vm14545_vm2, %v10927_v9, %v18443_v22 }
 0x657   : > { %v11102_v28 = vadd.f32 %v18294_v51, %v11063_v62  ;;  %v11064_v17 = vadd.f32 %v13619_v3, %v18369_v56  ;;  %v10457_v61 = vpop.f32.mrb[19].mxu1  ;;  %v10964_v57 = vor.u32 %v10963_v14, %v10960_v53  ;;  %v10977_v42 = vshll.u32 %v12299_v29, 16 }
 0x658   : > { %v11100_v20 = vadd.f32 %v18294_v51, %v11061_v11  ;;  %v11062_v47 = vadd.f32 %v18371_v13, %v10457_v61  ;;  %v10936_v13 = vrot.slane %v10934_v30, 4  ;;  %v10969_v4 = vrot.slane %v10967_v44, 5 }
 0x659   : > { %v11134_v35 = vmax.f32 %v11102_v28, 0.0  ;;  %v11103_v45 = vadd.f32 %v18294_v51, %v11064_v17  ;;  %v10950_v62 = vor.u32 %v10949_v33, %v10945_v52  ;;  %v10953_v58 = vshll.u32 %v12296_v49, 16 }
 0x65a   : > { %v11132_v43 = vmax.f32 %v11100_v20, 0.0  ;;  %v11101_v56 = vadd.f32 %v18294_v51, %v11062_v47  ;;  %v10940_v10 = vor.u32 %v10939_v6, %v10936_v13  ;;  %v10974_v59 = vor.u32 %v10973_v26, %v10969_v4 }
 0x65b   : > { %11166 = vst [vmem:[%s18315_s9 + $0x90] sm:$0xff] %v11134_v35  ;;  %v11135_v15 = vmax.f32 %v11103_v45, 0.0  ;;  %v11037_v32 = vunpack.c.l.bf16 %v10898_v38  ;;  %v10965_v22 = vrot.slane %v10964_v57, 4  ;;  %v11040_v11 = vunpack.c.l.bf16 %v10932_v23 }
 0x65c   : > { %11164 = vst [vmem:[%s18315_s9 + $0x80] sm:$0xff] %v11132_v43  ;;  %v11133_v41 = vmax.f32 %v11101_v56, 0.0  ;;  %v13622_v40 = vpop.f32.mrb[20].mxu1  ;;  %v10941_v3 = vrot.slane %v10940_v10, 4  ;;  %v10975_v27 = vrot.slane %v10974_v59, 4  ;;  %v10979_v28 = vrot.slane %v10977_v42, 5 }
 0x65d   : > { %11167 = vst [vmem:[%s18315_s9 + $0x98] sm:$0xff] %v11135_v15  ;;  %v11067_v63 = vadd.f32 %v13622_v40, %v11035_v46  ;;  %v10470_v25 = vpop.f32.mrb[21].mxu1  ;;  %v10951_v30 = vrot.slane %v10950_v62, 4  ;;  %v10955_v37 = vrot.slane %v10953_v58, 5  ;;  %v10970_v44 = vsel %vm14545_vm2, %v10965_v22, %v10969_v4 }
 0x65e   : > { %11165 = vst [vmem:[%s18315_s9 + $0x88] sm:$0xff] %v11133_v41  ;;  %v11065_v34 = vadd.f32 %v11033_v39, %v10470_v25  ;;  %v13623_v31 = vpop.f32.mrb[22].mxu1  ;;  %v10908_v39 = vsel %vm14545_vm2, %v10903_v7, %v18449_v60  ;;  %v10946_v19 = vsel %vm14545_vm2, %v10941_v3, %v10945_v52  ;;  %v10980_v56 = vsel %vm14545_vm2, %v10975_v27, %v10979_v28 }
 0x65f   : > { %v11106_v48 = vadd.f32 %v18294_v51, %v11067_v63  ;;  %v11068_v5 = vadd.f32 %v13623_v31, %v18426_v21  ;;  %v10473_v46 = vpop.f32.mrb[23].mxu1  ;;  %v11038_v53 = vunpack.c.l.bf16 %v10908_v39  ;;  %v11043_v15 = vunpack.c.l.bf16 %v10970_v44 }
 0x660   : > { %v11104_v12 = vadd.f32 %v18294_v51, %v11065_v34  ;;  %v11066_v2 = vadd.f32 %v11034_v0, %v10473_v46  ;;  %v10956_v7 = vsel %vm14545_vm2, %v10951_v30, %v10955_v37  ;;  %v11041_v41 = vunpack.c.l.bf16 %v10946_v19 }
 0x661   : > { %v11138_v18 = vmax.f32 %v11106_v48, 0.0  ;;  %v11107_v54 = vadd.f32 %v18294_v51, %v11068_v5  ;;  %v11044_v0 = vunpack.c.l.bf16 %v10980_v56  ;;  %v11042_v63 = vunpack.c.l.bf16 %v10956_v7 }
 0x662   : > { %v11136_v21 = vmax.f32 %v11104_v12, 0.0  ;;  %v11105_v50 = vadd.f32 %v18294_v51, %v11066_v2 }
 0x663   : > { %11170 = vst [vmem:[%s18315_s9 + $0xb0] sm:$0xff] %v11138_v18  ;;  %v11139_v16 = vmax.f32 %v11107_v54, 0.0 }
 0x664   : > { %11168 = vst [vmem:[%s18315_s9 + $0xa0] sm:$0xff] %v11136_v21  ;;  %v11137_v36 = vmax.f32 %v11105_v50, 0.0  ;;  %v13626_v60 = vpop.f32.mrb[24].mxu1 }
 0x665   : > { %11171 = vst [vmem:[%s18315_s9 + $0xb8] sm:$0xff] %v11139_v16  ;;  %v11071_v17 = vadd.f32 %v13626_v60, %v11039_v24  ;;  %v10486_v61 = vpop.f32.mrb[25].mxu1 }
 0x666   : > { %11169 = vst [vmem:[%s18315_s9 + $0xa8] sm:$0xff] %v11137_v36  ;;  %v11069_v20 = vadd.f32 %v11037_v32, %v10486_v61  ;;  %v13627_v47 = vpop.f32.mrb[26].mxu1 }
 0x667   : > { %v11110_v55 = vadd.f32 %v18294_v51, %v11071_v17  ;;  %v11072_v35 = vadd.f32 %v13627_v47, %v11040_v11  ;;  %v10489_v45 = vpop.f32.mrb[27].mxu1 }
 0x668   : > { %v11108_v8 = vadd.f32 %v18294_v51, %v11069_v20  ;;  %v11070_v43 = vadd.f32 %v11038_v53, %v10489_v45 }
 0x669   : > { %v11142_v9 = vmax.f32 %v11110_v55, 0.0  ;;  %v11111_v14 = vadd.f32 %v18294_v51, %v11072_v35 }
 0x66a   : > { %v11140_v13 = vmax.f32 %v11108_v8, 0.0  ;;  %v11109_v6 = vadd.f32 %v18294_v51, %v11070_v43 }
 0x66b   : > { %11174 = vst [vmem:[%s18315_s9 + $0xd0] sm:$0xff] %v11142_v9  ;;  %v11143_v40 = vmax.f32 %v11111_v14, 0.0 }
 0x66c   : > { %11172 = vst [vmem:[%s18315_s9 + $0xc0] sm:$0xff] %v11140_v13  ;;  %v11141_v4 = vmax.f32 %v11109_v6, 0.0  ;;  %v13630_v26 = vpop.f32.mrb[28].mxu1 }
 0x66d   : > { %11175 = vst [vmem:[%s18315_s9 + $0xd8] sm:$0xff] %v11143_v40  ;;  %v11075_v25 = vadd.f32 %v13630_v26, %v11043_v15  ;;  %v10502_v24 = vpop.f32.mrb[29].mxu1 }
 0x66e   : > { %11173 = vst [vmem:[%s18315_s9 + $0xc8] sm:$0xff] %v11141_v4  ;;  %v11073_v1 = vadd.f32 %v11041_v41, %v10502_v24  ;;  %v13631_v52 = vpop.f32.mrb[30].mxu1 }
 0x66f   : > { %v11114_v29 = vadd.f32 %v18294_v51, %v11075_v25  ;;  %v11076_v33 = vadd.f32 %v13631_v52, %v11044_v0  ;;  %v10505_v34 = vpop.f32.mrb[31].mxu1 }
 0x670   : > { %v11112_v31 = vadd.f32 %v18294_v51, %v11073_v1  ;;  %v11074_v38 = vadd.f32 %v11042_v63, %v10505_v34 }
 0x671   : > { %v11146_v23 = vmax.f32 %v11114_v29, 0.0  ;;  %v11115_v57 = vadd.f32 %v18294_v51, %v11076_v33 }
 0x672   : > { %v11144_v49 = vmax.f32 %v11112_v31, 0.0  ;;  %v11113_v48 = vadd.f32 %v18294_v51, %v11074_v38 }
 0x673   : > { %11178 = vst [vmem:[%s18315_s9 + $0xf0] sm:$0xff] %v11146_v23  ;;  %v11147_v5 = vmax.f32 %v11115_v57, 0.0 }
 0x674   : > { %11176 = vst [vmem:[%s18315_s9 + $0xe0] sm:$0xff] %v11144_v49  ;;  %v11145_v46 = vmax.f32 %v11113_v48, 0.0 }
 0x675   : > { %11179 = vst [vmem:[%s18315_s9 + $0xf8] sm:$0xff] %v11147_v5 }
 0x676   : > { %11177 = vst [vmem:[%s18315_s9 + $0xe8] sm:$0xff] %v11145_v46 }
 0x677 PF: > { %s15_s18 = sadd.s32 1, %s14457_s18  }
 0x678   : > { %p12_p4 = scmp.ge.s32.totalorder %s15_s18, 4  }
 0x67a   :  { %14 = sbr.rel (!%p12_p4) target bundleno = 1 (0x1), region = 91 }

</bundles_post_ra>
